<compile_context>
chip_gen: v6e
topology: v6e:2x2x1
jax: 0.10.0
libtpu: 0.0.40
codegen_flags: <defaults>
</compile_context>

<pallas_src>
import functools

import jax
import jax.numpy as jnp
import numpy as np
from jax import lax
from jax.experimental import pallas as pl
from jax.experimental.pallas import tpu as pltpu


# ----------------------------------------------------------------------------
# Model geometry (mirrors the PyTorch helper)
# ----------------------------------------------------------------------------
def calculate_layer_sides(channels, initial_layer_side, kernel=3):
    layer_sides = [initial_layer_side]
    for _ in channels:
        layer_sides.append(layer_sides[-1] - kernel + 1)
    last_layer_side = layer_sides[-1]
    last_layer_channels = channels[-1]
    toinner_dim = last_layer_side ** 2 * last_layer_channels
    return layer_sides, toinner_dim, last_layer_channels, last_layer_side


def _round_up(n, m):
    return ((n + m - 1) // m) * m


# ----------------------------------------------------------------------------
# Parameter init (PyTorch-shaped weights)
# ----------------------------------------------------------------------------
def init_params(key, inner_dim, topological_dim, channels, initial_layer_side, kernel):
    _, toinner_dim, last_ch, last_side = calculate_layer_sides(
        channels, initial_layer_side, kernel)
    n_keys = 4 * len(channels) + 6
    keys = list(jax.random.split(key, n_keys))
    nk = iter(keys)
    params = {"enc": [], "dec": []}

    # encoder convs: Conv2d(prev_ch -> cur_ch), weight (Cout, Cin, k, k)
    prev = 1
    for ch in channels:
        fan_in = prev * kernel * kernel
        w = jax.random.normal(next(nk), (ch, prev, kernel, kernel),
                              jnp.float32) / np.sqrt(fan_in)
        b = 0.01 * jax.random.normal(next(nk), (ch,), jnp.float32)
        params["enc"].append((w, b))
        prev = ch

    # inner linear: Linear(toinner_dim -> inner_dim), stored (K, N)
    params["lin_w"] = jax.random.normal(next(nk), (toinner_dim, inner_dim),
                                        jnp.float32) / np.sqrt(toinner_dim)
    params["lin_b"] = 0.01 * jax.random.normal(next(nk), (inner_dim,), jnp.float32)

    # topological prototypes: (inner_dim, topological_dim)
    params["topo_w"] = jax.random.normal(next(nk), (inner_dim, topological_dim),
                                         jnp.float32)

    # decoder linear: Linear(inner_dim -> toinner_dim), stored (K, N)
    params["dec_lin_w"] = jax.random.normal(next(nk), (inner_dim, toinner_dim),
                                            jnp.float32) / np.sqrt(inner_dim)
    params["dec_lin_b"] = 0.01 * jax.random.normal(next(nk), (toinner_dim,),
                                                   jnp.float32)

    # decoder deconvs (reversed pairs): ConvTranspose2d(cur_ch -> prev_ch),
    # PyTorch weight layout (Cin, Cout, k, k)
    pairs = list(zip(channels, (1,) + tuple(channels[:-1])))[::-1]
    for cur_ch, prev_ch in pairs:
        fan_in = cur_ch * kernel * kernel
        w = jax.random.normal(next(nk), (cur_ch, prev_ch, kernel, kernel),
                              jnp.float32) / np.sqrt(fan_in)
        b = 0.01 * jax.random.normal(next(nk), (prev_ch,), jnp.float32)
        params["dec"].append((w, b))

    meta = dict(toinner_dim=toinner_dim, last_ch=last_ch, last_side=last_side)
    return params, meta


# ----------------------------------------------------------------------------
# One-time weight packing: conv / deconv -> dense unrolled-conv (Toeplitz)
# matrices, decoder-linear fold, 128-lane padding.  Pure host-side, done once.
# ----------------------------------------------------------------------------
def conv_matrix(w, h_in, w_in):
    """w: (Cout, Cin, k, k) numpy.  Returns (Cin*H*W, Cout*OH*OW) mapping the
    NCHW-flat input to the NCHW-flat output of a stride-1 VALID Conv2d
    (cross-correlation, PyTorch semantics)."""
    cout, cin, k, _ = w.shape
    oh_n, ow_n = h_in - k + 1, w_in - k + 1
    t = np.zeros((cin, h_in, w_in, cout, oh_n, ow_n), np.float32)
    for kh in range(k):
        for kw in range(k):
            for oh in range(oh_n):
                for ow in range(ow_n):
                    t[:, oh + kh, ow + kw, :, oh, ow] = w[:, :, kh, kw].T
    return t.reshape(cin * h_in * w_in, cout * oh_n * ow_n)


def conv_transpose_matrix(w, h_in, w_in):
    """w: (Cin, Cout, k, k) numpy (PyTorch ConvTranspose2d layout).  Returns
    (Cin*H*W, Cout*OH*OW) with OH = H + k - 1 (stride 1, no padding)."""
    cin, cout, k, _ = w.shape
    oh_n, ow_n = h_in + k - 1, w_in + k - 1
    t = np.zeros((cin, h_in, w_in, cout, oh_n, ow_n), np.float32)
    for kh in range(k):
        for kw in range(k):
            for ih in range(h_in):
                for iw in range(w_in):
                    t[:, ih, iw, :, ih + kh, iw + kw] = w[:, :, kh, kw]
    return t.reshape(cin * h_in * w_in, cout * oh_n * ow_n)


def pack_params(params, channels, initial_layer_side, kernel):
    """Returns (weights_list, config_dict).  weights_list is a flat list of
    jnp arrays (kernel operand order); config_dict holds static python ints."""
    sides, toinner_dim, _, _ = calculate_layer_sides(channels, initial_layer_side, kernel)
    chans = (1,) + tuple(channels)
    LANE = 128

    weights = []

    # --- encoder convs: padded Toeplitz (bf16) + padded bias (f32) ---
    in_dim = chans[0] * sides[0] ** 2
    x_pad = _round_up(in_dim, LANE)
    prev_pad, prev_dim = x_pad, in_dim
    for li, ((w, b), s_in) in enumerate(zip(params["enc"], sides[:-1])):
        s_out = s_in - kernel + 1
        out_dim = channels[li] * s_out * s_out
        out_pad = _round_up(out_dim, LANE)
        t = np.zeros((prev_pad, out_pad), np.float32)
        t[:prev_dim, :out_dim] = conv_matrix(np.asarray(w), s_in, s_in)
        bias = np.zeros((1, out_pad), np.float32)
        bias[0, :out_dim] = np.repeat(np.asarray(b), s_out * s_out)   # (c,h,w) order
        weights += [jnp.asarray(t, jnp.bfloat16), jnp.asarray(bias, jnp.float32)]
        prev_pad, prev_dim = out_pad, out_dim

    inner_dim = int(params["lin_w"].shape[1])
    topo_dim = int(params["topo_w"].shape[1])
    z_pad = _round_up(inner_dim, LANE)
    zt_pad = _round_up(topo_dim, LANE)

    # --- inner linear (bf16 operands; padded lanes are zero -> relu(0)=0) ---
    lw = np.zeros((prev_pad, z_pad), np.float32)
    lw[:toinner_dim, :inner_dim] = np.asarray(params["lin_w"])
    lb = np.zeros((1, z_pad), np.float32)
    lb[0, :inner_dim] = np.asarray(params["lin_b"])
    weights += [jnp.asarray(lw, jnp.bfloat16), jnp.asarray(lb, jnp.float32)]

    # --- topological prototypes (f32) + hoisted ||w||^2 ---
    tw = np.zeros((z_pad, zt_pad), np.float32)
    tw[:inner_dim, :topo_dim] = np.asarray(params["topo_w"])
    w2 = np.zeros((1, zt_pad), np.float32)
    w2[0, :topo_dim] = np.sum(np.asarray(params["topo_w"]) ** 2, axis=0)
    weights += [jnp.asarray(tw, jnp.float32), jnp.asarray(w2, jnp.float32)]

    # --- decoder: fold the linear into the first deconv Toeplitz (f32 fold) ---
    dec_sides = sides[::-1]                    # input side of each deconv
    (w0, b0) = params["dec"][0]
    s_in0 = dec_sides[0]
    s_out0 = s_in0 + kernel - 1
    t0 = conv_transpose_matrix(np.asarray(w0), s_in0, s_in0)   # (toinner, dec0_out)
    dec0_out = t0.shape[1]
    fold_w_raw = np.asarray(params["dec_lin_w"], np.float32) @ t0
    fold_b_raw = (np.asarray(params["dec_lin_b"], np.float32) @ t0
                  + np.repeat(np.asarray(b0), s_out0 * s_out0))
    dec0_pad = _round_up(dec0_out, LANE)
    fold_w = np.zeros((z_pad, dec0_pad), np.float32)
    fold_w[:inner_dim, :dec0_out] = fold_w_raw
    fold_b = np.zeros((1, dec0_pad), np.float32)
    fold_b[0, :dec0_out] = fold_b_raw
    weights += [jnp.asarray(fold_w, jnp.bfloat16), jnp.asarray(fold_b, jnp.float32)]

    # --- remaining deconvs ---
    prev_pad, prev_dim = dec0_pad, dec0_out
    for (w, b), s_in in zip(params["dec"][1:], dec_sides[1:]):
        s_out = s_in + kernel - 1
        cout = w.shape[1]
        out_dim = cout * s_out * s_out
        out_pad = _round_up(out_dim, LANE)
        t = np.zeros((prev_pad, out_pad), np.float32)
        t[:prev_dim, :out_dim] = conv_transpose_matrix(np.asarray(w), s_in, s_in)
        bias = np.zeros((1, out_pad), np.float32)
        bias[0, :out_dim] = np.repeat(np.asarray(b), s_out * s_out)
        weights += [jnp.asarray(t, jnp.bfloat16), jnp.asarray(bias, jnp.float32)]
        prev_pad, prev_dim = out_pad, out_dim

    config = dict(
        x_pad=x_pad, z_pad=z_pad, zt_pad=zt_pad, y_pad=prev_pad,
        inner_dim=inner_dim, topo_dim=topo_dim, y_dim=prev_dim,
        out_side=initial_layer_side,
        n_enc=len(params["enc"]), n_extra_dec=len(params["dec"]) - 1,
    )
    return weights, config


# ----------------------------------------------------------------------------
# The fused Pallas kernel (batched grid; weights VMEM-resident)
# ----------------------------------------------------------------------------
def _fused_forward_kernel(*refs, n_enc, n_extra_dec, z_width, zt_width):
    """refs = [x_tile,
               (T, bias) * n_enc,                       # encoder convs
               lin_w, lin_b, topo_w, w2,
               fold_w, fold_b,                          # decoder linear ∘ deconv0
               (T, bias) * n_extra_dec,                 # remaining deconvs
               out_slab]"""
    it = iter(refs)
    x_ref = next(it)
    enc = [(next(it), next(it)) for _ in range(n_enc)]
    lw_ref = next(it)
    lb_ref = next(it)
    tw_ref = next(it)
    w2_ref = next(it)
    fw_ref = next(it)
    fb_ref = next(it)
    dec = [(next(it), next(it)) for _ in range(n_extra_dec)]
    out_ref = next(it)

    f32, bf16 = jnp.float32, jnp.bfloat16

    # encoder: [Conv2d + ReLU] * n_enc as dense matmuls (bf16 MXU, f32 epilogue)
    h = x_ref[...]
    for t_ref, b_ref in enc:
        acc = jnp.dot(h.astype(bf16), t_ref[...], preferred_element_type=f32)
        h = jnp.maximum(acc + b_ref[...], 0.0)

    # inner linear + ReLU (bf16 operands, f32 accumulation); padded lanes stay 0
    z = jnp.maximum(
        jnp.dot(h.astype(bf16), lw_ref[...], preferred_element_type=f32)
        + lb_ref[...], 0.0)

    # topological layer
    # TODO(synk): external class `TopologicalMap` is not defined in the source;
    # modeled here as a squared-Euclidean-distance map to `topological_dim`
    # prototype vectors (SOM-style semantics).  ||w||^2 is precomputed host-side.
    z2 = jnp.sum(z * z, axis=1, keepdims=True)
    cross = jnp.dot(z, tw_ref[...], preferred_element_type=f32)
    zt = jnp.maximum(z2 - 2.0 * cross + w2_ref[...], 0.0)   # clamp cancellation

    # decoder: folded (Linear ∘ ConvTranspose2d_0) + ReLU, then remaining deconvs
    d = jnp.maximum(
        jnp.dot(z.astype(bf16), fw_ref[...], preferred_element_type=f32)
        + fb_ref[...], 0.0)
    for t_ref, b_ref in dec:
        acc = jnp.dot(d.astype(bf16), t_ref[...], preferred_element_type=f32)
        d = jnp.maximum(acc + b_ref[...], 0.0)

    # single lane-dense output slab, 128-aligned unmasked stores
    out_ref[:, 0:z_width] = z
    out_ref[:, z_width:z_width + zt_width] = zt
    out_ref[:, z_width + zt_width:] = d


def fused_forward(weights, x, *, config, tile_m=128):
    """Mirrors TopologicalAutoencoder.forward; returns (z, zt, y)."""
    cfg = config
    B = x.shape[0]
    x_flat = x.reshape(B, -1).astype(jnp.float32)      # NCHW flatten (c, h, w)
    if x_flat.shape[1] != cfg["x_pad"]:
        x_flat = jnp.pad(x_flat, ((0, 0), (0, cfg["x_pad"] - x_flat.shape[1])))

    # batch tiling (pad B to a multiple of the tile)
    tile_m = max(8, min(tile_m, _round_up(B, 8)))
    b_pad = _round_up(B, tile_m)
    if b_pad != B:
        x_flat = jnp.pad(x_flat, ((0, b_pad - B), (0, 0)))
    grid = (b_pad // tile_m,)

    out_w = cfg["z_pad"] + cfg["zt_pad"] + cfg["y_pad"]

    kernel = functools.partial(
        _fused_forward_kernel,
        n_enc=cfg["n_enc"], n_extra_dec=cfg["n_extra_dec"],
        z_width=cfg["z_pad"], zt_width=cfg["zt_pad"])

    const_map = lambda i: (0, 0)                       # weights: resident across steps
    in_specs = [pl.BlockSpec((tile_m, cfg["x_pad"]), lambda i: (i, 0))]
    in_specs += [pl.BlockSpec(w.shape, const_map) for w in weights]

    out = pl.pallas_call(
        kernel,
        out_shape=jax.ShapeDtypeStruct((b_pad, out_w), jnp.float32),
        grid_spec=pltpu.PrefetchScalarGridSpec(
            num_scalar_prefetch=0,
            grid=grid,
            in_specs=in_specs,
            out_specs=pl.BlockSpec((tile_m, out_w), lambda i: (i, 0))),
        compiler_params=pltpu.CompilerParams(
            dimension_semantics=("parallel",),          # both TCs on v7x
            vmem_limit_bytes=32 * 1024 * 1024),
    )(x_flat, *weights)

    z = out[:B, :cfg["inner_dim"]]
    zt = out[:B, cfg["z_pad"]:cfg["z_pad"] + cfg["topo_dim"]]
    y0 = cfg["z_pad"] + cfg["zt_pad"]
    y = out[:B, y0:y0 + cfg["y_dim"]].reshape(B, 1, cfg["out_side"], cfg["out_side"])
    return z, zt, y


# ----------------------------------------------------------------------------
# Pure-JAX reference (independent path: lax.conv, f32 HIGHEST precision)
# ----------------------------------------------------------------------------
def ref_forward(params, x, meta):
    hp = lax.Precision.HIGHEST
    h = x
    for w, b in params["enc"]:
        h = lax.conv_general_dilated(
            h, w, window_strides=(1, 1), padding="VALID",
            dimension_numbers=("NCHW", "OIHW", "NCHW"), precision=hp)
        h = jnp.maximum(h + b[None, :, None, None], 0.0)
    B = x.shape[0]
    flat = h.reshape(B, -1)
    z = jnp.maximum(jnp.dot(flat, params["lin_w"], precision=hp)
                    + params["lin_b"][None, :], 0.0)
    diff = z[:, :, None] - params["topo_w"][None, :, :]
    zt = jnp.sum(diff * diff, axis=1)
    d = jnp.dot(z, params["dec_lin_w"], precision=hp) + params["dec_lin_b"][None, :]
    d = d.reshape(B, meta["last_ch"], meta["last_side"], meta["last_side"])
    for w, b in params["dec"]:
        k = w.shape[-1]
        w_conv = jnp.flip(w, axis=(2, 3)).transpose(1, 0, 2, 3)
        d = lax.conv_general_dilated(
            d, w_conv, window_strides=(1, 1),
            padding=[(k - 1, k - 1), (k - 1, k - 1)],
            dimension_numbers=("NCHW", "OIHW", "NCHW"), precision=hp)
        d = jnp.maximum(d + b[None, :, None, None], 0.0)
    return z, zt, d


# ----------------------------------------------------------------------------
# Main
# ----------------------------------------------------------------------------
if __name__ == "__main__":
    # Configuration consistent with the module:
    # channels=(4, 8), side 16, kernel 3 -> sides 16->14->12,
    # toinner_dim = 12*12*8 = 1152, inner_dim = 2, topological_dim = 16.
    # Batch raised to 256 per the perf review (amortizes weight DMA, fills the
    # MXU, and gives v7x's two TensorCores one grid step each at tile_m=128).
    BATCH = 256
    INNER_DIM = 2
    TOPO_DIM = 16
    CHANNELS = (4, 8)
    SIDE = 16
    KERNEL = 3

    key = jax.random.PRNGKey(0)
    k_param, k_x = jax.random.split(key)
    params, meta = init_params(k_param, INNER_DIM, TOPO_DIM, CHANNELS, SIDE, KERNEL)
    x = jax.random.normal(k_x, (BATCH, 1, SIDE, SIDE), jnp.float32)

    # one-time host-side packing (Toeplitz matrices, decoder-linear fold, padding)
    weights, config = pack_params(params, CHANNELS, SIDE, KERNEL)

    fwd = jax.jit(functools.partial(fused_forward, config=config, tile_m=128))
    z, zt, y = fwd(weights, x)
    jax.block_until_ready((z, zt, y))

    # shape checks
    assert z.shape == (BATCH, INNER_DIM)
    assert zt.shape == (BATCH, TOPO_DIM)
    assert y.shape == (BATCH, 1, SIDE, SIDE)

    # numerical check vs. an independent lax.conv / f32-HIGHEST reference
    # (tolerance accommodates bf16 MXU operands throughout the matmul chain)
    z_r, zt_r, y_r = ref_forward(params, x, meta)
    np.testing.assert_allclose(np.asarray(z), np.asarray(z_r), rtol=5e-2, atol=5e-2)
    np.testing.assert_allclose(np.asarray(zt), np.asarray(zt_r), rtol=5e-2, atol=5e-2)
    np.testing.assert_allclose(np.asarray(y), np.asarray(y_r), rtol=5e-2, atol=5e-2)

    print("KERNEL_OK")
</pallas_src>

<mosaic_0001>
module attributes {stable_mosaic.version = 11 : i64} {
  func.func @_fused_forward_kernel(%arg0: i32, %arg1: memref<128x256xf32, #tpu.memory_space<vmem>>, %arg2: memref<256x896xbf16, #tpu.memory_space<vmem>>, %arg3: memref<1x896xf32, #tpu.memory_space<vmem>>, %arg4: memref<896x1152xbf16, #tpu.memory_space<vmem>>, %arg5: memref<1x1152xf32, #tpu.memory_space<vmem>>, %arg6: memref<1152x128xbf16, #tpu.memory_space<vmem>>, %arg7: memref<1x128xf32, #tpu.memory_space<vmem>>, %arg8: memref<128x128xf32, #tpu.memory_space<vmem>>, %arg9: memref<1x128xf32, #tpu.memory_space<vmem>>, %arg10: memref<128x896xbf16, #tpu.memory_space<vmem>>, %arg11: memref<1x896xf32, #tpu.memory_space<vmem>>, %arg12: memref<896x256xbf16, #tpu.memory_space<vmem>>, %arg13: memref<1x256xf32, #tpu.memory_space<vmem>>, %arg14: memref<128x512xf32, #tpu.memory_space<vmem>>) attributes {dimension_semantics = [#tpu.dimension_semantics<parallel>], iteration_bounds = array<i64: 2>, scalar_prefetch = 0 : i64, scratch_operands = 0 : i64, tpu.core_type = #tpu.core_type<tc>, window_params = [{transform_indices = @transform_0, window_bounds = array<i64: 128, 256>}, {pipeline_mode = #tpu.pipeline_mode<synchronous>, transform_indices = @transform_1, window_bounds = array<i64: 256, 896>}, {pipeline_mode = #tpu.pipeline_mode<synchronous>, transform_indices = @transform_2, window_bounds = array<i64: 1, 896>}, {pipeline_mode = #tpu.pipeline_mode<synchronous>, transform_indices = @transform_3, window_bounds = array<i64: 896, 1152>}, {pipeline_mode = #tpu.pipeline_mode<synchronous>, transform_indices = @transform_4, window_bounds = array<i64: 1, 1152>}, {pipeline_mode = #tpu.pipeline_mode<synchronous>, transform_indices = @transform_5, window_bounds = array<i64: 1152, 128>}, {pipeline_mode = #tpu.pipeline_mode<synchronous>, transform_indices = @transform_6, window_bounds = array<i64: 1, 128>}, {pipeline_mode = #tpu.pipeline_mode<synchronous>, transform_indices = @transform_7, window_bounds = array<i64: 128, 128>}, {pipeline_mode = #tpu.pipeline_mode<synchronous>, transform_indices = @transform_8, window_bounds = array<i64: 1, 128>}, {pipeline_mode = #tpu.pipeline_mode<synchronous>, transform_indices = @transform_9, window_bounds = array<i64: 128, 896>}, {pipeline_mode = #tpu.pipeline_mode<synchronous>, transform_indices = @transform_10, window_bounds = array<i64: 1, 896>}, {pipeline_mode = #tpu.pipeline_mode<synchronous>, transform_indices = @transform_11, window_bounds = array<i64: 896, 256>}, {pipeline_mode = #tpu.pipeline_mode<synchronous>, transform_indices = @transform_12, window_bounds = array<i64: 1, 256>}, {transform_indices = @transform_13, window_bounds = array<i64: 128, 512>}]} {
    %c0 = arith.constant 0 : index
    %c0_0 = arith.constant 0 : index
    %0 = vector.load %arg1[%c0, %c0_0] : memref<128x256xf32, #tpu.memory_space<vmem>>, vector<128x256xf32>
    %1 = arith.truncf %0 : vector<128x256xf32> to vector<128x256xbf16>
    %c0_1 = arith.constant 0 : index
    %c0_2 = arith.constant 0 : index
    %2 = vector.load %arg2[%c0_1, %c0_2] : memref<256x896xbf16, #tpu.memory_space<vmem>>, vector<256x896xbf16>
    %cst = arith.constant dense<0.000000e+00> : vector<128x896xf32>
    %3 = tpu.matmul %1, %2, %cst {dimension_numbers = #tpu.dot_dimension_numbers<[1], [0], [0], [1], [0, 0, 1, 1], [], []>} : vector<128x256xbf16>, vector<256x896xbf16>, vector<128x896xf32> -> vector<128x896xf32>
    %c0_3 = arith.constant 0 : index
    %c0_4 = arith.constant 0 : index
    %4 = vector.load %arg3[%c0_3, %c0_4] : memref<1x896xf32, #tpu.memory_space<vmem>>, vector<1x896xf32>
    %5 = vector.broadcast %4 : vector<1x896xf32> to vector<128x896xf32>
    %6 = arith.addf %3, %5 : vector<128x896xf32>
    %cst_5 = arith.constant 0.000000e+00 : f32
    %7 = vector.broadcast %cst_5 : f32 to vector<128x896xf32>
    %8 = arith.maximumf %6, %7 : vector<128x896xf32>
    %9 = arith.truncf %8 : vector<128x896xf32> to vector<128x896xbf16>
    %c0_6 = arith.constant 0 : index
    %c0_7 = arith.constant 0 : index
    %10 = vector.load %arg4[%c0_6, %c0_7] : memref<896x1152xbf16, #tpu.memory_space<vmem>>, vector<896x1152xbf16>
    %cst_8 = arith.constant dense<0.000000e+00> : vector<128x1152xf32>
    %11 = tpu.matmul %9, %10, %cst_8 {dimension_numbers = #tpu.dot_dimension_numbers<[1], [0], [0], [1], [0, 0, 1, 1], [], []>} : vector<128x896xbf16>, vector<896x1152xbf16>, vector<128x1152xf32> -> vector<128x1152xf32>
    %c0_9 = arith.constant 0 : index
    %c0_10 = arith.constant 0 : index
    %12 = vector.load %arg5[%c0_9, %c0_10] : memref<1x1152xf32, #tpu.memory_space<vmem>>, vector<1x1152xf32>
    %13 = vector.broadcast %12 : vector<1x1152xf32> to vector<128x1152xf32>
    %14 = arith.addf %11, %13 : vector<128x1152xf32>
    %cst_11 = arith.constant 0.000000e+00 : f32
    %15 = vector.broadcast %cst_11 : f32 to vector<128x1152xf32>
    %16 = arith.maximumf %14, %15 : vector<128x1152xf32>
    %17 = arith.truncf %16 : vector<128x1152xf32> to vector<128x1152xbf16>
    %c0_12 = arith.constant 0 : index
    %c0_13 = arith.constant 0 : index
    %18 = vector.load %arg6[%c0_12, %c0_13] : memref<1152x128xbf16, #tpu.memory_space<vmem>>, vector<1152x128xbf16>
    %cst_14 = arith.constant dense<0.000000e+00> : vector<128x128xf32>
    %19 = tpu.matmul %17, %18, %cst_14 {dimension_numbers = #tpu.dot_dimension_numbers<[1], [0], [0], [1], [0, 0, 1, 1], [], []>} : vector<128x1152xbf16>, vector<1152x128xbf16>, vector<128x128xf32> -> vector<128x128xf32>
    %c0_15 = arith.constant 0 : index
    %c0_16 = arith.constant 0 : index
    %20 = vector.load %arg7[%c0_15, %c0_16] : memref<1x128xf32, #tpu.memory_space<vmem>>, vector<1x128xf32>
    %21 = vector.broadcast %20 : vector<1x128xf32> to vector<128x128xf32>
    %22 = arith.addf %19, %21 : vector<128x128xf32>
    %cst_17 = arith.constant 0.000000e+00 : f32
    %23 = vector.broadcast %cst_17 : f32 to vector<128x128xf32>
    %24 = arith.maximumf %22, %23 : vector<128x128xf32>
    %25 = arith.mulf %24, %24 : vector<128x128xf32>
    %cst_18 = arith.constant dense<0.000000e+00> : vector<128xf32>
    %26 = vector.multi_reduction <add>, %25, %cst_18 [1] : vector<128x128xf32> to vector<128xf32>
    %27 = vector.shape_cast %26 : vector<128xf32> to vector<128x1xf32>
    %c0_19 = arith.constant 0 : index
    %c0_20 = arith.constant 0 : index
    %28 = vector.load %arg8[%c0_19, %c0_20] : memref<128x128xf32, #tpu.memory_space<vmem>>, vector<128x128xf32>
    %cst_21 = arith.constant dense<0.000000e+00> : vector<128x128xf32>
    %29 = tpu.matmul %24, %28, %cst_21 {dimension_numbers = #tpu.dot_dimension_numbers<[1], [0], [0], [1], [0, 0, 1, 1], [], []>} : vector<128x128xf32>, vector<128x128xf32>, vector<128x128xf32> -> vector<128x128xf32>
    %cst_22 = arith.constant 2.000000e+00 : f32
    %30 = vector.broadcast %cst_22 : f32 to vector<128x128xf32>
    %31 = arith.mulf %30, %29 : vector<128x128xf32>
    %32 = vector.broadcast %27 : vector<128x1xf32> to vector<128x128xf32>
    %33 = arith.subf %32, %31 : vector<128x128xf32>
    %c0_23 = arith.constant 0 : index
    %c0_24 = arith.constant 0 : index
    %34 = vector.load %arg9[%c0_23, %c0_24] : memref<1x128xf32, #tpu.memory_space<vmem>>, vector<1x128xf32>
    %35 = vector.broadcast %34 : vector<1x128xf32> to vector<128x128xf32>
    %36 = arith.addf %33, %35 : vector<128x128xf32>
    %cst_25 = arith.constant 0.000000e+00 : f32
    %37 = vector.broadcast %cst_25 : f32 to vector<128x128xf32>
    %38 = arith.maximumf %36, %37 : vector<128x128xf32>
    %39 = arith.truncf %24 : vector<128x128xf32> to vector<128x128xbf16>
    %c0_26 = arith.constant 0 : index
    %c0_27 = arith.constant 0 : index
    %40 = vector.load %arg10[%c0_26, %c0_27] : memref<128x896xbf16, #tpu.memory_space<vmem>>, vector<128x896xbf16>
    %cst_28 = arith.constant dense<0.000000e+00> : vector<128x896xf32>
    %41 = tpu.matmul %39, %40, %cst_28 {dimension_numbers = #tpu.dot_dimension_numbers<[1], [0], [0], [1], [0, 0, 1, 1], [], []>} : vector<128x128xbf16>, vector<128x896xbf16>, vector<128x896xf32> -> vector<128x896xf32>
    %c0_29 = arith.constant 0 : index
    %c0_30 = arith.constant 0 : index
    %42 = vector.load %arg11[%c0_29, %c0_30] : memref<1x896xf32, #tpu.memory_space<vmem>>, vector<1x896xf32>
    %43 = vector.broadcast %42 : vector<1x896xf32> to vector<128x896xf32>
    %44 = arith.addf %41, %43 : vector<128x896xf32>
    %cst_31 = arith.constant 0.000000e+00 : f32
    %45 = vector.broadcast %cst_31 : f32 to vector<128x896xf32>
    %46 = arith.maximumf %44, %45 : vector<128x896xf32>
    %47 = arith.truncf %46 : vector<128x896xf32> to vector<128x896xbf16>
    %c0_32 = arith.constant 0 : index
    %c0_33 = arith.constant 0 : index
    %48 = vector.load %arg12[%c0_32, %c0_33] : memref<896x256xbf16, #tpu.memory_space<vmem>>, vector<896x256xbf16>
    %cst_34 = arith.constant dense<0.000000e+00> : vector<128x256xf32>
    %49 = tpu.matmul %47, %48, %cst_34 {dimension_numbers = #tpu.dot_dimension_numbers<[1], [0], [0], [1], [0, 0, 1, 1], [], []>} : vector<128x896xbf16>, vector<896x256xbf16>, vector<128x256xf32> -> vector<128x256xf32>
    %c0_35 = arith.constant 0 : index
    %c0_36 = arith.constant 0 : index
    %50 = vector.load %arg13[%c0_35, %c0_36] : memref<1x256xf32, #tpu.memory_space<vmem>>, vector<1x256xf32>
    %51 = vector.broadcast %50 : vector<1x256xf32> to vector<128x256xf32>
    %52 = arith.addf %49, %51 : vector<128x256xf32>
    %cst_37 = arith.constant 0.000000e+00 : f32
    %53 = vector.broadcast %cst_37 : f32 to vector<128x256xf32>
    %54 = arith.maximumf %52, %53 : vector<128x256xf32>
    %c0_38 = arith.constant 0 : index
    %c0_39 = arith.constant 0 : index
    %55 = vector.load %arg14[%c0_38, %c0_39] : memref<128x512xf32, #tpu.memory_space<vmem>>, vector<128x128xf32>
    tpu.vector_store %arg14[%c0_38, %c0_39], %24 {strides = array<i32>} : memref<128x512xf32, #tpu.memory_space<vmem>>, vector<128x128xf32>,
    %c0_40 = arith.constant 0 : index
    %c128 = arith.constant 128 : index
    %56 = vector.load %arg14[%c0_40, %c128] : memref<128x512xf32, #tpu.memory_space<vmem>>, vector<128x128xf32>
    tpu.vector_store %arg14[%c0_40, %c128], %38 {strides = array<i32>} : memref<128x512xf32, #tpu.memory_space<vmem>>, vector<128x128xf32>,
    %c0_41 = arith.constant 0 : index
    %c256 = arith.constant 256 : index
    %57 = vector.load %arg14[%c0_41, %c256] : memref<128x512xf32, #tpu.memory_space<vmem>>, vector<128x256xf32>
    tpu.vector_store %arg14[%c0_41, %c256], %54 {strides = array<i32>} : memref<128x512xf32, #tpu.memory_space<vmem>>, vector<128x256xf32>,
    return
  }
  func.func @transform_0(%arg0: i32) -> (i32, i32) {
    %c0_i32 = arith.constant 0 : i32
    %c0_i32_0 = arith.constant 0 : i32
    return %arg0, %c0_i32 : i32, i32
  }
  func.func @transform_1(%arg0: i32) -> (i32, i32) {
    %c0_i32 = arith.constant 0 : i32
    %c0_i32_0 = arith.constant 0 : i32
    %c0_i32_1 = arith.constant 0 : i32
    return %c0_i32, %c0_i32_0 : i32, i32
  }
  func.func @transform_2(%arg0: i32) -> (i32, i32) {
    %c0_i32 = arith.constant 0 : i32
    %c0_i32_0 = arith.constant 0 : i32
    %c0_i32_1 = arith.constant 0 : i32
    return %c0_i32, %c0_i32_0 : i32, i32
  }
  func.func @transform_3(%arg0: i32) -> (i32, i32) {
    %c0_i32 = arith.constant 0 : i32
    %c0_i32_0 = arith.constant 0 : i32
    %c0_i32_1 = arith.constant 0 : i32
    return %c0_i32, %c0_i32_0 : i32, i32
  }
  func.func @transform_4(%arg0: i32) -> (i32, i32) {
    %c0_i32 = arith.constant 0 : i32
    %c0_i32_0 = arith.constant 0 : i32
    %c0_i32_1 = arith.constant 0 : i32
    return %c0_i32, %c0_i32_0 : i32, i32
  }
  func.func @transform_5(%arg0: i32) -> (i32, i32) {
    %c0_i32 = arith.constant 0 : i32
    %c0_i32_0 = arith.constant 0 : i32
    %c0_i32_1 = arith.constant 0 : i32
    return %c0_i32, %c0_i32_0 : i32, i32
  }
  func.func @transform_6(%arg0: i32) -> (i32, i32) {
    %c0_i32 = arith.constant 0 : i32
    %c0_i32_0 = arith.constant 0 : i32
    %c0_i32_1 = arith.constant 0 : i32
    return %c0_i32, %c0_i32_0 : i32, i32
  }
  func.func @transform_7(%arg0: i32) -> (i32, i32) {
    %c0_i32 = arith.constant 0 : i32
    %c0_i32_0 = arith.constant 0 : i32
    %c0_i32_1 = arith.constant 0 : i32
    return %c0_i32, %c0_i32_0 : i32, i32
  }
  func.func @transform_8(%arg0: i32) -> (i32, i32) {
    %c0_i32 = arith.constant 0 : i32
    %c0_i32_0 = arith.constant 0 : i32
    %c0_i32_1 = arith.constant 0 : i32
    return %c0_i32, %c0_i32_0 : i32, i32
  }
  func.func @transform_9(%arg0: i32) -> (i32, i32) {
    %c0_i32 = arith.constant 0 : i32
    %c0_i32_0 = arith.constant 0 : i32
    %c0_i32_1 = arith.constant 0 : i32
    return %c0_i32, %c0_i32_0 : i32, i32
  }
  func.func @transform_10(%arg0: i32) -> (i32, i32) {
    %c0_i32 = arith.constant 0 : i32
    %c0_i32_0 = arith.constant 0 : i32
    %c0_i32_1 = arith.constant 0 : i32
    return %c0_i32, %c0_i32_0 : i32, i32
  }
  func.func @transform_11(%arg0: i32) -> (i32, i32) {
    %c0_i32 = arith.constant 0 : i32
    %c0_i32_0 = arith.constant 0 : i32
    %c0_i32_1 = arith.constant 0 : i32
    return %c0_i32, %c0_i32_0 : i32, i32
  }
  func.func @transform_12(%arg0: i32) -> (i32, i32) {
    %c0_i32 = arith.constant 0 : i32
    %c0_i32_0 = arith.constant 0 : i32
    %c0_i32_1 = arith.constant 0 : i32
    return %c0_i32, %c0_i32_0 : i32, i32
  }
  func.func @transform_13(%arg0: i32) -> (i32, i32) {
    %c0_i32 = arith.constant 0 : i32
    %c0_i32_0 = arith.constant 0 : i32
    return %arg0, %c0_i32 : i32, i32
  }
}

</mosaic_0001>

<bundles_post_ra>
// kernel: fused_forward.1
= control target key start
LH: loop header
LB: loop body
LE: loop exit
PB: predicated region body
PF: predicated region fallthrough
CT: control target
= control target key end

     0   :  { %18 = vsyncpa [#allocation3], 0  ;;  %s17673_s0 = inlined_call_operand.vmem [shape: f32[256,256], index: 0, kind: input, shape index: {}]   ;;  %s17674_s1 = inlined_call_operand.hbm [shape: bf16[256,896], index: 1, kind: input, shape index: {}]   ;;  %s17675_s2 = inlined_call_operand.hbm [shape: f32[1,896], index: 2, kind: input, shape index: {}]   ;;  %s17676_s3 = inlined_call_operand.hbm [shape: bf16[896,1152], index: 3, kind: input, shape index: {}]   ;;  %s17677_s4 = inlined_call_operand.hbm [shape: f32[1,1152], index: 4, kind: input, shape index: {}]   ;;  %s17678_s5 = inlined_call_operand.hbm [shape: bf16[1152,128], index: 5, kind: input, shape index: {}]   ;;  %s17679_s6 = inlined_call_operand.hbm [shape: f32[1,128], index: 6, kind: input, shape index: {}]   ;;  %s17680_s7 = inlined_call_operand.hbm [shape: f32[128,128], index: 7, kind: input, shape index: {}]   ;;  %s17681_s8 = inlined_call_operand.hbm [shape: f32[1,128], index: 8, kind: input, shape index: {}]   ;;  %s17682_s9 = inlined_call_operand.hbm [shape: bf16[128,896], index: 9, kind: input, shape index: {}]   ;;  %s17683_s10 = inlined_call_operand.hbm [shape: f32[1,896], index: 10, kind: input, shape index: {}]   ;;  %s17684_s11 = inlined_call_operand.hbm [shape: bf16[896,256], index: 11, kind: input, shape index: {}]   ;;  %s17685_s12 = inlined_call_operand.hbm [shape: f32[1,256], index: 12, kind: input, shape index: {}]   ;;  %s17686_s13 = inlined_call_operand.vmem [shape: f32[256,512], index: 13, kind: output, shape index: {}]  }
   0x1   :  { %19 = vsyncpa [#allocation5], 0 }
   0x2   :  { %20 = vsyncpa [#allocation8], 0 }
   0x3   :  { %21 = vsyncpa [#allocation11], 0 }
   0x4   :  { %22 = vsyncpa [#allocation14], 0 }
   0x5   :  { %23 = vsyncpa [#allocation17], 0 }
   0x6   :  { %24 = vsyncpa [#allocation20], 0  ;;  %s14821_s25 = smov 0  }
   0x7 LB: > { %s14730_s26 = smov [#allocation4]   ;;  %s17690_s28 = sadd.s32 4294967295, %s14728_s25   ;;  %s14728_s25 = sphi %s14821_s25, %s30_s25  }
   0x8   : > { %s365_s27 = sshll.u32 %s14730_s26, 4  ;;  %p11377_p0 = scmp.ge.s32.totalorder %s14728_s25, 1  ;;  %s366_s27 = int_to_ptr.vmem [resolvable:$true] %s365_s27 }
   0x9   : > { %p339_p1 = scmp.lt.s32.totalorder %s14728_s25, 3  ;;  %p14831_p2 = scmp.eq.s32.totalorder %s17690_s28, 0 }
   0xa   : > { %s14731_s14 = smov [#allocation7]   ;;  %s14732_s16 = smov [#allocation10]  }
   0xb   : > { %s17798_s29 = scalar_select %p14831_p2, 1, 0 }
   0xc   : > { %p14835_p3 = pnand %p11377_p0, %p339_p1  ;;  %s389_s15 = sshll.u32 %s14731_s14, 4  ;;  %s14841_s15 = int_to_ptr.vmem [resolvable:$true] %s389_s15 }
   0xd   : > { %s413_s17 = sshll.u32 %s14732_s16, 4  ;;  %s14733_s19 = smov [#allocation13]   ;;  %s14849_s17 = int_to_ptr.vmem [resolvable:$true] %s413_s17 }
   0xe   : > { %s17799_s30 = scalar_select %p14835_p3, 1, 0 }
   0xf   : > { %p13081_p4 = pneg %p14835_p3  ;;  %s437_s20 = sshll.u32 %s14733_s19, 4  ;;  %s14851_s20 = int_to_ptr.vmem [resolvable:$true] %s437_s20 }
  0x10   : > { %s14393_s22 = scalar_lea.vmem %s366_s27, 112  ;;  %s14400_s23 = scalar_lea.vmem %s366_s27, 128 }
  0x11   : > { %p14845_p5 = pnand %p14831_p2, %p13081_p4  ;;  %p14394_p7 = scmp.ne.s32.totalorder %s366_s27, %s14393_s22 }
  0x12   : > { %p14401_p10 = scmp.lt.s32.totalorder %s366_s27, %s366_s27  ;;  %p14402_p11 = scmp.lt.s32.totalorder %s14400_s23, %s14393_s22 }
  0x13   : > { %p14855_p6 = pneg %p14845_p5 }
  0x14   : > { %p14403_p12 = por %p14402_p11, %p14401_p10 }
  0x15   : > { %p14396_p8 = pnand %p14394_p7, %p14855_p6 }
  0x17   : > { %p14397_p9 = pneg %p14396_p8 }
  0x19   : > { %p14404_p13 = pnand %p14403_p12, %p14397_p9 }
  0x1b   : > { %14407 = shalt.err (!%p14404_p13)
}
  0x1c   : > { %13087 = dma.hbm_to_vmem [thread:$0]  (!%p14845_p5), %s17675_s2, 112, %s366_s27, [#allocation5]  }
  0x1d   : > { %s14419_s14 = scalar_lea.vmem %s14841_s15, 144  ;;  %s14426_s16 = scalar_lea.vmem %s14841_s15, 160 }
  0x1e   : > { %p14420_p0 = scmp.ne.s32.totalorder %s14841_s15, %s14419_s14  ;;  %p14427_p7 = scmp.lt.s32.totalorder %s14841_s15, %s14841_s15 }
  0x1f   : > { %p14428_p8 = scmp.lt.s32.totalorder %s14426_s16, %s14419_s14 }
  0x20   : > { %p14422_p1 = pnand %p14420_p0, %p14855_p6 }
  0x21   : > { %p14429_p9 = por %p14428_p8, %p14427_p7 }
  0x22   : > { %p14423_p4 = pneg %p14422_p1 }
  0x24   : > { %p14430_p10 = pnand %p14429_p9, %p14423_p4 }
  0x26   : > { %14433 = shalt.err (!%p14430_p10)
}
  0x27   : > { %13093 = dma.hbm_to_vmem [thread:$0]  (!%p14845_p5), %s17677_s4, 144, %s14841_s15, [#allocation8]  }
  0x28   : > { %s14445_s27 = scalar_lea.vmem %s14849_s17, 16  ;;  %s14452_s23 = scalar_lea.vmem %s14849_s17, 32 }
  0x29   : > { %p14446_p11 = scmp.ne.s32.totalorder %s14849_s17, %s14445_s27  ;;  %p14453_p0 = scmp.lt.s32.totalorder %s14849_s17, %s14849_s17 }
  0x2a   : > { %p14454_p1 = scmp.lt.s32.totalorder %s14452_s23, %s14445_s27 }
  0x2b   : > { %p14448_p12 = pnand %p14446_p11, %p14855_p6 }
  0x2c   : > { %p14455_p4 = por %p14454_p1, %p14453_p0 }
  0x2d   : > { %p14449_p13 = pneg %p14448_p12 }
  0x2f   : > { %p14456_p7 = pnand %p14455_p4, %p14449_p13 }
  0x31   : > { %14459 = shalt.err (!%p14456_p7)
}
  0x32   : > { %13099 = dma.hbm_to_vmem [thread:$0]  (!%p14845_p5), %s17679_s6, 16, %s14849_s17, [#allocation11]  }
  0x33   : > { %s14471_s15 = scalar_lea.vmem %s14851_s20, 16  ;;  %s14478_s14 = scalar_lea.vmem %s14851_s20, 32 }
  0x34   : > { %p14472_p8 = scmp.ne.s32.totalorder %s14851_s20, %s14471_s15  ;;  %p14479_p11 = scmp.lt.s32.totalorder %s14851_s20, %s14851_s20 }
  0x35   : > { %p14480_p12 = scmp.lt.s32.totalorder %s14478_s14, %s14471_s15 }
  0x36   : > { %p14474_p9 = pnand %p14472_p8, %p14855_p6 }
  0x37   : > { %p14481_p13 = por %p14480_p12, %p14479_p11 }
  0x38   : > { %p14475_p10 = pneg %p14474_p9 }
  0x3a   : > { %p14482_p0 = pnand %p14481_p13, %p14475_p10 }
  0x3c   : > { %14485 = shalt.err (!%p14482_p0)
}
  0x3d   : > { %13105 = dma.hbm_to_vmem [thread:$0]  (!%p14845_p5), %s17681_s8, 16, %s14851_s20, [#allocation14]  }
  0x3e   : > { %s14734_s17 = smov [#allocation16]   ;;  %s14735_s27 = smov [#allocation2]  }
  0x3f   : > { %s461_s22 = sshll.u32 %s14734_s17, 4  ;;  %s351_s23 = sshll.u32 %s14735_s27, 4  ;;  %s462_s22 = int_to_ptr.vmem [resolvable:$true] %s461_s22  ;;  %s352_s23 = int_to_ptr.vmem [resolvable:$true] %s351_s23 }
  0x40   : > { %s14497_s24 = scalar_lea.vmem %s462_s22, 112  ;;  %s14504_s26 = scalar_lea.vmem %s462_s22, 128 }
  0x41   : > { %p14498_p1 = scmp.ne.s32.totalorder %s462_s22, %s14497_s24  ;;  %p14505_p8 = scmp.lt.s32.totalorder %s462_s22, %s462_s22 }
  0x42   : > { %p14506_p9 = scmp.lt.s32.totalorder %s14504_s26, %s14497_s24 }
  0x43   : > { %p14500_p4 = pnand %p14498_p1, %p14855_p6 }
  0x44   : > { %p14507_p10 = por %p14506_p9, %p14505_p8 }
  0x45   : > { %p14501_p7 = pneg %p14500_p4 }
  0x47   : > { %p14508_p11 = pnand %p14507_p10, %p14501_p7 }
  0x49   : > { %14511 = shalt.err (!%p14508_p11)
}
  0x4a   : > { %13111 = dma.hbm_to_vmem [thread:$0]  (!%p14845_p5), %s17683_s10, 112, %s462_s22, [#allocation17]  }
  0x4b   : > { %s14523_s14 = scalar_lea.vmem %s352_s23, 14336  ;;  %p14531_p1 = scmp.lt.s32.totalorder %s352_s23, %s352_s23 }
  0x4c   : > { %p14524_p12 = scmp.ne.s32.totalorder %s352_s23, %s14523_s14  ;;  %p14532_p4 = scmp.lt.s32.totalorder %s14523_s14, %s14523_s14 }
  0x4e   : > { %p14526_p13 = pnand %p14524_p12, %p14855_p6  ;;  %p14533_p2 = por %p14532_p4, %p14531_p1 }
  0x50   : > { %p14527_p0 = pneg %p14526_p13 }
  0x52   : > { %p14534_p3 = pnand %p14533_p2, %p14527_p0 }
  0x54   : > { %14537 = shalt.err (!%p14534_p3)
}
  0x55   : > { %s14736_s16 = smov 448   ;;  %s14737_s19 = smov 28  }
  0x56   : > { %13084 = dma.hbm_to_vmem [thread:$0]  (!%p14845_p5), %s17674_s1, 14336, %s352_s23, [#allocation3], %s14736_s16, %s14736_s16, %s14737_s19  }
  0x57   : > { %s14738_s27 = smov [#allocation6]  }
  0x58   : > { %s375_s24 = sshll.u32 %s14738_s27, 4  ;;  %s376_s24 = int_to_ptr.vmem [resolvable:$true] %s375_s24 }
  0x59   : > { %s14549_s26 = scalar_lea.vmem %s376_s24, 64512  ;;  %p14557_p8 = scmp.lt.s32.totalorder %s376_s24, %s376_s24 }
  0x5a   : > { %p14550_p7 = scmp.ne.s32.totalorder %s376_s24, %s14549_s26  ;;  %p14558_p9 = scmp.lt.s32.totalorder %s14549_s26, %s14549_s26 }
  0x5c   : > { %p14552_p2 = pnand %p14550_p7, %p14855_p6  ;;  %p14559_p10 = por %p14558_p9, %p14557_p8 }
  0x5e   : > { %p14553_p3 = pneg %p14552_p2 }
  0x60   : > { %p14560_p11 = pnand %p14559_p10, %p14553_p3 }
  0x62   : > { %14563 = shalt.err (!%p14560_p11)
}
  0x63   : > { %s14739_s15 = smov 576   ;;  %s14740_s20 = smov 36  }
  0x64   : > { %13090 = dma.hbm_to_vmem [thread:$0]  (!%p14845_p5), %s17676_s3, 64512, %s376_s24, [#allocation5], %s14739_s15, %s14739_s15, %s14740_s20  }
  0x65   : > { %s14741_s17 = smov [#allocation9]  }
  0x66   : > { %s399_s22 = sshll.u32 %s14741_s17, 4  ;;  %s400_s22 = int_to_ptr.vmem [resolvable:$true] %s399_s22 }
  0x67   : > { %s14575_s27 = scalar_lea.vmem %s400_s22, 9216  ;;  %p14583_p1 = scmp.lt.s32.totalorder %s400_s22, %s400_s22 }
  0x68   : > { %p14576_p12 = scmp.ne.s32.totalorder %s400_s22, %s14575_s27  ;;  %p14584_p4 = scmp.lt.s32.totalorder %s14575_s27, %s14575_s27 }
  0x6a   : > { %p14578_p13 = pnand %p14576_p12, %p14855_p6  ;;  %p14585_p7 = por %p14584_p4, %p14583_p1 }
  0x6c   : > { %p14579_p0 = pneg %p14578_p13 }
  0x6e   : > { %p14586_p2 = pnand %p14585_p7, %p14579_p0 }
  0x70   : > { %14589 = shalt.err (!%p14586_p2)
}
  0x71   : > { %s14742_s26 = smov 64   ;;  %s14743_s28 = smov 4  }
  0x72   : > { %13096 = dma.hbm_to_vmem [thread:$0]  (!%p14845_p5), %s17678_s5, 9216, %s400_s22, [#allocation8], %s14742_s26, %s14742_s26, %s14743_s28  }
  0x73   : > { %s14744_s15 = smov [#allocation12]  }
  0x74   : > { %s423_s20 = sshll.u32 %s14744_s15, 4  ;;  %s424_s20 = int_to_ptr.vmem [resolvable:$true] %s423_s20 }
  0x75   : > { %s14601_s23 = scalar_lea.vmem %s424_s20, 2048  ;;  %p14609_p10 = scmp.lt.s32.totalorder %s424_s20, %s424_s20 }
  0x76   : > { %p14602_p3 = scmp.ne.s32.totalorder %s424_s20, %s14601_s23  ;;  %p14610_p11 = scmp.lt.s32.totalorder %s14601_s23, %s14601_s23 }
  0x78   : > { %p14604_p8 = pnand %p14602_p3, %p14855_p6  ;;  %p14611_p12 = por %p14610_p11, %p14609_p10 }
  0x7a   : > { %p14605_p9 = pneg %p14604_p8 }
  0x7c   : > { %p14612_p13 = pnand %p14611_p12, %p14605_p9 }
  0x7e   : > { %14615 = shalt.err (!%p14612_p13)
}
  0x7f   : > { %s14745_s17 = smov 128   ;;  %s14746_s27 = smov 8  }
  0x80   : > { %13102 = dma.hbm_to_vmem [thread:$0]  (!%p14845_p5), %s17680_s7, 2048, %s424_s20, [#allocation11], %s14745_s17, %s14745_s17, %s14746_s27  }
  0x81   : > { %s14747_s26 = smov [#allocation15]   ;;  %s14748_s24 = smov [#allocation18]  }
  0x82   : > { %s447_s14 = sshll.u32 %s14747_s26, 4  ;;  %s471_s15 = sshll.u32 %s14748_s24, 4  ;;  %s448_s14 = int_to_ptr.vmem [resolvable:$true] %s447_s14  ;;  %s472_s15 = int_to_ptr.vmem [resolvable:$true] %s471_s15 }
  0x83   : > { %s14627_s23 = scalar_lea.vmem %s448_s14, 7168  ;;  %p14635_p7 = scmp.lt.s32.totalorder %s448_s14, %s448_s14 }
  0x84   : > { %p14628_p0 = scmp.ne.s32.totalorder %s448_s14, %s14627_s23  ;;  %p14636_p2 = scmp.lt.s32.totalorder %s14627_s23, %s14627_s23 }
  0x86   : > { %p14630_p1 = pnand %p14628_p0, %p14855_p6  ;;  %p14637_p3 = por %p14636_p2, %p14635_p7 }
  0x88   : > { %p14631_p4 = pneg %p14630_p1 }
  0x8a   : > { %p14638_p8 = pnand %p14637_p3, %p14631_p4 }
  0x8c   : > { %14641 = shalt.err (!%p14638_p8)
}
  0x8d   : > { %13108 = dma.hbm_to_vmem [thread:$0]  (!%p14845_p5), %s17682_s9, 7168, %s448_s14, [#allocation14], %s14736_s16, %s14736_s16, %s14737_s19  }
  0x8e   : > { %s14653_s22 = scalar_lea.vmem %s472_s15, 14336  ;;  %p14661_p12 = scmp.lt.s32.totalorder %s472_s15, %s472_s15 }
  0x8f   : > { %p14654_p9 = scmp.ne.s32.totalorder %s472_s15, %s14653_s22  ;;  %p14662_p13 = scmp.lt.s32.totalorder %s14653_s22, %s14653_s22 }
  0x91   : > { %p14656_p10 = pnand %p14654_p9, %p14855_p6  ;;  %p14663_p0 = por %p14662_p13, %p14661_p12 }
  0x93   : > { %p14657_p11 = pneg %p14656_p10 }
  0x95   : > { %p14664_p1 = pnand %p14663_p0, %p14657_p11 }
  0x97   : > { %14667 = shalt.err (!%p14664_p1)
}
  0x98   : > { %13114 = dma.hbm_to_vmem [thread:$0]  (!%p14845_p5), %s17684_s11, 14336, %s472_s15, [#allocation17], %s14745_s17, %s14745_s17, %s14746_s27  }
  0x99   : > { %s14749_s16 = smov [#allocation19]  }
  0x9a   : > { %s485_s19 = sshll.u32 %s14749_s16, 4  ;;  %s486_s19 = int_to_ptr.vmem [resolvable:$true] %s485_s19 }
  0x9b   : > { %s14679_s14 = scalar_lea.vmem %s486_s19, 32  ;;  %p14687_p3 = scmp.lt.s32.totalorder %s486_s19, %s486_s19 }
  0x9c   : > { %p14680_p4 = scmp.ne.s32.totalorder %s486_s19, %s14679_s14  ;;  %p14688_p8 = scmp.lt.s32.totalorder %s14679_s14, %s14679_s14 }
  0x9e   : > { %p14682_p7 = pnand %p14680_p4, %p14855_p6  ;;  %p14689_p9 = por %p14688_p8, %p14687_p3 }
  0xa0   : > { %p14683_p2 = pneg %p14682_p7 }
  0xa2   : > { %p14690_p10 = pnand %p14689_p9, %p14683_p2 }
  0xa4   : > { %14693 = shalt.err (!%p14690_p10)
}
  0xa5   : > { %13117 = dma.hbm_to_vmem [thread:$0]  (!%p14845_p5), %s17685_s12, 32, %s486_s19, [#allocation20]  }
  0xa6   : > { %p17802_p11 = scmp.ne.s32.totalorder %s17799_s30, 0 }
  0xa8   : > { %508 = sbr.rel (%p17802_p11) target bundleno = 2028 (0x7ec), region = 72 }
  0xad   : > { %p17803_p12 = scmp.ne.s32.totalorder %s17798_s29, 0 }
  0xaf   : > { %14699 = dma.done.wait (%p17803_p12), [#allocation3], 14336  }
  0xb0   : > { %14701 = vsyncadd (%p17803_p12), [#allocation3], 4294952960 }
  0xb1   : > { %14703 = dma.done.wait (%p17803_p12), [#allocation5], 64624  }
  0xb2   : > { %14705 = vsyncadd (%p17803_p12), [#allocation5], 4294902672 }
  0xb3   : > { %14707 = dma.done.wait (%p17803_p12), [#allocation8], 9360  }
  0xb4   : > { %14709 = vsyncadd (%p17803_p12), [#allocation8], 4294957936 }
  0xb5   : > { %14711 = dma.done.wait (%p17803_p12), [#allocation11], 2064  }
  0xb6   : > { %14713 = vsyncadd (%p17803_p12), [#allocation11], 4294965232 }
  0xb7   : > { %14715 = dma.done.wait (%p17803_p12), [#allocation14], 7184  }
  0xb8   : > { %14717 = vsyncadd (%p17803_p12), [#allocation14], 4294960112 }
  0xb9   : > { %14719 = dma.done.wait (%p17803_p12), [#allocation17], 14448  }
  0xba   : > { %14721 = vsyncadd (%p17803_p12), [#allocation17], 4294952848 }
  0xbb   : > { %14723 = dma.done.wait (%p17803_p12), [#allocation20], 32  }
  0xbc   : > { %14725 = vsyncadd (%p17803_p12), [#allocation20], 4294967264  ;;  %v13171_v0 = vld [vmem:[#allocation2 + $0x18c] ss:$28 sps:$4 sm:$0xff]   ;;  %v13173_v1 = vld [vmem:[#allocation2 + $0x194] ss:$28 sps:$4 sm:$0xff]  }
  0xbd   : > { %1402 = vmatprep.subr.bf16.mxu0 %v13171_v0  ;;  %v13175_v2 = vld [vmem:[#allocation2 + $0x188] ss:$28 sps:$4 sm:$0xff]   ;;  %v13176_v3 = vld [vmem:[#allocation2 + $0x190] ss:$28 sps:$4 sm:$0xff]   ;;  %1515 = vmatprep.subr.bf16.mxu1 %v13173_v1  ;;  %v13179_v5 = vld [vmem:[#allocation2 + $0x15c] ss:$28 sps:$4 sm:$0xff]  }
  0xbe   : > { %v13177_v4 = vld [vmem:[#allocation2 + $0x154] ss:$28 sps:$4 sm:$0xff]   ;;  %1403 = vmatpush1.bf16.msra.mxu0 %v13175_v2  ;;  %1516 = vmatpush1.bf16.msra.mxu1 %v13176_v3  ;;  %v13183_v8 = vld [vmem:[#allocation2 + $0x11c] ss:$28 sps:$4 sm:$0xff]   ;;  %v13185_v9 = vld [vmem:[#allocation2 + $0x124] ss:$28 sps:$4 sm:$0xff]  }
  0xbf   : > { %v13181_v6 = vld [vmem:[#allocation2 + $0x150] ss:$28 sps:$4 sm:$0xff]   ;;  %1404 = vmatprep.subr.bf16.mxu0 %v13177_v4  ;;  %v13182_v7 = vld [vmem:[#allocation2 + $0x158] ss:$28 sps:$4 sm:$0xff]   ;;  %1517 = vmatprep.subr.bf16.mxu1 %v13179_v5  ;;  %v13188_v11 = vld [vmem:[#allocation2 + $0x120] ss:$28 sps:$4 sm:$0xff]  }
  0xc0   : > { %v13187_v10 = vld [vmem:[#allocation2 + $0x118] ss:$28 sps:$4 sm:$0xff]   ;;  %v13189_v12 = vld [vmem:[#allocation2 + $0xe4] ss:$28 sps:$4 sm:$0xff]   ;;  %v13191_v13 = vld [vmem:[#allocation2 + $0xec] ss:$28 sps:$4 sm:$0xff]  }
  0xc1   : > { %v13193_v14 = vld [vmem:[#allocation2 + $0xe0] ss:$28 sps:$4 sm:$0xff]   ;;  %v13194_v15 = vld [vmem:[#allocation2 + $0xe8] ss:$28 sps:$4 sm:$0xff]   ;;  %v13197_v17 = vld [vmem:[#allocation2 + $0xb4] ss:$28 sps:$4 sm:$0xff]  }
  0xc2   : > { %1405 = vmatpush1.bf16.msra.mxu0 %v13181_v6  ;;  %1518 = vmatpush1.bf16.msra.mxu1 %v13182_v7  ;;  %v13195_v16 = vld [vmem:[#allocation2 + $0xac] ss:$28 sps:$4 sm:$0xff]   ;;  %v13201_v20 = vld [vmem:[#allocation2 + $0x74] ss:$28 sps:$4 sm:$0xff]   ;;  %v13203_v21 = vld [vmem:[#allocation2 + $0x7c] ss:$28 sps:$4 sm:$0xff]  }
  0xc3   : > { %1406 = vmatprep.subr.bf16.mxu0 %v13183_v8  ;;  %1519 = vmatprep.subr.bf16.mxu1 %v13185_v9  ;;  %v13199_v18 = vld [vmem:[#allocation2 + $0xa8] ss:$28 sps:$4 sm:$0xff]   ;;  %v13200_v19 = vld [vmem:[#allocation2 + $0xb0] ss:$28 sps:$4 sm:$0xff]   ;;  %v13206_v23 = vld [vmem:[#allocation2 + $0x78] ss:$28 sps:$4 sm:$0xff]  }
  0xc4   : > { %v13205_v22 = vld [vmem:[#allocation2 + $0x70] ss:$28 sps:$4 sm:$0xff]   ;;  %v13207_v24 = vld [vmem:[#allocation2 + $0x3c] ss:$28 sps:$4 sm:$0xff]   ;;  %v13209_v25 = vld [vmem:[#allocation2 + $0x44] ss:$28 sps:$4 sm:$0xff]  }
  0xc5   : > { %v13211_v26 = vld [vmem:[#allocation2 + $0x38] ss:$28 sps:$4 sm:$0xff]   ;;  %v13212_v27 = vld [vmem:[#allocation2 + $0x40] ss:$28 sps:$4 sm:$0xff]   ;;  %v13215_v29 = vld [vmem:[#allocation2 + $0xc] ss:$28 sps:$4 sm:$0xff]  }
  0xc6   : > { %1407 = vmatpush1.bf16.msra.mxu0 %v13187_v10  ;;  %1520 = vmatpush1.bf16.msra.mxu1 %v13188_v11  ;;  %v13213_v28 = vld [vmem:[#allocation2 + $0x4] ss:$28 sps:$4 sm:$0xff]   ;;  %s17804_s29 = sadd.s32 4294967295, %s14728_s25   ;;  %v13219_v32 = vld [vmem:[#allocation2 + $0x34c] ss:$28 sps:$4 sm:$0xff]  }
  0xc7   : > { %1408 = vmatprep.subr.bf16.mxu0 %v13189_v12  ;;  %1521 = vmatprep.subr.bf16.mxu1 %v13191_v13  ;;  %s11404_s30 = sshll.u32 %s17804_s29, 4  ;;  %v13217_v30 = vld [vmem:[#allocation2] ss:$28 sps:$4 sm:$0xff]   ;;  %v13218_v31 = vld [vmem:[#allocation2 + $0x8] ss:$28 sps:$4 sm:$0xff]  }
  0xc8   : > { %p599_p5 = scmp.lt.s32.totalorder %s11404_s30, 31  ;;  %v13221_v33 = vld [vmem:[#allocation2 + $0x354] ss:$28 sps:$4 sm:$0xff]   ;;  %v13223_v34 = vld [vmem:[#allocation2 + $0x348] ss:$28 sps:$4 sm:$0xff]  }
  0xc9   : > { %v13224_v35 = vld [vmem:[#allocation2 + $0x350] ss:$28 sps:$4 sm:$0xff]   ;;  %v13227_v37 = vld [vmem:[#allocation2 + $0x31c] ss:$28 sps:$4 sm:$0xff]   ;;  %v13233_v41 = vld [vmem:[#allocation2 + $0x2e4] ss:$28 sps:$4 sm:$0xff]  }
  0xca   : > { %1409 = vmatpush1.bf16.msra.mxu0 %v13193_v14  ;;  %1522 = vmatpush1.bf16.msra.mxu1 %v13194_v15  ;;  %v13225_v36 = vld [vmem:[#allocation2 + $0x314] ss:$28 sps:$4 sm:$0xff]   ;;  %s18258_s30 = smov (!%p599_p5, %s11404_s30), 31  ;;  %v13231_v40 = vld [vmem:[#allocation2 + $0x2dc] ss:$28 sps:$4 sm:$0xff]  }
  0xcb   : > { %1410 = vmatprep.subr.bf16.mxu0 %v13195_v16  ;;  %1523 = vmatprep.subr.bf16.mxu1 %v13197_v17  ;;  %v13229_v38 = vld [vmem:[#allocation2 + $0x310] ss:$28 sps:$4 sm:$0xff]   ;;  %v13230_v39 = vld [vmem:[#allocation2 + $0x318] ss:$28 sps:$4 sm:$0xff]   ;;  %s12271_s18 = sshll.u32 %s18258_s30, 4  ;;  %s12272_s15 = sshll.u32 %s18258_s30, 5 }
  0xcc   : > { %v13235_v42 = vld [vmem:[#allocation2 + $0x2d8] ss:$28 sps:$4 sm:$0xff]   ;;  %v13236_v43 = vld [vmem:[#allocation2 + $0x2e0] ss:$28 sps:$4 sm:$0xff]   ;;  %s15011_s27 = scalar_lea.vmem %s17673_s0, %s12271_s18  ;;  %v13239_v45 = vld [vmem:[#allocation2 + $0x2ac] ss:$28 sps:$4 sm:$0xff]   ;;  %s16859_s26 = scalar_lea.vmem %s17686_s13, %s12272_s15 }
  0xcd   : > { %v13237_v44 = vld [vmem:[#allocation2 + $0x2a4] ss:$28 sps:$4 sm:$0xff]   ;;  %v614_v46 = vld [vmem:[%s15011_s27 + $0x8] sm:$0xff]  ;;  %v616_v49 = vld [vmem:[%s15011_s27 + $0x18] sm:$0xff] }
  0xce   : > { %1411 = vmatpush1.bf16.msra.mxu0 %v13199_v18  ;;  %1524 = vmatpush1.bf16.msra.mxu1 %v13200_v19  ;;  %v13241_v47 = vld [vmem:[#allocation2 + $0x2a0] ss:$28 sps:$4 sm:$0xff]   ;;  %v13242_v48 = vld [vmem:[#allocation2 + $0x2a8] ss:$28 sps:$4 sm:$0xff]   ;;  %v15015_v51 = vpack.c.bf16 %v616_v49, %v614_v46  ;;  %v13245_v52 = vld [vmem:[#allocation2 + $0x274] ss:$28 sps:$4 sm:$0xff]  }
  0xcf   : > { %1412 = vmatprep.subr.bf16.mxu0 %v13201_v20  ;;  %1525 = vmatprep.subr.bf16.mxu1 %v13203_v21  ;;  %v13243_v50 = vld [vmem:[#allocation2 + $0x26c] ss:$28 sps:$4 sm:$0xff]   ;;  %v13249_v55 = vld [vmem:[#allocation2 + $0x234] ss:$28 sps:$4 sm:$0xff]   ;;  %v13251_v56 = vld [vmem:[#allocation2 + $0x23c] ss:$28 sps:$4 sm:$0xff]  }
  0xd0   : > { %1434 = vmatprep.mubr.bf16.mxu0 %v15015_v51  ;;  %1547 = vmatprep.mubr.bf16.mxu1 %v15015_v51  ;;  %v13247_v53 = vld [vmem:[#allocation2 + $0x268] ss:$28 sps:$4 sm:$0xff]   ;;  %v13248_v54 = vld [vmem:[#allocation2 + $0x270] ss:$28 sps:$4 sm:$0xff]   ;;  %v13254_v58 = vld [vmem:[#allocation2 + $0x238] ss:$28 sps:$4 sm:$0xff]  }
  0xd1   : > { %v13253_v57 = vld [vmem:[#allocation2 + $0x230] ss:$28 sps:$4 sm:$0xff]   ;;  %v13255_v59 = vld [vmem:[#allocation2 + $0x1fc] ss:$28 sps:$4 sm:$0xff]   ;;  %v13257_v60 = vld [vmem:[#allocation2 + $0x204] ss:$28 sps:$4 sm:$0xff]  }
  0xd2   : > { %1413 = vmatpush1.bf16.msra.mxu0 %v13205_v22  ;;  %1526 = vmatpush1.bf16.msra.mxu1 %v13206_v23  ;;  %v13259_v61 = vld [vmem:[#allocation2 + $0x1f8] ss:$28 sps:$4 sm:$0xff]   ;;  %v13260_v62 = vld [vmem:[#allocation2 + $0x200] ss:$28 sps:$4 sm:$0xff]   ;;  %v13263_v0 = vld [vmem:[#allocation2 + $0x1cc] ss:$28 sps:$4 sm:$0xff]  }
  0xd3   : > { %1414 = vmatprep.subr.bf16.mxu0 %v13207_v24  ;;  %1527 = vmatprep.subr.bf16.mxu1 %v13209_v25  ;;  %v13261_v63 = vld [vmem:[#allocation2 + $0x1c4] ss:$28 sps:$4 sm:$0xff]   ;;  %v615_v4 = vld [vmem:[%s15011_s27 + $0x10] sm:$0xff]  ;;  %v13269_v5 = vld [vmem:[#allocation2 + $0x19c] ss:$28 sps:$4 sm:$0xff]  }
  0xd4   : > { %v13265_v1 = vld [vmem:[#allocation2 + $0x1c0] ss:$28 sps:$4 sm:$0xff]   ;;  %v13266_v2 = vld [vmem:[#allocation2 + $0x1c8] ss:$28 sps:$4 sm:$0xff]   ;;  %v13267_v10 = vld [vmem:[#allocation2 + $0x198] ss:$28 sps:$4 sm:$0xff]  }
  0xd5   : > { %v613_v3 = vld [vmem:[%s15011_s27] sm:$0xff]  ;;  %v618_v6 = vld [vmem:[%s15011_s27 + $0x28] sm:$0xff]  ;;  %v620_v7 = vld [vmem:[%s15011_s27 + $0x38] sm:$0xff] }
  0xd6   : > { %1415 = vmatpush1.bf16.msra.mxu0 %v13211_v26  ;;  %1528 = vmatpush1.bf16.msra.mxu1 %v13212_v27  ;;  %v13294_v8 = vld [vmem:[#allocation2 + $0x360] ss:$28 sps:$4 sm:$0xff]   ;;  %v15023_v9 = vpack.c.bf16 %v615_v4, %v613_v3  ;;  %v15025_v11 = vpack.c.bf16 %v620_v7, %v618_v6  ;;  %v619_v16 = vld [vmem:[%s15011_s27 + $0x30] sm:$0xff]  ;;  %v13275_v17 = vld [vmem:[#allocation2 + $0x12c] ss:$28 sps:$4 sm:$0xff]  }
  0xd7   : > { %1416 = vmatprep.subr.bf16.mxu0 %v13213_v28  ;;  %1529 = vmatprep.subr.bf16.mxu1 %v13215_v29  ;;  %v13272_v12 = vld [vmem:[#allocation2 + $0x164] ss:$28 sps:$4 sm:$0xff]   ;;  %v622_v19 = vld [vmem:[%s15011_s27 + $0x48] sm:$0xff]  ;;  %v624_v20 = vld [vmem:[%s15011_s27 + $0x58] sm:$0xff] }
  0xd8   : > { %v13270_v13 = vld [vmem:[#allocation2 + $0x160] ss:$28 sps:$4 sm:$0xff]   ;;  %v13299_v18 = vld [vmem:[#allocation2 + $0x328] ss:$28 sps:$4 sm:$0xff]   ;;  %v15037_v24 = vpack.c.bf16 %v624_v20, %v622_v19  ;;  %v13278_v25 = vld [vmem:[#allocation2 + $0xf4] ss:$28 sps:$4 sm:$0xff]  }
  0xd9   : > { %v617_v14 = vld [vmem:[%s15011_s27 + $0x20] sm:$0xff]  ;;  %v13276_v26 = vld [vmem:[#allocation2 + $0xf0] ss:$28 sps:$4 sm:$0xff]   ;;  %v632_v46 = vld [vmem:[%s15011_s27 + $0x98] sm:$0xff] }
  0xda   : > { %1417 = vmatpush1.bf16.msra.mxu0 %v13217_v30  ;;  %1530 = vmatpush1.bf16.msra.mxu1 %v13218_v31  ;;  %v13295_v15 = vld [vmem:[#allocation2 + $0x1a0] ss:$28 sps:$4 sm:$0xff]   ;;  %v13300_v21 = vld [vmem:[#allocation2 + $0x168] ss:$28 sps:$4 sm:$0xff]   ;;  %v15035_v22 = vpack.c.bf16 %v619_v16, %v617_v14  ;;  %v623_v28 = vld [vmem:[%s15011_s27 + $0x50] sm:$0xff] }
  0xdb   : > { %1418 = vmatprep.subr.bf16.mxu0 %v13219_v32  ;;  %1531 = vmatprep.subr.bf16.mxu1 %v13221_v33  ;;  %v13273_v23 = vld [vmem:[#allocation2 + $0x128] ss:$28 sps:$4 sm:$0xff]   ;;  %v13304_v29 = vld [vmem:[#allocation2 + $0x2f0] ss:$28 sps:$4 sm:$0xff]   ;;  %v13281_v30 = vld [vmem:[#allocation2 + $0xbc] ss:$28 sps:$4 sm:$0xff]  }
  0xdc   : > { %v621_v27 = vld [vmem:[%s15011_s27 + $0x40] sm:$0xff]  ;;  %v626_v31 = vld [vmem:[%s15011_s27 + $0x68] sm:$0xff]  ;;  %v13309_v33 = vld [vmem:[#allocation2 + $0x2b8] ss:$28 sps:$4 sm:$0xff]  }
  0xdd   : > { %v13305_v32 = vld [vmem:[#allocation2 + $0x130] ss:$28 sps:$4 sm:$0xff]   ;;  %v13285_v49 = vld [vmem:[#allocation2 + $0x48] ss:$28 sps:$4 sm:$0xff]   ;;  %v13329_v7 = vld [vmem:[#allocation2 + $0x1d8] ss:$28 sps:$4 sm:$0xff]  }
  0xde   : > { %1419 = vmatpush2.bf16.msra.mxu0 %v13223_v34  ;;  %1532 = vmatpush2.bf16.msra.mxu1 %v13224_v35  ;;  %v628_v34 = vld [vmem:[%s15011_s27 + $0x78] sm:$0xff]  ;;  %v15047_v35 = vpack.c.bf16 %v623_v28, %v621_v27  ;;  %v633_v3 = vld [vmem:[%s15011_s27 + $0xa0] sm:$0xff]  ;;  %v635_v4 = vld [vmem:[%s15011_s27 + $0xb0] sm:$0xff] }
  0xdf   : > { %1420 = vmatprep.subr.bf16.mxu0 %v13225_v36  ;;  %1533 = vmatprep.subr.bf16.mxu1 %v13227_v37  ;;  %v13279_v36 = vld [vmem:[#allocation2 + $0xb8] ss:$28 sps:$4 sm:$0xff]   ;;  %v15049_v37 = vpack.c.bf16 %v628_v34, %v626_v31  ;;  %v13303_v6 = vld [vmem:[#allocation2 + $0x2ec] ss:$28 sps:$4 sm:$0xff]   ;;  %v641_v31 = vld [vmem:[%s15011_s27 + $0xe0] sm:$0xff] }
  0xe0   : > { %v13301_v14 = vld [vmem:[#allocation2 + $0x2e8] ss:$28 sps:$4 sm:$0xff]   ;;  %v13308_v16 = vld [vmem:[#allocation2 + $0x2b4] ss:$28 sps:$4 sm:$0xff]  }
  0xe1   : > { %v13336_v19 = vld [vmem:[#allocation6 + $0x67c] ss:$36 sps:$4 sm:$0xff]   ;;  %v639_v20 = vld [vmem:[%s15011_s27 + $0xd0] sm:$0xff] }
  0xe2   : > { %1421 = vmatpush2.bf16.msra.mxu0 %v13229_v38  ;;  %1534 = vmatpush2.bf16.msra.mxu1 %v13230_v39  ;;  %v13284_v38 = vld [vmem:[#allocation2 + $0x84] ss:$28 sps:$4 sm:$0xff]   ;;  %v13311_v27 = vld [vmem:[#allocation2 + $0x278] ss:$28 sps:$4 sm:$0xff]  }
  0xe3   : > { %1422 = vmatprep.subr.bf16.mxu0 %v13231_v40  ;;  %1535 = vmatprep.subr.bf16.mxu1 %v13233_v41  ;;  %v13282_v39 = vld [vmem:[#allocation2 + $0x80] ss:$28 sps:$4 sm:$0xff]   ;;  %v13310_v41 = vld [vmem:[#allocation2 + $0xf8] ss:$28 sps:$4 sm:$0xff]  }
  0xe4   : > { %v625_v40 = vld [vmem:[%s15011_s27 + $0x60] sm:$0xff] }
  0xe6   : > { %1423 = vmatpush2.bf16.msra.mxu0 %v13235_v42  ;;  %1536 = vmatpush2.bf16.msra.mxu1 %v13236_v43  ;;  %v627_v42 = vld [vmem:[%s15011_s27 + $0x70] sm:$0xff]  ;;  %v13287_v43 = vld [vmem:[#allocation2 + $0x4c] ss:$28 sps:$4 sm:$0xff]  }
  0xe7   : > { %1424 = vmatprep.subr.bf16.mxu0 %v13237_v44  ;;  %1537 = vmatprep.subr.bf16.mxu1 %v13239_v45  ;;  %v13314_v44 = vld [vmem:[#allocation2 + $0x280] ss:$28 sps:$4 sm:$0xff]   ;;  %v630_v45 = vld [vmem:[%s15011_s27 + $0x88] sm:$0xff] }
  0xea   : > { %1425 = vmatpush2.bf16.msra.mxu0 %v13241_v47  ;;  %1538 = vmatpush2.bf16.msra.mxu1 %v13242_v48  ;;  %v13315_v47 = vld [vmem:[#allocation2 + $0xc0] ss:$28 sps:$4 sm:$0xff]   ;;  %v15059_v48 = vpack.c.bf16 %v627_v42, %v625_v40  ;;  %v13333_v40 = vld [vmem:[#allocation6 + $0x1fc] ss:$36 sps:$4 sm:$0xff]  }
  0xeb   : > { %1426 = vmatprep.subr.bf16.mxu0 %v13243_v50  ;;  %1539 = vmatprep.subr.bf16.mxu1 %v13245_v52  ;;  %v15061_v50 = vpack.c.bf16 %v632_v46, %v630_v45  ;;  %v13290_v52 = vld [vmem:[#allocation2 + $0x14] ss:$28 sps:$4 sm:$0xff]   ;;  %v13334_v42 = vld [vmem:[#allocation6 + $0x678] ss:$36 sps:$4 sm:$0xff]   ;;  %v13337_v45 = vld [vmem:[#allocation6 + $0x1b0] ss:$36 sps:$4 sm:$0xff]  }
  0xec   : > { %v13340_v46 = vld [vmem:[#allocation6 + $0x630] ss:$36 sps:$4 sm:$0xff]  }
  0xee   : > { %1427 = vmatpush2.bf16.msra.mxu0 %v13247_v53  ;;  %1540 = vmatpush2.bf16.msra.mxu1 %v13248_v54  ;;  %v13288_v53 = vld [vmem:[#allocation2 + $0x10] ss:$28 sps:$4 sm:$0xff]   ;;  %v629_v54 = vld [vmem:[%s15011_s27 + $0x80] sm:$0xff] }
  0xef   : > { %1428 = vmatprep.subr.bf16.mxu0 %v13249_v55  ;;  %1541 = vmatprep.subr.bf16.mxu1 %v13251_v56  ;;  %v631_v55 = vld [vmem:[%s15011_s27 + $0x90] sm:$0xff]  ;;  %v13319_v56 = vld [vmem:[#allocation2 + $0x248] ss:$28 sps:$4 sm:$0xff]  }
  0xf2   : > { %1429 = vmatpush2.bf16.msra.mxu0 %v13253_v57  ;;  %1542 = vmatpush2.bf16.msra.mxu1 %v13254_v58  ;;  %v13293_v57 = vld [vmem:[#allocation2 + $0x35c] ss:$28 sps:$4 sm:$0xff]   ;;  %v634_v58 = vld [vmem:[%s15011_s27 + $0xa8] sm:$0xff] }
  0xf3   : > { %1430 = vmatprep.subr.bf16.mxu0 %v13255_v59  ;;  %1543 = vmatprep.subr.bf16.mxu1 %v13257_v60  ;;  %v13320_v59 = vld [vmem:[#allocation2 + $0x88] ss:$28 sps:$4 sm:$0xff]   ;;  %v13324_v60 = vld [vmem:[#allocation2 + $0x210] ss:$28 sps:$4 sm:$0xff]  }
  0xf6   : > { %1431 = vmatpush2.bf16.msra.mxu0 %v13259_v61  ;;  %1544 = vmatpush2.bf16.msra.mxu1 %v13260_v62  ;;  %v636_v61 = vld [vmem:[%s15011_s27 + $0xb8] sm:$0xff]  ;;  %v15071_v62 = vpack.c.bf16 %v631_v55, %v629_v54  ;;  %v13354_v54 = vld [vmem:[#allocation6 + $0x5a4] ss:$36 sps:$4 sm:$0xff]   ;;  %v13357_v55 = vld [vmem:[#allocation6 + $0xdc] ss:$36 sps:$4 sm:$0xff]  }
  0xf7   : > { %1432 = vmatprep.subr.bf16.mxu0 %v13261_v63  ;;  %1545 = vmatprep.subr.bf16.mxu1 %v13263_v0  ;;  %v13291_v63 = vld [vmem:[#allocation2 + $0x358] ss:$28 sps:$4 sm:$0xff]   ;;  %v15073_v0 = vpack.c.bf16 %v636_v61, %v634_v58  ;;  %v13358_v58 = vld [vmem:[#allocation6 + $0x558] ss:$36 sps:$4 sm:$0xff]  }
  0xf8   : > { %v13369_v61 = vld [vmem:[#allocation6 + $0x4c] ss:$36 sps:$4 sm:$0xff]  }
  0xfa   : > { %1433 = vmatpush2.bf16.msra.mxu0 %v13265_v1  ;;  %1546 = vmatpush2.bf16.msra.mxu1 %v13266_v2  ;;  %v13298_v1 = vld [vmem:[#allocation2 + $0x324] ss:$28 sps:$4 sm:$0xff]  }
  0xfb   : > { %1628 = vmatprep.subr.bf16.mxu0 %v13269_v5  ;;  %12273 = vmatprep.subr.bf16.mxu1 %v13294_v8  ;;  %v13296_v2 = vld [vmem:[#allocation2 + $0x320] ss:$28 sps:$4 sm:$0xff]   ;;  %v13325_v5 = vld [vmem:[#allocation2 + $0x50] ss:$28 sps:$4 sm:$0xff]  }
  0xfc   : > { %v638_v8 = vld [vmem:[%s15011_s27 + $0xc8] sm:$0xff] }
  0xfd   : > { %1435 = vmatmul.mubr.bf16.vlgmr.msra.gmra.mxu0 %v15023_v9  ;;  %1548 = vmatmul.mubr.bf16.vlgmr.msra.gmra.mxu1 %v15023_v9 }
  0xfe   : > { %1629 = vmatpush1.bf16.msra.mxu0 %v13267_v10  ;;  %1444 = vmatprep.mubr.bf16.mxu0 %v15025_v11  ;;  %v640_v10 = vld [vmem:[%s15011_s27 + $0xd8] sm:$0xff] }
  0xff   : > { %1630 = vmatprep.subr.bf16.mxu0 %v13272_v12  ;;  %1557 = vmatprep.mubr.bf16.mxu1 %v15025_v11  ;;  %v13330_v12 = vld [vmem:[#allocation2 + $0x18] ss:$28 sps:$4 sm:$0xff]  }
 0x100   : > { %12274 = vmatpush3.bf16.msra.mxu1 %v13295_v15  ;;  %v15085_v15 = vpack.c.bf16 %v640_v10, %v638_v8  ;;  %v13382_v8 = vld [vmem:[#allocation6 + $0x8b8] ss:$36 sps:$4 sm:$0xff]  }
 0x101   : > { %12275 = vmatprep.subr.bf16.mxu1 %v13299_v18  ;;  %v637_v18 = vld [vmem:[%s15011_s27 + $0xc0] sm:$0xff] }
 0x102   : > { %1631 = vmatpush1.bf16.msra.mxu0 %v13270_v13  ;;  %v15083_v13 = vpack.c.bf16 %v635_v4, %v633_v3  ;;  %v13375_v3 = vld [vmem:[#allocation6 + $0x4] ss:$36 sps:$4 sm:$0xff]   ;;  %v13387_v10 = vld [vmem:[#allocation6 + $0x3f4] ss:$36 sps:$4 sm:$0xff]  }
 0x103   : > { %1632 = vmatprep.subr.bf16.mxu0 %v13275_v17  ;;  %v13306_v17 = vld [vmem:[#allocation2 + $0x2b0] ss:$28 sps:$4 sm:$0xff]  }
 0x104   : > { %12276 = vmatpush3.bf16.msra.mxu1 %v13300_v21  ;;  %v13313_v21 = vld [vmem:[#allocation2 + $0x27c] ss:$28 sps:$4 sm:$0xff]   ;;  %v13378_v4 = vld [vmem:[#allocation6 + $0x484] ss:$36 sps:$4 sm:$0xff]  }
 0x105   : > { %1445 = vmatmul.mubr.bf16.gmra.mxu0 %v15035_v22  ;;  %1558 = vmatmul.mubr.bf16.gmra.mxu1 %v15035_v22 }
 0x106   : > { %1633 = vmatpush1.bf16.msra.mxu0 %v13273_v23  ;;  %1454 = vmatprep.mubr.bf16.mxu0 %v15037_v24  ;;  %v642_v23 = vld [vmem:[%s15011_s27 + $0xe8] sm:$0xff] }
 0x107   : > { %1634 = vmatprep.subr.bf16.mxu0 %v13278_v25  ;;  %1567 = vmatprep.mubr.bf16.mxu1 %v15037_v24  ;;  %v644_v25 = vld [vmem:[%s15011_s27 + $0xf8] sm:$0xff] }
 0x108   : > { %12277 = vmatprep.subr.bf16.mxu1 %v13304_v29  ;;  %v15097_v28 = vpack.c.bf16 %v644_v25, %v642_v23  ;;  %v13318_v29 = vld [vmem:[#allocation2 + $0x244] ss:$28 sps:$4 sm:$0xff]  }
 0x109   : > { %12278 = vmatpush3.bf16.msra.mxu1 %v13305_v32  ;;  %v643_v32 = vld [vmem:[%s15011_s27 + $0xf0] sm:$0xff]  ;;  %v13408_v23 = vld [vmem:[#allocation6 + $0x79c] ss:$36 sps:$4 sm:$0xff]  }
 0x10a   : > { %1635 = vmatpush1.bf16.msra.mxu0 %v13276_v26  ;;  %12279 = vmatprep.subr.bf16.mxu1 %v13309_v33  ;;  %v15095_v26 = vpack.c.bf16 %v639_v20, %v637_v18  ;;  %v13323_v33 = vld [vmem:[#allocation2 + $0x20c] ss:$28 sps:$4 sm:$0xff]   ;;  %v15105_v34 = vpack.c.bf16 %v643_v32, %v641_v31  ;;  %v13394_v18 = vld [vmem:[#allocation6 + $0x828] ss:$36 sps:$4 sm:$0xff]   ;;  %v13403_v25 = vld [vmem:[#allocation6 + $0x318] ss:$36 sps:$4 sm:$0xff]  }
 0x10b   : > { %1636 = vmatprep.subr.bf16.mxu0 %v13281_v30  ;;  %v13316_v30 = vld [vmem:[#allocation2 + $0x240] ss:$28 sps:$4 sm:$0xff]   ;;  %v13402_v20 = vld [vmem:[#allocation6 + $0x7e4] ss:$36 sps:$4 sm:$0xff]   ;;  %v13417_v31 = vld [vmem:[#allocation6 + $0x28c] ss:$36 sps:$4 sm:$0xff]  }
 0x10c   : > { %v13420_v32 = vld [vmem:[#allocation6 + $0x70c] ss:$36 sps:$4 sm:$0xff]  }
 0x10d   : > { %1455 = vmatmul.mubr.bf16.gmra.mxu0 %v15047_v35  ;;  %1568 = vmatmul.mubr.bf16.gmra.mxu1 %v15047_v35 }
 0x10e   : > { %1637 = vmatpush1.bf16.msra.mxu0 %v13279_v36  ;;  %1464 = vmatprep.mubr.bf16.mxu0 %v15049_v37  ;;  %v13321_v36 = vld [vmem:[#allocation2 + $0x208] ss:$28 sps:$4 sm:$0xff]  }
 0x10f   : > { %1638 = vmatprep.subr.bf16.mxu0 %v13284_v38  ;;  %1577 = vmatprep.mubr.bf16.mxu1 %v15049_v37  ;;  %v13328_v38 = vld [vmem:[#allocation2 + $0x1d4] ss:$28 sps:$4 sm:$0xff]  }
 0x110   : > { %12280 = vmatpush3.bf16.msra.mxu1 %v13310_v41  ;;  %v13331_v41 = vld [vmem:[#allocation6 + $0x1f8] ss:$36 sps:$4 sm:$0xff]  }
 0x111   : > { %12281 = vmatprep.subr.bf16.mxu1 %v13314_v44  ;;  %v13342_v44 = vld [vmem:[#allocation6 + $0x634] ss:$36 sps:$4 sm:$0xff]  }
 0x112   : > { %1639 = vmatpush1.bf16.msra.mxu0 %v13282_v39  ;;  %v13326_v39 = vld [vmem:[#allocation2 + $0x1d0] ss:$28 sps:$4 sm:$0xff]  }
 0x113   : > { %1640 = vmatprep.subr.bf16.mxu0 %v13287_v43  ;;  %v13339_v43 = vld [vmem:[#allocation6 + $0x1b4] ss:$36 sps:$4 sm:$0xff]  }
 0x114   : > { %12282 = vmatpush3.bf16.msra.mxu1 %v13315_v47  ;;  %v13345_v47 = vld [vmem:[#allocation6 + $0x16c] ss:$36 sps:$4 sm:$0xff]  }
 0x115   : > { %1465 = vmatmul.mubr.bf16.gmra.mxu0 %v15059_v48  ;;  %1578 = vmatmul.mubr.bf16.gmra.mxu1 %v15059_v48 }
 0x116   : > { %1641 = vmatpush1.bf16.msra.mxu0 %v13285_v49  ;;  %1474 = vmatprep.mubr.bf16.mxu0 %v15061_v50  ;;  %v13343_v49 = vld [vmem:[#allocation6 + $0x168] ss:$36 sps:$4 sm:$0xff]  }
 0x117   : > { %1642 = vmatprep.subr.bf16.mxu0 %v13290_v52  ;;  %1587 = vmatprep.mubr.bf16.mxu1 %v15061_v50  ;;  %v13346_v52 = vld [vmem:[#allocation6 + $0x5e8] ss:$36 sps:$4 sm:$0xff]  }
 0x118   : > { %12283 = vmatprep.subr.bf16.mxu1 %v13319_v56  ;;  %v13360_v56 = vld [vmem:[#allocation6 + $0x55c] ss:$36 sps:$4 sm:$0xff]  }
 0x119   : > { %12284 = vmatpush3.bf16.msra.mxu1 %v13320_v59  ;;  %v13363_v59 = vld [vmem:[#allocation6 + $0x94] ss:$36 sps:$4 sm:$0xff]  }
 0x11a   : > { %1643 = vmatpush1.bf16.msra.mxu0 %v13288_v53  ;;  %12285 = vmatprep.subr.bf16.mxu1 %v13324_v60  ;;  %v13351_v53 = vld [vmem:[#allocation6 + $0x124] ss:$36 sps:$4 sm:$0xff]   ;;  %v13366_v60 = vld [vmem:[#allocation6 + $0x514] ss:$36 sps:$4 sm:$0xff]  }
 0x11b   : > { %1644 = vmatprep.subr.bf16.mxu0 %v13293_v57  ;;  %v13355_v57 = vld [vmem:[#allocation6 + $0xd8] ss:$36 sps:$4 sm:$0xff]  }
 0x11d   : > { %1475 = vmatmul.mubr.bf16.gmra.mxu0 %v15071_v62  ;;  %1588 = vmatmul.mubr.bf16.gmra.mxu1 %v15071_v62 }
 0x11e   : > { %1645 = vmatpush2.bf16.msra.mxu0 %v13291_v63  ;;  %1484 = vmatprep.mubr.bf16.mxu0 %v15073_v0  ;;  %v13372_v63 = vld [vmem:[#allocation6 + $0x4cc] ss:$36 sps:$4 sm:$0xff]  }
 0x11f   : > { %1646 = vmatprep.subr.bf16.mxu0 %v13298_v1  ;;  %1597 = vmatprep.mubr.bf16.mxu1 %v15073_v0  ;;  %v13367_v1 = vld [vmem:[#allocation6 + $0x48] ss:$36 sps:$4 sm:$0xff]  }
 0x120   : > { %12286 = vmatpush3.bf16.msra.mxu1 %v13325_v5  ;;  %v13381_v5 = vld [vmem:[#allocation6 + $0x43c] ss:$36 sps:$4 sm:$0xff]  }
 0x121   : > { %12287 = vmatprep.subr.bf16.mxu1 %v13329_v7  ;;  %v13379_v7 = vld [vmem:[#allocation6 + $0x438] ss:$36 sps:$4 sm:$0xff]  }
 0x122   : > { %1647 = vmatpush2.bf16.msra.mxu0 %v13296_v2  ;;  %v13370_v2 = vld [vmem:[#allocation6 + $0x4c8] ss:$36 sps:$4 sm:$0xff]  }
 0x123   : > { %1648 = vmatprep.subr.bf16.mxu0 %v13303_v6  ;;  %v13384_v6 = vld [vmem:[#allocation6 + $0x8bc] ss:$36 sps:$4 sm:$0xff]  }
 0x124   : > { %12288 = vmatpush3.bf16.msra.mxu1 %v13330_v12  ;;  %v13390_v12 = vld [vmem:[#allocation6 + $0x874] ss:$36 sps:$4 sm:$0xff]  }
 0x125   : > { %1485 = vmatmul.mubr.bf16.gmra.mxu0 %v15083_v13  ;;  %1598 = vmatmul.mubr.bf16.gmra.mxu1 %v15083_v13 }
 0x126   : > { %1649 = vmatpush2.bf16.msra.mxu0 %v13301_v14  ;;  %1494 = vmatprep.mubr.bf16.mxu0 %v15085_v15  ;;  %v13393_v14 = vld [vmem:[#allocation6 + $0x3ac] ss:$36 sps:$4 sm:$0xff]  }
 0x127   : > { %1650 = vmatprep.subr.bf16.mxu0 %v13308_v16  ;;  %1607 = vmatprep.mubr.bf16.mxu1 %v15085_v15  ;;  %v13396_v16 = vld [vmem:[#allocation6 + $0x82c] ss:$36 sps:$4 sm:$0xff]  }
 0x128   : > { %5304 = vmatprep.subr.bf16.mxu1 %v13336_v19  ;;  %v13399_v19 = vld [vmem:[#allocation6 + $0x364] ss:$36 sps:$4 sm:$0xff]  }
 0x12a   : > { %1651 = vmatpush2.bf16.msra.mxu0 %v13306_v17  ;;  %v13391_v17 = vld [vmem:[#allocation6 + $0x3a8] ss:$36 sps:$4 sm:$0xff]  }
 0x12b   : > { %1652 = vmatprep.subr.bf16.mxu0 %v13313_v21  ;;  %v13405_v21 = vld [vmem:[#allocation6 + $0x31c] ss:$36 sps:$4 sm:$0xff]  }
 0x12d   : > { %1495 = vmatmul.mubr.bf16.gmra.mxu0 %v15095_v26  ;;  %1608 = vmatmul.mubr.bf16.gmra.mxu1 %v15095_v26 }
 0x12e   : > { %1653 = vmatpush2.bf16.msra.mxu0 %v13311_v27  ;;  %1504 = vmatprep.mubr.bf16.mxu0 %v15097_v28  ;;  %v13406_v27 = vld [vmem:[#allocation6 + $0x798] ss:$36 sps:$4 sm:$0xff]  }
 0x12f   : > { %1654 = vmatprep.subr.bf16.mxu0 %v13318_v29  ;;  %1617 = vmatprep.mubr.bf16.mxu1 %v15097_v28  ;;  %v13411_v29 = vld [vmem:[#allocation6 + $0x2d4] ss:$36 sps:$4 sm:$0xff]  }
 0x132   : > { %1655 = vmatpush2.bf16.msra.mxu0 %v13316_v30  ;;  %v13412_v30 = vld [vmem:[#allocation6 + $0x750] ss:$36 sps:$4 sm:$0xff]  }
 0x133   : > { %1656 = vmatprep.subr.bf16.mxu0 %v13323_v33  ;;  %v13415_v33 = vld [vmem:[#allocation6 + $0x288] ss:$36 sps:$4 sm:$0xff]  }
 0x135   : > { %1505 = vmatmul.mubr.bf16.gmra.mxu0 %v15105_v34  ;;  %1618 = vmatmul.mubr.bf16.gmra.mxu1 %v15105_v34 }
 0x136   : > { %1657 = vmatpush2.bf16.msra.mxu0 %v13321_v36  ;;  %1660 = vmatprep.mubr.bf16.mxu0 %v15015_v51  ;;  %v13418_v36 = vld [vmem:[#allocation6 + $0x708] ss:$36 sps:$4 sm:$0xff]  }
 0x137   : > { %1658 = vmatprep.subr.bf16.mxu0 %v13328_v38  ;;  %1773 = vmatprep.mubr.bf16.mxu1 %v15015_v51  ;;  %v13348_v51 = vld [vmem:[#allocation6 + $0x5ec] ss:$36 sps:$4 sm:$0xff]   ;;  %v13423_v38 = vld [vmem:[#allocation6 + $0x244] ss:$36 sps:$4 sm:$0xff]  }
 0x13a   : > { %1659 = vmatpush2.bf16.msra.mxu0 %v13326_v39  ;;  %v13424_v39 = vld [vmem:[#allocation6 + $0x6c0] ss:$36 sps:$4 sm:$0xff]  }
 0x13b   : > { %5191 = vmatprep.subr.bf16.mxu0 %v13333_v40  ;;  %v13429_v40 = vld [vmem:[#allocation6 + $0xafc] ss:$36 sps:$4 sm:$0xff]  }
 0x13d   : > { %1661 = vmatmul.mubr.bf16.vlgmr.msra.gmra.mxu0 %v15023_v9  ;;  %1774 = vmatmul.mubr.bf16.vlgmr.msra.gmra.mxu1 %v15023_v9  ;;  %v13349_v9 = vld [vmem:[#allocation6 + $0x120] ss:$36 sps:$4 sm:$0xff]  }
 0x13e   : > { %1670 = vmatprep.mubr.bf16.mxu0 %v15025_v11  ;;  %1781 = vmatprep.mubr.bf16.mxu1 %v15025_v11  ;;  %v13352_v11 = vld [vmem:[#allocation6 + $0x5a0] ss:$36 sps:$4 sm:$0xff]  }
 0x13f   : > { %5192 = vmatpush1.bf16.msra.mxu0 %v13331_v41  ;;  %5305 = vmatpush1.bf16.msra.mxu1 %v13334_v42  ;;  %v13456_v41 = vld [vmem:[#allocation6 + $0xf7c] ss:$36 sps:$4 sm:$0xff]   ;;  %v791_v42 = vlaneseq }
 0x140   : > { %5193 = vmatprep.subr.bf16.mxu0 %v13339_v43  ;;  %5306 = vmatprep.subr.bf16.mxu1 %v13342_v44 }
 0x141   : > { %v15141_v43 = vshrl.u32 %v791_v42, 7 }
 0x143   : > { %5194 = vmatpush1.bf16.msra.mxu0 %v13337_v45  ;;  %5307 = vmatpush1.bf16.msra.mxu1 %v13340_v46  ;;  %17805 = vst [vmem:[#allocation28_spill] sm:$0xff] %v15141_v43  ;;  %v15144_v44 = vsub.s32 2, %v15141_v43  ;;  %v15149_v45 = vld [vmem:[#allocation4] sm:$0xff]  ;;  %v15152_v46 = vsub.s32 1, %v15141_v43 }
 0x144   : > { %5195 = vmatprep.subr.bf16.mxu0 %v13345_v47  ;;  %5308 = vmatprep.subr.bf16.mxu1 %v13348_v51  ;;  %v15155_v47 = vsub.s32 0, %v15141_v43 }
 0x145   : > { %1671 = vmatmul.mubr.bf16.gmra.mxu0 %v15035_v22  ;;  %1782 = vmatmul.mubr.bf16.gmra.mxu1 %v15035_v22  ;;  %v13361_v22 = vld [vmem:[#allocation6 + $0x90] ss:$36 sps:$4 sm:$0xff]   ;;  %17806 = vst [vmem:[#allocation29_spill] sm:$0xff] %v15144_v44  ;;  %17808 = vst [vmem:[#allocation31_spill] sm:$0xff] %v15152_v46  ;;  %v15159_v51 = vrot.slane %v15149_v45, %v15144_v44 }
 0x146   : > { %1680 = vmatprep.mubr.bf16.mxu0 %v15037_v24  ;;  %1789 = vmatprep.mubr.bf16.mxu1 %v15037_v24  ;;  %v13364_v24 = vld [vmem:[#allocation6 + $0x510] ss:$36 sps:$4 sm:$0xff]   ;;  %17809 = vst [vmem:[#allocation32_spill] sm:$0xff] %v15155_v47 }
 0x147   : > { %5196 = vmatpush1.bf16.msra.mxu0 %v13343_v49  ;;  %5309 = vmatpush1.bf16.msra.mxu1 %v13346_v52 }
 0x148   : > { %5197 = vmatprep.subr.bf16.mxu0 %v13351_v53  ;;  %5310 = vmatprep.subr.bf16.mxu1 %v13354_v54  ;;  %v15167_v54 = vrot.slane %v15149_v45, %v15152_v46  ;;  %v13511_v46 = vld [vmem:[#allocation6 + $0x170] ss:$36 sps:$4 sm:$0xff]  }
 0x14b   : > { %5198 = vmatpush1.bf16.msra.mxu0 %v13349_v9  ;;  %5311 = vmatpush1.bf16.msra.mxu1 %v13352_v11  ;;  %v15171_v9 = vrot.slane %v15149_v45, %v15155_v47  ;;  %v13519_v47 = vld [vmem:[#allocation6 + $0x12c] ss:$36 sps:$4 sm:$0xff]  }
 0x14c   : > { %5199 = vmatprep.subr.bf16.mxu0 %v13357_v55  ;;  %5312 = vmatprep.subr.bf16.mxu1 %v13360_v56 }
 0x14d   : > { %1681 = vmatmul.mubr.bf16.gmra.mxu0 %v15047_v35  ;;  %1790 = vmatmul.mubr.bf16.gmra.mxu1 %v15047_v35  ;;  %v13373_v35 = vld [vmem:[#allocation6] ss:$36 sps:$4 sm:$0xff]  }
 0x14e   : > { %1690 = vmatprep.mubr.bf16.mxu0 %v15049_v37  ;;  %1797 = vmatprep.mubr.bf16.mxu1 %v15049_v37  ;;  %v13376_v37 = vld [vmem:[#allocation6 + $0x480] ss:$36 sps:$4 sm:$0xff]  }
 0x14f   : > { %5200 = vmatpush1.bf16.msra.mxu0 %v13355_v57  ;;  %5313 = vmatpush1.bf16.msra.mxu1 %v13358_v58 }
 0x150   : > { %5201 = vmatprep.subr.bf16.mxu0 %v13363_v59  ;;  %5314 = vmatprep.subr.bf16.mxu1 %v13366_v60 }
 0x153   : > { %5202 = vmatpush1.bf16.msra.mxu0 %v13361_v22  ;;  %5315 = vmatpush1.bf16.msra.mxu1 %v13364_v24 }
 0x154   : > { %5203 = vmatprep.subr.bf16.mxu0 %v13369_v61  ;;  %5316 = vmatprep.subr.bf16.mxu1 %v13372_v63 }
 0x155   : > { %1691 = vmatmul.mubr.bf16.gmra.mxu0 %v15059_v48  ;;  %1798 = vmatmul.mubr.bf16.gmra.mxu1 %v15059_v48  ;;  %v13385_v48 = vld [vmem:[#allocation6 + $0x3f0] ss:$36 sps:$4 sm:$0xff]  }
 0x156   : > { %1700 = vmatprep.mubr.bf16.mxu0 %v15061_v50  ;;  %1805 = vmatprep.mubr.bf16.mxu1 %v15061_v50  ;;  %v13388_v50 = vld [vmem:[#allocation6 + $0x870] ss:$36 sps:$4 sm:$0xff]  }
 0x157   : > { %5204 = vmatpush1.bf16.msra.mxu0 %v13367_v1  ;;  %5317 = vmatpush1.bf16.msra.mxu1 %v13370_v2 }
 0x158   : > { %5205 = vmatprep.subr.bf16.mxu0 %v13375_v3  ;;  %5318 = vmatprep.subr.bf16.mxu1 %v13378_v4 }
 0x15b   : > { %5206 = vmatpush1.bf16.msra.mxu0 %v13373_v35  ;;  %5319 = vmatpush1.bf16.msra.mxu1 %v13376_v37 }
 0x15c   : > { %5207 = vmatprep.subr.bf16.mxu0 %v13381_v5  ;;  %5320 = vmatprep.subr.bf16.mxu1 %v13384_v6 }
 0x15d   : > { %1701 = vmatmul.mubr.bf16.gmra.mxu0 %v15071_v62  ;;  %1806 = vmatmul.mubr.bf16.gmra.mxu1 %v15071_v62  ;;  %v13397_v62 = vld [vmem:[#allocation6 + $0x360] ss:$36 sps:$4 sm:$0xff]  }
 0x15e   : > { %1710 = vmatprep.mubr.bf16.mxu0 %v15073_v0  ;;  %1813 = vmatprep.mubr.bf16.mxu1 %v15073_v0  ;;  %v13400_v0 = vld [vmem:[#allocation6 + $0x7e0] ss:$36 sps:$4 sm:$0xff]  }
 0x15f   : > { %5208 = vmatpush2.bf16.msra.mxu0 %v13379_v7  ;;  %5321 = vmatpush2.bf16.msra.mxu1 %v13382_v8 }
 0x160   : > { %5209 = vmatprep.subr.bf16.mxu0 %v13387_v10  ;;  %5322 = vmatprep.subr.bf16.mxu1 %v13390_v12 }
 0x163   : > { %5210 = vmatpush2.bf16.msra.mxu0 %v13385_v48  ;;  %5323 = vmatpush2.bf16.msra.mxu1 %v13388_v50  ;;  %v13427_v48 = vld [vmem:[#allocation6 + $0xaf8] ss:$36 sps:$4 sm:$0xff]  }
 0x164   : > { %5211 = vmatprep.subr.bf16.mxu0 %v13393_v14  ;;  %5324 = vmatprep.subr.bf16.mxu1 %v13396_v16 }
 0x165   : > { %1711 = vmatmul.mubr.bf16.gmra.mxu0 %v15083_v13  ;;  %1814 = vmatmul.mubr.bf16.gmra.mxu1 %v15083_v13  ;;  %v13414_v13 = vld [vmem:[#allocation6 + $0x754] ss:$36 sps:$4 sm:$0xff]  }
 0x166   : > { %1720 = vmatprep.mubr.bf16.mxu0 %v15085_v15  ;;  %1821 = vmatprep.mubr.bf16.mxu1 %v15085_v15  ;;  %v13409_v15 = vld [vmem:[#allocation6 + $0x2d0] ss:$36 sps:$4 sm:$0xff]  }
 0x167   : > { %5212 = vmatpush2.bf16.msra.mxu0 %v13391_v17  ;;  %5325 = vmatpush2.bf16.msra.mxu1 %v13394_v18 }
 0x168   : > { %5213 = vmatprep.subr.bf16.mxu0 %v13399_v19  ;;  %5326 = vmatprep.subr.bf16.mxu1 %v13402_v20  ;;  %v13432_v19 = vld [vmem:[#allocation6 + $0xab4] ss:$36 sps:$4 sm:$0xff]  }
 0x169   : > { %v13454_v20 = vld [vmem:[#allocation6 + $0xf78] ss:$36 sps:$4 sm:$0xff]  }
 0x16b   : > { %5214 = vmatpush2.bf16.msra.mxu0 %v13397_v62  ;;  %5327 = vmatpush2.bf16.msra.mxu1 %v13400_v0 }
 0x16c   : > { %5215 = vmatprep.subr.bf16.mxu0 %v13405_v21  ;;  %5328 = vmatprep.subr.bf16.mxu1 %v13408_v23  ;;  %v13462_v23 = vld [vmem:[#allocation6 + $0xf34] ss:$36 sps:$4 sm:$0xff]  }
 0x16d   : > { %1721 = vmatmul.mubr.bf16.gmra.mxu0 %v15095_v26  ;;  %1822 = vmatmul.mubr.bf16.gmra.mxu1 %v15095_v26  ;;  %v13426_v26 = vld [vmem:[#allocation6 + $0x6c4] ss:$36 sps:$4 sm:$0xff]  }
 0x16e   : > { %1730 = vmatprep.mubr.bf16.mxu0 %v15097_v28  ;;  %1829 = vmatprep.mubr.bf16.mxu1 %v15097_v28  ;;  %v13421_v28 = vld [vmem:[#allocation6 + $0x240] ss:$36 sps:$4 sm:$0xff]  }
 0x16f   : > { %5216 = vmatpush2.bf16.msra.mxu0 %v13403_v25  ;;  %5329 = vmatpush2.bf16.msra.mxu1 %v13406_v27 }
 0x170   : > { %5217 = vmatprep.subr.bf16.mxu0 %v13411_v29  ;;  %5330 = vmatprep.subr.bf16.mxu1 %v13414_v13 }
 0x173   : > { %5218 = vmatpush2.bf16.msra.mxu0 %v13409_v15  ;;  %5331 = vmatpush2.bf16.msra.mxu1 %v13412_v30 }
 0x174   : > { %5219 = vmatprep.subr.bf16.mxu0 %v13417_v31  ;;  %5332 = vmatprep.subr.bf16.mxu1 %v13420_v32 }
 0x175   : > { %1731 = vmatmul.mubr.bf16.gmra.mxu0 %v15105_v34  ;;  %1830 = vmatmul.mubr.bf16.gmra.mxu1 %v15105_v34  ;;  %v15147_v34 = vsub.s32 3, %v15141_v43 }
 0x177   : > { %5220 = vmatpush2.bf16.msra.mxu0 %v13415_v33  ;;  %5333 = vmatpush2.bf16.msra.mxu1 %v13418_v36  ;;  %17807 = vst [vmem:[#allocation30_spill] sm:$0xff] %v15147_v34  ;;  %v15163_v49 = vrot.slane %v15149_v45, %v15147_v34 }
 0x178   : > { %5221 = vmatprep.subr.bf16.mxu0 %v13423_v38  ;;  %5334 = vmatprep.subr.bf16.mxu1 %v13426_v26  ;;  %v13430_v38 = vld [vmem:[#allocation6 + $0xab0] ss:$36 sps:$4 sm:$0xff]  }
 0x17b   : > { %5222 = vmatpush2.bf16.msra.mxu0 %v13421_v28  ;;  %5335 = vmatpush2.bf16.msra.mxu1 %v13424_v39 }
 0x17c   : > { %5417 = vmatprep.subr.bf16.mxu0 %v13429_v40  ;;  %5530 = vmatprep.subr.bf16.mxu1 %v13456_v41 }
 0x1bd   : > { %v1436_v52 = vpop.f32.mrf.mxu0  ;;  %v1549_v53 = vpop.f32.mrf.mxu1 }
 0x1be   : > { %v1550_v11 = vadd.f32 %v1549_v53, %v15159_v51  ;;  %v1437_v61 = vadd.f32 %v1436_v52, %v15171_v9  ;;  %v13435_v53 = vld [vmem:[#allocation6 + $0xa6c] ss:$36 sps:$4 sm:$0xff]  }
 0x1bf   : > { %v1438_v55 = vpop.f32.mrf.mxu0  ;;  %v1551_v56 = vpop.f32.mrf.mxu1 }
 0x1c0   : > { %v1552_v57 = vadd.f32 %v1551_v56, %v15163_v49  ;;  %v1439_v60 = vadd.f32 %v1438_v55, %v15167_v54  ;;  %v1840_v63 = vmax.f32 %v1550_v11, 0.0  ;;  %v1838_v50 = vmax.f32 %v1437_v61, 0.0  ;;  %v13460_v11 = vld [vmem:[#allocation6 + $0xf30] ss:$36 sps:$4 sm:$0xff]  }
 0x1c1   : > { %v1440_v58 = vpop.f32.mrf.mxu0  ;;  %v1553_v59 = vpop.f32.mrf.mxu1 }
 0x1c2   : > { %v1441_v22 = vadd.f32 %v1440_v58, %v15171_v9  ;;  %v1554_v24 = vadd.f32 %v1553_v59, %v15159_v51  ;;  %v1841_v3 = vmax.f32 %v1552_v57, 0.0  ;;  %v1839_v8 = vmax.f32 %v1439_v60, 0.0  ;;  %v13433_v58 = vld [vmem:[#allocation6 + $0xa68] ss:$36 sps:$4 sm:$0xff]  }
 0x1c3   : > { %v1442_v1 = vpop.f32.mrf.mxu0  ;;  %v1555_v2 = vpop.f32.mrf.mxu1  ;;  %v13468_v59 = vld [vmem:[#allocation6 + $0xeec] ss:$36 sps:$4 sm:$0xff]  }
 0x1c4   : > { %v1847_v4 = vmax.f32 %v1554_v24, 0.0  ;;  %v1443_v35 = vadd.f32 %v1442_v1, %v15167_v54  ;;  %v1556_v37 = vadd.f32 %v1555_v2, %v15163_v49  ;;  %v1845_v5 = vmax.f32 %v1441_v22, 0.0  ;;  %v13438_v1 = vld [vmem:[#allocation6 + $0xa24] ss:$36 sps:$4 sm:$0xff]  }
 0x1c5   : > { %v1446_v6 = vpop.f32.mrf.mxu0  ;;  %v1559_v7 = vpop.f32.mrf.mxu1  ;;  %v13466_v2 = vld [vmem:[#allocation6 + $0xee8] ss:$36 sps:$4 sm:$0xff]  }
 0x1c6   : > { %v1846_v10 = vmax.f32 %v1443_v35, 0.0  ;;  %v1848_v12 = vmax.f32 %v1556_v37, 0.0  ;;  %v15181_v14 = vpack.c.bf16 %v1847_v4, %v1840_v63  ;;  %v1560_v16 = vadd.f32 %v1559_v7, %v15159_v51 }
 0x1c7   : > { %v1448_v17 = vpop.f32.mrf.mxu0  ;;  %v1561_v18 = vpop.f32.mrf.mxu1  ;;  %v15189_v25 = vpack.c.bf16 %v1845_v5, %v1838_v50  ;;  %v1447_v31 = vadd.f32 %v1446_v6, %v15171_v9 }
 0x1c8   : > { %17810 = vst [vmem:[#allocation33_spill] sm:$0xff] %v15181_v14  ;;  %v15184_v62 = vpack.c.bf16 %v1846_v10, %v1839_v8  ;;  %v15186_v0 = vpack.c.bf16 %v1848_v12, %v1841_v3  ;;  %v1562_v21 = vadd.f32 %v1561_v18, %v15163_v49  ;;  %v1449_v13 = vadd.f32 %v1448_v17, %v15167_v54  ;;  %v13474_v12 = vld [vmem:[#allocation6 + $0xea4] ss:$36 sps:$4 sm:$0xff]  }
 0x1c9   : > { %17813 = vst [vmem:[#allocation36_spill] sm:$0xff] %v15189_v25  ;;  %v1450_v27 = vpop.f32.mrf.mxu0  ;;  %v1563_v29 = vpop.f32.mrf.mxu1  ;;  %v1854_v32 = vmax.f32 %v1560_v16, 0.0  ;;  %v1852_v60 = vmax.f32 %v1447_v31, 0.0  ;;  %v13436_v18 = vld [vmem:[#allocation6 + $0xa20] ss:$36 sps:$4 sm:$0xff]  }
 0x1ca   : > { %17811 = vst [vmem:[#allocation34_spill] sm:$0xff] %v15184_v62  ;;  %17812 = vst [vmem:[#allocation35_spill] sm:$0xff] %v15186_v0  ;;  %v1451_v15 = vadd.f32 %v1450_v27, %v15171_v9  ;;  %v1564_v30 = vadd.f32 %v1563_v29, %v15159_v51  ;;  %5223 = vmatprep.mubr.bf16.mxu0 %v15184_v62  ;;  %5336 = vmatprep.mubr.bf16.mxu1 %v15186_v0  ;;  %v1855_v26 = vmax.f32 %v1562_v21, 0.0 }
 0x1cb   : > { %v1452_v33 = vpop.f32.mrf.mxu0  ;;  %v1565_v36 = vpop.f32.mrf.mxu1  ;;  %5224 = vmatmul.mubr.bf16.vlgmr.msra.gmra.mxu0 %v15189_v25  ;;  %5337 = vmatmul.mubr.bf16.vlgmr.msra.gmra.mxu1 %v15181_v14  ;;  %v1853_v55 = vmax.f32 %v1449_v13, 0.0 }
 0x1cc   : > { %v1861_v28 = vmax.f32 %v1564_v30, 0.0  ;;  %v1453_v39 = vadd.f32 %v1452_v33, %v15167_v54  ;;  %v1566_v40 = vadd.f32 %v1565_v36, %v15163_v49  ;;  %5418 = vmatpush1.bf16.msra.mxu0 %v13427_v48  ;;  %5531 = vmatpush1.bf16.msra.mxu1 %v13454_v20  ;;  %v1859_v41 = vmax.f32 %v1451_v15, 0.0  ;;  %v13441_v15 = vld [vmem:[#allocation6 + $0x9dc] ss:$36 sps:$4 sm:$0xff]  }
 0x1cd   : > { %v1456_v42 = vpop.f32.mrf.mxu0  ;;  %v1569_v52 = vpop.f32.mrf.mxu1  ;;  %5419 = vmatprep.subr.bf16.mxu0 %v13432_v19  ;;  %5532 = vmatprep.subr.bf16.mxu1 %v13462_v23  ;;  %v13472_v30 = vld [vmem:[#allocation6 + $0xea0] ss:$36 sps:$4 sm:$0xff]   ;;  %v13439_v36 = vld [vmem:[#allocation6 + $0x9d8] ss:$36 sps:$4 sm:$0xff]  }
 0x1ce   : > { %v1860_v56 = vmax.f32 %v1453_v39, 0.0  ;;  %v1862_v57 = vmax.f32 %v1566_v40, 0.0  ;;  %v15201_v22 = vpack.c.bf16 %v1861_v28, %v1854_v32  ;;  %v1570_v24 = vadd.f32 %v1569_v52, %v15159_v51  ;;  %v13478_v52 = vld [vmem:[#allocation6 + $0xe58] ss:$36 sps:$4 sm:$0xff]  }
 0x1cf   : > { %v1458_v61 = vpop.f32.mrf.mxu0  ;;  %v1571_v63 = vpop.f32.mrf.mxu1  ;;  %v15209_v37 = vpack.c.bf16 %v1859_v41, %v1852_v60  ;;  %v1457_v48 = vadd.f32 %v1456_v42, %v15171_v9  ;;  %v13444_v42 = vld [vmem:[#allocation6 + $0x994] ss:$36 sps:$4 sm:$0xff]  }
 0x1d0   : > { %v15204_v3 = vpack.c.bf16 %v1860_v56, %v1853_v55  ;;  %v15206_v4 = vpack.c.bf16 %v1862_v57, %v1855_v26  ;;  %v1572_v35 = vadd.f32 %v1571_v63, %v15163_v49  ;;  %5420 = vmatpush1.bf16.msra.mxu0 %v13430_v38  ;;  %5533 = vmatpush1.bf16.msra.mxu1 %v13460_v11  ;;  %v1868_v50 = vmax.f32 %v1570_v24, 0.0  ;;  %v13480_v38 = vld [vmem:[#allocation6 + $0xe5c] ss:$36 sps:$4 sm:$0xff]  }
 0x1d1   : > { %v1460_v5 = vpop.f32.mrf.mxu0  ;;  %v1573_v6 = vpop.f32.mrf.mxu1  ;;  %5421 = vmatprep.subr.bf16.mxu0 %v13435_v53  ;;  %v1459_v7 = vadd.f32 %v1458_v61, %v15167_v54  ;;  %5534 = vmatprep.subr.bf16.mxu1 %v13468_v59  ;;  %v1866_v26 = vmax.f32 %v1457_v48, 0.0  ;;  %v13486_v61 = vld [vmem:[#allocation6 + $0xe14] ss:$36 sps:$4 sm:$0xff]  }
 0x1d2   : > { %17814 = vst [vmem:[#allocation37_spill] sm:$0xff] %v15204_v3  ;;  %17815 = vst [vmem:[#allocation38_spill] sm:$0xff] %v15206_v4  ;;  %v1461_v8 = vadd.f32 %v1460_v5, %v15171_v9  ;;  %v1574_v10 = vadd.f32 %v1573_v6, %v15159_v51  ;;  %5233 = vmatprep.mubr.bf16.mxu0 %v15204_v3  ;;  %5346 = vmatprep.mubr.bf16.mxu1 %v15206_v4  ;;  %v1869_v19 = vmax.f32 %v1572_v35, 0.0  ;;  %v13442_v5 = vld [vmem:[#allocation6 + $0x990] ss:$36 sps:$4 sm:$0xff]  }
 0x1d3   : > { %v1462_v16 = vpop.f32.mrf.mxu0  ;;  %v1575_v17 = vpop.f32.mrf.mxu1  ;;  %5234 = vmatmul.mubr.bf16.gmra.mxu0 %v15209_v37  ;;  %5347 = vmatmul.mubr.bf16.gmra.mxu1 %v15201_v22  ;;  %v1867_v31 = vmax.f32 %v1459_v7, 0.0 }
 0x1d4   : > { %v1875_v20 = vmax.f32 %v1574_v10, 0.0  ;;  %v1463_v21 = vadd.f32 %v1462_v16, %v15167_v54  ;;  %v1576_v23 = vadd.f32 %v1575_v17, %v15163_v49  ;;  %5422 = vmatpush1.bf16.msra.mxu0 %v13433_v58  ;;  %v1873_v27 = vmax.f32 %v1461_v8, 0.0  ;;  %5535 = vmatpush1.bf16.msra.mxu1 %v13466_v2  ;;  %v13447_v16 = vld [vmem:[#allocation6 + $0x94c] ss:$36 sps:$4 sm:$0xff]  }
 0x1d5   : > { %v1466_v29 = vpop.f32.mrf.mxu0  ;;  %v1579_v13 = vpop.f32.mrf.mxu1  ;;  %5423 = vmatprep.subr.bf16.mxu0 %v13438_v1  ;;  %5536 = vmatprep.subr.bf16.mxu1 %v13474_v12  ;;  %v13484_v17 = vld [vmem:[#allocation6 + $0xe10] ss:$36 sps:$4 sm:$0xff]  }
 0x1d6   : > { %v1874_v32 = vmax.f32 %v1463_v21, 0.0  ;;  %v1876_v33 = vmax.f32 %v1576_v23, 0.0  ;;  %v15221_v28 = vpack.c.bf16 %v1875_v20, %v1868_v50  ;;  %v1580_v39 = vadd.f32 %v1579_v13, %v15159_v51  ;;  %v13445_v21 = vld [vmem:[#allocation6 + $0x948] ss:$36 sps:$4 sm:$0xff]  }
 0x1d7   : > { %v1468_v40 = vpop.f32.mrf.mxu0  ;;  %v1581_v41 = vpop.f32.mrf.mxu1  ;;  %v15229_v56 = vpack.c.bf16 %v1873_v27, %v1866_v26  ;;  %v1467_v63 = vadd.f32 %v1466_v29, %v15171_v9  ;;  %v13492_v23 = vld [vmem:[#allocation6 + $0xdcc] ss:$36 sps:$4 sm:$0xff]  }
 0x1d8   : > { %v15224_v53 = vpack.c.bf16 %v1874_v32, %v1867_v31  ;;  %v15226_v11 = vpack.c.bf16 %v1876_v33, %v1869_v19  ;;  %v1582_v55 = vadd.f32 %v1581_v41, %v15163_v49  ;;  %5424 = vmatpush1.bf16.msra.mxu0 %v13436_v18  ;;  %5537 = vmatpush1.bf16.msra.mxu1 %v13472_v30  ;;  %v1882_v1 = vmax.f32 %v1580_v39, 0.0  ;;  %v13450_v31 = vld [vmem:[#allocation6 + $0x904] ss:$36 sps:$4 sm:$0xff]  }
 0x1d9   : > { %v1470_v57 = vpop.f32.mrf.mxu0  ;;  %v1583_v58 = vpop.f32.mrf.mxu1  ;;  %5425 = vmatprep.subr.bf16.mxu0 %v13441_v15  ;;  %v1469_v59 = vadd.f32 %v1468_v40, %v15167_v54  ;;  %5538 = vmatprep.subr.bf16.mxu1 %v13480_v38  ;;  %v1880_v27 = vmax.f32 %v1467_v63, 0.0  ;;  %v13490_v32 = vld [vmem:[#allocation6 + $0xdc8] ss:$36 sps:$4 sm:$0xff]  }
 0x1da   : > { %v1471_v60 = vadd.f32 %v1470_v57, %v15171_v9  ;;  %v1584_v24 = vadd.f32 %v1583_v58, %v15159_v51  ;;  %5243 = vmatprep.mubr.bf16.mxu0 %v15224_v53  ;;  %5356 = vmatprep.mubr.bf16.mxu1 %v15226_v11  ;;  %v1883_v6 = vmax.f32 %v1582_v55, 0.0  ;;  %v13498_v55 = vld [vmem:[#allocation6 + $0xd84] ss:$36 sps:$4 sm:$0xff]  }
 0x1db   : > { %v1472_v2 = vpop.f32.mrf.mxu0  ;;  %v1585_v35 = vpop.f32.mrf.mxu1  ;;  %5244 = vmatmul.mubr.bf16.gmra.mxu0 %v15229_v56  ;;  %5357 = vmatmul.mubr.bf16.gmra.mxu1 %v15221_v28  ;;  %v1881_v18 = vmax.f32 %v1469_v59, 0.0 }
 0x1dc   : > { %v1889_v7 = vmax.f32 %v1584_v24, 0.0  ;;  %v1473_v8 = vadd.f32 %v1472_v2, %v15167_v54  ;;  %v1586_v10 = vadd.f32 %v1585_v35, %v15163_v49  ;;  %5426 = vmatpush1.bf16.msra.mxu0 %v13439_v36  ;;  %v1887_v12 = vmax.f32 %v1471_v60, 0.0  ;;  %5539 = vmatpush1.bf16.msra.mxu1 %v13478_v52  ;;  %v13448_v24 = vld [vmem:[#allocation6 + $0x900] ss:$36 sps:$4 sm:$0xff]  }
 0x1dd   : > { %v1476_v48 = vpop.f32.mrf.mxu0  ;;  %v1589_v50 = vpop.f32.mrf.mxu1  ;;  %5427 = vmatprep.subr.bf16.mxu0 %v13444_v42  ;;  %5540 = vmatprep.subr.bf16.mxu1 %v13486_v61 }
 0x1de   : > { %v1888_v19 = vmax.f32 %v1473_v8, 0.0  ;;  %v1890_v20 = vmax.f32 %v1586_v10, 0.0  ;;  %v15241_v29 = vpack.c.bf16 %v1889_v7, %v1882_v1  ;;  %v1590_v13 = vadd.f32 %v1589_v50, %v15159_v51  ;;  %v13453_v7 = vld [vmem:[#allocation6 + $0xd3c] ss:$36 sps:$4 sm:$0xff]  }
 0x1df   : > { %v1478_v15 = vpop.f32.mrf.mxu0  ;;  %v1591_v30 = vpop.f32.mrf.mxu1  ;;  %v15249_v26 = vpack.c.bf16 %v1887_v12, %v1880_v27  ;;  %v1477_v57 = vadd.f32 %v1476_v48, %v15171_v9  ;;  %v13496_v8 = vld [vmem:[#allocation6 + $0xd80] ss:$36 sps:$4 sm:$0xff]   ;;  %v13451_v50 = vld [vmem:[#allocation6 + $0xd38] ss:$36 sps:$4 sm:$0xff]  }
 0x1e0   : > { %v15244_v33 = vpack.c.bf16 %v1888_v19, %v1881_v18  ;;  %v15246_v36 = vpack.c.bf16 %v1890_v20, %v1883_v6  ;;  %v1592_v38 = vadd.f32 %v1591_v30, %v15163_v49  ;;  %5428 = vmatpush1.bf16.msra.mxu0 %v13442_v5  ;;  %5541 = vmatpush1.bf16.msra.mxu1 %v13484_v17  ;;  %v1896_v58 = vmax.f32 %v1590_v13, 0.0 }
 0x1e1   : > { %v1480_v39 = vpop.f32.mrf.mxu0  ;;  %v1593_v40 = vpop.f32.mrf.mxu1  ;;  %5429 = vmatprep.subr.bf16.mxu0 %v13447_v16  ;;  %v1479_v41 = vadd.f32 %v1478_v15, %v15167_v54  ;;  %5542 = vmatprep.subr.bf16.mxu1 %v13492_v23  ;;  %v13504_v16 = vld [vmem:[#allocation6 + $0x684] ss:$36 sps:$4 sm:$0xff]   ;;  %v1894_v17 = vmax.f32 %v1477_v57, 0.0  ;;  %v13459_v23 = vld [vmem:[#allocation6 + $0xcf4] ss:$36 sps:$4 sm:$0xff]  }
 0x1e2   : > { %v1481_v42 = vadd.f32 %v1480_v39, %v15171_v9  ;;  %v1594_v52 = vadd.f32 %v1593_v40, %v15159_v51  ;;  %5253 = vmatprep.mubr.bf16.mxu0 %v15244_v33  ;;  %5366 = vmatprep.mubr.bf16.mxu1 %v15246_v36  ;;  %v1897_v61 = vmax.f32 %v1592_v38, 0.0 }
 0x1e3   : > { %v1482_v59 = vpop.f32.mrf.mxu0  ;;  %v1595_v60 = vpop.f32.mrf.mxu1  ;;  %5254 = vmatmul.mubr.bf16.gmra.mxu0 %v15249_v26  ;;  %5367 = vmatmul.mubr.bf16.gmra.mxu1 %v15241_v29  ;;  %v1895_v10 = vmax.f32 %v1479_v41, 0.0 }
 0x1e4   : > { %v1903_v63 = vmax.f32 %v1594_v52, 0.0  ;;  %v1483_v1 = vadd.f32 %v1482_v59, %v15167_v54  ;;  %v1596_v2 = vadd.f32 %v1595_v60, %v15163_v49  ;;  %5430 = vmatpush1.bf16.msra.mxu0 %v13445_v21  ;;  %v1901_v35 = vmax.f32 %v1481_v42, 0.0  ;;  %5543 = vmatpush1.bf16.msra.mxu1 %v13490_v32 }
 0x1e5   : > { %v1486_v5 = vpop.f32.mrf.mxu0  ;;  %v1599_v6 = vpop.f32.mrf.mxu1  ;;  %5431 = vmatprep.subr.bf16.mxu0 %v13450_v31  ;;  %5544 = vmatprep.subr.bf16.mxu1 %v13498_v55 }
 0x1e6   : > { %v1902_v12 = vmax.f32 %v1483_v1, 0.0  ;;  %v1904_v48 = vmax.f32 %v1596_v2, 0.0  ;;  %v15261_v18 = vpack.c.bf16 %v1903_v63, %v1896_v58  ;;  %v1600_v19 = vadd.f32 %v1599_v6, %v15159_v51 }
 0x1e7   : > { %v1488_v20 = vpop.f32.mrf.mxu0  ;;  %v1601_v21 = vpop.f32.mrf.mxu1  ;;  %v15269_v30 = vpack.c.bf16 %v1901_v35, %v1894_v17  ;;  %v1487_v41 = vadd.f32 %v1486_v5, %v15171_v9  ;;  %v13465_v35 = vld [vmem:[#allocation6 + $0xcac] ss:$36 sps:$4 sm:$0xff]  }
 0x1e8   : > { %17816 = vst [vmem:[#allocation39_spill] sm:$0xff] %v15261_v18  ;;  %v15264_v27 = vpack.c.bf16 %v1902_v12, %v1895_v10  ;;  %v15266_v13 = vpack.c.bf16 %v1904_v48, %v1897_v61  ;;  %v1602_v15 = vadd.f32 %v1601_v21, %v15163_v49  ;;  %5432 = vmatpush1.bf16.msra.mxu0 %v13448_v24  ;;  %v1910_v42 = vmax.f32 %v1600_v19, 0.0  ;;  %v13457_v24 = vld [vmem:[#allocation6 + $0xcf0] ss:$36 sps:$4 sm:$0xff]   ;;  %v13463_v19 = vld [vmem:[#allocation6 + $0xca8] ss:$36 sps:$4 sm:$0xff]  }
 0x1e9   : > { %17817 = vst [vmem:[#allocation40_spill] sm:$0xff] %v15269_v30  ;;  %v1489_v31 = vadd.f32 %v1488_v20, %v15167_v54  ;;  %v1490_v32 = vpop.f32.mrf.mxu0  ;;  %v1603_v38 = vpop.f32.mrf.mxu1  ;;  %5433 = vmatprep.subr.bf16.mxu0 %v13453_v7  ;;  %5545 = vmatpush1.bf16.msra.mxu1 %v13496_v8  ;;  %v1908_v7 = vmax.f32 %v1487_v41, 0.0 }
 0x1ea   : > { %v1491_v39 = vadd.f32 %v1490_v32, %v15171_v9  ;;  %v1604_v40 = vadd.f32 %v1603_v38, %v15159_v51  ;;  %5263 = vmatprep.mubr.bf16.mxu0 %v15264_v27  ;;  %5376 = vmatprep.mubr.bf16.mxu1 %v15266_v13  ;;  %v1911_v57 = vmax.f32 %v1602_v15, 0.0 }
 0x1eb   : > { %v1492_v52 = vpop.f32.mrf.mxu0  ;;  %v1605_v55 = vpop.f32.mrf.mxu1  ;;  %5264 = vmatmul.mubr.bf16.gmra.mxu0 %v15269_v30  ;;  %5377 = vmatmul.mubr.bf16.gmra.mxu1 %v15261_v18  ;;  %v1909_v61 = vmax.f32 %v1489_v31, 0.0  ;;  %v13471_v31 = vld [vmem:[#allocation6 + $0xc64] ss:$36 sps:$4 sm:$0xff]  }
 0x1ec   : > { %v1917_v58 = vmax.f32 %v1604_v40, 0.0  ;;  %v1493_v59 = vadd.f32 %v1492_v52, %v15167_v54  ;;  %v1606_v60 = vadd.f32 %v1605_v55, %v15163_v49  ;;  %5434 = vmatpush2.bf16.msra.mxu0 %v13451_v50  ;;  %5756 = vmatprep.subr.bf16.mxu1 %v13504_v16  ;;  %v1915_v63 = vmax.f32 %v1491_v39, 0.0 }
 0x1ed   : > { %v1496_v1 = vpop.f32.mrf.mxu0  ;;  %v1609_v2 = vpop.f32.mrf.mxu1  ;;  %5435 = vmatprep.subr.bf16.mxu0 %v13459_v23 }
 0x1ee   : > { %v1916_v5 = vmax.f32 %v1493_v59, 0.0  ;;  %v1918_v6 = vmax.f32 %v1606_v60, 0.0  ;;  %v15281_v8 = vpack.c.bf16 %v1917_v58, %v1910_v42  ;;  %v1610_v10 = vadd.f32 %v1609_v2, %v15159_v51  ;;  %v13469_v59 = vld [vmem:[#allocation6 + $0xc60] ss:$36 sps:$4 sm:$0xff]  }
 0x1ef   : > { %v1498_v12 = vpop.f32.mrf.mxu0  ;;  %v1611_v48 = vpop.f32.mrf.mxu1  ;;  %v15289_v20 = vpack.c.bf16 %v1915_v63, %v1908_v7  ;;  %v1497_v39 = vadd.f32 %v1496_v1, %v15171_v9  ;;  %v13477_v1 = vld [vmem:[#allocation6 + $0xc1c] ss:$36 sps:$4 sm:$0xff]  }
 0x1f0   : > { %17818 = vst [vmem:[#allocation41_spill] sm:$0xff] %v15281_v8  ;;  %v15284_v17 = vpack.c.bf16 %v1916_v5, %v1909_v61  ;;  %v15286_v50 = vpack.c.bf16 %v1918_v6, %v1911_v57  ;;  %v1612_v16 = vadd.f32 %v1611_v48, %v15163_v49  ;;  %5436 = vmatpush2.bf16.msra.mxu0 %v13457_v24  ;;  %v1924_v40 = vmax.f32 %v1610_v10, 0.0  ;;  %v13475_v5 = vld [vmem:[#allocation6 + $0xc18] ss:$36 sps:$4 sm:$0xff]  }
 0x1f1   : > { %17821 = vst [vmem:[#allocation44_spill] sm:$0xff] %v15289_v20  ;;  %v1499_v21 = vadd.f32 %v1498_v12, %v15167_v54  ;;  %v1500_v23 = vpop.f32.mrf.mxu0  ;;  %v1613_v15 = vpop.f32.mrf.mxu1  ;;  %5437 = vmatprep.subr.bf16.mxu0 %v13465_v35  ;;  %v1922_v6 = vmax.f32 %v1497_v39, 0.0  ;;  %v13483_v39 = vld [vmem:[#allocation6 + $0xbd4] ss:$36 sps:$4 sm:$0xff]  }
 0x1f2   : > { %17819 = vst [vmem:[#allocation42_spill] sm:$0xff] %v15284_v17  ;;  %17820 = vst [vmem:[#allocation43_spill] sm:$0xff] %v15286_v50  ;;  %v1501_v32 = vadd.f32 %v1500_v23, %v15171_v9  ;;  %v1614_v38 = vadd.f32 %v1613_v15, %v15159_v51  ;;  %5273 = vmatprep.mubr.bf16.mxu0 %v15284_v17  ;;  %5386 = vmatprep.mubr.bf16.mxu1 %v15286_v50  ;;  %v1925_v52 = vmax.f32 %v1612_v16, 0.0 }
 0x1f3   : > { %v1502_v41 = vpop.f32.mrf.mxu0  ;;  %v1615_v42 = vpop.f32.mrf.mxu1  ;;  %5274 = vmatmul.mubr.bf16.gmra.mxu0 %v15289_v20  ;;  %5387 = vmatmul.mubr.bf16.gmra.mxu1 %v15281_v8  ;;  %v1923_v60 = vmax.f32 %v1499_v21, 0.0  ;;  %v15310_v23 = vsub.s32 5, %v15141_v43 }
 0x1f4   : > { %v1931_v55 = vmax.f32 %v1614_v38, 0.0  ;;  %v1503_v57 = vadd.f32 %v1502_v41, %v15167_v54  ;;  %v1616_v58 = vadd.f32 %v1615_v42, %v15163_v49  ;;  %5438 = vmatpush2.bf16.msra.mxu0 %v13463_v19  ;;  %v1929_v24 = vmax.f32 %v1501_v32, 0.0 }
 0x1f5   : > { %v1506_v61 = vpop.f32.mrf.mxu0  ;;  %v1619_v63 = vpop.f32.mrf.mxu1  ;;  %5439 = vmatprep.subr.bf16.mxu0 %v13471_v31  ;;  %17825 = vst [vmem:[#allocation48_spill] sm:$0xff] %v15310_v23  ;;  %v15320_v42 = vsub.s32 6, %v15141_v43 }
 0x1f6   : > { %v1930_v2 = vmax.f32 %v1503_v57, 0.0  ;;  %v1932_v35 = vmax.f32 %v1616_v58, 0.0  ;;  %v15301_v7 = vpack.c.bf16 %v1931_v55, %v1924_v40  ;;  %v1620_v10 = vadd.f32 %v1619_v63, %v15159_v51 }
 0x1f7   : > { %v1508_v12 = vpop.f32.mrf.mxu0  ;;  %v1621_v48 = vpop.f32.mrf.mxu1  ;;  %v15312_v15 = vpack.c.bf16 %v1929_v24, %v1922_v6  ;;  %17827 = vst [vmem:[#allocation50_spill] sm:$0xff] %v15320_v42  ;;  %v15332_v6 = vrot.slane %v15149_v45, %v15310_v23 }
 0x1f8   : > { %17822 = vst [vmem:[#allocation45_spill] sm:$0xff] %v15301_v7  ;;  %v15304_v16 = vpack.c.bf16 %v1930_v2, %v1923_v60  ;;  %v15306_v19 = vpack.c.bf16 %v1932_v35, %v1925_v52  ;;  %v1622_v21 = vadd.f32 %v1621_v48, %v15163_v49  ;;  %5440 = vmatpush2.bf16.msra.mxu0 %v13469_v59  ;;  %v1938_v55 = vmax.f32 %v1620_v10, 0.0  ;;  %v13489_v10 = vld [vmem:[#allocation6 + $0xb8c] ss:$36 sps:$4 sm:$0xff]  }
 0x1f9   : > { %17826 = vst [vmem:[#allocation49_spill] sm:$0xff] %v15312_v15  ;;  %v1509_v31 = vadd.f32 %v1508_v12, %v15167_v54  ;;  %v1510_v32 = vpop.f32.mrf.mxu0  ;;  %v1623_v38 = vpop.f32.mrf.mxu1  ;;  %5441 = vmatprep.subr.bf16.mxu0 %v13477_v1  ;;  %v1507_v52 = vadd.f32 %v1506_v61, %v15171_v9  ;;  %v15326_v59 = vsub.s32 4, %v15141_v43  ;;  %v13481_v1 = vld [vmem:[#allocation6 + $0xbd0] ss:$36 sps:$4 sm:$0xff]  }
 0x1fa   : > { %17823 = vst [vmem:[#allocation46_spill] sm:$0xff] %v15304_v16  ;;  %17824 = vst [vmem:[#allocation47_spill] sm:$0xff] %v15306_v19  ;;  %v1511_v40 = vadd.f32 %v1510_v32, %v15171_v9  ;;  %v1624_v41 = vadd.f32 %v1623_v38, %v15159_v51  ;;  %5283 = vmatprep.mubr.bf16.mxu0 %v15304_v16  ;;  %5396 = vmatprep.mubr.bf16.mxu1 %v15306_v19  ;;  %v1939_v51 = vmax.f32 %v1622_v21, 0.0 }
 0x1fb   : > { %v1512_v57 = vpop.f32.mrf.mxu0  ;;  %v1625_v58 = vpop.f32.mrf.mxu1  ;;  %5284 = vmatmul.mubr.bf16.gmra.mxu0 %v15312_v15  ;;  %5397 = vmatmul.mubr.bf16.gmra.mxu1 %v15301_v7  ;;  %17828 = vst [vmem:[#allocation51_spill] sm:$0xff] %v15326_v59  ;;  %v1937_v2 = vmax.f32 %v1509_v31, 0.0  ;;  %v15336_v21 = vrot.slane %v15149_v45, %v15320_v42  ;;  %v15342_v31 = vrot.slane %v15149_v45, %v15326_v59  ;;  %v13499_v42 = vld [vmem:[#allocation6 + $0x200] ss:$36 sps:$4 sm:$0xff]  }
 0x1fc   : > { %v1945_v60 = vmax.f32 %v1624_v41, 0.0  ;;  %v1513_v24 = vadd.f32 %v1512_v57, %v15167_v54  ;;  %v1626_v63 = vadd.f32 %v1625_v58, %v15163_v49  ;;  %5442 = vmatpush2.bf16.msra.mxu0 %v13475_v5  ;;  %v1943_v9 = vmax.f32 %v1511_v40, 0.0  ;;  %v13487_v54 = vld [vmem:[#allocation6 + $0xb88] ss:$36 sps:$4 sm:$0xff]   ;;  %v13507_v59 = vld [vmem:[#allocation6 + $0x1bc] ss:$36 sps:$4 sm:$0xff]  }
 0x1fd   : > { %v1662_v61 = vpop.f32.mrf.mxu0  ;;  %v12289_v35 = vpop.f32.mrf.mxu1  ;;  %5443 = vmatprep.subr.bf16.mxu0 %v13483_v39  ;;  %v1936_v49 = vmax.f32 %v1507_v52, 0.0  ;;  %v13495_v57 = vld [vmem:[#allocation6 + $0xb44] ss:$36 sps:$4 sm:$0xff]  }
 0x1fe   : > { %v1944_v12 = vmax.f32 %v1513_v24, 0.0  ;;  %v1946_v48 = vmax.f32 %v1626_v63, 0.0  ;;  %v15338_v5 = vpack.c.bf16 %v1945_v60, %v1938_v55 }
 0x1ff   : > { %v1664_v32 = vpop.f32.mrf.mxu0  ;;  %v12290_v38 = vpop.f32.mrf.mxu1  ;;  %v15348_v58 = vpack.c.bf16 %v1943_v9, %v1936_v49 }
 0x200   : > { %17829 = vst [vmem:[#allocation52_spill] sm:$0xff] %v15338_v5  ;;  %v15344_v40 = vpack.c.bf16 %v1944_v12, %v1937_v2  ;;  %v15346_v39 = vpack.c.bf16 %v1946_v48, %v1939_v51  ;;  %v12291_v41 = vadd.f32 %v12290_v38, %v12289_v35  ;;  %5444 = vmatpush2.bf16.msra.mxu0 %v13481_v1  ;;  %v13493_v35 = vld [vmem:[#allocation6 + $0xb40] ss:$36 sps:$4 sm:$0xff]  }
 0x201   : > { %17832 = vst [vmem:[#allocation55_spill] sm:$0xff] %v15348_v58  ;;  %v1665_v24 = vadd.f32 %v1664_v32, %v15332_v6  ;;  %v1666_v52 = vpop.f32.mrf.mxu0  ;;  %v12292_v55 = vpop.f32.mrf.mxu1  ;;  %5445 = vmatprep.subr.bf16.mxu0 %v13489_v10  ;;  %v1663_v51 = vadd.f32 %v1662_v61, %v15342_v31  ;;  %v17696_v10 = vmov 0   ;;  %v13501_v12 = vld [vmem:[#allocation6 + $0x204] ss:$36 sps:$4 sm:$0xff]  }
 0x202   : > { %17830 = vst [vmem:[#allocation53_spill] sm:$0xff] %v15344_v40  ;;  %17831 = vst [vmem:[#allocation54_spill] sm:$0xff] %v15346_v39  ;;  %v1776_v60 = vadd.f32 %v12291_v41, %v15336_v21  ;;  %v1667_v45 = vadd.f32 %v1666_v52, %v15342_v31  ;;  %5293 = vmatprep.mubr.bf16.mxu0 %v15344_v40  ;;  %5406 = vmatprep.mubr.bf16.mxu1 %v15346_v39 }
 0x203   : > { %v1668_v63 = vpop.f32.mrf.mxu0  ;;  %v12293_v1 = vpop.f32.mrf.mxu1  ;;  %5294 = vmatmul.mubr.bf16.gmra.mxu0 %v15348_v58  ;;  %5407 = vmatmul.mubr.bf16.gmra.mxu1 %v15338_v5  ;;  %v1843_v48 = vmax.f32 %v1665_v24, 0.0  ;;  %v1842_v43 = vmax.f32 %v1663_v51, 0.0 }
 0x204   : > { %v1669_v2 = vadd.f32 %v1668_v63, %v15332_v6  ;;  %v12294_v9 = vadd.f32 %v12293_v1, %v12292_v55  ;;  %5446 = vmatpush2.bf16.msra.mxu0 %v13487_v54  ;;  %5562 = vmatprep.mubr.bf16.mxu1 %v17696_v10  ;;  %v1844_v49 = vmax.f32 %v1776_v60, 0.0  ;;  %v1849_v32 = vmax.f32 %v1667_v45, 0.0  ;;  %v13502_v1 = vld [vmem:[#allocation6 + $0x680] ss:$36 sps:$4 sm:$0xff]  }
 0x205   : > { %v1672_v38 = vpop.f32.mrf.mxu0  ;;  %v12295_v61 = vpop.f32.mrf.mxu1  ;;  %5447 = vmatprep.subr.bf16.mxu0 %v13495_v57 }
 0x206   : > { %v1850_v41 = vmax.f32 %v1669_v2, 0.0  ;;  %v1779_v52 = vadd.f32 %v12294_v9, %v15336_v21  ;;  %v15363_v10 = vpack.c.bf16 %v1849_v32, %v1842_v43  ;;  %v13505_v9 = vld [vmem:[#allocation6 + $0x1b8] ss:$36 sps:$4 sm:$0xff]  }
 0x207   : > { %v1674_v23 = vpop.f32.mrf.mxu0  ;;  %v12296_v63 = vpop.f32.mrf.mxu1 }
 0x208   : > { %v15361_v55 = vpack.c.bf16 %v1850_v41, %v1843_v48  ;;  %v1851_v54 = vmax.f32 %v1779_v52, 0.0  ;;  %5448 = vmatpush2.bf16.msra.mxu0 %v13493_v35  ;;  %17834 = vst [vmem:[#allocation57_spill] sm:$0xff] %v15363_v10  ;;  %v12297_v24 = vadd.f32 %v12296_v63, %v12295_v61  ;;  %v1675_v2 = vadd.f32 %v1674_v23, %v15332_v6  ;;  %v13510_v48 = vld [vmem:[#allocation6 + $0x63c] ss:$36 sps:$4 sm:$0xff]   ;;  %v13513_v41 = vld [vmem:[#allocation6 + $0x174] ss:$36 sps:$4 sm:$0xff]  }
 0x209   : > { %v1676_v60 = vpop.f32.mrf.mxu0  ;;  %v12298_v45 = vpop.f32.mrf.mxu1  ;;  %5643 = vmatprep.subr.bf16.mxu0 %v13501_v12  ;;  %v1673_v35 = vadd.f32 %v1672_v38, %v15342_v31  ;;  %v13508_v12 = vld [vmem:[#allocation6 + $0x638] ss:$36 sps:$4 sm:$0xff]  }
 0x20a   : > { %17833 = vst [vmem:[#allocation56_spill] sm:$0xff] %v15361_v55  ;;  %v15365_v57 = vpack.c.bf16 %v1851_v54, %v1844_v49  ;;  %v1677_v51 = vadd.f32 %v1676_v60, %v15342_v31  ;;  %5449 = vmatprep.mubr.bf16.mxu0 %v15361_v55  ;;  %v1784_v43 = vadd.f32 %v12297_v24, %v15336_v21  ;;  %v13516_v23 = vld [vmem:[#allocation6 + $0x5f4] ss:$36 sps:$4 sm:$0xff]   ;;  %v1857_v38 = vmax.f32 %v1675_v2, 0.0 }
 0x20b   : > { %v1678_v32 = vpop.f32.mrf.mxu0  ;;  %v12299_v61 = vpop.f32.mrf.mxu1  ;;  %5450 = vmatmul.mubr.bf16.vlgmr.msra.gmra.mxu0 %v15363_v10  ;;  %v17836_v10 = vmov 0  }
 0x20c   : > { %17835 = vst [vmem:[#allocation58_spill] sm:$0xff] %v15365_v57  ;;  %v1679_v49 = vadd.f32 %v1678_v32, %v15332_v6  ;;  %v12300_v52 = vadd.f32 %v12299_v61, %v12298_v45  ;;  %5563 = vmatmul.mubr.bf16.vlgmr.msra.gmra.mxu1 %v15365_v57  ;;  %5644 = vmatpush1.bf16.msra.mxu0 %v13499_v42  ;;  %v1863_v63 = vmax.f32 %v1677_v51, 0.0  ;;  %v1858_v24 = vmax.f32 %v1784_v43, 0.0  ;;  %v13514_v57 = vld [vmem:[#allocation6 + $0x5f0] ss:$36 sps:$4 sm:$0xff]  }
 0x20d   : > { %v1682_v54 = vpop.f32.mrf.mxu0  ;;  %v12301_v60 = vpop.f32.mrf.mxu1  ;;  %5757 = vmatpush1.bf16.msra.mxu1 %v13502_v1  ;;  %5645 = vmatprep.subr.bf16.mxu0 %v13507_v59  ;;  %v1856_v32 = vmax.f32 %v1673_v35, 0.0 }
 0x20e   : > { %v1864_v34 = vmax.f32 %v1679_v49, 0.0  ;;  %v1787_v44 = vadd.f32 %v12300_v52, %v15336_v21  ;;  %5758 = vmatprep.subr.bf16.mxu1 %v13510_v48  ;;  %5572 = vmatprep.mubr.bf16.mxu1 %v17836_v10 }
 0x20f   : > { %v1684_v45 = vpop.f32.mrf.mxu0  ;;  %v12302_v61 = vpop.f32.mrf.mxu1  ;;  %v15379_v1 = vpack.c.bf16 %v1863_v63, %v1856_v32  ;;  %v13528_v32 = vld [vmem:[#allocation6 + $0x564] ss:$36 sps:$4 sm:$0xff]  }
 0x210   : > { %v15377_v42 = vpack.c.bf16 %v1864_v34, %v1857_v38  ;;  %v1865_v51 = vmax.f32 %v1787_v44, 0.0  ;;  %5646 = vmatpush1.bf16.msra.mxu0 %v13505_v9  ;;  %v12303_v59 = vadd.f32 %v12302_v61, %v12301_v60  ;;  %v1685_v49 = vadd.f32 %v1684_v45, %v15332_v6  ;;  %v13517_v34 = vld [vmem:[#allocation6 + $0x128] ss:$36 sps:$4 sm:$0xff]  }
 0x211   : > { %17838 = vst [vmem:[#allocation60_spill] sm:$0xff] %v15379_v1  ;;  %v1686_v2 = vpop.f32.mrf.mxu0  ;;  %v12304_v43 = vpop.f32.mrf.mxu1  ;;  %5759 = vmatpush1.bf16.msra.mxu1 %v13508_v12  ;;  %5647 = vmatprep.subr.bf16.mxu0 %v13513_v41  ;;  %v13522_v44 = vld [vmem:[#allocation6 + $0x5ac] ss:$36 sps:$4 sm:$0xff]   ;;  %v1683_v9 = vadd.f32 %v1682_v54, %v15342_v31  ;;  %v13525_v41 = vld [vmem:[#allocation6 + $0xe4] ss:$36 sps:$4 sm:$0xff]  }
 0x212   : > { %17837 = vst [vmem:[#allocation59_spill] sm:$0xff] %v15377_v42  ;;  %v15381_v48 = vpack.c.bf16 %v1865_v51, %v1858_v24  ;;  %v1687_v35 = vadd.f32 %v1686_v2, %v15342_v31  ;;  %5459 = vmatprep.mubr.bf16.mxu0 %v15377_v42  ;;  %5760 = vmatprep.subr.bf16.mxu1 %v13516_v23  ;;  %v13520_v12 = vld [vmem:[#allocation6 + $0x5a8] ss:$36 sps:$4 sm:$0xff]   ;;  %v1871_v54 = vmax.f32 %v1685_v49, 0.0  ;;  %v13531_v42 = vld [vmem:[#allocation6 + $0x9c] ss:$36 sps:$4 sm:$0xff]  }
 0x213   : > { %v1792_v52 = vadd.f32 %v12303_v59, %v15336_v21  ;;  %v1688_v63 = vpop.f32.mrf.mxu0  ;;  %v12305_v60 = vpop.f32.mrf.mxu1  ;;  %5460 = vmatmul.mubr.bf16.gmra.mxu0 %v15379_v1  ;;  %v13523_v1 = vld [vmem:[#allocation6 + $0xe0] ss:$36 sps:$4 sm:$0xff]  }
 0x214   : > { %17839 = vst [vmem:[#allocation61_spill] sm:$0xff] %v15381_v48  ;;  %v1689_v38 = vadd.f32 %v1688_v63, %v15332_v6  ;;  %v12306_v24 = vadd.f32 %v12305_v60, %v12304_v43  ;;  %5573 = vmatmul.mubr.bf16.gmra.mxu1 %v15381_v48  ;;  %5648 = vmatpush1.bf16.msra.mxu0 %v13511_v46  ;;  %v1877_v23 = vmax.f32 %v1687_v35, 0.0  ;;  %v1870_v63 = vmax.f32 %v1683_v9, 0.0  ;;  %v13526_v48 = vld [vmem:[#allocation6 + $0x560] ss:$36 sps:$4 sm:$0xff]  }
 0x215   : > { %v1692_v45 = vpop.f32.mrf.mxu0  ;;  %v12307_v61 = vpop.f32.mrf.mxu1  ;;  %5761 = vmatpush1.bf16.msra.mxu1 %v13514_v57  ;;  %5649 = vmatprep.subr.bf16.mxu0 %v13519_v47  ;;  %v1872_v51 = vmax.f32 %v1792_v52, 0.0 }
 0x216   : > { %v1878_v59 = vmax.f32 %v1689_v38, 0.0  ;;  %v1795_v2 = vadd.f32 %v12306_v24, %v15336_v21  ;;  %5762 = vmatprep.subr.bf16.mxu1 %v13522_v44  ;;  %5582 = vmatprep.mubr.bf16.mxu1 %v17836_v10  ;;  %v15395_v57 = vpack.c.bf16 %v1877_v23, %v1870_v63  ;;  %v13529_v24 = vld [vmem:[#allocation6 + $0x98] ss:$36 sps:$4 sm:$0xff]  }
 0x217   : > { %v1694_v43 = vpop.f32.mrf.mxu0  ;;  %v12308_v60 = vpop.f32.mrf.mxu1  ;;  %v13540_v63 = vld [vmem:[#allocation6 + $0x4d4] ss:$36 sps:$4 sm:$0xff]  }
 0x218   : > { %v15393_v46 = vpack.c.bf16 %v1878_v59, %v1871_v54  ;;  %v1879_v35 = vmax.f32 %v1795_v2, 0.0  ;;  %5650 = vmatpush1.bf16.msra.mxu0 %v13517_v34  ;;  %17841 = vst [vmem:[#allocation63_spill] sm:$0xff] %v15395_v57  ;;  %v12309_v47 = vadd.f32 %v12308_v60, %v12307_v61  ;;  %v1695_v38 = vadd.f32 %v1694_v43, %v15332_v6  ;;  %v13534_v54 = vld [vmem:[#allocation6 + $0x51c] ss:$36 sps:$4 sm:$0xff]  }
 0x219   : > { %v1696_v49 = vpop.f32.mrf.mxu0  ;;  %v12310_v52 = vpop.f32.mrf.mxu1  ;;  %5763 = vmatpush1.bf16.msra.mxu1 %v13520_v12  ;;  %5651 = vmatprep.subr.bf16.mxu0 %v13525_v41  ;;  %v1693_v34 = vadd.f32 %v1692_v45, %v15342_v31  ;;  %v13532_v12 = vld [vmem:[#allocation6 + $0x518] ss:$36 sps:$4 sm:$0xff]  }
 0x21a   : > { %17840 = vst [vmem:[#allocation62_spill] sm:$0xff] %v15393_v46  ;;  %v15397_v44 = vpack.c.bf16 %v1879_v35, %v1872_v51  ;;  %v1697_v9 = vadd.f32 %v1696_v49, %v15342_v31  ;;  %5469 = vmatprep.mubr.bf16.mxu0 %v15393_v46  ;;  %5764 = vmatprep.subr.bf16.mxu1 %v13528_v32  ;;  %v13537_v41 = vld [vmem:[#allocation6 + $0x54] ss:$36 sps:$4 sm:$0xff]   ;;  %v1885_v45 = vmax.f32 %v1695_v38, 0.0  ;;  %v13543_v46 = vld [vmem:[#allocation6 + $0xc] ss:$36 sps:$4 sm:$0xff]  }
 0x21b   : > { %v1800_v23 = vadd.f32 %v12309_v47, %v15336_v21  ;;  %v1698_v61 = vpop.f32.mrf.mxu0  ;;  %v12311_v59 = vpop.f32.mrf.mxu1  ;;  %5470 = vmatmul.mubr.bf16.gmra.mxu0 %v15395_v57  ;;  %v13535_v57 = vld [vmem:[#allocation6 + $0x50] ss:$36 sps:$4 sm:$0xff]  }
 0x21c   : > { %17842 = vst [vmem:[#allocation64_spill] sm:$0xff] %v15397_v44  ;;  %v1699_v51 = vadd.f32 %v1698_v61, %v15332_v6  ;;  %v12312_v2 = vadd.f32 %v12311_v59, %v12310_v52  ;;  %5583 = vmatmul.mubr.bf16.gmra.mxu1 %v15397_v44  ;;  %5652 = vmatpush1.bf16.msra.mxu0 %v13523_v1  ;;  %v1891_v32 = vmax.f32 %v1697_v9, 0.0  ;;  %v1884_v61 = vmax.f32 %v1693_v34, 0.0  ;;  %v13538_v44 = vld [vmem:[#allocation6 + $0x4d0] ss:$36 sps:$4 sm:$0xff]  }
 0x21d   : > { %v1702_v43 = vpop.f32.mrf.mxu0  ;;  %v12313_v60 = vpop.f32.mrf.mxu1  ;;  %5765 = vmatpush1.bf16.msra.mxu1 %v13526_v48  ;;  %5653 = vmatprep.subr.bf16.mxu0 %v13531_v42  ;;  %v1886_v35 = vmax.f32 %v1800_v23, 0.0 }
 0x21e   : > { %v1892_v47 = vmax.f32 %v1699_v51, 0.0  ;;  %v1803_v49 = vadd.f32 %v12312_v2, %v15336_v21  ;;  %5766 = vmatprep.subr.bf16.mxu1 %v13534_v54  ;;  %5592 = vmatprep.mubr.bf16.mxu1 %v17836_v10  ;;  %v15411_v48 = vpack.c.bf16 %v1891_v32, %v1884_v61  ;;  %v13541_v2 = vld [vmem:[#allocation6 + $0x8] ss:$36 sps:$4 sm:$0xff]  }
 0x21f   : > { %v1704_v52 = vpop.f32.mrf.mxu0  ;;  %v12314_v59 = vpop.f32.mrf.mxu1  ;;  %v13552_v61 = vld [vmem:[#allocation6 + $0x8c4] ss:$36 sps:$4 sm:$0xff]  }
 0x220   : > { %v15409_v1 = vpack.c.bf16 %v1892_v47, %v1885_v45  ;;  %v1893_v9 = vmax.f32 %v1803_v49, 0.0  ;;  %5654 = vmatpush1.bf16.msra.mxu0 %v13529_v24  ;;  %17844 = vst [vmem:[#allocation66_spill] sm:$0xff] %v15411_v48  ;;  %v12315_v42 = vadd.f32 %v12314_v59, %v12313_v60  ;;  %v1705_v51 = vadd.f32 %v1704_v52, %v15332_v6  ;;  %v13546_v45 = vld [vmem:[#allocation6 + $0x48c] ss:$36 sps:$4 sm:$0xff]  }
 0x221   : > { %v1706_v38 = vpop.f32.mrf.mxu0  ;;  %v12316_v23 = vpop.f32.mrf.mxu1  ;;  %5767 = vmatpush1.bf16.msra.mxu1 %v13532_v12  ;;  %5655 = vmatprep.subr.bf16.mxu0 %v13537_v41  ;;  %v1703_v24 = vadd.f32 %v1702_v43, %v15342_v31  ;;  %v13544_v12 = vld [vmem:[#allocation6 + $0x488] ss:$36 sps:$4 sm:$0xff]  }
 0x222   : > { %17843 = vst [vmem:[#allocation65_spill] sm:$0xff] %v15409_v1  ;;  %v15413_v54 = vpack.c.bf16 %v1893_v9, %v1886_v35  ;;  %v1707_v34 = vadd.f32 %v1706_v38, %v15342_v31  ;;  %5479 = vmatprep.mubr.bf16.mxu0 %v15409_v1  ;;  %5768 = vmatprep.subr.bf16.mxu1 %v13540_v63  ;;  %v13549_v41 = vld [vmem:[#allocation6 + $0x444] ss:$36 sps:$4 sm:$0xff]   ;;  %v1899_v43 = vmax.f32 %v1705_v51, 0.0  ;;  %v13555_v1 = vld [vmem:[#allocation6 + $0x3fc] ss:$36 sps:$4 sm:$0xff]  }
 0x223   : > { %v1808_v32 = vadd.f32 %v12315_v42, %v15336_v21  ;;  %v1708_v60 = vpop.f32.mrf.mxu0  ;;  %v12317_v47 = vpop.f32.mrf.mxu1  ;;  %5480 = vmatmul.mubr.bf16.gmra.mxu0 %v15411_v48  ;;  %v13547_v48 = vld [vmem:[#allocation6 + $0x440] ss:$36 sps:$4 sm:$0xff]  }
 0x224   : > { %17845 = vst [vmem:[#allocation67_spill] sm:$0xff] %v15413_v54  ;;  %v1709_v35 = vadd.f32 %v1708_v60, %v15332_v6  ;;  %v12318_v49 = vadd.f32 %v12317_v47, %v12316_v23  ;;  %5593 = vmatmul.mubr.bf16.gmra.mxu1 %v15413_v54  ;;  %5656 = vmatpush1.bf16.msra.mxu0 %v13535_v57  ;;  %v1905_v63 = vmax.f32 %v1707_v34, 0.0  ;;  %v1898_v60 = vmax.f32 %v1703_v24, 0.0  ;;  %v13550_v54 = vld [vmem:[#allocation6 + $0x8c0] ss:$36 sps:$4 sm:$0xff]  }
 0x225   : > { %v1712_v52 = vpop.f32.mrf.mxu0  ;;  %v12319_v59 = vpop.f32.mrf.mxu1  ;;  %5769 = vmatpush1.bf16.msra.mxu1 %v13538_v44  ;;  %5657 = vmatprep.subr.bf16.mxu0 %v13543_v46  ;;  %v1900_v9 = vmax.f32 %v1808_v32, 0.0 }
 0x226   : > { %v1906_v42 = vmax.f32 %v1709_v35, 0.0  ;;  %v1811_v38 = vadd.f32 %v12318_v49, %v15336_v21  ;;  %5770 = vmatprep.subr.bf16.mxu1 %v13546_v45  ;;  %5602 = vmatprep.mubr.bf16.mxu1 %v17836_v10  ;;  %v15427_v44 = vpack.c.bf16 %v1905_v63, %v1898_v60  ;;  %v13553_v49 = vld [vmem:[#allocation6 + $0x3f8] ss:$36 sps:$4 sm:$0xff]  }
 0x227   : > { %v1714_v23 = vpop.f32.mrf.mxu0  ;;  %v12320_v47 = vpop.f32.mrf.mxu1  ;;  %v13564_v60 = vld [vmem:[#allocation6 + $0x834] ss:$36 sps:$4 sm:$0xff]  }
 0x228   : > { %v15425_v57 = vpack.c.bf16 %v1906_v42, %v1899_v43  ;;  %v1907_v34 = vmax.f32 %v1811_v38, 0.0  ;;  %5658 = vmatpush1.bf16.msra.mxu0 %v13541_v2  ;;  %17847 = vst [vmem:[#allocation69_spill] sm:$0xff] %v15427_v44  ;;  %v12321_v46 = vadd.f32 %v12320_v47, %v12319_v59  ;;  %v1715_v35 = vadd.f32 %v1714_v23, %v15332_v6  ;;  %v13558_v43 = vld [vmem:[#allocation6 + $0x87c] ss:$36 sps:$4 sm:$0xff]  }
 0x229   : > { %v1716_v51 = vpop.f32.mrf.mxu0  ;;  %v12322_v32 = vpop.f32.mrf.mxu1  ;;  %5771 = vmatpush1.bf16.msra.mxu1 %v13544_v12  ;;  %5659 = vmatprep.subr.bf16.mxu0 %v13549_v41  ;;  %v1713_v2 = vadd.f32 %v1712_v52, %v15342_v31  ;;  %v13556_v12 = vld [vmem:[#allocation6 + $0x878] ss:$36 sps:$4 sm:$0xff]  }
 0x22a   : > { %17846 = vst [vmem:[#allocation68_spill] sm:$0xff] %v15425_v57  ;;  %v15429_v45 = vpack.c.bf16 %v1907_v34, %v1900_v9  ;;  %v1717_v24 = vadd.f32 %v1716_v51, %v15342_v31  ;;  %5489 = vmatprep.mubr.bf16.mxu0 %v15425_v57  ;;  %5772 = vmatprep.subr.bf16.mxu1 %v13552_v61  ;;  %v13561_v41 = vld [vmem:[#allocation6 + $0x3b4] ss:$36 sps:$4 sm:$0xff]   ;;  %v1913_v52 = vmax.f32 %v1715_v35, 0.0  ;;  %v13567_v57 = vld [vmem:[#allocation6 + $0x36c] ss:$36 sps:$4 sm:$0xff]  }
 0x22b   : > { %v1816_v63 = vadd.f32 %v12321_v46, %v15336_v21  ;;  %v1718_v59 = vpop.f32.mrf.mxu0  ;;  %v12323_v42 = vpop.f32.mrf.mxu1  ;;  %5490 = vmatmul.mubr.bf16.gmra.mxu0 %v15427_v44  ;;  %v13559_v44 = vld [vmem:[#allocation6 + $0x3b0] ss:$36 sps:$4 sm:$0xff]  }
 0x22c   : > { %17848 = vst [vmem:[#allocation70_spill] sm:$0xff] %v15429_v45  ;;  %v1719_v9 = vadd.f32 %v1718_v59, %v15332_v6  ;;  %v12324_v38 = vadd.f32 %v12323_v42, %v12322_v32  ;;  %5603 = vmatmul.mubr.bf16.gmra.mxu1 %v15429_v45  ;;  %5660 = vmatpush2.bf16.msra.mxu0 %v13547_v48  ;;  %v1919_v61 = vmax.f32 %v1717_v24, 0.0  ;;  %v1912_v59 = vmax.f32 %v1713_v2, 0.0  ;;  %v13562_v45 = vld [vmem:[#allocation6 + $0x830] ss:$36 sps:$4 sm:$0xff]  }
 0x22d   : > { %v1722_v23 = vpop.f32.mrf.mxu0  ;;  %v12325_v47 = vpop.f32.mrf.mxu1  ;;  %5773 = vmatpush2.bf16.msra.mxu1 %v13550_v54  ;;  %5661 = vmatprep.subr.bf16.mxu0 %v13555_v1  ;;  %v1914_v34 = vmax.f32 %v1816_v63, 0.0 }
 0x22e   : > { %v1920_v46 = vmax.f32 %v1719_v9, 0.0  ;;  %v1819_v51 = vadd.f32 %v12324_v38, %v15336_v21  ;;  %5774 = vmatprep.subr.bf16.mxu1 %v13558_v43  ;;  %5612 = vmatprep.mubr.bf16.mxu1 %v17836_v10  ;;  %v15443_v54 = vpack.c.bf16 %v1919_v61, %v1912_v59  ;;  %v13565_v38 = vld [vmem:[#allocation6 + $0x368] ss:$36 sps:$4 sm:$0xff]  }
 0x22f   : > { %v1724_v32 = vpop.f32.mrf.mxu0  ;;  %v12326_v42 = vpop.f32.mrf.mxu1  ;;  %v13576_v59 = vld [vmem:[#allocation6 + $0x7a4] ss:$36 sps:$4 sm:$0xff]  }
 0x230   : > { %v15441_v48 = vpack.c.bf16 %v1920_v46, %v1913_v52  ;;  %v1921_v24 = vmax.f32 %v1819_v51, 0.0  ;;  %5662 = vmatpush2.bf16.msra.mxu0 %v13553_v49  ;;  %17850 = vst [vmem:[#allocation72_spill] sm:$0xff] %v15443_v54  ;;  %v12327_v1 = vadd.f32 %v12326_v42, %v12325_v47  ;;  %v1725_v9 = vadd.f32 %v1724_v32, %v15332_v6  ;;  %v13570_v52 = vld [vmem:[#allocation6 + $0x7ec] ss:$36 sps:$4 sm:$0xff]  }
 0x231   : > { %v1726_v35 = vpop.f32.mrf.mxu0  ;;  %v12328_v63 = vpop.f32.mrf.mxu1  ;;  %5775 = vmatpush2.bf16.msra.mxu1 %v13556_v12  ;;  %5663 = vmatprep.subr.bf16.mxu0 %v13561_v41  ;;  %v1723_v49 = vadd.f32 %v1722_v23, %v15342_v31  ;;  %v13568_v12 = vld [vmem:[#allocation6 + $0x7e8] ss:$36 sps:$4 sm:$0xff]  }
 0x232   : > { %17849 = vst [vmem:[#allocation71_spill] sm:$0xff] %v15441_v48  ;;  %v15445_v43 = vpack.c.bf16 %v1921_v24, %v1914_v34  ;;  %v1727_v2 = vadd.f32 %v1726_v35, %v15342_v31  ;;  %5499 = vmatprep.mubr.bf16.mxu0 %v15441_v48  ;;  %5776 = vmatprep.subr.bf16.mxu1 %v13564_v60  ;;  %v13573_v41 = vld [vmem:[#allocation6 + $0x324] ss:$36 sps:$4 sm:$0xff]   ;;  %v1927_v23 = vmax.f32 %v1725_v9, 0.0  ;;  %v13579_v48 = vld [vmem:[#allocation6 + $0x2dc] ss:$36 sps:$4 sm:$0xff]  }
 0x233   : > { %v1824_v61 = vadd.f32 %v12327_v1, %v15336_v21  ;;  %v1728_v47 = vpop.f32.mrf.mxu0  ;;  %v12329_v46 = vpop.f32.mrf.mxu1  ;;  %5500 = vmatmul.mubr.bf16.gmra.mxu0 %v15443_v54  ;;  %v13571_v54 = vld [vmem:[#allocation6 + $0x320] ss:$36 sps:$4 sm:$0xff]  }
 0x234   : > { %17851 = vst [vmem:[#allocation73_spill] sm:$0xff] %v15445_v43  ;;  %v1729_v34 = vadd.f32 %v1728_v47, %v15332_v6  ;;  %v12330_v51 = vadd.f32 %v12329_v46, %v12328_v63  ;;  %5613 = vmatmul.mubr.bf16.gmra.mxu1 %v15445_v43  ;;  %5664 = vmatpush2.bf16.msra.mxu0 %v13559_v44  ;;  %v1933_v60 = vmax.f32 %v1727_v2, 0.0  ;;  %v1926_v47 = vmax.f32 %v1723_v49, 0.0  ;;  %v13574_v43 = vld [vmem:[#allocation6 + $0x7a0] ss:$36 sps:$4 sm:$0xff]  }
 0x235   : > { %v1732_v32 = vpop.f32.mrf.mxu0  ;;  %v12331_v42 = vpop.f32.mrf.mxu1  ;;  %5777 = vmatpush2.bf16.msra.mxu1 %v13562_v45  ;;  %5665 = vmatprep.subr.bf16.mxu0 %v13567_v57  ;;  %v1928_v24 = vmax.f32 %v1824_v61, 0.0 }
 0x236   : > { %v1934_v1 = vmax.f32 %v1729_v34, 0.0  ;;  %v1827_v35 = vadd.f32 %v12330_v51, %v15336_v21  ;;  %5778 = vmatprep.subr.bf16.mxu1 %v13570_v52  ;;  %5622 = vmatprep.mubr.bf16.mxu1 %v17836_v10  ;;  %v15459_v45 = vpack.c.bf16 %v1933_v60, %v1926_v47  ;;  %v13577_v51 = vld [vmem:[#allocation6 + $0x2d8] ss:$36 sps:$4 sm:$0xff]  }
 0x237   : > { %v1734_v63 = vpop.f32.mrf.mxu0  ;;  %v12332_v46 = vpop.f32.mrf.mxu1  ;;  %v13588_v47 = vld [vmem:[#allocation6 + $0x714] ss:$36 sps:$4 sm:$0xff]  }
 0x238   : > { %v15457_v44 = vpack.c.bf16 %v1934_v1, %v1927_v23  ;;  %v1935_v2 = vmax.f32 %v1827_v35, 0.0  ;;  %5666 = vmatpush2.bf16.msra.mxu0 %v13565_v38  ;;  %17853 = vst [vmem:[#allocation75_spill] sm:$0xff] %v15459_v45  ;;  %v12333_v57 = vadd.f32 %v12332_v46, %v12331_v42  ;;  %v1735_v34 = vadd.f32 %v1734_v63, %v15332_v6  ;;  %v13582_v23 = vld [vmem:[#allocation6 + $0x75c] ss:$36 sps:$4 sm:$0xff]  }
 0x239   : > { %v1736_v9 = vpop.f32.mrf.mxu0  ;;  %v12334_v61 = vpop.f32.mrf.mxu1  ;;  %5779 = vmatpush2.bf16.msra.mxu1 %v13568_v12  ;;  %5667 = vmatprep.subr.bf16.mxu0 %v13573_v41  ;;  %v1733_v38 = vadd.f32 %v1732_v32, %v15342_v31  ;;  %v13580_v12 = vld [vmem:[#allocation6 + $0x758] ss:$36 sps:$4 sm:$0xff]  }
 0x23a   : > { %17852 = vst [vmem:[#allocation74_spill] sm:$0xff] %v15457_v44  ;;  %v15461_v52 = vpack.c.bf16 %v1935_v2, %v1928_v24  ;;  %v1737_v49 = vadd.f32 %v1736_v9, %v15342_v31  ;;  %5509 = vmatprep.mubr.bf16.mxu0 %v15457_v44  ;;  %5780 = vmatprep.subr.bf16.mxu1 %v13576_v59  ;;  %v13585_v41 = vld [vmem:[#allocation6 + $0x294] ss:$36 sps:$4 sm:$0xff]   ;;  %v1941_v63 = vmax.f32 %v1735_v34, 0.0  ;;  %v13592_v34 = vld [vmem:[#allocation6 + $0x6c8] ss:$36 sps:$4 sm:$0xff]  }
 0x23b   : > { %v1832_v60 = vadd.f32 %v12333_v57, %v15336_v21  ;;  %v1738_v42 = vpop.f32.mrf.mxu0  ;;  %v12335_v1 = vpop.f32.mrf.mxu1  ;;  %5510 = vmatmul.mubr.bf16.gmra.mxu0 %v15459_v45  ;;  %v1940_v2 = vmax.f32 %v1733_v38, 0.0  ;;  %v13583_v57 = vld [vmem:[#allocation6 + $0x290] ss:$36 sps:$4 sm:$0xff]   ;;  %v13595_v38 = vld [vmem:[#allocation6 + $0xb00] ss:$36 sps:$4 sm:$0xff]  }
 0x23c   : > { %17854 = vst [vmem:[#allocation76_spill] sm:$0xff] %v15461_v52  ;;  %v1739_v24 = vadd.f32 %v1738_v42, %v15332_v6  ;;  %v12336_v35 = vadd.f32 %v12335_v1, %v12334_v61  ;;  %5623 = vmatmul.mubr.bf16.gmra.mxu1 %v15461_v52  ;;  %5668 = vmatpush2.bf16.msra.mxu0 %v13571_v54  ;;  %v1947_v59 = vmax.f32 %v1737_v49, 0.0  ;;  %v13586_v61 = vld [vmem:[#allocation6 + $0x710] ss:$36 sps:$4 sm:$0xff]   ;;  %v13622_v42 = vld [vmem:[#allocation6 + $0xf80] ss:$36 sps:$4 sm:$0xff]  }
 0x23d   : > { %5781 = vmatpush2.bf16.msra.mxu1 %v13574_v43  ;;  %5669 = vmatprep.subr.bf16.mxu0 %v13579_v48  ;;  %v1942_v31 = vmax.f32 %v1832_v60, 0.0  ;;  %v13591_v43 = vld [vmem:[#allocation6 + $0x24c] ss:$36 sps:$4 sm:$0xff]   ;;  %v13600_v60 = vld [vmem:[#allocation6 + $0xabc] ss:$36 sps:$4 sm:$0xff]  }
 0x23e   : > { %v1948_v32 = vmax.f32 %v1739_v24, 0.0  ;;  %v1835_v46 = vadd.f32 %v12336_v35, %v15336_v21  ;;  %5782 = vmatprep.subr.bf16.mxu1 %v13582_v23  ;;  %5632 = vmatprep.mubr.bf16.mxu1 %v17836_v10  ;;  %v15475_v54 = vpack.c.bf16 %v1947_v59, %v1940_v2  ;;  %v13589_v21 = vld [vmem:[#allocation6 + $0x248] ss:$36 sps:$4 sm:$0xff]   ;;  %v13598_v1 = vld [vmem:[#allocation6 + $0xab8] ss:$36 sps:$4 sm:$0xff]  }
 0x23f   : > { %v13594_v49 = vld [vmem:[#allocation6 + $0x6cc] ss:$36 sps:$4 sm:$0xff]   ;;  %v13624_v23 = vld [vmem:[#allocation6 + $0xf84] ss:$36 sps:$4 sm:$0xff]   ;;  %v13628_v24 = vld [vmem:[#allocation6 + $0xf38] ss:$36 sps:$4 sm:$0xff]  }
 0x240   : > { %v15473_v9 = vpack.c.bf16 %v1948_v32, %v1941_v63  ;;  %v1949_v6 = vmax.f32 %v1835_v46, 0.0  ;;  %5670 = vmatpush2.bf16.msra.mxu0 %v13577_v51  ;;  %17856 = vst [vmem:[#allocation78_spill] sm:$0xff] %v15475_v54  ;;  %v13597_v51 = vld [vmem:[#allocation6 + $0xb04] ss:$36 sps:$4 sm:$0xff]   ;;  %v13601_v35 = vld [vmem:[#allocation6 + $0xa70] ss:$36 sps:$4 sm:$0xff]  }
 0x241   : > { %5783 = vmatpush2.bf16.msra.mxu1 %v13580_v12  ;;  %5671 = vmatprep.subr.bf16.mxu0 %v13585_v41  ;;  %v13630_v12 = vld [vmem:[#allocation6 + $0xf3c] ss:$36 sps:$4 sm:$0xff]   ;;  %v13603_v41 = vld [vmem:[#allocation6 + $0xa74] ss:$36 sps:$4 sm:$0xff]   ;;  %v13606_v59 = vld [vmem:[#allocation6 + $0xa2c] ss:$36 sps:$4 sm:$0xff]  }
 0x242   : > { %17855 = vst [vmem:[#allocation77_spill] sm:$0xff] %v15473_v9  ;;  %v15477_v48 = vpack.c.bf16 %v1949_v6, %v1942_v31  ;;  %5519 = vmatprep.mubr.bf16.mxu0 %v15473_v9  ;;  %5784 = vmatprep.subr.bf16.mxu1 %v13588_v47  ;;  %v13636_v47 = vld [vmem:[#allocation6 + $0xef4] ss:$36 sps:$4 sm:$0xff]   ;;  %v13604_v31 = vld [vmem:[#allocation6 + $0xa28] ss:$36 sps:$4 sm:$0xff]  }
 0x243   : > { %5520 = vmatmul.mubr.bf16.gmra.mxu0 %v15475_v54  ;;  %v13634_v63 = vld [vmem:[#allocation6 + $0xef0] ss:$36 sps:$4 sm:$0xff]   ;;  %v13609_v46 = vld [vmem:[#allocation6 + $0x9e4] ss:$36 sps:$4 sm:$0xff]  }
 0x244   : > { %17857 = vst [vmem:[#allocation79_spill] sm:$0xff] %v15477_v48  ;;  %5633 = vmatmul.mubr.bf16.gmra.mxu1 %v15477_v48  ;;  %5672 = vmatpush2.bf16.msra.mxu0 %v13583_v57  ;;  %v13642_v32 = vld [vmem:[#allocation6 + $0xeac] ss:$36 sps:$4 sm:$0xff]   ;;  %v13607_v57 = vld [vmem:[#allocation6 + $0x9e0] ss:$36 sps:$4 sm:$0xff]  }
 0x245   : > { %5675 = vmatprep.mubr.bf16.mxu0 %v15184_v62  ;;  %5785 = vmatpush2.bf16.msra.mxu1 %v13586_v61  ;;  %v13640_v2 = vld [vmem:[#allocation6 + $0xea8] ss:$36 sps:$4 sm:$0xff]   ;;  %v13612_v61 = vld [vmem:[#allocation6 + $0x99c] ss:$36 sps:$4 sm:$0xff]  }
 0x246   : > { %5788 = vmatprep.mubr.bf16.mxu1 %v15186_v0  ;;  %5673 = vmatprep.subr.bf16.mxu0 %v13591_v43  ;;  %v13648_v6 = vld [vmem:[#allocation6 + $0xe64] ss:$36 sps:$4 sm:$0xff]   ;;  %v13610_v43 = vld [vmem:[#allocation6 + $0x998] ss:$36 sps:$4 sm:$0xff]  }
 0x247   : > { %5786 = vmatprep.subr.bf16.mxu1 %v13594_v49  ;;  %v13615_v49 = vld [vmem:[#allocation6 + $0x954] ss:$36 sps:$4 sm:$0xff]  }
 0x248   : > { %5674 = vmatpush2.bf16.msra.mxu0 %v13589_v21  ;;  %v13646_v21 = vld [vmem:[#allocation6 + $0xe60] ss:$36 sps:$4 sm:$0xff]  }
 0x249   : > { %5787 = vmatpush2.bf16.msra.mxu1 %v13592_v34  ;;  %5869 = vmatprep.subr.bf16.mxu0 %v13597_v51  ;;  %v13654_v34 = vld [vmem:[#allocation6 + $0xe1c] ss:$36 sps:$4 sm:$0xff]  }
 0x24a   : > { %5982 = vmatprep.subr.bf16.mxu1 %v13624_v23  ;;  %v13652_v51 = vld [vmem:[#allocation6 + $0xe18] ss:$36 sps:$4 sm:$0xff]   ;;  %v13613_v23 = vld [vmem:[#allocation6 + $0x950] ss:$36 sps:$4 sm:$0xff]  }
 0x24b   : > { %5676 = vmatmul.mubr.bf16.vlgmr.msra.gmra.mxu0 %v15189_v25 }
 0x24c   : > { %5685 = vmatprep.mubr.bf16.mxu0 %v15204_v3  ;;  %5789 = vmatmul.mubr.bf16.vlgmr.msra.gmra.mxu1 %v15181_v14 }
 0x24d   : > { %5870 = vmatpush1.bf16.msra.mxu0 %v13595_v38  ;;  %5798 = vmatprep.mubr.bf16.mxu1 %v15206_v4  ;;  %v13660_v38 = vld [vmem:[#allocation6 + $0xdd4] ss:$36 sps:$4 sm:$0xff]  }
 0x24e   : > { %5871 = vmatprep.subr.bf16.mxu0 %v13600_v60  ;;  %5983 = vmatpush1.bf16.msra.mxu1 %v13622_v42  ;;  %v13618_v60 = vld [vmem:[#allocation6 + $0x90c] ss:$36 sps:$4 sm:$0xff]  }
 0x24f   : > { %5984 = vmatprep.subr.bf16.mxu1 %v13630_v12  ;;  %v13658_v42 = vld [vmem:[#allocation6 + $0xdd0] ss:$36 sps:$4 sm:$0xff]  }
 0x250   : > { %v13666_v12 = vld [vmem:[#allocation6 + $0xd8c] ss:$36 sps:$4 sm:$0xff]  }
 0x251   : > { %5872 = vmatpush1.bf16.msra.mxu0 %v13598_v1  ;;  %v13616_v1 = vld [vmem:[#allocation6 + $0x908] ss:$36 sps:$4 sm:$0xff]  }
 0x252   : > { %5873 = vmatprep.subr.bf16.mxu0 %v13603_v41  ;;  %5985 = vmatpush1.bf16.msra.mxu1 %v13628_v24  ;;  %v13621_v41 = vld [vmem:[#allocation6 + $0xd44] ss:$36 sps:$4 sm:$0xff]  }
 0x253   : > { %5686 = vmatmul.mubr.bf16.gmra.mxu0 %v15209_v37  ;;  %5986 = vmatprep.subr.bf16.mxu1 %v13636_v47  ;;  %v13664_v24 = vld [vmem:[#allocation6 + $0xd88] ss:$36 sps:$4 sm:$0xff]  }
 0x254   : > { %5695 = vmatprep.mubr.bf16.mxu0 %v15224_v53  ;;  %5799 = vmatmul.mubr.bf16.gmra.mxu1 %v15201_v22  ;;  %v13672_v47 = vld [vmem:[#allocation6 + $0x68c] ss:$36 sps:$4 sm:$0xff]  }
 0x255   : > { %5874 = vmatpush1.bf16.msra.mxu0 %v13601_v35  ;;  %5808 = vmatprep.mubr.bf16.mxu1 %v15226_v11  ;;  %v13619_v35 = vld [vmem:[#allocation6 + $0xd40] ss:$36 sps:$4 sm:$0xff]  }
 0x256   : > { %5875 = vmatprep.subr.bf16.mxu0 %v13606_v59  ;;  %5987 = vmatpush1.bf16.msra.mxu1 %v13634_v63  ;;  %v13627_v59 = vld [vmem:[#allocation6 + $0xcfc] ss:$36 sps:$4 sm:$0xff]  }
 0x257   : > { %5988 = vmatprep.subr.bf16.mxu1 %v13642_v32  ;;  %v13625_v63 = vld [vmem:[#allocation6 + $0xcf8] ss:$36 sps:$4 sm:$0xff]   ;;  %v13631_v32 = vld [vmem:[#allocation6 + $0xcb0] ss:$36 sps:$4 sm:$0xff]  }
 0x259   : > { %5876 = vmatpush1.bf16.msra.mxu0 %v13604_v31  ;;  %v13633_v31 = vld [vmem:[#allocation6 + $0xcb4] ss:$36 sps:$4 sm:$0xff]  }
 0x25a   : > { %5877 = vmatprep.subr.bf16.mxu0 %v13609_v46  ;;  %5989 = vmatpush1.bf16.msra.mxu1 %v13640_v2  ;;  %v13639_v46 = vld [vmem:[#allocation6 + $0xc6c] ss:$36 sps:$4 sm:$0xff]  }
 0x25b   : > { %5696 = vmatmul.mubr.bf16.gmra.mxu0 %v15229_v56  ;;  %5990 = vmatprep.subr.bf16.mxu1 %v13648_v6  ;;  %v13637_v2 = vld [vmem:[#allocation6 + $0xc68] ss:$36 sps:$4 sm:$0xff]   ;;  %v13643_v6 = vld [vmem:[#allocation6 + $0xc20] ss:$36 sps:$4 sm:$0xff]  }
 0x25c   : > { %5705 = vmatprep.mubr.bf16.mxu0 %v15244_v33  ;;  %5809 = vmatmul.mubr.bf16.gmra.mxu1 %v15221_v28 }
 0x25d   : > { %5878 = vmatpush1.bf16.msra.mxu0 %v13607_v57  ;;  %5818 = vmatprep.mubr.bf16.mxu1 %v15246_v36  ;;  %v13645_v57 = vld [vmem:[#allocation6 + $0xc24] ss:$36 sps:$4 sm:$0xff]  }
 0x25e   : > { %5879 = vmatprep.subr.bf16.mxu0 %v13612_v61  ;;  %5991 = vmatpush1.bf16.msra.mxu1 %v13646_v21  ;;  %v13651_v61 = vld [vmem:[#allocation6 + $0xbdc] ss:$36 sps:$4 sm:$0xff]  }
 0x25f   : > { %5992 = vmatprep.subr.bf16.mxu1 %v13654_v34  ;;  %v13649_v21 = vld [vmem:[#allocation6 + $0xbd8] ss:$36 sps:$4 sm:$0xff]   ;;  %v13655_v34 = vld [vmem:[#allocation6 + $0xb90] ss:$36 sps:$4 sm:$0xff]  }
 0x261   : > { %5880 = vmatpush1.bf16.msra.mxu0 %v13610_v43  ;;  %v13657_v43 = vld [vmem:[#allocation6 + $0xb94] ss:$36 sps:$4 sm:$0xff]  }
 0x262   : > { %5881 = vmatprep.subr.bf16.mxu0 %v13615_v49  ;;  %5993 = vmatpush1.bf16.msra.mxu1 %v13652_v51  ;;  %v13663_v49 = vld [vmem:[#allocation6 + $0xb4c] ss:$36 sps:$4 sm:$0xff]  }
 0x263   : > { %5706 = vmatmul.mubr.bf16.gmra.mxu0 %v15249_v26  ;;  %5994 = vmatprep.subr.bf16.mxu1 %v13660_v38  ;;  %v13661_v51 = vld [vmem:[#allocation6 + $0xb48] ss:$36 sps:$4 sm:$0xff]  }
 0x264   : > { %5715 = vmatprep.mubr.bf16.mxu0 %v15264_v27  ;;  %5819 = vmatmul.mubr.bf16.gmra.mxu1 %v15241_v29  ;;  %v13669_v38 = vld [vmem:[#allocation6 + $0x20c] ss:$36 sps:$4 sm:$0xff]  }
 0x265   : > { %5882 = vmatpush1.bf16.msra.mxu0 %v13613_v23  ;;  %5828 = vmatprep.mubr.bf16.mxu1 %v15266_v13  ;;  %v2566_v23 = vld [vmem:[#allocation7] sm:$0xff] }
 0x266   : > { %5883 = vmatprep.subr.bf16.mxu0 %v13618_v60  ;;  %5995 = vmatpush1.bf16.msra.mxu1 %v13658_v42  ;;  %v17858_v60 = vld [vmem:[#allocation32_spill] sm:$0xff] }
 0x267   : > { %5996 = vmatprep.subr.bf16.mxu1 %v13666_v12  ;;  %v15517_v42 = vrot.slane %v2566_v23, %v17858_v60  ;;  %v13670_v12 = vld [vmem:[#allocation6 + $0x688] ss:$36 sps:$4 sm:$0xff]  }
 0x269   : > { %5884 = vmatpush1.bf16.msra.mxu0 %v13616_v1  ;;  %v13667_v1 = vld [vmem:[#allocation6 + $0x208] ss:$36 sps:$4 sm:$0xff]  }
 0x26a   : > { %5885 = vmatprep.subr.bf16.mxu0 %v13621_v41  ;;  %5997 = vmatpush1.bf16.msra.mxu1 %v13664_v24  ;;  %v13675_v41 = vld [vmem:[#allocation6 + $0x1c4] ss:$36 sps:$4 sm:$0xff]   ;;  %v17859_v24 = vld [vmem:[#allocation31_spill] sm:$0xff] }
 0x26b   : > { %5716 = vmatmul.mubr.bf16.gmra.mxu0 %v15269_v30  ;;  %6208 = vmatprep.subr.bf16.mxu1 %v13672_v47 }
 0x26c   : > { %5725 = vmatprep.mubr.bf16.mxu0 %v15284_v17  ;;  %5829 = vmatmul.mubr.bf16.gmra.mxu1 %v15261_v18  ;;  %v13724_v18 = vld [vmem:[#allocation6 + $0x880] ss:$36 sps:$4 sm:$0xff]  }
 0x26d   : > { %5886 = vmatpush2.bf16.msra.mxu0 %v13619_v35  ;;  %5838 = vmatprep.mubr.bf16.mxu1 %v15286_v50  ;;  %v15520_v35 = vrot.slane %v2566_v23, %v17859_v24  ;;  %v13682_v24 = vld [vmem:[#allocation6 + $0x5f8] ss:$36 sps:$4 sm:$0xff]   ;;  %v13721_v50 = vld [vmem:[#allocation6 + $0x400] ss:$36 sps:$4 sm:$0xff]  }
 0x26e   : > { %5887 = vmatprep.subr.bf16.mxu0 %v13627_v59 }
 0x271   : > { %5888 = vmatpush2.bf16.msra.mxu0 %v13625_v63  ;;  %v13678_v63 = vld [vmem:[#allocation6 + $0x644] ss:$36 sps:$4 sm:$0xff]  }
 0x272   : > { %5889 = vmatprep.subr.bf16.mxu0 %v13633_v31 }
 0x273   : > { %5726 = vmatmul.mubr.bf16.gmra.mxu0 %v15289_v20 }
 0x274   : > { %5735 = vmatprep.mubr.bf16.mxu0 %v15304_v16  ;;  %5839 = vmatmul.mubr.bf16.gmra.mxu1 %v15281_v8  ;;  %v13712_v8 = vld [vmem:[#allocation6 + $0x490] ss:$36 sps:$4 sm:$0xff]  }
 0x275   : > { %5890 = vmatpush2.bf16.msra.mxu0 %v13631_v32  ;;  %5848 = vmatprep.mubr.bf16.mxu1 %v15306_v19  ;;  %v17860_v32 = vld [vmem:[#allocation57_spill] sm:$0xff]  ;;  %v13709_v19 = vld [vmem:[#allocation6 + $0x10] ss:$36 sps:$4 sm:$0xff]  }
 0x276   : > { %5891 = vmatprep.subr.bf16.mxu0 %v13639_v46  ;;  %v17861_v46 = vld [vmem:[#allocation58_spill] sm:$0xff] }
 0x279   : > { %5892 = vmatpush2.bf16.msra.mxu0 %v13637_v2  ;;  %v13673_v2 = vld [vmem:[#allocation6 + $0x1c0] ss:$36 sps:$4 sm:$0xff]  }
 0x27a   : > { %5893 = vmatprep.subr.bf16.mxu0 %v13645_v57  ;;  %v13676_v57 = vld [vmem:[#allocation6 + $0x640] ss:$36 sps:$4 sm:$0xff]  }
 0x27b   : > { %5736 = vmatmul.mubr.bf16.gmra.mxu0 %v15312_v15 }
 0x27c   : > { %5745 = vmatprep.mubr.bf16.mxu0 %v15344_v40  ;;  %5849 = vmatmul.mubr.bf16.gmra.mxu1 %v15301_v7  ;;  %v13700_v7 = vld [vmem:[#allocation6 + $0x520] ss:$36 sps:$4 sm:$0xff]  }
 0x27d   : > { %5894 = vmatpush2.bf16.msra.mxu0 %v13643_v6  ;;  %5858 = vmatprep.mubr.bf16.mxu1 %v15346_v39  ;;  %v17862_v6 = vld [vmem:[#allocation59_spill] sm:$0xff]  ;;  %v13697_v39 = vld [vmem:[#allocation6 + $0xa0] ss:$36 sps:$4 sm:$0xff]  }
 0x27e   : > { %5895 = vmatprep.subr.bf16.mxu0 %v13651_v61 }
 0x281   : > { %5896 = vmatpush2.bf16.msra.mxu0 %v13649_v21 }
 0x282   : > { %5897 = vmatprep.subr.bf16.mxu0 %v13657_v43  ;;  %v13681_v43 = vld [vmem:[#allocation6 + $0x17c] ss:$36 sps:$4 sm:$0xff]  }
 0x283   : > { %5746 = vmatmul.mubr.bf16.gmra.mxu0 %v15348_v58 }
 0x284   : > { %5859 = vmatmul.mubr.bf16.gmra.mxu1 %v15338_v5  ;;  %5901 = vmatprep.mubr.bf16.mxu0 %v15361_v55  ;;  %v13688_v55 = vld [vmem:[#allocation6 + $0x5b0] ss:$36 sps:$4 sm:$0xff]  }
 0x285   : > { %5898 = vmatpush2.bf16.msra.mxu0 %v13655_v34  ;;  %6014 = vmatprep.mubr.bf16.mxu1 %v17836_v10 }
 0x286   : > { %5899 = vmatprep.subr.bf16.mxu0 %v13663_v49 }
 0x289   : > { %5900 = vmatpush2.bf16.msra.mxu0 %v13661_v51 }
 0x28a   : > { %6095 = vmatprep.subr.bf16.mxu0 %v13669_v38  ;;  %v13684_v38 = vld [vmem:[#allocation6 + $0x5fc] ss:$36 sps:$4 sm:$0xff]  }
 0x28b   : > { %v5225_v47 = vpop.f32.mrf.mxu0  ;;  %v5338_v59 = vpop.f32.mrf.mxu1 }
 0x28c   : > { %v5226_v31 = vadd.f32 %v5225_v47, %v15517_v42  ;;  %5902 = vmatmul.mubr.bf16.vlgmr.msra.gmra.mxu0 %v17860_v32  ;;  %6015 = vmatmul.mubr.bf16.vlgmr.msra.gmra.mxu1 %v17861_v46  ;;  %v13685_v32 = vld [vmem:[#allocation6 + $0x130] ss:$36 sps:$4 sm:$0xff]  }
 0x28d   : > { %5911 = vmatprep.mubr.bf16.mxu0 %v17862_v6  ;;  %6096 = vmatpush1.bf16.msra.mxu0 %v13667_v1  ;;  %v5227_v61 = vpop.f32.mrf.mxu0  ;;  %v5340_v21 = vpop.f32.mrf.mxu1  ;;  %v13679_v1 = vld [vmem:[#allocation6 + $0x178] ss:$36 sps:$4 sm:$0xff]  }
 0x28e   : > { %v15526_v34 = vadd.f32 %v5338_v59, %v5226_v31  ;;  %v5228_v49 = vadd.f32 %v5227_v61, %v15520_v35  ;;  %6209 = vmatpush1.bf16.msra.mxu1 %v13670_v12  ;;  %6097 = vmatprep.subr.bf16.mxu0 %v13675_v41  ;;  %v13687_v31 = vld [vmem:[#allocation6 + $0x134] ss:$36 sps:$4 sm:$0xff]  }
 0x28f   : > { %v5229_v51 = vpop.f32.mrf.mxu0  ;;  %v5342_v23 = vpop.f32.mrf.mxu1  ;;  %6210 = vmatprep.subr.bf16.mxu1 %v13678_v63  ;;  %6024 = vmatprep.mubr.bf16.mxu1 %v17836_v10  ;;  %v13690_v61 = vld [vmem:[#allocation6 + $0x5b4] ss:$36 sps:$4 sm:$0xff]  }
 0x290   : > { %v15530_v47 = vadd.f32 %v5340_v21, %v5228_v49  ;;  %v5230_v60 = vadd.f32 %v5229_v51, %v15517_v42  ;;  %v17863_v51 = vld [vmem:[#allocation60_spill] sm:$0xff] }
 0x291   : > { %6098 = vmatpush1.bf16.msra.mxu0 %v13673_v2  ;;  %v5231_v6 = vpop.f32.mrf.mxu0  ;;  %v5344_v59 = vpop.f32.mrf.mxu1  ;;  %v17864_v2 = vld [vmem:[#allocation61_spill] sm:$0xff] }
 0x292   : > { %v15533_v46 = vadd.f32 %v5342_v23, %v5230_v60  ;;  %v5232_v12 = vadd.f32 %v5231_v6, %v15520_v35  ;;  %6211 = vmatpush1.bf16.msra.mxu1 %v13676_v57  ;;  %6099 = vmatprep.subr.bf16.mxu0 %v13681_v43  ;;  %v17865_v60 = vld [vmem:[#allocation62_spill] sm:$0xff] }
 0x293   : > { %v5235_v41 = vpop.f32.mrf.mxu0  ;;  %v5348_v63 = vpop.f32.mrf.mxu1  ;;  %6212 = vmatprep.subr.bf16.mxu1 %v13684_v38  ;;  %v13693_v43 = vld [vmem:[#allocation6 + $0xec] ss:$36 sps:$4 sm:$0xff]  }
 0x294   : > { %v15536_v21 = vadd.f32 %v5344_v59, %v5232_v12  ;;  %v5236_v49 = vadd.f32 %v5235_v41, %v15517_v42  ;;  %5912 = vmatmul.mubr.bf16.gmra.mxu0 %v17863_v51  ;;  %6025 = vmatmul.mubr.bf16.gmra.mxu1 %v17864_v2  ;;  %v13696_v41 = vld [vmem:[#allocation6 + $0x56c] ss:$36 sps:$4 sm:$0xff]  }
 0x295   : > { %5921 = vmatprep.mubr.bf16.mxu0 %v17865_v60  ;;  %6100 = vmatpush1.bf16.msra.mxu0 %v13679_v1  ;;  %v5237_v6 = vpop.f32.mrf.mxu0  ;;  %v5350_v57 = vpop.f32.mrf.mxu1  ;;  %v13691_v1 = vld [vmem:[#allocation6 + $0xe8] ss:$36 sps:$4 sm:$0xff]  }
 0x296   : > { %v15542_v23 = vadd.f32 %v5348_v63, %v5236_v49  ;;  %v5238_v38 = vadd.f32 %v5237_v6, %v15520_v35  ;;  %6213 = vmatpush1.bf16.msra.mxu1 %v13682_v24  ;;  %6101 = vmatprep.subr.bf16.mxu0 %v13687_v31  ;;  %v13694_v51 = vld [vmem:[#allocation6 + $0x568] ss:$36 sps:$4 sm:$0xff]  }
 0x297   : > { %v5239_v59 = vpop.f32.mrf.mxu0  ;;  %v5352_v12 = vpop.f32.mrf.mxu1  ;;  %6214 = vmatprep.subr.bf16.mxu1 %v13690_v61  ;;  %6034 = vmatprep.mubr.bf16.mxu1 %v17836_v10  ;;  %v13699_v49 = vld [vmem:[#allocation6 + $0xa4] ss:$36 sps:$4 sm:$0xff]  }
 0x298   : > { %v15546_v2 = vadd.f32 %v5350_v57, %v5238_v38  ;;  %v5240_v60 = vadd.f32 %v5239_v59, %v15517_v42  ;;  %v13702_v6 = vld [vmem:[#allocation6 + $0x524] ss:$36 sps:$4 sm:$0xff]   ;;  %v17866_v59 = vld [vmem:[#allocation63_spill] sm:$0xff] }
 0x299   : > { %6102 = vmatpush1.bf16.msra.mxu0 %v13685_v32  ;;  %v5241_v5 = vpop.f32.mrf.mxu0  ;;  %v5354_v63 = vpop.f32.mrf.mxu1  ;;  %v17867_v32 = vld [vmem:[#allocation64_spill] sm:$0xff] }
 0x29a   : > { %v15549_v58 = vadd.f32 %v5352_v12, %v5240_v60  ;;  %v5242_v24 = vadd.f32 %v5241_v5, %v15520_v35  ;;  %6215 = vmatpush1.bf16.msra.mxu1 %v13688_v55  ;;  %6103 = vmatprep.subr.bf16.mxu0 %v13693_v43  ;;  %v17868_v60 = vld [vmem:[#allocation65_spill] sm:$0xff] }
 0x29b   : > { %v5245_v31 = vpop.f32.mrf.mxu0  ;;  %v5358_v61 = vpop.f32.mrf.mxu1  ;;  %6216 = vmatprep.subr.bf16.mxu1 %v13696_v41  ;;  %v13705_v43 = vld [vmem:[#allocation6 + $0x5c] ss:$36 sps:$4 sm:$0xff]  }
 0x29c   : > { %v15552_v57 = vadd.f32 %v5354_v63, %v5242_v24  ;;  %v5246_v38 = vadd.f32 %v5245_v31, %v15517_v42  ;;  %5922 = vmatmul.mubr.bf16.gmra.mxu0 %v17866_v59  ;;  %6035 = vmatmul.mubr.bf16.gmra.mxu1 %v17867_v32  ;;  %v13708_v31 = vld [vmem:[#allocation6 + $0x4dc] ss:$36 sps:$4 sm:$0xff]  }
 0x29d   : > { %5931 = vmatprep.mubr.bf16.mxu0 %v17868_v60  ;;  %6104 = vmatpush1.bf16.msra.mxu0 %v13691_v1  ;;  %v5247_v5 = vpop.f32.mrf.mxu0  ;;  %v5360_v55 = vpop.f32.mrf.mxu1  ;;  %v13703_v1 = vld [vmem:[#allocation6 + $0x58] ss:$36 sps:$4 sm:$0xff]  }
 0x29e   : > { %v15558_v12 = vadd.f32 %v5358_v61, %v5246_v38  ;;  %v5248_v41 = vadd.f32 %v5247_v5, %v15520_v35  ;;  %6217 = vmatpush1.bf16.msra.mxu1 %v13694_v51  ;;  %6105 = vmatprep.subr.bf16.mxu0 %v13699_v49  ;;  %v13706_v59 = vld [vmem:[#allocation6 + $0x4d8] ss:$36 sps:$4 sm:$0xff]  }
 0x29f   : > { %v5249_v63 = vpop.f32.mrf.mxu0  ;;  %v5362_v24 = vpop.f32.mrf.mxu1  ;;  %6218 = vmatprep.subr.bf16.mxu1 %v13702_v6  ;;  %6044 = vmatprep.mubr.bf16.mxu1 %v17836_v10  ;;  %v13711_v38 = vld [vmem:[#allocation6 + $0x14] ss:$36 sps:$4 sm:$0xff]  }
 0x2a0   : > { %v15562_v32 = vadd.f32 %v5360_v55, %v5248_v41  ;;  %v5250_v60 = vadd.f32 %v5249_v63, %v15517_v42  ;;  %v13714_v5 = vld [vmem:[#allocation6 + $0x494] ss:$36 sps:$4 sm:$0xff]   ;;  %v17869_v63 = vld [vmem:[#allocation66_spill] sm:$0xff] }
 0x2a1   : > { %6106 = vmatpush1.bf16.msra.mxu0 %v13697_v39  ;;  %v5251_v40 = vpop.f32.mrf.mxu0  ;;  %v5364_v61 = vpop.f32.mrf.mxu1  ;;  %v17870_v39 = vld [vmem:[#allocation67_spill] sm:$0xff] }
 0x2a2   : > { %v15565_v15 = vadd.f32 %v5362_v24, %v5250_v60  ;;  %v5252_v51 = vadd.f32 %v5251_v40, %v15520_v35  ;;  %6219 = vmatpush1.bf16.msra.mxu1 %v13700_v7  ;;  %6107 = vmatprep.subr.bf16.mxu0 %v13705_v43  ;;  %v17871_v60 = vld [vmem:[#allocation68_spill] sm:$0xff]  ;;  %v13717_v43 = vld [vmem:[#allocation6 + $0x44c] ss:$36 sps:$4 sm:$0xff]  }
 0x2a3   : > { %v5255_v49 = vpop.f32.mrf.mxu0  ;;  %v5368_v6 = vpop.f32.mrf.mxu1  ;;  %6220 = vmatprep.subr.bf16.mxu1 %v13708_v31 }
 0x2a4   : > { %v15568_v55 = vadd.f32 %v5364_v61, %v5252_v51  ;;  %v5256_v41 = vadd.f32 %v5255_v49, %v15517_v42  ;;  %5932 = vmatmul.mubr.bf16.gmra.mxu0 %v17869_v63  ;;  %6045 = vmatmul.mubr.bf16.gmra.mxu1 %v17870_v39  ;;  %v13720_v49 = vld [vmem:[#allocation6 + $0x8cc] ss:$36 sps:$4 sm:$0xff]  }
 0x2a5   : > { %5941 = vmatprep.mubr.bf16.mxu0 %v17871_v60  ;;  %6108 = vmatpush1.bf16.msra.mxu0 %v13703_v1  ;;  %v5257_v40 = vpop.f32.mrf.mxu0  ;;  %v5370_v7 = vpop.f32.mrf.mxu1  ;;  %v13715_v1 = vld [vmem:[#allocation6 + $0x448] ss:$36 sps:$4 sm:$0xff]  }
 0x2a6   : > { %v15574_v24 = vadd.f32 %v5368_v6, %v5256_v41  ;;  %v5258_v31 = vadd.f32 %v5257_v40, %v15520_v35  ;;  %6221 = vmatpush1.bf16.msra.mxu1 %v13706_v59  ;;  %6109 = vmatprep.subr.bf16.mxu0 %v13711_v38  ;;  %v13718_v63 = vld [vmem:[#allocation6 + $0x8c8] ss:$36 sps:$4 sm:$0xff]  }
 0x2a7   : > { %v5259_v61 = vpop.f32.mrf.mxu0  ;;  %v5372_v51 = vpop.f32.mrf.mxu1  ;;  %6222 = vmatprep.subr.bf16.mxu1 %v13714_v5  ;;  %6054 = vmatprep.mubr.bf16.mxu1 %v17836_v10  ;;  %v13723_v41 = vld [vmem:[#allocation6 + $0x404] ss:$36 sps:$4 sm:$0xff]  }
 0x2a8   : > { %v15578_v39 = vadd.f32 %v5370_v7, %v5258_v31  ;;  %v5260_v60 = vadd.f32 %v5259_v61, %v15517_v42  ;;  %v13726_v40 = vld [vmem:[#allocation6 + $0x884] ss:$36 sps:$4 sm:$0xff]  }
 0x2a9   : > { %6110 = vmatpush1.bf16.msra.mxu0 %v13709_v19  ;;  %v5261_v16 = vpop.f32.mrf.mxu0  ;;  %v5374_v6 = vpop.f32.mrf.mxu1  ;;  %v17872_v61 = vld [vmem:[#allocation69_spill] sm:$0xff]  ;;  %v17873_v19 = vld [vmem:[#allocation70_spill] sm:$0xff] }
 0x2aa   : > { %v15581_v20 = vadd.f32 %v5372_v51, %v5260_v60  ;;  %v5262_v59 = vadd.f32 %v5261_v16, %v15520_v35  ;;  %6223 = vmatpush1.bf16.msra.mxu1 %v13712_v8  ;;  %6111 = vmatprep.subr.bf16.mxu0 %v13717_v43  ;;  %v17874_v60 = vld [vmem:[#allocation71_spill] sm:$0xff]  ;;  %v13729_v43 = vld [vmem:[#allocation6 + $0x3bc] ss:$36 sps:$4 sm:$0xff]  }
 0x2ab   : > { %v5265_v38 = vpop.f32.mrf.mxu0  ;;  %v5378_v5 = vpop.f32.mrf.mxu1  ;;  %6224 = vmatprep.subr.bf16.mxu1 %v13720_v49 }
 0x2ac   : > { %v15584_v7 = vadd.f32 %v5374_v6, %v5262_v59  ;;  %v5266_v31 = vadd.f32 %v5265_v38, %v15517_v42  ;;  %5942 = vmatmul.mubr.bf16.gmra.mxu0 %v17872_v61  ;;  %6055 = vmatmul.mubr.bf16.gmra.mxu1 %v17873_v19  ;;  %v13732_v38 = vld [vmem:[#allocation6 + $0x83c] ss:$36 sps:$4 sm:$0xff]  }
 0x2ad   : > { %5951 = vmatprep.mubr.bf16.mxu0 %v17874_v60  ;;  %6112 = vmatpush2.bf16.msra.mxu0 %v13715_v1  ;;  %v5267_v16 = vpop.f32.mrf.mxu0  ;;  %v5380_v8 = vpop.f32.mrf.mxu1  ;;  %v13727_v1 = vld [vmem:[#allocation6 + $0x3b8] ss:$36 sps:$4 sm:$0xff]  }
 0x2ae   : > { %v15590_v51 = vadd.f32 %v5378_v5, %v5266_v31  ;;  %v5268_v49 = vadd.f32 %v5267_v16, %v15520_v35  ;;  %6225 = vmatpush2.bf16.msra.mxu1 %v13718_v63  ;;  %6113 = vmatprep.subr.bf16.mxu0 %v13723_v41  ;;  %v13730_v61 = vld [vmem:[#allocation6 + $0x838] ss:$36 sps:$4 sm:$0xff]  }
 0x2af   : > { %v5269_v6 = vpop.f32.mrf.mxu0  ;;  %v5382_v59 = vpop.f32.mrf.mxu1  ;;  %6226 = vmatprep.subr.bf16.mxu1 %v13726_v40  ;;  %6064 = vmatprep.mubr.bf16.mxu1 %v17836_v10  ;;  %v13735_v31 = vld [vmem:[#allocation6 + $0x374] ss:$36 sps:$4 sm:$0xff]  }
 0x2b0   : > { %17875 = vst [vmem:[#allocation80_spill] sm:$0xff] %v15590_v51  ;;  %v15594_v19 = vadd.f32 %v5380_v8, %v5268_v49  ;;  %v5270_v60 = vadd.f32 %v5269_v6, %v15517_v42  ;;  %v13738_v16 = vld [vmem:[#allocation6 + $0x7f4] ss:$36 sps:$4 sm:$0xff]  }
 0x2b1   : > { %6114 = vmatpush2.bf16.msra.mxu0 %v13721_v50  ;;  %v5271_v17 = vpop.f32.mrf.mxu0  ;;  %v5384_v5 = vpop.f32.mrf.mxu1  ;;  %v17877_v6 = vld [vmem:[#allocation72_spill] sm:$0xff]  ;;  %v17878_v50 = vld [vmem:[#allocation73_spill] sm:$0xff]  ;;  %v13736_v51 = vld [vmem:[#allocation6 + $0x7f0] ss:$36 sps:$4 sm:$0xff]  }
 0x2b2   : > { %17876 = vst [vmem:[#allocation81_spill] sm:$0xff] %v15594_v19  ;;  %v15597_v30 = vadd.f32 %v5382_v59, %v5270_v60  ;;  %v5272_v63 = vadd.f32 %v5271_v17, %v15520_v35  ;;  %6227 = vmatpush2.bf16.msra.mxu1 %v13724_v18  ;;  %6115 = vmatprep.subr.bf16.mxu0 %v13729_v43  ;;  %v13733_v19 = vld [vmem:[#allocation6 + $0x370] ss:$36 sps:$4 sm:$0xff]  }
 0x2b3   : > { %v5275_v41 = vpop.f32.mrf.mxu0  ;;  %v5388_v40 = vpop.f32.mrf.mxu1  ;;  %6228 = vmatprep.subr.bf16.mxu1 %v13732_v38  ;;  %v13741_v60 = vld [vmem:[#allocation6 + $0x32c] ss:$36 sps:$4 sm:$0xff]  }
 0x2b4   : > { %v15600_v8 = vadd.f32 %v5384_v5, %v5272_v63  ;;  %v5276_v49 = vadd.f32 %v5275_v41, %v15517_v42  ;;  %5952 = vmatmul.mubr.bf16.gmra.mxu0 %v17877_v6  ;;  %6065 = vmatmul.mubr.bf16.gmra.mxu1 %v17878_v50  ;;  %v13744_v63 = vld [vmem:[#allocation6 + $0x7ac] ss:$36 sps:$4 sm:$0xff]  }
 0x2b5   : > { %5961 = vmatprep.mubr.bf16.mxu0 %v15457_v44  ;;  %6116 = vmatpush2.bf16.msra.mxu0 %v13727_v1  ;;  %v5277_v17 = vpop.f32.mrf.mxu0  ;;  %v5390_v18 = vpop.f32.mrf.mxu1  ;;  %v13739_v1 = vld [vmem:[#allocation6 + $0x328] ss:$36 sps:$4 sm:$0xff]  }
 0x2b6   : > { %v15606_v43 = vadd.f32 %v5388_v40, %v5276_v49  ;;  %v5278_v59 = vadd.f32 %v5277_v17, %v15520_v35  ;;  %6229 = vmatpush2.bf16.msra.mxu1 %v13730_v61  ;;  %6117 = vmatprep.subr.bf16.mxu0 %v13735_v31  ;;  %v13742_v50 = vld [vmem:[#allocation6 + $0x7a8] ss:$36 sps:$4 sm:$0xff]  }
 0x2b7   : > { %v5279_v38 = vpop.f32.mrf.mxu0  ;;  %v5392_v5 = vpop.f32.mrf.mxu1  ;;  %6230 = vmatprep.subr.bf16.mxu1 %v13738_v16  ;;  %6074 = vmatprep.mubr.bf16.mxu1 %v17836_v10  ;;  %v13747_v49 = vld [vmem:[#allocation6 + $0x2e4] ss:$36 sps:$4 sm:$0xff]  }
 0x2b8   : > { %17879 = vst [vmem:[#allocation82_spill] sm:$0xff] %v15606_v43  ;;  %v15610_v41 = vadd.f32 %v5390_v18, %v5278_v59  ;;  %v5280_v44 = vadd.f32 %v5279_v38, %v15517_v42  ;;  %v13750_v17 = vld [vmem:[#allocation6 + $0x764] ss:$36 sps:$4 sm:$0xff]  }
 0x2b9   : > { %6118 = vmatpush2.bf16.msra.mxu0 %v13733_v19  ;;  %v5281_v6 = vpop.f32.mrf.mxu0  ;;  %v5394_v40 = vpop.f32.mrf.mxu1  ;;  %v13745_v19 = vld [vmem:[#allocation6 + $0x2e0] ss:$36 sps:$4 sm:$0xff]  }
 0x2ba   : > { %v15613_v43 = vadd.f32 %v5392_v5, %v5280_v44  ;;  %v5282_v61 = vadd.f32 %v5281_v6, %v15520_v35  ;;  %6231 = vmatpush2.bf16.msra.mxu1 %v13736_v51  ;;  %6119 = vmatprep.subr.bf16.mxu0 %v13741_v60  ;;  %v13748_v38 = vld [vmem:[#allocation6 + $0x760] ss:$36 sps:$4 sm:$0xff]  }
 0x2bb   : > { %v5285_v31 = vpop.f32.mrf.mxu0  ;;  %v5398_v16 = vpop.f32.mrf.mxu1  ;;  %6232 = vmatprep.subr.bf16.mxu1 %v13744_v63  ;;  %v13753_v6 = vld [vmem:[#allocation6 + $0x29c] ss:$36 sps:$4 sm:$0xff]  }
 0x2bc   : > { %v15616_v18 = vadd.f32 %v5394_v40, %v5282_v61  ;;  %v5286_v59 = vadd.f32 %v5285_v31, %v15517_v42  ;;  %5962 = vmatmul.mubr.bf16.gmra.mxu0 %v15459_v45  ;;  %6075 = vmatmul.mubr.bf16.gmra.mxu1 %v15461_v52  ;;  %v13756_v61 = vld [vmem:[#allocation6 + $0x71c] ss:$36 sps:$4 sm:$0xff]  }
 0x2bd   : > { %5971 = vmatprep.mubr.bf16.mxu0 %v15473_v9  ;;  %6120 = vmatpush2.bf16.msra.mxu0 %v13739_v1  ;;  %v5287_v44 = vpop.f32.mrf.mxu0  ;;  %v5400_v51 = vpop.f32.mrf.mxu1  ;;  %v13751_v1 = vld [vmem:[#allocation6 + $0x298] ss:$36 sps:$4 sm:$0xff]  }
 0x2be   : > { %v15622_v60 = vadd.f32 %v5398_v16, %v5286_v59  ;;  %v5288_v5 = vadd.f32 %v5287_v44, %v15520_v35  ;;  %6233 = vmatpush2.bf16.msra.mxu1 %v13742_v50  ;;  %6121 = vmatprep.subr.bf16.mxu0 %v13747_v49  ;;  %v13754_v52 = vld [vmem:[#allocation6 + $0x718] ss:$36 sps:$4 sm:$0xff]  }
 0x2bf   : > { %v5289_v63 = vpop.f32.mrf.mxu0  ;;  %v5402_v40 = vpop.f32.mrf.mxu1  ;;  %6234 = vmatprep.subr.bf16.mxu1 %v13750_v17  ;;  %6084 = vmatprep.mubr.bf16.mxu1 %v17836_v10  ;;  %v13759_v59 = vld [vmem:[#allocation6 + $0x254] ss:$36 sps:$4 sm:$0xff]  }
 0x2c0   : > { %17880 = vst [vmem:[#allocation83_spill] sm:$0xff] %v15622_v60  ;;  %v15626_v31 = vadd.f32 %v5400_v51, %v5288_v5  ;;  %v5290_v9 = vadd.f32 %v5289_v63, %v15517_v42  ;;  %v13762_v44 = vld [vmem:[#allocation6 + $0x6d4] ss:$36 sps:$4 sm:$0xff]  }
 0x2c1   : > { %6122 = vmatpush2.bf16.msra.mxu0 %v13745_v19  ;;  %v5291_v45 = vpop.f32.mrf.mxu0  ;;  %v5404_v16 = vpop.f32.mrf.mxu1  ;;  %v13760_v63 = vld [vmem:[#allocation6 + $0x6d0] ss:$36 sps:$4 sm:$0xff]  }
 0x2c2   : > { %v15629_v60 = vadd.f32 %v5402_v40, %v5290_v9  ;;  %v5292_v50 = vadd.f32 %v5291_v45, %v15520_v35  ;;  %6235 = vmatpush2.bf16.msra.mxu1 %v13748_v38  ;;  %6123 = vmatprep.subr.bf16.mxu0 %v13753_v6  ;;  %v13757_v45 = vld [vmem:[#allocation6 + $0x250] ss:$36 sps:$4 sm:$0xff]  }
 0x2c3   : > { %v5295_v49 = vpop.f32.mrf.mxu0  ;;  %v5408_v17 = vpop.f32.mrf.mxu1  ;;  %6236 = vmatprep.subr.bf16.mxu1 %v13756_v61  ;;  %v13765_v40 = vld [vmem:[#allocation6 + $0xb0c] ss:$36 sps:$4 sm:$0xff]  }
 0x2c4   : > { %v15632_v51 = vadd.f32 %v5404_v16, %v5292_v50  ;;  %v5296_v5 = vadd.f32 %v5295_v49, %v15517_v42  ;;  %5972 = vmatmul.mubr.bf16.gmra.mxu0 %v15475_v54  ;;  %6085 = vmatmul.mubr.bf16.gmra.mxu1 %v15477_v48  ;;  %v13792_v50 = vld [vmem:[#allocation6 + $0xf8c] ss:$36 sps:$4 sm:$0xff]   ;;  %v13768_v48 = vld [vmem:[#allocation6 + $0xac4] ss:$36 sps:$4 sm:$0xff]  }
 0x2c5   : > { %6124 = vmatpush2.bf16.msra.mxu0 %v13751_v1  ;;  %6127 = vmatprep.mubr.bf16.mxu0 %v15184_v62  ;;  %v5297_v9 = vpop.f32.mrf.mxu0  ;;  %v5410_v19 = vpop.f32.mrf.mxu1 }
 0x2c6   : > { %v15638_v38 = vadd.f32 %v5408_v17, %v5296_v5  ;;  %v5298_v6 = vadd.f32 %v5297_v9, %v15520_v35  ;;  %6237 = vmatpush2.bf16.msra.mxu1 %v13754_v52  ;;  %6240 = vmatprep.mubr.bf16.mxu1 %v15186_v0  ;;  %v13763_v9 = vld [vmem:[#allocation6 + $0xb08] ss:$36 sps:$4 sm:$0xff]  }
 0x2c7   : > { %v5299_v61 = vpop.f32.mrf.mxu0  ;;  %6125 = vmatprep.subr.bf16.mxu0 %v13759_v59  ;;  %v5412_v16 = vpop.f32.mrf.mxu1  ;;  %6238 = vmatprep.subr.bf16.mxu1 %v13762_v44  ;;  %v13790_v59 = vld [vmem:[#allocation6 + $0xf88] ss:$36 sps:$4 sm:$0xff]  }
 0x2c8   : > { %v15642_v1 = vadd.f32 %v5410_v19, %v5298_v6  ;;  %v5300_v49 = vadd.f32 %v5299_v61, %v15517_v42 }
 0x2c9   : > { %6126 = vmatpush2.bf16.msra.mxu0 %v13757_v45  ;;  %v5301_v62 = vpop.f32.mrf.mxu0  ;;  %v5414_v17 = vpop.f32.mrf.mxu1  ;;  %v13798_v45 = vld [vmem:[#allocation6 + $0xf44] ss:$36 sps:$4 sm:$0xff]  }
 0x2ca   : > { %v15645_v5 = vadd.f32 %v5412_v16, %v5300_v49  ;;  %v5302_v52 = vadd.f32 %v5301_v62, %v15520_v35  ;;  %6239 = vmatpush2.bf16.msra.mxu1 %v13760_v63  ;;  %6321 = vmatprep.subr.bf16.mxu0 %v13765_v40  ;;  %v13766_v40 = vld [vmem:[#allocation6 + $0xac0] ss:$36 sps:$4 sm:$0xff]  }
 0x2cb   : > { %v5451_v0 = vpop.f32.mrf.mxu0  ;;  %6434 = vmatprep.subr.bf16.mxu1 %v13792_v50 }
 0x2cc   : > { %v15648_v44 = vadd.f32 %v5414_v17, %v5302_v52  ;;  %v5452_v19 = vadd.f32 %v5451_v0, %v15526_v34  ;;  %6128 = vmatmul.mubr.bf16.vlgmr.msra.gmra.mxu0 %v15189_v25  ;;  %v5564_v42 = vpop.f32.mrf.mxu1  ;;  %v13771_v0 = vld [vmem:[#allocation6 + $0xa7c] ss:$36 sps:$4 sm:$0xff]  }
 0x2cd   : > { %6137 = vmatprep.mubr.bf16.mxu0 %v15204_v3  ;;  %6241 = vmatmul.mubr.bf16.vlgmr.msra.gmra.mxu1 %v15181_v14  ;;  %v5453_v62 = vpop.f32.mrf.mxu0  ;;  %v13796_v34 = vld [vmem:[#allocation6 + $0xf40] ss:$36 sps:$4 sm:$0xff]  }
 0x2ce   : > { %v5565_v35 = vadd.f32 %v5564_v42, %v5452_v19  ;;  %6322 = vmatpush1.bf16.msra.mxu0 %v13763_v9  ;;  %v5454_v6 = vadd.f32 %v5453_v62, %v15530_v47  ;;  %6250 = vmatprep.mubr.bf16.mxu1 %v15206_v4  ;;  %v5566_v63 = vpop.f32.mrf.mxu1  ;;  %v13804_v17 = vld [vmem:[#allocation6 + $0xefc] ss:$36 sps:$4 sm:$0xff]   ;;  %v13774_v4 = vld [vmem:[#allocation6 + $0xa34] ss:$36 sps:$4 sm:$0xff]  }
 0x2cf   : > { %v5455_v61 = vpop.f32.mrf.mxu0  ;;  %6323 = vmatprep.subr.bf16.mxu0 %v13768_v48  ;;  %6435 = vmatpush1.bf16.msra.mxu1 %v13790_v59  ;;  %v13769_v42 = vld [vmem:[#allocation6 + $0xa78] ss:$36 sps:$4 sm:$0xff]  }
 0x2d0   : > { %v5567_v16 = vadd.f32 %v5566_v63, %v5454_v6  ;;  %v5456_v50 = vadd.f32 %v5455_v61, %v15533_v46  ;;  %v5568_v49 = vpop.f32.mrf.mxu1  ;;  %6436 = vmatprep.subr.bf16.mxu1 %v13798_v45  ;;  %v13802_v48 = vld [vmem:[#allocation6 + $0xef8] ss:$36 sps:$4 sm:$0xff]   ;;  %v7387_v59 = vmax.f32 %v5565_v35, 0.0 }
 0x2d1   : > { %v5457_v52 = vpop.f32.mrf.mxu0  ;;  %v13810_v63 = vld [vmem:[#allocation6 + $0xeb4] ss:$36 sps:$4 sm:$0xff]  }
 0x2d2   : > { %v5569_v19 = vadd.f32 %v5568_v49, %v5456_v50  ;;  %6324 = vmatpush1.bf16.msra.mxu0 %v13766_v40  ;;  %v5458_v47 = vadd.f32 %v5457_v52, %v15536_v21  ;;  %v5570_v9 = vpop.f32.mrf.mxu1  ;;  %v7388_v40 = vmax.f32 %v5567_v16, 0.0  ;;  %v13772_v50 = vld [vmem:[#allocation6 + $0xa30] ss:$36 sps:$4 sm:$0xff]  }
 0x2d3   : > { %v5461_v62 = vpop.f32.mrf.mxu0  ;;  %6325 = vmatprep.subr.bf16.mxu0 %v13771_v0  ;;  %6437 = vmatpush1.bf16.msra.mxu1 %v13796_v34  ;;  %v13808_v16 = vld [vmem:[#allocation6 + $0xeb0] ss:$36 sps:$4 sm:$0xff]  }
 0x2d4   : > { %v7396_v14 = vmax.f32 %v5569_v19, 0.0  ;;  %v5571_v6 = vadd.f32 %v5570_v9, %v5458_v47  ;;  %v5462_v46 = vadd.f32 %v5461_v62, %v15542_v23  ;;  %6138 = vmatmul.mubr.bf16.gmra.mxu0 %v15209_v37  ;;  %v5574_v45 = vpop.f32.mrf.mxu1  ;;  %6438 = vmatprep.subr.bf16.mxu1 %v13804_v17  ;;  %v13777_v17 = vld [vmem:[#allocation6 + $0x9ec] ss:$36 sps:$4 sm:$0xff]  }
 0x2d5   : > { %6147 = vmatprep.mubr.bf16.mxu0 %v15224_v53  ;;  %6251 = vmatmul.mubr.bf16.gmra.mxu1 %v15201_v22  ;;  %v5463_v21 = vpop.f32.mrf.mxu0 }
 0x2d6   : > { %v15662_v61 = vpack.c.bf16 %v7396_v14, %v7387_v59  ;;  %v7397_v0 = vmax.f32 %v5571_v6, 0.0  ;;  %v5575_v34 = vadd.f32 %v5574_v45, %v5462_v46  ;;  %6326 = vmatpush1.bf16.msra.mxu0 %v13769_v42  ;;  %v5464_v35 = vadd.f32 %v5463_v21, %v15546_v2  ;;  %6260 = vmatprep.mubr.bf16.mxu1 %v15226_v11  ;;  %v5576_v23 = vpop.f32.mrf.mxu1  ;;  %v13816_v14 = vld [vmem:[#allocation6 + $0xe6c] ss:$36 sps:$4 sm:$0xff]  }
 0x2d7   : > { %v5465_v49 = vpop.f32.mrf.mxu0  ;;  %6327 = vmatprep.subr.bf16.mxu0 %v13774_v4  ;;  %6439 = vmatpush1.bf16.msra.mxu1 %v13802_v48  ;;  %v13775_v6 = vld [vmem:[#allocation6 + $0x9e8] ss:$36 sps:$4 sm:$0xff]  }
 0x2d8   : > { %17881 = vst [vmem:[#allocation84_spill] sm:$0xff] %v15662_v61  ;;  %v5577_v52 = vadd.f32 %v5576_v23, %v5464_v35  ;;  %v5466_v19 = vadd.f32 %v5465_v49, %v15549_v58  ;;  %v5578_v47 = vpop.f32.mrf.mxu1  ;;  %6440 = vmatprep.subr.bf16.mxu1 %v13810_v63  ;;  %v15667_v9 = vpack.c.bf16 %v7397_v0, %v7388_v40  ;;  %v13780_v4 = vld [vmem:[#allocation6 + $0x9a4] ss:$36 sps:$4 sm:$0xff]   ;;  %v7405_v45 = vmax.f32 %v5575_v34, 0.0  ;;  %v13870_v61 = vld [vmem:[#allocation6 + $0x52c] ss:$36 sps:$4 sm:$0xff]  }
 0x2d9   : > { %v5467_v42 = vpop.f32.mrf.mxu0  ;;  %v13814_v48 = vld [vmem:[#allocation6 + $0xe68] ss:$36 sps:$4 sm:$0xff]  }
 0x2da   : > { %17882 = vst [vmem:[#allocation85_spill] sm:$0xff] %v15667_v9  ;;  %v5579_v62 = vadd.f32 %v5578_v47, %v5466_v19  ;;  %6328 = vmatpush1.bf16.msra.mxu0 %v13772_v50  ;;  %v5468_v2 = vadd.f32 %v5467_v42, %v15552_v57  ;;  %v5580_v59 = vpop.f32.mrf.mxu1  ;;  %v13822_v0 = vld [vmem:[#allocation6 + $0xe24] ss:$36 sps:$4 sm:$0xff]   ;;  %v7406_v35 = vmax.f32 %v5577_v52, 0.0  ;;  %v13783_v19 = vld [vmem:[#allocation6 + $0x95c] ss:$36 sps:$4 sm:$0xff]  }
 0x2db   : > { %v5471_v46 = vpop.f32.mrf.mxu0  ;;  %6329 = vmatprep.subr.bf16.mxu0 %v13777_v17  ;;  %6441 = vmatpush1.bf16.msra.mxu1 %v13808_v16  ;;  %v13778_v17 = vld [vmem:[#allocation6 + $0x9a0] ss:$36 sps:$4 sm:$0xff]   ;;  %v17924_v9 = vld [vmem:[#allocation63_spill] sm:$0xff] }
 0x2dc   : > { %v7414_v21 = vmax.f32 %v5579_v62, 0.0  ;;  %v5581_v58 = vadd.f32 %v5580_v59, %v5468_v2  ;;  %v5472_v63 = vadd.f32 %v5471_v46, %v15558_v12  ;;  %6148 = vmatmul.mubr.bf16.gmra.mxu0 %v15229_v56  ;;  %v5584_v40 = vpop.f32.mrf.mxu1  ;;  %6442 = vmatprep.subr.bf16.mxu1 %v13816_v14  ;;  %v13820_v52 = vld [vmem:[#allocation6 + $0xe20] ss:$36 sps:$4 sm:$0xff]  }
 0x2dd   : > { %6157 = vmatprep.mubr.bf16.mxu0 %v15244_v33  ;;  %6261 = vmatmul.mubr.bf16.gmra.mxu1 %v15221_v28  ;;  %v5473_v57 = vpop.f32.mrf.mxu0  ;;  %v13828_v62 = vld [vmem:[#allocation6 + $0xddc] ss:$36 sps:$4 sm:$0xff]  }
 0x2de   : > { %v15674_v23 = vpack.c.bf16 %v7414_v21, %v7405_v45  ;;  %v7415_v50 = vmax.f32 %v5581_v58, 0.0  ;;  %v5585_v49 = vadd.f32 %v5584_v40, %v5472_v63  ;;  %6330 = vmatpush1.bf16.msra.mxu0 %v13775_v6  ;;  %v5474_v34 = vadd.f32 %v5473_v57, %v15562_v32  ;;  %6270 = vmatprep.mubr.bf16.mxu1 %v15246_v36  ;;  %v5586_v12 = vpop.f32.mrf.mxu1  ;;  %v13781_v45 = vld [vmem:[#allocation6 + $0x958] ss:$36 sps:$4 sm:$0xff]  }
 0x2df   : > { %v5475_v16 = vpop.f32.mrf.mxu0  ;;  %6331 = vmatprep.subr.bf16.mxu0 %v13780_v4  ;;  %6443 = vmatpush1.bf16.msra.mxu1 %v13814_v48  ;;  %v13786_v4 = vld [vmem:[#allocation6 + $0x914] ss:$36 sps:$4 sm:$0xff]  }
 0x2e0   : > { %17883 = vst [vmem:[#allocation86_spill] sm:$0xff] %v15674_v23  ;;  %v5587_v47 = vadd.f32 %v5586_v12, %v5474_v34  ;;  %v5476_v14 = vadd.f32 %v5475_v16, %v15565_v15  ;;  %v5588_v42 = vpop.f32.mrf.mxu1  ;;  %6444 = vmatprep.subr.bf16.mxu1 %v13822_v0  ;;  %v15679_v2 = vpack.c.bf16 %v7415_v50, %v7406_v35  ;;  %v13826_v48 = vld [vmem:[#allocation6 + $0xdd8] ss:$36 sps:$4 sm:$0xff]   ;;  %v7423_v58 = vmax.f32 %v5585_v49, 0.0  ;;  %v13859_v23 = vld [vmem:[#allocation6 + $0xf0] ss:$36 sps:$4 sm:$0xff]  }
 0x2e1   : > { %v5477_v59 = vpop.f32.mrf.mxu0  ;;  %v13834_v35 = vld [vmem:[#allocation6 + $0xd94] ss:$36 sps:$4 sm:$0xff]  }
 0x2e2   : > { %17884 = vst [vmem:[#allocation87_spill] sm:$0xff] %v15679_v2  ;;  %v5589_v6 = vadd.f32 %v5588_v42, %v5476_v14  ;;  %6332 = vmatpush1.bf16.msra.mxu0 %v13778_v17  ;;  %v5478_v32 = vadd.f32 %v5477_v59, %v15568_v55  ;;  %v5590_v46 = vpop.f32.mrf.mxu1  ;;  %v7424_v57 = vmax.f32 %v5587_v47, 0.0  ;;  %v13784_v17 = vld [vmem:[#allocation6 + $0x910] ss:$36 sps:$4 sm:$0xff]  }
 0x2e3   : > { %v5481_v21 = vpop.f32.mrf.mxu0  ;;  %6333 = vmatprep.subr.bf16.mxu0 %v13783_v19  ;;  %6445 = vmatpush1.bf16.msra.mxu1 %v13820_v52  ;;  %v13789_v19 = vld [vmem:[#allocation6 + $0xd4c] ss:$36 sps:$4 sm:$0xff]  }
 0x2e4   : > { %v7432_v63 = vmax.f32 %v5589_v6, 0.0  ;;  %v5591_v15 = vadd.f32 %v5590_v46, %v5478_v32  ;;  %v5482_v40 = vadd.f32 %v5481_v21, %v15574_v24  ;;  %6158 = vmatmul.mubr.bf16.gmra.mxu0 %v15249_v26  ;;  %v5594_v0 = vpop.f32.mrf.mxu1  ;;  %6446 = vmatprep.subr.bf16.mxu1 %v13828_v62  ;;  %v13832_v52 = vld [vmem:[#allocation6 + $0xd90] ss:$36 sps:$4 sm:$0xff]  }
 0x2e5   : > { %6167 = vmatprep.mubr.bf16.mxu0 %v15264_v27  ;;  %6271 = vmatmul.mubr.bf16.gmra.mxu1 %v15241_v29  ;;  %v5483_v55 = vpop.f32.mrf.mxu0  ;;  %v13840_v62 = vld [vmem:[#allocation6 + $0x694] ss:$36 sps:$4 sm:$0xff]  }
 0x2e6   : > { %v15686_v50 = vpack.c.bf16 %v7432_v63, %v7423_v58  ;;  %v7433_v34 = vmax.f32 %v5591_v15, 0.0  ;;  %v5595_v12 = vadd.f32 %v5594_v0, %v5482_v40  ;;  %6334 = vmatpush1.bf16.msra.mxu0 %v13781_v45  ;;  %v5484_v49 = vadd.f32 %v5483_v55, %v15578_v39  ;;  %6280 = vmatprep.mubr.bf16.mxu1 %v15266_v13  ;;  %v5596_v24 = vpop.f32.mrf.mxu1  ;;  %v13787_v45 = vld [vmem:[#allocation6 + $0xd48] ss:$36 sps:$4 sm:$0xff]   ;;  %v17888_v40 = vld [vmem:[#allocation40_spill] sm:$0xff]  ;;  %v17890_v55 = vld [vmem:[#allocation39_spill] sm:$0xff] }
 0x2e7   : > { %v5485_v16 = vpop.f32.mrf.mxu0  ;;  %6335 = vmatprep.subr.bf16.mxu0 %v13786_v4  ;;  %6447 = vmatpush1.bf16.msra.mxu1 %v13826_v48  ;;  %v13795_v4 = vld [vmem:[#allocation6 + $0xd04] ss:$36 sps:$4 sm:$0xff]  }
 0x2e8   : > { %17885 = vst [vmem:[#allocation88_spill] sm:$0xff] %v15686_v50  ;;  %v5597_v47 = vadd.f32 %v5596_v24, %v5484_v49  ;;  %v5486_v14 = vadd.f32 %v5485_v16, %v15581_v20  ;;  %v5598_v42 = vpop.f32.mrf.mxu1  ;;  %6448 = vmatprep.subr.bf16.mxu1 %v13834_v35  ;;  %v15691_v59 = vpack.c.bf16 %v7433_v34, %v7424_v57  ;;  %v7441_v48 = vmax.f32 %v5595_v12, 0.0  ;;  %v17887_v20 = vld [vmem:[#allocation80_spill] sm:$0xff]  ;;  %v17889_v57 = vld [vmem:[#allocation42_spill] sm:$0xff]  ;;  %v17892_v12 = vld [vmem:[#allocation81_spill] sm:$0xff] }
 0x2e9   : > { %v5487_v6 = vpop.f32.mrf.mxu0  ;;  %v17893_v16 = vld [vmem:[#allocation43_spill] sm:$0xff] }
 0x2ea   : > { %17886 = vst [vmem:[#allocation89_spill] sm:$0xff] %v15691_v59  ;;  %v5599_v32 = vadd.f32 %v5598_v42, %v5486_v14  ;;  %6336 = vmatpush1.bf16.msra.mxu0 %v13784_v17  ;;  %v5488_v39 = vadd.f32 %v5487_v6, %v15584_v7  ;;  %v5600_v46 = vpop.f32.mrf.mxu1  ;;  %v7442_v35 = vmax.f32 %v5597_v47, 0.0  ;;  %v13801_v42 = vld [vmem:[#allocation6 + $0xcbc] ss:$36 sps:$4 sm:$0xff]  }
 0x2eb   : > { %v5491_v21 = vpop.f32.mrf.mxu0  ;;  %6337 = vmatprep.subr.bf16.mxu0 %v13789_v19  ;;  %6449 = vmatpush1.bf16.msra.mxu1 %v13832_v52  ;;  %v13793_v52 = vld [vmem:[#allocation6 + $0xd00] ss:$36 sps:$4 sm:$0xff]  }
 0x2ec   : > { %v7450_v58 = vmax.f32 %v5599_v32, 0.0  ;;  %v5601_v63 = vadd.f32 %v5600_v46, %v5488_v39  ;;  %v5492_v15 = vadd.f32 %v5491_v21, %v17887_v20  ;;  %6168 = vmatmul.mubr.bf16.gmra.mxu0 %v17888_v40  ;;  %v5604_v0 = vpop.f32.mrf.mxu1  ;;  %6660 = vmatprep.subr.bf16.mxu1 %v13840_v62 }
 0x2ed   : > { %6177 = vmatprep.mubr.bf16.mxu0 %v17889_v57  ;;  %6281 = vmatmul.mubr.bf16.gmra.mxu1 %v17890_v55  ;;  %v5493_v7 = vpop.f32.mrf.mxu0 }
 0x2ee   : > { %v15698_v34 = vpack.c.bf16 %v7450_v58, %v7441_v48  ;;  %v7451_v49 = vmax.f32 %v5601_v63, 0.0  ;;  %v5605_v24 = vadd.f32 %v5604_v0, %v5492_v15  ;;  %6338 = vmatpush2.bf16.msra.mxu0 %v13787_v45  ;;  %v5494_v17 = vadd.f32 %v5493_v7, %v17892_v12  ;;  %6290 = vmatprep.mubr.bf16.mxu1 %v17893_v16  ;;  %v5606_v19 = vpop.f32.mrf.mxu1  ;;  %v13799_v48 = vld [vmem:[#allocation6 + $0xcb8] ss:$36 sps:$4 sm:$0xff]   ;;  %v17895_v0 = vld [vmem:[#allocation82_spill] sm:$0xff] }
 0x2ef   : > { %v5495_v14 = vpop.f32.mrf.mxu0  ;;  %6339 = vmatprep.subr.bf16.mxu0 %v13795_v4  ;;  %v13807_v63 = vld [vmem:[#allocation6 + $0xc74] ss:$36 sps:$4 sm:$0xff]  }
 0x2f0   : > { %17891 = vst [vmem:[#allocation80_spill] sm:$0xff] %v15698_v34  ;;  %v5607_v47 = vadd.f32 %v5606_v19, %v5494_v17  ;;  %v5496_v62 = vadd.f32 %v5495_v14, %v15597_v30  ;;  %v5608_v6 = vpop.f32.mrf.mxu1  ;;  %v15703_v32 = vpack.c.bf16 %v7451_v49, %v7442_v35  ;;  %v7459_v20 = vmax.f32 %v5605_v24, 0.0  ;;  %v17896_v12 = vld [vmem:[#allocation44_spill] sm:$0xff]  ;;  %v17897_v49 = vld [vmem:[#allocation46_spill] sm:$0xff]  ;;  %v17898_v17 = vld [vmem:[#allocation41_spill] sm:$0xff] }
 0x2f1   : > { %v5497_v39 = vpop.f32.mrf.mxu0 }
 0x2f2   : > { %17894 = vst [vmem:[#allocation40_spill] sm:$0xff] %v15703_v32  ;;  %v5609_v46 = vadd.f32 %v5608_v6, %v5496_v62  ;;  %6340 = vmatpush2.bf16.msra.mxu0 %v13793_v52  ;;  %v5498_v45 = vadd.f32 %v5497_v39, %v15600_v8  ;;  %v5610_v21 = vpop.f32.mrf.mxu1  ;;  %v7460_v35 = vmax.f32 %v5607_v47, 0.0  ;;  %v13805_v6 = vld [vmem:[#allocation6 + $0xc70] ss:$36 sps:$4 sm:$0xff]  }
 0x2f3   : > { %v5501_v58 = vpop.f32.mrf.mxu0  ;;  %6341 = vmatprep.subr.bf16.mxu0 %v13801_v42  ;;  %v17900_v42 = vld [vmem:[#allocation47_spill] sm:$0xff] }
 0x2f4   : > { %v7468_v15 = vmax.f32 %v5609_v46, 0.0  ;;  %v5611_v4 = vadd.f32 %v5610_v21, %v5498_v45  ;;  %v5502_v7 = vadd.f32 %v5501_v58, %v17895_v0  ;;  %6178 = vmatmul.mubr.bf16.gmra.mxu0 %v17896_v12  ;;  %v5614_v30 = vpop.f32.mrf.mxu1  ;;  %v13813_v46 = vld [vmem:[#allocation6 + $0xc2c] ss:$36 sps:$4 sm:$0xff]  }
 0x2f5   : > { %6187 = vmatprep.mubr.bf16.mxu0 %v17897_v49  ;;  %6291 = vmatmul.mubr.bf16.gmra.mxu1 %v17898_v17  ;;  %v5503_v19 = vpop.f32.mrf.mxu0  ;;  %v17938_v17 = vld [vmem:[#allocation75_spill] sm:$0xff] }
 0x2f6   : > { %v15710_v8 = vpack.c.bf16 %v7468_v15, %v7459_v20  ;;  %v7469_v52 = vmax.f32 %v5611_v4, 0.0  ;;  %v5615_v14 = vadd.f32 %v5614_v30, %v5502_v7  ;;  %6342 = vmatpush2.bf16.msra.mxu0 %v13799_v48  ;;  %v5504_v24 = vadd.f32 %v5503_v19, %v15610_v41  ;;  %6300 = vmatprep.mubr.bf16.mxu1 %v17900_v42  ;;  %v5616_v62 = vpop.f32.mrf.mxu1  ;;  %v13811_v41 = vld [vmem:[#allocation6 + $0xc28] ss:$36 sps:$4 sm:$0xff]  }
 0x2f7   : > { %v5505_v39 = vpop.f32.mrf.mxu0  ;;  %6343 = vmatprep.subr.bf16.mxu0 %v13807_v63  ;;  %v13819_v7 = vld [vmem:[#allocation6 + $0xbe4] ss:$36 sps:$4 sm:$0xff]  }
 0x2f8   : > { %17899 = vst [vmem:[#allocation42_spill] sm:$0xff] %v15710_v8  ;;  %v5617_v47 = vadd.f32 %v5616_v62, %v5504_v24  ;;  %v5506_v45 = vadd.f32 %v5505_v39, %v15613_v43  ;;  %v5618_v21 = vpop.f32.mrf.mxu1  ;;  %v15715_v58 = vpack.c.bf16 %v7469_v52, %v7460_v35  ;;  %v7477_v30 = vmax.f32 %v5615_v14, 0.0  ;;  %v17902_v8 = vld [vmem:[#allocation83_spill] sm:$0xff]  ;;  %v17903_v62 = vld [vmem:[#allocation49_spill] sm:$0xff] }
 0x2f9   : > { %v5507_v20 = vpop.f32.mrf.mxu0  ;;  %v17904_v52 = vld [vmem:[#allocation53_spill] sm:$0xff] }
 0x2fa   : > { %17901 = vst [vmem:[#allocation39_spill] sm:$0xff] %v15715_v58  ;;  %v5619_v15 = vadd.f32 %v5618_v21, %v5506_v45  ;;  %6344 = vmatpush2.bf16.msra.mxu0 %v13805_v6  ;;  %v5508_v48 = vadd.f32 %v5507_v20, %v15616_v18  ;;  %v5620_v4 = vpop.f32.mrf.mxu1  ;;  %v7478_v35 = vmax.f32 %v5617_v47, 0.0  ;;  %v17905_v39 = vld [vmem:[#allocation45_spill] sm:$0xff] }
 0x2fb   : > { %v5511_v0 = vpop.f32.mrf.mxu0  ;;  %6345 = vmatprep.subr.bf16.mxu0 %v13813_v46  ;;  %v17907_v46 = vld [vmem:[#allocation54_spill] sm:$0xff] }
 0x2fc   : > { %v7486_v19 = vmax.f32 %v5619_v15, 0.0  ;;  %v5621_v63 = vadd.f32 %v5620_v4, %v5508_v48  ;;  %v5512_v24 = vadd.f32 %v5511_v0, %v17902_v8  ;;  %6188 = vmatmul.mubr.bf16.gmra.mxu0 %v17903_v62  ;;  %v5624_v43 = vpop.f32.mrf.mxu1  ;;  %v13817_v8 = vld [vmem:[#allocation6 + $0xbe0] ss:$36 sps:$4 sm:$0xff]  }
 0x2fd   : > { %6197 = vmatprep.mubr.bf16.mxu0 %v17904_v52  ;;  %6301 = vmatmul.mubr.bf16.gmra.mxu1 %v17905_v39  ;;  %v5513_v6 = vpop.f32.mrf.mxu0  ;;  %v13825_v48 = vld [vmem:[#allocation6 + $0xb9c] ss:$36 sps:$4 sm:$0xff]  }
 0x2fe   : > { %v15722_v18 = vpack.c.bf16 %v7486_v19, %v7477_v30  ;;  %v7487_v45 = vmax.f32 %v5621_v63, 0.0  ;;  %v5625_v21 = vadd.f32 %v5624_v43, %v5512_v24  ;;  %6346 = vmatpush2.bf16.msra.mxu0 %v13811_v41  ;;  %v5514_v14 = vadd.f32 %v5513_v6, %v15626_v31  ;;  %6310 = vmatprep.mubr.bf16.mxu1 %v17907_v46  ;;  %v5626_v20 = vpop.f32.mrf.mxu1  ;;  %v13823_v31 = vld [vmem:[#allocation6 + $0xb98] ss:$36 sps:$4 sm:$0xff]  }
 0x2ff   : > { %v5515_v15 = vpop.f32.mrf.mxu0  ;;  %6347 = vmatprep.subr.bf16.mxu0 %v13819_v7  ;;  %v13831_v43 = vld [vmem:[#allocation6 + $0xb54] ss:$36 sps:$4 sm:$0xff]   ;;  %v13906_v39 = vld [vmem:[#allocation6 + $0x7fc] ss:$36 sps:$4 sm:$0xff]  }
 0x300   : > { %17906 = vst [vmem:[#allocation81_spill] sm:$0xff] %v15722_v18  ;;  %v5627_v47 = vadd.f32 %v5626_v20, %v5514_v14  ;;  %v5516_v4 = vadd.f32 %v5515_v15, %v15629_v60  ;;  %v5628_v0 = vpop.f32.mrf.mxu1  ;;  %v15727_v58 = vpack.c.bf16 %v7487_v45, %v7478_v35  ;;  %v7495_v6 = vmax.f32 %v5625_v21, 0.0  ;;  %v17909_v20 = vld [vmem:[#allocation55_spill] sm:$0xff]  ;;  %v17910_v45 = vld [vmem:[#allocation52_spill] sm:$0xff] }
 0x301   : > { %v5517_v30 = vpop.f32.mrf.mxu0  ;;  %v17911_v15 = vld [vmem:[#allocation56_spill] sm:$0xff] }
 0x302   : > { %17908 = vst [vmem:[#allocation43_spill] sm:$0xff] %v15727_v58  ;;  %v5629_v19 = vadd.f32 %v5628_v0, %v5516_v4  ;;  %6348 = vmatpush2.bf16.msra.mxu0 %v13817_v8  ;;  %v5518_v41 = vadd.f32 %v5517_v30, %v15632_v51  ;;  %v5630_v63 = vpop.f32.mrf.mxu1  ;;  %v7496_v35 = vmax.f32 %v5627_v47, 0.0  ;;  %v13829_v30 = vld [vmem:[#allocation6 + $0xb50] ss:$36 sps:$4 sm:$0xff]   ;;  %v17913_v58 = vld [vmem:[#allocation29_spill] sm:$0xff]  ;;  %v17933_v52 = vld [vmem:[#allocation72_spill] sm:$0xff] }
 0x303   : > { %v5521_v24 = vpop.f32.mrf.mxu0  ;;  %6349 = vmatprep.subr.bf16.mxu0 %v13825_v48 }
 0x304   : > { %v7504_v18 = vmax.f32 %v5629_v19, 0.0  ;;  %v5631_v7 = vadd.f32 %v5630_v63, %v5518_v41  ;;  %v5522_v14 = vadd.f32 %v5521_v24, %v15638_v38  ;;  %6198 = vmatmul.mubr.bf16.gmra.mxu0 %v17909_v20  ;;  %v5634_v60 = vpop.f32.mrf.mxu1  ;;  %v13837_v19 = vld [vmem:[#allocation6 + $0x214] ss:$36 sps:$4 sm:$0xff]   ;;  %v14379_v24 = vld [vmem:[#allocation7] sm:$0xff] }
 0x305   : > { %6311 = vmatmul.mubr.bf16.gmra.mxu1 %v17910_v45  ;;  %6353 = vmatprep.mubr.bf16.mxu0 %v17911_v15  ;;  %v5523_v8 = vpop.f32.mrf.mxu0  ;;  %v13894_v15 = vld [vmem:[#allocation6 + $0x88c] ss:$36 sps:$4 sm:$0xff]   ;;  %v17930_v45 = vld [vmem:[#allocation69_spill] sm:$0xff] }
 0x306   : > { %v15734_v51 = vpack.c.bf16 %v7504_v18, %v7495_v6  ;;  %v7505_v4 = vmax.f32 %v5631_v7, 0.0  ;;  %v5635_v0 = vadd.f32 %v5634_v60, %v5522_v14  ;;  %6350 = vmatpush2.bf16.msra.mxu0 %v13823_v31  ;;  %v5524_v21 = vadd.f32 %v5523_v8, %v15642_v1  ;;  %v5636_v48 = vpop.f32.mrf.mxu1  ;;  %6466 = vmatprep.mubr.bf16.mxu1 %v17836_v10  ;;  %v13835_v60 = vld [vmem:[#allocation6 + $0x210] ss:$36 sps:$4 sm:$0xff]   ;;  %v17915_v8 = vld [vmem:[#allocation30_spill] sm:$0xff] }
 0x307   : > { %v5525_v38 = vpop.f32.mrf.mxu0  ;;  %6351 = vmatprep.subr.bf16.mxu0 %v13831_v43  ;;  %v15740_v18 = vrot.slane %v14379_v24, %v17913_v58  ;;  %v15746_v43 = vrot.slane %v14379_v24, %v17915_v8 }
 0x308   : > { %17912 = vst [vmem:[#allocation82_spill] sm:$0xff] %v15734_v51  ;;  %v5637_v47 = vadd.f32 %v5636_v48, %v5524_v21  ;;  %v5526_v41 = vadd.f32 %v5525_v38, %v15645_v5  ;;  %v5638_v63 = vpop.f32.mrf.mxu1  ;;  %v15742_v6 = vpack.c.bf16 %v7505_v4, %v7496_v35  ;;  %v13838_v5 = vld [vmem:[#allocation6 + $0x690] ss:$36 sps:$4 sm:$0xff]   ;;  %v7513_v38 = vmax.f32 %v5635_v0, 0.0 }
 0x309   : > { %v5527_v31 = vpop.f32.mrf.mxu0  ;;  %v13843_v48 = vld [vmem:[#allocation6 + $0x1cc] ss:$36 sps:$4 sm:$0xff]  }
 0x30a   : > { %17914 = vst [vmem:[#allocation44_spill] sm:$0xff] %v15742_v6  ;;  %v5639_v7 = vadd.f32 %v5638_v63, %v5526_v41  ;;  %6352 = vmatpush2.bf16.msra.mxu0 %v13829_v30  ;;  %v5528_v1 = vadd.f32 %v5527_v31, %v15648_v44  ;;  %v5640_v14 = vpop.f32.mrf.mxu1  ;;  %v13846_v6 = vld [vmem:[#allocation6 + $0x64c] ss:$36 sps:$4 sm:$0xff]   ;;  %v7514_v41 = vmax.f32 %v5637_v47, 0.0  ;;  %v17916_v30 = vld [vmem:[#allocation57_spill] sm:$0xff] }
 0x30b   : > { %v5677_v21 = vpop.f32.mrf.mxu0  ;;  %6547 = vmatprep.subr.bf16.mxu0 %v13837_v19  ;;  %v17917_v44 = vld [vmem:[#allocation58_spill] sm:$0xff]  ;;  %v17919_v19 = vld [vmem:[#allocation59_spill] sm:$0xff] }
 0x30c   : > { %v7522_v51 = vmax.f32 %v5639_v7, 0.0  ;;  %v5641_v58 = vadd.f32 %v5640_v14, %v5528_v1  ;;  %v5678_v35 = vadd.f32 %v5677_v21, %v15740_v18  ;;  %v5790_v4 = vpop.f32.mrf.mxu1  ;;  %v13841_v1 = vld [vmem:[#allocation6 + $0x1c8] ss:$36 sps:$4 sm:$0xff]  }
 0x30d   : > { %6354 = vmatmul.mubr.bf16.vlgmr.msra.gmra.mxu0 %v17916_v30  ;;  %6467 = vmatmul.mubr.bf16.vlgmr.msra.gmra.mxu1 %v17917_v44  ;;  %v5679_v63 = vpop.f32.mrf.mxu0  ;;  %v13844_v47 = vld [vmem:[#allocation6 + $0x648] ss:$36 sps:$4 sm:$0xff]  }
 0x30e   : > { %v15751_v31 = vpack.c.bf16 %v7522_v51, %v7513_v38  ;;  %v7523_v24 = vmax.f32 %v5641_v58, 0.0  ;;  %v15753_v8 = vadd.f32 %v5790_v4, %v5678_v35  ;;  %6363 = vmatprep.mubr.bf16.mxu0 %v17919_v19  ;;  %6548 = vmatpush1.bf16.msra.mxu0 %v13835_v60  ;;  %v5680_v0 = vadd.f32 %v5679_v63, %v15746_v43  ;;  %v5792_v7 = vpop.f32.mrf.mxu1  ;;  %v13849_v21 = vld [vmem:[#allocation6 + $0x184] ss:$36 sps:$4 sm:$0xff]  }
 0x30f   : > { %6661 = vmatpush1.bf16.msra.mxu1 %v13838_v5  ;;  %v5681_v14 = vpop.f32.mrf.mxu0  ;;  %6549 = vmatprep.subr.bf16.mxu0 %v13843_v48  ;;  %v13852_v58 = vld [vmem:[#allocation6 + $0x604] ss:$36 sps:$4 sm:$0xff]  }
 0x310   : > { %17918 = vst [vmem:[#allocation46_spill] sm:$0xff] %v15751_v31  ;;  %v15757_v34 = vadd.f32 %v5792_v7, %v5680_v0  ;;  %v5682_v51 = vadd.f32 %v5681_v14, %v15740_v18  ;;  %v5794_v38 = vpop.f32.mrf.mxu1  ;;  %6662 = vmatprep.subr.bf16.mxu1 %v13846_v6  ;;  %6476 = vmatprep.mubr.bf16.mxu1 %v17836_v10  ;;  %v13847_v63 = vld [vmem:[#allocation6 + $0x180] ss:$36 sps:$4 sm:$0xff]   ;;  %v17927_v19 = vld [vmem:[#allocation66_spill] sm:$0xff] }
 0x311   : > { %v15761_v35 = vpack.c.bf16 %v7523_v24, %v7514_v41  ;;  %v5683_v60 = vpop.f32.mrf.mxu0  ;;  %v13850_v7 = vld [vmem:[#allocation6 + $0x600] ss:$36 sps:$4 sm:$0xff]   ;;  %v17921_v24 = vld [vmem:[#allocation60_spill] sm:$0xff] }
 0x312   : > { %v15763_v4 = vadd.f32 %v5794_v38, %v5682_v51  ;;  %6550 = vmatpush1.bf16.msra.mxu0 %v13841_v1  ;;  %v5684_v5 = vadd.f32 %v5683_v60, %v15746_v43  ;;  %v5796_v48 = vpop.f32.mrf.mxu1  ;;  %v13855_v14 = vld [vmem:[#allocation6 + $0x13c] ss:$36 sps:$4 sm:$0xff]   ;;  %v17923_v60 = vld [vmem:[#allocation62_spill] sm:$0xff] }
 0x313   : > { %17920 = vst [vmem:[#allocation83_spill] sm:$0xff] %v15761_v35  ;;  %6663 = vmatpush1.bf16.msra.mxu1 %v13844_v47  ;;  %v5687_v0 = vpop.f32.mrf.mxu0  ;;  %6551 = vmatprep.subr.bf16.mxu0 %v13849_v21  ;;  %v13858_v41 = vld [vmem:[#allocation6 + $0x5bc] ss:$36 sps:$4 sm:$0xff]  }
 0x314   : > { %v15766_v31 = vadd.f32 %v5796_v48, %v5684_v5  ;;  %v5688_v6 = vadd.f32 %v5687_v0, %v15740_v18  ;;  %v5800_v32 = vpop.f32.mrf.mxu1  ;;  %6664 = vmatprep.subr.bf16.mxu1 %v13852_v58  ;;  %v17922_v51 = vld [vmem:[#allocation61_spill] sm:$0xff]  ;;  %v13853_v5 = vld [vmem:[#allocation6 + $0x138] ss:$36 sps:$4 sm:$0xff]  }
 0x315   : > { %6364 = vmatmul.mubr.bf16.gmra.mxu0 %v17921_v24  ;;  %6477 = vmatmul.mubr.bf16.gmra.mxu1 %v17922_v51  ;;  %v5689_v1 = vpop.f32.mrf.mxu0  ;;  %v13856_v0 = vld [vmem:[#allocation6 + $0x5b8] ss:$36 sps:$4 sm:$0xff]  }
 0x316   : > { %v15771_v38 = vadd.f32 %v5800_v32, %v5688_v6  ;;  %6373 = vmatprep.mubr.bf16.mxu0 %v17923_v60  ;;  %6552 = vmatpush1.bf16.msra.mxu0 %v13847_v63  ;;  %v5690_v47 = vadd.f32 %v5689_v1, %v15746_v43  ;;  %v5802_v21 = vpop.f32.mrf.mxu1  ;;  %v13861_v58 = vld [vmem:[#allocation6 + $0xf4] ss:$36 sps:$4 sm:$0xff]   ;;  %v13882_v24 = vld [vmem:[#allocation6 + $0x49c] ss:$36 sps:$4 sm:$0xff]  }
 0x317   : > { %6665 = vmatpush1.bf16.msra.mxu1 %v13850_v7  ;;  %v5691_v48 = vpop.f32.mrf.mxu0  ;;  %6553 = vmatprep.subr.bf16.mxu0 %v13855_v14  ;;  %v13864_v32 = vld [vmem:[#allocation6 + $0x574] ss:$36 sps:$4 sm:$0xff]  }
 0x318   : > { %v15775_v35 = vadd.f32 %v5802_v21, %v5690_v47  ;;  %v5692_v50 = vadd.f32 %v5691_v48, %v15740_v18  ;;  %v5804_v59 = vpop.f32.mrf.mxu1  ;;  %6666 = vmatprep.subr.bf16.mxu1 %v13858_v41  ;;  %6486 = vmatprep.mubr.bf16.mxu1 %v17836_v10  ;;  %v13862_v47 = vld [vmem:[#allocation6 + $0x570] ss:$36 sps:$4 sm:$0xff]  }
 0x319   : > { %v5693_v6 = vpop.f32.mrf.mxu0  ;;  %v13867_v21 = vld [vmem:[#allocation6 + $0xac] ss:$36 sps:$4 sm:$0xff]  }
 0x31a   : > { %v15779_v63 = vadd.f32 %v5804_v59, %v5692_v50  ;;  %6554 = vmatpush1.bf16.msra.mxu0 %v13853_v5  ;;  %v5694_v1 = vadd.f32 %v5693_v6, %v15746_v43  ;;  %v5806_v7 = vpop.f32.mrf.mxu1  ;;  %v17925_v50 = vld [vmem:[#allocation64_spill] sm:$0xff]  ;;  %v17926_v6 = vld [vmem:[#allocation65_spill] sm:$0xff] }
 0x31b   : > { %6667 = vmatpush1.bf16.msra.mxu1 %v13856_v0  ;;  %v5697_v14 = vpop.f32.mrf.mxu0  ;;  %6555 = vmatprep.subr.bf16.mxu0 %v13861_v58 }
 0x31c   : > { %v15782_v2 = vadd.f32 %v5806_v7, %v5694_v1  ;;  %v5698_v41 = vadd.f32 %v5697_v14, %v15740_v18  ;;  %v5810_v48 = vpop.f32.mrf.mxu1  ;;  %6668 = vmatprep.subr.bf16.mxu1 %v13864_v32  ;;  %v13865_v1 = vld [vmem:[#allocation6 + $0xa8] ss:$36 sps:$4 sm:$0xff]  }
 0x31d   : > { %6374 = vmatmul.mubr.bf16.gmra.mxu0 %v17924_v9  ;;  %6487 = vmatmul.mubr.bf16.gmra.mxu1 %v17925_v50  ;;  %v5699_v59 = vpop.f32.mrf.mxu0  ;;  %v13868_v14 = vld [vmem:[#allocation6 + $0x528] ss:$36 sps:$4 sm:$0xff]  }
 0x31e   : > { %v15787_v5 = vadd.f32 %v5810_v48, %v5698_v41  ;;  %6383 = vmatprep.mubr.bf16.mxu0 %v17926_v6  ;;  %6556 = vmatpush1.bf16.msra.mxu0 %v13859_v23  ;;  %v5700_v0 = vadd.f32 %v5699_v59, %v15746_v43  ;;  %v5812_v58 = vpop.f32.mrf.mxu1  ;;  %v13873_v32 = vld [vmem:[#allocation6 + $0x64] ss:$36 sps:$4 sm:$0xff]  }
 0x31f   : > { %6669 = vmatpush1.bf16.msra.mxu1 %v13862_v47  ;;  %v5701_v7 = vpop.f32.mrf.mxu0  ;;  %6557 = vmatprep.subr.bf16.mxu0 %v13867_v21  ;;  %v13876_v41 = vld [vmem:[#allocation6 + $0x4e4] ss:$36 sps:$4 sm:$0xff]  }
 0x320   : > { %v15791_v60 = vadd.f32 %v5812_v58, %v5700_v0  ;;  %v5702_v9 = vadd.f32 %v5701_v7, %v15740_v18  ;;  %v5814_v50 = vpop.f32.mrf.mxu1  ;;  %6670 = vmatprep.subr.bf16.mxu1 %v13870_v61  ;;  %6496 = vmatprep.mubr.bf16.mxu1 %v17836_v10  ;;  %v13871_v6 = vld [vmem:[#allocation6 + $0x60] ss:$36 sps:$4 sm:$0xff]  }
 0x321   : > { %v5703_v48 = vpop.f32.mrf.mxu0  ;;  %v13874_v0 = vld [vmem:[#allocation6 + $0x4e0] ss:$36 sps:$4 sm:$0xff]  }
 0x322   : > { %v15795_v23 = vadd.f32 %v5814_v50, %v5702_v9  ;;  %6558 = vmatpush1.bf16.msra.mxu0 %v13865_v1  ;;  %v5704_v59 = vadd.f32 %v5703_v48, %v15746_v43  ;;  %v5816_v47 = vpop.f32.mrf.mxu1  ;;  %v13879_v58 = vld [vmem:[#allocation6 + $0x1c] ss:$36 sps:$4 sm:$0xff]   ;;  %v17928_v9 = vld [vmem:[#allocation67_spill] sm:$0xff] }
 0x323   : > { %6671 = vmatpush1.bf16.msra.mxu1 %v13868_v14  ;;  %v5707_v21 = vpop.f32.mrf.mxu0  ;;  %6559 = vmatprep.subr.bf16.mxu0 %v13873_v32  ;;  %v17929_v48 = vld [vmem:[#allocation68_spill] sm:$0xff] }
 0x324   : > { %v15798_v51 = vadd.f32 %v5816_v47, %v5704_v59  ;;  %v5708_v61 = vadd.f32 %v5707_v21, %v15740_v18  ;;  %v5820_v7 = vpop.f32.mrf.mxu1  ;;  %6672 = vmatprep.subr.bf16.mxu1 %v13876_v41  ;;  %v13877_v59 = vld [vmem:[#allocation6 + $0x18] ss:$36 sps:$4 sm:$0xff]  }
 0x325   : > { %6384 = vmatmul.mubr.bf16.gmra.mxu0 %v17927_v19  ;;  %6497 = vmatmul.mubr.bf16.gmra.mxu1 %v17928_v9  ;;  %v5709_v50 = vpop.f32.mrf.mxu0  ;;  %v13880_v21 = vld [vmem:[#allocation6 + $0x498] ss:$36 sps:$4 sm:$0xff]  }
 0x326   : > { %v15803_v1 = vadd.f32 %v5820_v7, %v5708_v61  ;;  %6393 = vmatprep.mubr.bf16.mxu0 %v17929_v48  ;;  %6560 = vmatpush1.bf16.msra.mxu0 %v13871_v6  ;;  %v5710_v14 = vadd.f32 %v5709_v50, %v15746_v43  ;;  %v5822_v32 = vpop.f32.mrf.mxu1  ;;  %v13885_v41 = vld [vmem:[#allocation6 + $0x454] ss:$36 sps:$4 sm:$0xff]  }
 0x327   : > { %6673 = vmatpush1.bf16.msra.mxu1 %v13874_v0  ;;  %v5711_v47 = vpop.f32.mrf.mxu0  ;;  %6561 = vmatprep.subr.bf16.mxu0 %v13879_v58  ;;  %v13888_v61 = vld [vmem:[#allocation6 + $0x8d4] ss:$36 sps:$4 sm:$0xff]  }
 0x328   : > { %v15807_v44 = vadd.f32 %v5822_v32, %v5710_v14  ;;  %v5712_v19 = vadd.f32 %v5711_v47, %v15740_v18  ;;  %v5824_v9 = vpop.f32.mrf.mxu1  ;;  %6674 = vmatprep.subr.bf16.mxu1 %v13882_v24  ;;  %6506 = vmatprep.mubr.bf16.mxu1 %v17836_v10  ;;  %v13883_v48 = vld [vmem:[#allocation6 + $0x450] ss:$36 sps:$4 sm:$0xff]  }
 0x329   : > { %v5713_v7 = vpop.f32.mrf.mxu0  ;;  %v13886_v14 = vld [vmem:[#allocation6 + $0x8d0] ss:$36 sps:$4 sm:$0xff]  }
 0x32a   : > { %v15811_v6 = vadd.f32 %v5824_v9, %v5712_v19  ;;  %6562 = vmatpush1.bf16.msra.mxu0 %v13877_v59  ;;  %v5714_v50 = vadd.f32 %v5713_v7, %v15746_v43  ;;  %v5826_v0 = vpop.f32.mrf.mxu1  ;;  %v13891_v32 = vld [vmem:[#allocation6 + $0x40c] ss:$36 sps:$4 sm:$0xff]  }
 0x32b   : > { %6675 = vmatpush1.bf16.msra.mxu1 %v13880_v21  ;;  %v5717_v58 = vpop.f32.mrf.mxu0  ;;  %6563 = vmatprep.subr.bf16.mxu0 %v13885_v41  ;;  %v17931_v19 = vld [vmem:[#allocation70_spill] sm:$0xff]  ;;  %v17932_v7 = vld [vmem:[#allocation71_spill] sm:$0xff] }
 0x32c   : > { %v15814_v30 = vadd.f32 %v5826_v0, %v5714_v50  ;;  %v5718_v24 = vadd.f32 %v5717_v58, %v15740_v18  ;;  %v5830_v47 = vpop.f32.mrf.mxu1  ;;  %6676 = vmatprep.subr.bf16.mxu1 %v13888_v61  ;;  %v13889_v50 = vld [vmem:[#allocation6 + $0x408] ss:$36 sps:$4 sm:$0xff]  }
 0x32d   : > { %6394 = vmatmul.mubr.bf16.gmra.mxu0 %v17930_v45  ;;  %6507 = vmatmul.mubr.bf16.gmra.mxu1 %v17931_v19  ;;  %v5719_v9 = vpop.f32.mrf.mxu0  ;;  %v13892_v58 = vld [vmem:[#allocation6 + $0x888] ss:$36 sps:$4 sm:$0xff]  }
 0x32e   : > { %v15819_v59 = vadd.f32 %v5830_v47, %v5718_v24  ;;  %6403 = vmatprep.mubr.bf16.mxu0 %v17932_v7  ;;  %6564 = vmatpush2.bf16.msra.mxu0 %v13883_v48  ;;  %v5720_v21 = vadd.f32 %v5719_v9, %v15746_v43  ;;  %v5832_v41 = vpop.f32.mrf.mxu1  ;;  %v13897_v61 = vld [vmem:[#allocation6 + $0x3c4] ss:$36 sps:$4 sm:$0xff]  }
 0x32f   : > { %6677 = vmatpush2.bf16.msra.mxu1 %v13886_v14  ;;  %v5721_v0 = vpop.f32.mrf.mxu0  ;;  %6565 = vmatprep.subr.bf16.mxu0 %v13891_v32  ;;  %v13900_v24 = vld [vmem:[#allocation6 + $0x844] ss:$36 sps:$4 sm:$0xff]  }
 0x330   : > { %v15823_v20 = vadd.f32 %v5832_v41, %v5720_v21  ;;  %v5722_v45 = vadd.f32 %v5721_v0, %v15740_v18  ;;  %v5834_v19 = vpop.f32.mrf.mxu1  ;;  %6678 = vmatprep.subr.bf16.mxu1 %v13894_v15  ;;  %6516 = vmatprep.mubr.bf16.mxu1 %v17836_v10  ;;  %v13895_v7 = vld [vmem:[#allocation6 + $0x3c0] ss:$36 sps:$4 sm:$0xff]  }
 0x331   : > { %v5723_v47 = vpop.f32.mrf.mxu0  ;;  %v13898_v21 = vld [vmem:[#allocation6 + $0x840] ss:$36 sps:$4 sm:$0xff]  }
 0x332   : > { %v15827_v48 = vadd.f32 %v5834_v19, %v5722_v45  ;;  %6566 = vmatpush2.bf16.msra.mxu0 %v13889_v50  ;;  %v5724_v9 = vadd.f32 %v5723_v47, %v15746_v43  ;;  %v5836_v14 = vpop.f32.mrf.mxu1  ;;  %v13903_v41 = vld [vmem:[#allocation6 + $0x37c] ss:$36 sps:$4 sm:$0xff]   ;;  %v17935_v47 = vld [vmem:[#allocation74_spill] sm:$0xff] }
 0x333   : > { %6679 = vmatpush2.bf16.msra.mxu1 %v13892_v58  ;;  %v5727_v32 = vpop.f32.mrf.mxu0  ;;  %6567 = vmatprep.subr.bf16.mxu0 %v13897_v61  ;;  %v17934_v45 = vld [vmem:[#allocation73_spill] sm:$0xff] }
 0x334   : > { %v15830_v46 = vadd.f32 %v5836_v14, %v5724_v9  ;;  %v5728_v15 = vadd.f32 %v5727_v32, %v15740_v18  ;;  %v5840_v0 = vpop.f32.mrf.mxu1  ;;  %6680 = vmatprep.subr.bf16.mxu1 %v13900_v24  ;;  %v13901_v9 = vld [vmem:[#allocation6 + $0x378] ss:$36 sps:$4 sm:$0xff]  }
 0x335   : > { %6404 = vmatmul.mubr.bf16.gmra.mxu0 %v17933_v52  ;;  %6517 = vmatmul.mubr.bf16.gmra.mxu1 %v17934_v45  ;;  %v5729_v19 = vpop.f32.mrf.mxu0  ;;  %v13904_v32 = vld [vmem:[#allocation6 + $0x7f8] ss:$36 sps:$4 sm:$0xff]  }
 0x336   : > { %v15835_v50 = vadd.f32 %v5840_v0, %v5728_v15  ;;  %6413 = vmatprep.mubr.bf16.mxu0 %v17935_v47  ;;  %6568 = vmatpush2.bf16.msra.mxu0 %v13895_v7  ;;  %v5730_v58 = vadd.f32 %v5729_v19, %v15746_v43  ;;  %v5842_v61 = vpop.f32.mrf.mxu1  ;;  %v13909_v24 = vld [vmem:[#allocation6 + $0x334] ss:$36 sps:$4 sm:$0xff]  }
 0x337   : > { %6681 = vmatpush2.bf16.msra.mxu1 %v13898_v21  ;;  %v5731_v14 = vpop.f32.mrf.mxu0  ;;  %6569 = vmatprep.subr.bf16.mxu0 %v13903_v41  ;;  %v13912_v15 = vld [vmem:[#allocation6 + $0x7b4] ss:$36 sps:$4 sm:$0xff]  }
 0x338   : > { %v15839_v62 = vadd.f32 %v5842_v61, %v5730_v58  ;;  %v5732_v52 = vadd.f32 %v5731_v14, %v15740_v18  ;;  %v5844_v45 = vpop.f32.mrf.mxu1  ;;  %6682 = vmatprep.subr.bf16.mxu1 %v13906_v39  ;;  %6526 = vmatprep.mubr.bf16.mxu1 %v17836_v10  ;;  %v13907_v47 = vld [vmem:[#allocation6 + $0x330] ss:$36 sps:$4 sm:$0xff]  }
 0x339   : > { %v5733_v0 = vpop.f32.mrf.mxu0  ;;  %v13910_v58 = vld [vmem:[#allocation6 + $0x7b0] ss:$36 sps:$4 sm:$0xff]  }
 0x33a   : > { %17936 = vst [vmem:[#allocation90_spill] sm:$0xff] %v15839_v62  ;;  %v15843_v7 = vadd.f32 %v5844_v45, %v5732_v52  ;;  %6570 = vmatpush2.bf16.msra.mxu0 %v13901_v9  ;;  %v5734_v19 = vadd.f32 %v5733_v0, %v15746_v43  ;;  %v5846_v21 = vpop.f32.mrf.mxu1  ;;  %v13915_v61 = vld [vmem:[#allocation6 + $0x2ec] ss:$36 sps:$4 sm:$0xff]   ;;  %v17939_v52 = vld [vmem:[#allocation76_spill] sm:$0xff]  ;;  %v17940_v0 = vld [vmem:[#allocation77_spill] sm:$0xff] }
 0x33b   : > { %6683 = vmatpush2.bf16.msra.mxu1 %v13904_v32  ;;  %v5737_v41 = vpop.f32.mrf.mxu0  ;;  %6571 = vmatprep.subr.bf16.mxu0 %v13909_v24  ;;  %v13918_v62 = vld [vmem:[#allocation6 + $0x76c] ss:$36 sps:$4 sm:$0xff]  }
 0x33c   : > { %v15846_v42 = vadd.f32 %v5846_v21, %v5734_v19  ;;  %v5738_v39 = vadd.f32 %v5737_v41, %v15740_v18  ;;  %v5850_v14 = vpop.f32.mrf.mxu1  ;;  %6684 = vmatprep.subr.bf16.mxu1 %v13912_v15  ;;  %v13913_v19 = vld [vmem:[#allocation6 + $0x2e8] ss:$36 sps:$4 sm:$0xff]  }
 0x33d   : > { %6414 = vmatmul.mubr.bf16.gmra.mxu0 %v17938_v17  ;;  %6527 = vmatmul.mubr.bf16.gmra.mxu1 %v17939_v52  ;;  %v5739_v45 = vpop.f32.mrf.mxu0  ;;  %v13916_v41 = vld [vmem:[#allocation6 + $0x768] ss:$36 sps:$4 sm:$0xff]  }
 0x33e   : > { %17937 = vst [vmem:[#allocation91_spill] sm:$0xff] %v15846_v42  ;;  %v15851_v9 = vadd.f32 %v5850_v14, %v5738_v39  ;;  %6423 = vmatprep.mubr.bf16.mxu0 %v17940_v0  ;;  %6572 = vmatpush2.bf16.msra.mxu0 %v13907_v47  ;;  %v5740_v32 = vadd.f32 %v5739_v45, %v15746_v43  ;;  %v5852_v24 = vpop.f32.mrf.mxu1  ;;  %v13921_v15 = vld [vmem:[#allocation6 + $0x2a4] ss:$36 sps:$4 sm:$0xff]  }
 0x33f   : > { %6685 = vmatpush2.bf16.msra.mxu1 %v13910_v58  ;;  %v5741_v21 = vpop.f32.mrf.mxu0  ;;  %6573 = vmatprep.subr.bf16.mxu0 %v13915_v61  ;;  %v13924_v39 = vld [vmem:[#allocation6 + $0x724] ss:$36 sps:$4 sm:$0xff]  }
 0x340   : > { %v15855_v42 = vadd.f32 %v5852_v24, %v5740_v32  ;;  %v5742_v17 = vadd.f32 %v5741_v21, %v15740_v18  ;;  %v5854_v52 = vpop.f32.mrf.mxu1  ;;  %6686 = vmatprep.subr.bf16.mxu1 %v13918_v62  ;;  %6536 = vmatprep.mubr.bf16.mxu1 %v17836_v10  ;;  %v13919_v0 = vld [vmem:[#allocation6 + $0x2a0] ss:$36 sps:$4 sm:$0xff]  }
 0x341   : > { %v5743_v14 = vpop.f32.mrf.mxu0  ;;  %v13922_v32 = vld [vmem:[#allocation6 + $0x720] ss:$36 sps:$4 sm:$0xff]  }
 0x342   : > { %17941 = vst [vmem:[#allocation92_spill] sm:$0xff] %v15855_v42  ;;  %v15859_v47 = vadd.f32 %v5854_v52, %v5742_v17  ;;  %6574 = vmatpush2.bf16.msra.mxu0 %v13913_v19  ;;  %v5744_v45 = vadd.f32 %v5743_v14, %v15746_v43  ;;  %v5856_v58 = vpop.f32.mrf.mxu1  ;;  %v13927_v10 = vld [vmem:[#allocation6 + $0x25c] ss:$36 sps:$4 sm:$0xff]   ;;  %v17944_v17 = vld [vmem:[#allocation79_spill] sm:$0xff] }
 0x343   : > { %6687 = vmatpush2.bf16.msra.mxu1 %v13916_v41  ;;  %v5747_v61 = vpop.f32.mrf.mxu0  ;;  %6575 = vmatprep.subr.bf16.mxu0 %v13921_v15  ;;  %v13930_v42 = vld [vmem:[#allocation6 + $0x6dc] ss:$36 sps:$4 sm:$0xff]   ;;  %v17945_v41 = vld [vmem:[#allocation34_spill] sm:$0xff] }
 0x344   : > { %17942 = vst [vmem:[#allocation93_spill] sm:$0xff] %v15859_v47  ;;  %v15862_v24 = vadd.f32 %v5856_v58, %v5744_v45  ;;  %v5748_v21 = vadd.f32 %v5747_v61, %v15740_v18  ;;  %v5860_v62 = vpop.f32.mrf.mxu1  ;;  %6688 = vmatprep.subr.bf16.mxu1 %v13924_v39  ;;  %v13925_v45 = vld [vmem:[#allocation6 + $0x258] ss:$36 sps:$4 sm:$0xff]   ;;  %v17946_v58 = vld [vmem:[#allocation35_spill] sm:$0xff] }
 0x345   : > { %6424 = vmatmul.mubr.bf16.gmra.mxu0 %v15475_v54  ;;  %6537 = vmatmul.mubr.bf16.gmra.mxu1 %v17944_v17  ;;  %v5749_v52 = vpop.f32.mrf.mxu0  ;;  %v13928_v61 = vld [vmem:[#allocation6 + $0x6d8] ss:$36 sps:$4 sm:$0xff]  }
 0x346   : > { %17943 = vst [vmem:[#allocation94_spill] sm:$0xff] %v15862_v24  ;;  %v15867_v19 = vadd.f32 %v5860_v62, %v5748_v21  ;;  %6576 = vmatpush2.bf16.msra.mxu0 %v13919_v0  ;;  %6579 = vmatprep.mubr.bf16.mxu0 %v17945_v41  ;;  %v5750_v15 = vadd.f32 %v5749_v52, %v15746_v43  ;;  %v5862_v14 = vpop.f32.mrf.mxu1  ;;  %v13933_v24 = vld [vmem:[#allocation6 + $0xb14] ss:$36 sps:$4 sm:$0xff]  }
 0x347   : > { %6689 = vmatpush2.bf16.msra.mxu1 %v13922_v32  ;;  %6692 = vmatprep.mubr.bf16.mxu1 %v17946_v58  ;;  %v5751_v39 = vpop.f32.mrf.mxu0  ;;  %v13960_v0 = vld [vmem:[#allocation6 + $0xf94] ss:$36 sps:$4 sm:$0xff]  }
 0x348   : > { %v15872_v47 = vadd.f32 %v5862_v14, %v5750_v15  ;;  %v5752_v17 = vadd.f32 %v5751_v39, %v15740_v18  ;;  %6577 = vmatprep.subr.bf16.mxu0 %v13927_v10  ;;  %v5864_v21 = vpop.f32.mrf.mxu1  ;;  %6690 = vmatprep.subr.bf16.mxu1 %v13930_v42  ;;  %v13931_v58 = vld [vmem:[#allocation6 + $0xb10] ss:$36 sps:$4 sm:$0xff]  }
 0x349   : > { %v5753_v62 = vpop.f32.mrf.mxu0  ;;  %v13958_v18 = vld [vmem:[#allocation6 + $0xf90] ss:$36 sps:$4 sm:$0xff]  }
 0x34a   : > { %17947 = vst [vmem:[#allocation95_spill] sm:$0xff] %v15872_v47  ;;  %v15875_v41 = vadd.f32 %v5864_v21, %v5752_v17  ;;  %6578 = vmatpush2.bf16.msra.mxu0 %v13925_v45  ;;  %v5754_v52 = vadd.f32 %v5753_v62, %v15746_v43  ;;  %v5866_v32 = vpop.f32.mrf.mxu1  ;;  %v13936_v47 = vld [vmem:[#allocation6 + $0xacc] ss:$36 sps:$4 sm:$0xff]   ;;  %v17949_v17 = vld [vmem:[#allocation33_spill] sm:$0xff] }
 0x34b   : > { %6691 = vmatpush2.bf16.msra.mxu1 %v13928_v61  ;;  %6773 = vmatprep.subr.bf16.mxu0 %v13933_v24  ;;  %v13966_v42 = vld [vmem:[#allocation6 + $0xf4c] ss:$36 sps:$4 sm:$0xff]  }
 0x34c   : > { %v15878_v54 = vadd.f32 %v5866_v32, %v5754_v52  ;;  %v5903_v15 = vpop.f32.mrf.mxu0  ;;  %v6016_v14 = vpop.f32.mrf.mxu1  ;;  %6886 = vmatprep.subr.bf16.mxu1 %v13960_v0  ;;  %v17950_v61 = vld [vmem:[#allocation38_spill] sm:$0xff] }
 0x34d   : > { %v5904_v10 = vadd.f32 %v5903_v15, %v15753_v8  ;;  %6580 = vmatmul.mubr.bf16.vlgmr.msra.gmra.mxu0 %v15189_v25  ;;  %v13934_v21 = vld [vmem:[#allocation6 + $0xac8] ss:$36 sps:$4 sm:$0xff]  }
 0x34e   : > { %17948 = vst [vmem:[#allocation96_spill] sm:$0xff] %v15878_v54  ;;  %6589 = vmatprep.mubr.bf16.mxu0 %v15204_v3  ;;  %6693 = vmatmul.mubr.bf16.vlgmr.msra.gmra.mxu1 %v17949_v17  ;;  %v5905_v43 = vpop.f32.mrf.mxu0  ;;  %v6018_v45 = vpop.f32.mrf.mxu1  ;;  %v13939_v8 = vld [vmem:[#allocation6 + $0xa84] ss:$36 sps:$4 sm:$0xff]  }
 0x34f   : > { %v6017_v39 = vadd.f32 %v6016_v14, %v5904_v10  ;;  %6774 = vmatpush1.bf16.msra.mxu0 %v13931_v58  ;;  %v5906_v24 = vadd.f32 %v5905_v43, %v15757_v34  ;;  %6702 = vmatprep.mubr.bf16.mxu1 %v17950_v61  ;;  %v13964_v52 = vld [vmem:[#allocation6 + $0xf48] ss:$36 sps:$4 sm:$0xff]   ;;  %v13937_v58 = vld [vmem:[#allocation6 + $0xa80] ss:$36 sps:$4 sm:$0xff]  }
 0x350   : > { %v5907_v62 = vpop.f32.mrf.mxu0  ;;  %6775 = vmatprep.subr.bf16.mxu0 %v13936_v47  ;;  %v6020_v0 = vpop.f32.mrf.mxu1  ;;  %6887 = vmatpush1.bf16.msra.mxu1 %v13958_v18  ;;  %v13972_v3 = vld [vmem:[#allocation6 + $0xf04] ss:$36 sps:$4 sm:$0xff]   ;;  %v13942_v47 = vld [vmem:[#allocation6 + $0xa3c] ss:$36 sps:$4 sm:$0xff]  }
 0x351   : > { %v6019_v32 = vadd.f32 %v6018_v45, %v5906_v24  ;;  %v5908_v15 = vadd.f32 %v5907_v62, %v15763_v4  ;;  %6888 = vmatprep.subr.bf16.mxu1 %v13966_v42  ;;  %v13970_v61 = vld [vmem:[#allocation6 + $0xf00] ss:$36 sps:$4 sm:$0xff]   ;;  %v7389_v18 = vmax.f32 %v6017_v39, 0.0 }
 0x352   : > { %v5909_v17 = vpop.f32.mrf.mxu0  ;;  %v6022_v25 = vpop.f32.mrf.mxu1  ;;  %v13978_v42 = vld [vmem:[#allocation6 + $0xebc] ss:$36 sps:$4 sm:$0xff]  }
 0x353   : > { %v6021_v14 = vadd.f32 %v6020_v0, %v5908_v15  ;;  %6776 = vmatpush1.bf16.msra.mxu0 %v13934_v21  ;;  %v5910_v34 = vadd.f32 %v5909_v17, %v15766_v31  ;;  %v7390_v24 = vmax.f32 %v6019_v32, 0.0 }
 0x354   : > { %v5913_v10 = vpop.f32.mrf.mxu0  ;;  %6777 = vmatprep.subr.bf16.mxu0 %v13939_v8  ;;  %v6026_v43 = vpop.f32.mrf.mxu1  ;;  %6889 = vmatpush1.bf16.msra.mxu1 %v13964_v52  ;;  %v13945_v8 = vld [vmem:[#allocation6 + $0x9f4] ss:$36 sps:$4 sm:$0xff]  }
 0x355   : > { %v7398_v54 = vmax.f32 %v6021_v14, 0.0  ;;  %v6023_v45 = vadd.f32 %v6022_v25, %v5910_v34  ;;  %v5914_v4 = vadd.f32 %v5913_v10, %v15771_v38  ;;  %6590 = vmatmul.mubr.bf16.gmra.mxu0 %v15209_v37  ;;  %6890 = vmatprep.subr.bf16.mxu1 %v13972_v3  ;;  %v13940_v38 = vld [vmem:[#allocation6 + $0xa38] ss:$36 sps:$4 sm:$0xff]  }
 0x356   : > { %6599 = vmatprep.mubr.bf16.mxu0 %v15224_v53  ;;  %6703 = vmatmul.mubr.bf16.gmra.mxu1 %v15201_v22  ;;  %v5915_v31 = vpop.f32.mrf.mxu0  ;;  %v6028_v17 = vpop.f32.mrf.mxu1  ;;  %v13976_v52 = vld [vmem:[#allocation6 + $0xeb8] ss:$36 sps:$4 sm:$0xff]  }
 0x357   : > { %v15892_v21 = vpack.c.bf16 %v7398_v54, %v7389_v18  ;;  %v7399_v62 = vmax.f32 %v6023_v45, 0.0  ;;  %v6027_v0 = vadd.f32 %v6026_v43, %v5914_v4  ;;  %6778 = vmatpush1.bf16.msra.mxu0 %v13937_v58  ;;  %v5916_v25 = vadd.f32 %v5915_v31, %v15775_v35  ;;  %6712 = vmatprep.mubr.bf16.mxu1 %v15226_v11  ;;  %v13984_v54 = vld [vmem:[#allocation6 + $0xe74] ss:$36 sps:$4 sm:$0xff]   ;;  %v13948_v45 = vld [vmem:[#allocation6 + $0x9ac] ss:$36 sps:$4 sm:$0xff]  }
 0x358   : > { %v5917_v39 = vpop.f32.mrf.mxu0  ;;  %6779 = vmatprep.subr.bf16.mxu0 %v13942_v47  ;;  %v6030_v3 = vpop.f32.mrf.mxu1  ;;  %6891 = vmatpush1.bf16.msra.mxu1 %v13970_v61  ;;  %v13943_v43 = vld [vmem:[#allocation6 + $0x9f0] ss:$36 sps:$4 sm:$0xff]  }
 0x359   : > { %17951 = vst [vmem:[#allocation97_spill] sm:$0xff] %v15892_v21  ;;  %v6029_v32 = vadd.f32 %v6028_v17, %v5916_v25  ;;  %v5918_v15 = vadd.f32 %v5917_v39, %v15779_v63  ;;  %6892 = vmatprep.subr.bf16.mxu1 %v13978_v42  ;;  %v15897_v14 = vpack.c.bf16 %v7399_v62, %v7390_v24  ;;  %v13982_v61 = vld [vmem:[#allocation6 + $0xe70] ss:$36 sps:$4 sm:$0xff]   ;;  %v7407_v4 = vmax.f32 %v6027_v0, 0.0 }
 0x35a   : > { %v5919_v34 = vpop.f32.mrf.mxu0  ;;  %v6032_v58 = vpop.f32.mrf.mxu1  ;;  %v13990_v24 = vld [vmem:[#allocation6 + $0xe2c] ss:$36 sps:$4 sm:$0xff]  }
 0x35b   : > { %17952 = vst [vmem:[#allocation98_spill] sm:$0xff] %v15897_v14  ;;  %v6031_v10 = vadd.f32 %v6030_v3, %v5918_v15  ;;  %6780 = vmatpush1.bf16.msra.mxu0 %v13940_v38  ;;  %v5920_v35 = vadd.f32 %v5919_v34, %v15782_v2  ;;  %v7408_v17 = vmax.f32 %v6029_v32, 0.0  ;;  %v13988_v32 = vld [vmem:[#allocation6 + $0xe28] ss:$36 sps:$4 sm:$0xff]  }
 0x35c   : > { %v5923_v18 = vpop.f32.mrf.mxu0  ;;  %6781 = vmatprep.subr.bf16.mxu0 %v13945_v8  ;;  %v6036_v47 = vpop.f32.mrf.mxu1  ;;  %6893 = vmatpush1.bf16.msra.mxu1 %v13976_v52  ;;  %v13951_v52 = vld [vmem:[#allocation6 + $0x964] ss:$36 sps:$4 sm:$0xff]  }
 0x35d   : > { %v7416_v31 = vmax.f32 %v6031_v10, 0.0  ;;  %v6033_v63 = vadd.f32 %v6032_v58, %v5920_v35  ;;  %v5924_v42 = vadd.f32 %v5923_v18, %v15787_v5  ;;  %6600 = vmatmul.mubr.bf16.gmra.mxu0 %v15229_v56  ;;  %6894 = vmatprep.subr.bf16.mxu1 %v13984_v54  ;;  %v13946_v5 = vld [vmem:[#allocation6 + $0x9a8] ss:$36 sps:$4 sm:$0xff]   ;;  %v13949_v18 = vld [vmem:[#allocation6 + $0x960] ss:$36 sps:$4 sm:$0xff]  }
 0x35e   : > { %6609 = vmatprep.mubr.bf16.mxu0 %v15244_v33  ;;  %6713 = vmatmul.mubr.bf16.gmra.mxu1 %v15221_v28  ;;  %v5925_v2 = vpop.f32.mrf.mxu0  ;;  %v6038_v62 = vpop.f32.mrf.mxu1  ;;  %v13996_v34 = vld [vmem:[#allocation6 + $0xde4] ss:$36 sps:$4 sm:$0xff]  }
 0x35f   : > { %v15904_v25 = vpack.c.bf16 %v7416_v31, %v7407_v4  ;;  %v7417_v38 = vmax.f32 %v6033_v63, 0.0  ;;  %v6037_v39 = vadd.f32 %v6036_v47, %v5924_v42  ;;  %6782 = vmatpush1.bf16.msra.mxu0 %v13943_v43  ;;  %v5926_v0 = vadd.f32 %v5925_v2, %v15791_v60  ;;  %6722 = vmatprep.mubr.bf16.mxu1 %v15246_v36  ;;  %v13954_v4 = vld [vmem:[#allocation6 + $0x91c] ss:$36 sps:$4 sm:$0xff]  }
 0x360   : > { %v5927_v3 = vpop.f32.mrf.mxu0  ;;  %6783 = vmatprep.subr.bf16.mxu0 %v13948_v45  ;;  %v6040_v8 = vpop.f32.mrf.mxu1  ;;  %6895 = vmatpush1.bf16.msra.mxu1 %v13982_v61  ;;  %v13994_v61 = vld [vmem:[#allocation6 + $0xde0] ss:$36 sps:$4 sm:$0xff]  }
 0x361   : > { %17953 = vst [vmem:[#allocation99_spill] sm:$0xff] %v15904_v25  ;;  %v6039_v15 = vadd.f32 %v6038_v62, %v5926_v0  ;;  %v5928_v54 = vadd.f32 %v5927_v3, %v15795_v23  ;;  %6896 = vmatprep.subr.bf16.mxu1 %v13990_v24  ;;  %v15909_v58 = vpack.c.bf16 %v7417_v38, %v7408_v17  ;;  %v7425_v31 = vmax.f32 %v6037_v39, 0.0  ;;  %v14002_v24 = vld [vmem:[#allocation6 + $0xd9c] ss:$36 sps:$4 sm:$0xff]  }
 0x362   : > { %v5929_v10 = vpop.f32.mrf.mxu0  ;;  %v6042_v35 = vpop.f32.mrf.mxu1 }
 0x363   : > { %17954 = vst [vmem:[#allocation100_spill] sm:$0xff] %v15909_v58  ;;  %v6041_v43 = vadd.f32 %v6040_v8, %v5928_v54  ;;  %6784 = vmatpush1.bf16.msra.mxu0 %v13946_v5  ;;  %v5930_v60 = vadd.f32 %v5929_v10, %v15798_v51  ;;  %v7426_v17 = vmax.f32 %v6039_v15, 0.0  ;;  %v13957_v8 = vld [vmem:[#allocation6 + $0xd54] ss:$36 sps:$4 sm:$0xff]  }
 0x364   : > { %v5933_v47 = vpop.f32.mrf.mxu0  ;;  %6785 = vmatprep.subr.bf16.mxu0 %v13951_v52  ;;  %v6046_v45 = vpop.f32.mrf.mxu1  ;;  %6897 = vmatpush1.bf16.msra.mxu1 %v13988_v32  ;;  %v14000_v52 = vld [vmem:[#allocation6 + $0xd98] ss:$36 sps:$4 sm:$0xff]   ;;  %v17993_v58 = vld [vmem:[#allocation63_spill] sm:$0xff] }
 0x365   : > { %v7434_v63 = vmax.f32 %v6041_v43, 0.0  ;;  %v6043_v23 = vadd.f32 %v6042_v35, %v5930_v60  ;;  %v5934_v42 = vadd.f32 %v5933_v47, %v15803_v1  ;;  %6610 = vmatmul.mubr.bf16.gmra.mxu0 %v15249_v26  ;;  %6898 = vmatprep.subr.bf16.mxu1 %v13996_v34  ;;  %v13952_v1 = vld [vmem:[#allocation6 + $0x918] ss:$36 sps:$4 sm:$0xff]   ;;  %v13955_v60 = vld [vmem:[#allocation6 + $0xd50] ss:$36 sps:$4 sm:$0xff]  }
 0x366   : > { %6619 = vmatprep.mubr.bf16.mxu0 %v15264_v27  ;;  %6723 = vmatmul.mubr.bf16.gmra.mxu1 %v15241_v29  ;;  %v5935_v51 = vpop.f32.mrf.mxu0  ;;  %v6048_v2 = vpop.f32.mrf.mxu1  ;;  %v14013_v54 = vld [vmem:[#allocation6 + $0x8d8] ss:$36 sps:$4 sm:$0xff]  }
 0x367   : > { %v15916_v62 = vpack.c.bf16 %v7434_v63, %v7425_v31  ;;  %v7435_v38 = vmax.f32 %v6043_v23, 0.0  ;;  %v6047_v0 = vadd.f32 %v6046_v45, %v5934_v42  ;;  %6786 = vmatpush1.bf16.msra.mxu0 %v13949_v18  ;;  %v5936_v39 = vadd.f32 %v5935_v51, %v15807_v44  ;;  %6732 = vmatprep.mubr.bf16.mxu1 %v15266_v13  ;;  %v13963_v45 = vld [vmem:[#allocation6 + $0xd0c] ss:$36 sps:$4 sm:$0xff]  }
 0x368   : > { %v5937_v5 = vpop.f32.mrf.mxu0  ;;  %6787 = vmatprep.subr.bf16.mxu0 %v13954_v4  ;;  %v6050_v3 = vpop.f32.mrf.mxu1  ;;  %6899 = vmatpush1.bf16.msra.mxu1 %v13994_v61 }
 0x369   : > { %17955 = vst [vmem:[#allocation101_spill] sm:$0xff] %v15916_v62  ;;  %v6049_v32 = vadd.f32 %v6048_v2, %v5936_v39  ;;  %v5938_v15 = vadd.f32 %v5937_v5, %v15811_v6  ;;  %6900 = vmatprep.subr.bf16.mxu1 %v14002_v24  ;;  %v15921_v34 = vpack.c.bf16 %v7435_v38, %v7426_v17  ;;  %v7443_v4 = vmax.f32 %v6047_v0, 0.0  ;;  %v13969_v0 = vld [vmem:[#allocation6 + $0xcc4] ss:$36 sps:$4 sm:$0xff]  }
 0x36a   : > { %v5939_v10 = vpop.f32.mrf.mxu0  ;;  %v6052_v35 = vpop.f32.mrf.mxu1 }
 0x36b   : > { %17956 = vst [vmem:[#allocation102_spill] sm:$0xff] %v15921_v34  ;;  %v6051_v43 = vadd.f32 %v6050_v3, %v5938_v15  ;;  %6788 = vmatpush1.bf16.msra.mxu0 %v13952_v1  ;;  %v5940_v44 = vadd.f32 %v5939_v10, %v15814_v30  ;;  %v7444_v63 = vmax.f32 %v6049_v32, 0.0  ;;  %v13967_v15 = vld [vmem:[#allocation6 + $0xcc0] ss:$36 sps:$4 sm:$0xff]  }
 0x36c   : > { %v5943_v18 = vpop.f32.mrf.mxu0  ;;  %6789 = vmatprep.subr.bf16.mxu0 %v13957_v8  ;;  %v6056_v47 = vpop.f32.mrf.mxu1  ;;  %6901 = vmatpush1.bf16.msra.mxu1 %v14000_v52  ;;  %v13975_v10 = vld [vmem:[#allocation6 + $0xc7c] ss:$36 sps:$4 sm:$0xff]  }
 0x36d   : > { %v7452_v61 = vmax.f32 %v6051_v43, 0.0  ;;  %v6053_v31 = vadd.f32 %v6052_v35, %v5940_v44  ;;  %v5944_v6 = vadd.f32 %v5943_v18, %v15819_v59  ;;  %6620 = vmatmul.mubr.bf16.gmra.mxu0 %v17888_v40  ;;  %12401 = vmatprep.subr.bf16.mxu1 %v14013_v54  ;;  %v13961_v59 = vld [vmem:[#allocation6 + $0xd08] ss:$36 sps:$4 sm:$0xff]   ;;  %v17959_v18 = vld [vmem:[#allocation41_spill] sm:$0xff] }
 0x36e   : > { %6629 = vmatprep.mubr.bf16.mxu0 %v17889_v57  ;;  %6733 = vmatmul.mubr.bf16.gmra.mxu1 %v17890_v55  ;;  %v5945_v30 = vpop.f32.mrf.mxu0  ;;  %v6058_v23 = vpop.f32.mrf.mxu1 }
 0x36f   : > { %v15928_v42 = vpack.c.bf16 %v7452_v61, %v7443_v4  ;;  %v7453_v24 = vmax.f32 %v6053_v31, 0.0  ;;  %v6057_v17 = vadd.f32 %v6056_v47, %v5944_v6  ;;  %6790 = vmatpush2.bf16.msra.mxu0 %v13955_v60  ;;  %v5946_v51 = vadd.f32 %v5945_v30, %v15823_v20  ;;  %6742 = vmatprep.mubr.bf16.mxu1 %v17893_v16  ;;  %v17961_v31 = vld [vmem:[#allocation90_spill] sm:$0xff]  ;;  %v13973_v30 = vld [vmem:[#allocation6 + $0xc78] ss:$36 sps:$4 sm:$0xff]  }
 0x370   : > { %v5947_v2 = vpop.f32.mrf.mxu0  ;;  %6791 = vmatprep.subr.bf16.mxu0 %v13963_v45  ;;  %v6060_v38 = vpop.f32.mrf.mxu1 }
 0x371   : > { %17957 = vst [vmem:[#allocation103_spill] sm:$0xff] %v15928_v42  ;;  %v6059_v39 = vadd.f32 %v6058_v23, %v5946_v51  ;;  %v5948_v1 = vadd.f32 %v5947_v2, %v15827_v48  ;;  %v15933_v5 = vpack.c.bf16 %v7453_v24, %v7444_v63  ;;  %v7461_v35 = vmax.f32 %v6057_v17, 0.0  ;;  %v17962_v63 = vld [vmem:[#allocation47_spill] sm:$0xff] }
 0x372   : > { %v5949_v3 = vpop.f32.mrf.mxu0  ;;  %v6062_v8 = vpop.f32.mrf.mxu1  ;;  %v13981_v24 = vld [vmem:[#allocation6 + $0xc34] ss:$36 sps:$4 sm:$0xff]  }
 0x373   : > { %17958 = vst [vmem:[#allocation104_spill] sm:$0xff] %v15933_v5  ;;  %v6061_v52 = vadd.f32 %v6060_v38, %v5948_v1  ;;  %6792 = vmatpush2.bf16.msra.mxu0 %v13961_v59  ;;  %v5950_v32 = vadd.f32 %v5949_v3, %v15830_v46  ;;  %v7462_v48 = vmax.f32 %v6059_v39, 0.0  ;;  %v17964_v39 = vld [vmem:[#allocation91_spill] sm:$0xff]  ;;  %v14011_v5 = vld [vmem:[#allocation6 + $0x338] ss:$36 sps:$4 sm:$0xff]  }
 0x374   : > { %v5953_v20 = vpop.f32.mrf.mxu0  ;;  %6793 = vmatprep.subr.bf16.mxu0 %v13969_v0  ;;  %v6066_v54 = vpop.f32.mrf.mxu1  ;;  %v13979_v3 = vld [vmem:[#allocation6 + $0xc30] ss:$36 sps:$4 sm:$0xff]  }
 0x375   : > { %v7470_v43 = vmax.f32 %v6061_v52, 0.0  ;;  %v6063_v44 = vadd.f32 %v6062_v8, %v5950_v32  ;;  %v5954_v60 = vadd.f32 %v5953_v20, %v15835_v50  ;;  %6630 = vmatmul.mubr.bf16.gmra.mxu0 %v17896_v12  ;;  %v13987_v32 = vld [vmem:[#allocation6 + $0xbec] ss:$36 sps:$4 sm:$0xff]  }
 0x376   : > { %6639 = vmatprep.mubr.bf16.mxu0 %v17897_v49  ;;  %6743 = vmatmul.mubr.bf16.gmra.mxu1 %v17959_v18  ;;  %v5955_v47 = vpop.f32.mrf.mxu0  ;;  %v6068_v45 = vpop.f32.mrf.mxu1 }
 0x377   : > { %v15940_v46 = vpack.c.bf16 %v7470_v43, %v7461_v35  ;;  %v7471_v4 = vmax.f32 %v6063_v44, 0.0  ;;  %v6067_v61 = vadd.f32 %v6066_v54, %v5954_v60  ;;  %6794 = vmatpush2.bf16.msra.mxu0 %v13967_v15  ;;  %v5956_v6 = vadd.f32 %v5955_v47, %v17961_v31  ;;  %6752 = vmatprep.mubr.bf16.mxu1 %v17962_v63  ;;  %v17965_v35 = vld [vmem:[#allocation49_spill] sm:$0xff]  ;;  %v17969_v31 = vld [vmem:[#allocation92_spill] sm:$0xff] }
 0x378   : > { %v5957_v50 = vpop.f32.mrf.mxu0  ;;  %6795 = vmatprep.subr.bf16.mxu0 %v13975_v10  ;;  %v6070_v23 = vpop.f32.mrf.mxu1  ;;  %v17966_v43 = vld [vmem:[#allocation53_spill] sm:$0xff] }
 0x379   : > { %17960 = vst [vmem:[#allocation41_spill] sm:$0xff] %v15940_v46  ;;  %v6069_v17 = vadd.f32 %v6068_v45, %v5956_v6  ;;  %v5958_v51 = vadd.f32 %v5957_v50, %v15843_v7  ;;  %v15945_v59 = vpack.c.bf16 %v7471_v4, %v7462_v48  ;;  %v7479_v15 = vmax.f32 %v6067_v61, 0.0  ;;  %v17967_v44 = vld [vmem:[#allocation45_spill] sm:$0xff]  ;;  %v17970_v6 = vld [vmem:[#allocation54_spill] sm:$0xff] }
 0x37a   : > { %v5959_v2 = vpop.f32.mrf.mxu0  ;;  %v6072_v38 = vpop.f32.mrf.mxu1 }
 0x37b   : > { %17963 = vst [vmem:[#allocation90_spill] sm:$0xff] %v15945_v59  ;;  %v6071_v0 = vadd.f32 %v6070_v23, %v5958_v51  ;;  %6796 = vmatpush2.bf16.msra.mxu0 %v13973_v30  ;;  %v5960_v1 = vadd.f32 %v5959_v2, %v17964_v39  ;;  %v7480_v7 = vmax.f32 %v6069_v17, 0.0  ;;  %v13985_v30 = vld [vmem:[#allocation6 + $0xbe8] ss:$36 sps:$4 sm:$0xff]   ;;  %v17971_v17 = vld [vmem:[#allocation93_spill] sm:$0xff] }
 0x37c   : > { %v5963_v8 = vpop.f32.mrf.mxu0  ;;  %6797 = vmatprep.subr.bf16.mxu0 %v13981_v24  ;;  %v6076_v52 = vpop.f32.mrf.mxu1  ;;  %v13993_v23 = vld [vmem:[#allocation6 + $0xba4] ss:$36 sps:$4 sm:$0xff]  }
 0x37d   : > { %v7488_v20 = vmax.f32 %v6071_v0, 0.0  ;;  %v6073_v54 = vadd.f32 %v6072_v38, %v5960_v1  ;;  %v5964_v10 = vadd.f32 %v5963_v8, %v15851_v9  ;;  %6640 = vmatmul.mubr.bf16.gmra.mxu0 %v17965_v35  ;;  %v17973_v1 = vld [vmem:[#allocation94_spill] sm:$0xff]  ;;  %v13991_v8 = vld [vmem:[#allocation6 + $0xba0] ss:$36 sps:$4 sm:$0xff]  }
 0x37e   : > { %6649 = vmatprep.mubr.bf16.mxu0 %v17966_v43  ;;  %6753 = vmatmul.mubr.bf16.gmra.mxu1 %v17967_v44  ;;  %v5965_v60 = vpop.f32.mrf.mxu0  ;;  %v6078_v48 = vpop.f32.mrf.mxu1  ;;  %v14009_v59 = vld [vmem:[#allocation6 + $0x380] ss:$36 sps:$4 sm:$0xff]   ;;  %v18012_v35 = vld [vmem:[#allocation78_spill] sm:$0xff] }
 0x37f   : > { %v15952_v47 = vpack.c.bf16 %v7488_v20, %v7479_v15  ;;  %v7489_v45 = vmax.f32 %v6073_v54, 0.0  ;;  %v6077_v4 = vadd.f32 %v6076_v52, %v5964_v10  ;;  %6798 = vmatpush2.bf16.msra.mxu0 %v13979_v3  ;;  %v5966_v61 = vadd.f32 %v5965_v60, %v17969_v31  ;;  %6762 = vmatprep.mubr.bf16.mxu1 %v17970_v6  ;;  %v13999_v20 = vld [vmem:[#allocation6 + $0xb5c] ss:$36 sps:$4 sm:$0xff]  }
 0x380   : > { %v5967_v9 = vpop.f32.mrf.mxu0  ;;  %6799 = vmatprep.subr.bf16.mxu0 %v13987_v32  ;;  %v6080_v50 = vpop.f32.mrf.mxu1  ;;  %v17976_v31 = vld [vmem:[#allocation56_spill] sm:$0xff] }
 0x381   : > { %17968 = vst [vmem:[#allocation47_spill] sm:$0xff] %v15952_v47  ;;  %v6079_v24 = vadd.f32 %v6078_v48, %v5966_v61  ;;  %v5968_v51 = vadd.f32 %v5967_v9, %v17971_v17  ;;  %v15957_v2 = vpack.c.bf16 %v7489_v45, %v7480_v7  ;;  %v7497_v54 = vmax.f32 %v6077_v4, 0.0  ;;  %v17974_v48 = vld [vmem:[#allocation55_spill] sm:$0xff]  ;;  %v17975_v45 = vld [vmem:[#allocation52_spill] sm:$0xff] }
 0x382   : > { %v5969_v38 = vpop.f32.mrf.mxu0  ;;  %v6082_v0 = vpop.f32.mrf.mxu1  ;;  %v17978_v17 = vld [vmem:[#allocation95_spill] sm:$0xff]  ;;  %v18006_v6 = vld [vmem:[#allocation76_spill] sm:$0xff] }
 0x383   : > { %17972 = vst [vmem:[#allocation91_spill] sm:$0xff] %v15957_v2  ;;  %v6081_v39 = vadd.f32 %v6080_v50, %v5968_v51  ;;  %6800 = vmatpush2.bf16.msra.mxu0 %v13985_v30  ;;  %v5970_v3 = vadd.f32 %v5969_v38, %v17973_v1  ;;  %v7498_v7 = vmax.f32 %v6079_v24, 0.0  ;;  %v13997_v51 = vld [vmem:[#allocation6 + $0xb58] ss:$36 sps:$4 sm:$0xff]   ;;  %v17979_v38 = vmov 0  }
 0x384   : > { %v5973_v52 = vpop.f32.mrf.mxu0  ;;  %6801 = vmatprep.subr.bf16.mxu0 %v13993_v23  ;;  %v6086_v15 = vpop.f32.mrf.mxu1  ;;  %v14003_v24 = vld [vmem:[#allocation6 + $0x458] ss:$36 sps:$4 sm:$0xff]  }
 0x385   : > { %v7506_v32 = vmax.f32 %v6081_v39, 0.0  ;;  %v6083_v10 = vadd.f32 %v6082_v0, %v5970_v3  ;;  %v5974_v60 = vadd.f32 %v5973_v52, %v15867_v19  ;;  %6650 = vmatmul.mubr.bf16.gmra.mxu0 %v17974_v48  ;;  %v15969_v3 = vld [vmem:[#allocation7] sm:$0xff]  ;;  %v17981_v52 = vld [vmem:[#allocation51_spill] sm:$0xff] }
 0x386   : > { %6763 = vmatmul.mubr.bf16.gmra.mxu1 %v17975_v45  ;;  %6805 = vmatprep.mubr.bf16.mxu0 %v17976_v31  ;;  %v5975_v61 = vpop.f32.mrf.mxu0  ;;  %v6088_v30 = vpop.f32.mrf.mxu1  ;;  %17980 = vst [vmem:[#allocation93_spill] sm:$0xff] %v15969_v3  ;;  %v18005_v48 = vld [vmem:[#allocation75_spill] sm:$0xff] }
 0x387   : > { %v15964_v9 = vpack.c.bf16 %v7506_v32, %v7497_v54  ;;  %v7507_v50 = vmax.f32 %v6083_v10, 0.0  ;;  %v6087_v23 = vadd.f32 %v6086_v15, %v5974_v60  ;;  %6802 = vmatpush2.bf16.msra.mxu0 %v13991_v8  ;;  %v5976_v4 = vadd.f32 %v5975_v61, %v17978_v17  ;;  %6918 = vmatprep.mubr.bf16.mxu1 %v17979_v38  ;;  %v17983_v60 = vld [vmem:[#allocation96_spill] sm:$0xff] }
 0x388   : > { %v5977_v19 = vpop.f32.mrf.mxu0  ;;  %6803 = vmatprep.subr.bf16.mxu0 %v13999_v20  ;;  %v6090_v0 = vpop.f32.mrf.mxu1  ;;  %v15973_v54 = vrot.slane %v15969_v3, %v17981_v52  ;;  %v14004_v20 = vld [vmem:[#allocation6 + $0x218] ss:$36 sps:$4 sm:$0xff]  }
 0x389   : > { %17977 = vst [vmem:[#allocation92_spill] sm:$0xff] %v15964_v9  ;;  %v6089_v39 = vadd.f32 %v6088_v30, %v5976_v4  ;;  %v5978_v1 = vadd.f32 %v5977_v19, %v15875_v41  ;;  %v15975_v15 = vpack.c.bf16 %v7507_v50, %v7498_v7  ;;  %v17984_v17 = vld [vmem:[#allocation48_spill] sm:$0xff]  ;;  %v14005_v4 = vld [vmem:[#allocation6 + $0x410] ss:$36 sps:$4 sm:$0xff]   ;;  %v7515_v19 = vmax.f32 %v6087_v23, 0.0 }
 0x38a   : > { %v5979_v8 = vpop.f32.mrf.mxu0  ;;  %v6092_v32 = vpop.f32.mrf.mxu1  ;;  %v15980_v30 = vrot.slane %v15969_v3, %v17984_v17  ;;  %v18002_v3 = vld [vmem:[#allocation72_spill] sm:$0xff] }
 0x38b   : > { %17982 = vst [vmem:[#allocation94_spill] sm:$0xff] %v15975_v15  ;;  %v6091_v10 = vadd.f32 %v6090_v0, %v5978_v1  ;;  %6804 = vmatpush2.bf16.msra.mxu0 %v13997_v51  ;;  %v5980_v61 = vadd.f32 %v5979_v8, %v17983_v60  ;;  %v14014_v15 = vld [vmem:[#allocation6 + $0x698] ss:$36 sps:$4 sm:$0xff]   ;;  %v7516_v47 = vmax.f32 %v6089_v39, 0.0  ;;  %v17985_v0 = vld [vmem:[#allocation57_spill] sm:$0xff]  ;;  %v17986_v51 = vld [vmem:[#allocation58_spill] sm:$0xff] }
 0x38c   : > { %v6129_v41 = vpop.f32.mrf.mxu0  ;;  %12337 = vmatprep.subr.bf16.mxu0 %v14003_v24  ;;  %v14015_v8 = vld [vmem:[#allocation6 + $0x890] ss:$36 sps:$4 sm:$0xff]   ;;  %v14007_v39 = vld [vmem:[#allocation6 + $0x3c8] ss:$36 sps:$4 sm:$0xff]  }
 0x38d   : > { %v7524_v9 = vmax.f32 %v6091_v10, 0.0  ;;  %v6093_v52 = vadd.f32 %v6092_v32, %v5980_v61  ;;  %v6130_v7 = vadd.f32 %v6129_v41, %v15973_v54  ;;  %v6242_v50 = vpop.f32.mrf.mxu1  ;;  %v17988_v24 = vld [vmem:[#allocation59_spill] sm:$0xff] }
 0x38e   : > { %6806 = vmatmul.mubr.bf16.vlgmr.msra.gmra.mxu0 %v17985_v0  ;;  %6919 = vmatmul.mubr.bf16.vlgmr.msra.gmra.mxu1 %v17986_v51  ;;  %v6131_v1 = vpop.f32.mrf.mxu0  ;;  %v14006_v10 = vld [vmem:[#allocation6 + $0x1d0] ss:$36 sps:$4 sm:$0xff]   ;;  %v18003_v51 = vld [vmem:[#allocation73_spill] sm:$0xff] }
 0x38f   : > { %v15985_v60 = vpack.c.bf16 %v7524_v9, %v7515_v19  ;;  %v7525_v17 = vmax.f32 %v6093_v52, 0.0  ;;  %v15987_v2 = vadd.f32 %v6242_v50, %v6130_v7  ;;  %6815 = vmatprep.mubr.bf16.mxu0 %v17988_v24  ;;  %12338 = vmatpush3.bf16.msra.mxu0 %v14004_v20  ;;  %v6132_v23 = vadd.f32 %v6131_v1, %v15980_v30  ;;  %v6244_v32 = vpop.f32.mrf.mxu1  ;;  %v14016_v52 = vld [vmem:[#allocation6 + $0x650] ss:$36 sps:$4 sm:$0xff]  }
 0x390   : > { %v6133_v61 = vpop.f32.mrf.mxu0  ;;  %6928 = vmatprep.mubr.bf16.mxu1 %v17979_v38  ;;  %12339 = vmatprep.subr.bf16.mxu0 %v14005_v4  ;;  %v14008_v4 = vld [vmem:[#allocation6 + $0x188] ss:$36 sps:$4 sm:$0xff]  }
 0x391   : > { %17987 = vst [vmem:[#allocation95_spill] sm:$0xff] %v15985_v60  ;;  %v15992_v41 = vadd.f32 %v6244_v32, %v6132_v23  ;;  %v6134_v9 = vadd.f32 %v6133_v61, %v15973_v54  ;;  %v6246_v19 = vpop.f32.mrf.mxu1  ;;  %12402 = vmatpush3.bf16.msra.mxu1 %v14014_v15  ;;  %v15995_v7 = vpack.c.bf16 %v7525_v17, %v7516_v47  ;;  %v14019_v23 = vld [vmem:[#allocation6 + $0x848] ss:$36 sps:$4 sm:$0xff]   ;;  %v17990_v17 = vld [vmem:[#allocation60_spill] sm:$0xff] }
 0x392   : > { %v6135_v50 = vpop.f32.mrf.mxu0  ;;  %12403 = vmatprep.subr.bf16.mxu1 %v14015_v8  ;;  %v14020_v47 = vld [vmem:[#allocation6 + $0x608] ss:$36 sps:$4 sm:$0xff]   ;;  %v17991_v8 = vld [vmem:[#allocation61_spill] sm:$0xff] }
 0x393   : > { %17989 = vst [vmem:[#allocation96_spill] sm:$0xff] %v15995_v7  ;;  %v15997_v20 = vadd.f32 %v6246_v19, %v6134_v9  ;;  %v6136_v1 = vadd.f32 %v6135_v50, %v15980_v30  ;;  %v6248_v60 = vpop.f32.mrf.mxu1  ;;  %12340 = vmatpush3.bf16.msra.mxu0 %v14006_v10  ;;  %v14021_v19 = vld [vmem:[#allocation6 + $0x800] ss:$36 sps:$4 sm:$0xff]   ;;  %v17992_v10 = vld [vmem:[#allocation62_spill] sm:$0xff] }
 0x394   : > { %v6139_v46 = vpop.f32.mrf.mxu0  ;;  %12341 = vmatprep.subr.bf16.mxu0 %v14007_v39 }
 0x395   : > { %v16000_v32 = vadd.f32 %v6248_v60, %v6136_v1  ;;  %v6140_v61 = vadd.f32 %v6139_v46, %v15973_v54  ;;  %v6252_v15 = vpop.f32.mrf.mxu1  ;;  %12404 = vmatpush3.bf16.msra.mxu1 %v14016_v52  ;;  %v14010_v1 = vld [vmem:[#allocation6 + $0x140] ss:$36 sps:$4 sm:$0xff]  }
 0x396   : > { %6816 = vmatmul.mubr.bf16.gmra.mxu0 %v17990_v17  ;;  %6929 = vmatmul.mubr.bf16.gmra.mxu1 %v17991_v8  ;;  %v6141_v9 = vpop.f32.mrf.mxu0 }
 0x397   : > { %v16005_v50 = vadd.f32 %v6252_v15, %v6140_v61  ;;  %6825 = vmatprep.mubr.bf16.mxu0 %v17992_v10  ;;  %v6142_v39 = vadd.f32 %v6141_v9, %v15980_v30  ;;  %v6254_v60 = vpop.f32.mrf.mxu1  ;;  %6938 = vmatprep.mubr.bf16.mxu1 %v17979_v38  ;;  %v14022_v61 = vld [vmem:[#allocation6 + $0x5c0] ss:$36 sps:$4 sm:$0xff]  }
 0x398   : > { %v6143_v46 = vpop.f32.mrf.mxu0  ;;  %12342 = vmatpush3.bf16.msra.mxu0 %v14008_v4  ;;  %12405 = vmatprep.subr.bf16.mxu1 %v14019_v23  ;;  %v14012_v4 = vld [vmem:[#allocation6 + $0xf8] ss:$36 sps:$4 sm:$0xff]  }
 0x399   : > { %v16010_v52 = vadd.f32 %v6254_v60, %v6142_v39  ;;  %v6144_v7 = vadd.f32 %v6143_v46, %v15973_v54  ;;  %v6256_v42 = vpop.f32.mrf.mxu1  ;;  %12343 = vmatprep.subr.bf16.mxu0 %v14009_v59  ;;  %12406 = vmatpush3.bf16.msra.mxu1 %v14020_v47  ;;  %v14025_v23 = vld [vmem:[#allocation6 + $0x7b8] ss:$36 sps:$4 sm:$0xff]   ;;  %v14017_v59 = vld [vmem:[#allocation6 + $0x2f0] ss:$36 sps:$4 sm:$0xff]  }
 0x39a   : > { %v6145_v15 = vpop.f32.mrf.mxu0  ;;  %12407 = vmatprep.subr.bf16.mxu1 %v14021_v19  ;;  %v14026_v47 = vld [vmem:[#allocation6 + $0x578] ss:$36 sps:$4 sm:$0xff]   ;;  %v14027_v19 = vld [vmem:[#allocation6 + $0x770] ss:$36 sps:$4 sm:$0xff]  }
 0x39b   : > { %v16013_v62 = vadd.f32 %v6256_v42, %v6144_v7  ;;  %v6146_v9 = vadd.f32 %v6145_v15, %v15980_v30  ;;  %v6258_v34 = vpop.f32.mrf.mxu1  ;;  %v17994_v42 = vld [vmem:[#allocation64_spill] sm:$0xff] }
 0x39c   : > { %v6149_v25 = vpop.f32.mrf.mxu0  ;;  %12344 = vmatpush3.bf16.msra.mxu0 %v14010_v1  ;;  %v17995_v1 = vld [vmem:[#allocation65_spill] sm:$0xff] }
 0x39d   : > { %v16016_v39 = vadd.f32 %v6258_v34, %v6146_v9  ;;  %v6150_v60 = vadd.f32 %v6149_v25, %v15973_v54  ;;  %v6262_v46 = vpop.f32.mrf.mxu1  ;;  %12345 = vmatprep.subr.bf16.mxu0 %v14011_v5  ;;  %12408 = vmatpush3.bf16.msra.mxu1 %v14022_v61  ;;  %v14018_v5 = vld [vmem:[#allocation6 + $0xb0] ss:$36 sps:$4 sm:$0xff]  }
 0x39e   : > { %6826 = vmatmul.mubr.bf16.gmra.mxu0 %v17993_v58  ;;  %6939 = vmatmul.mubr.bf16.gmra.mxu1 %v17994_v42  ;;  %v6151_v7 = vpop.f32.mrf.mxu0  ;;  %v14023_v58 = vld [vmem:[#allocation6 + $0x2a8] ss:$36 sps:$4 sm:$0xff]  }
 0x39f   : > { %v16021_v15 = vadd.f32 %v6262_v46, %v6150_v60  ;;  %6835 = vmatprep.mubr.bf16.mxu0 %v17995_v1  ;;  %v6152_v34 = vadd.f32 %v6151_v7, %v15980_v30  ;;  %v6264_v9 = vpop.f32.mrf.mxu1  ;;  %6948 = vmatprep.mubr.bf16.mxu1 %v17979_v38  ;;  %v14028_v60 = vld [vmem:[#allocation6 + $0x530] ss:$36 sps:$4 sm:$0xff]   ;;  %v17996_v42 = vld [vmem:[#allocation66_spill] sm:$0xff] }
 0x3a0   : > { %v6153_v25 = vpop.f32.mrf.mxu0  ;;  %12346 = vmatpush3.bf16.msra.mxu0 %v14012_v4  ;;  %12409 = vmatprep.subr.bf16.mxu1 %v14025_v23  ;;  %v14024_v4 = vld [vmem:[#allocation6 + $0x68] ss:$36 sps:$4 sm:$0xff]  }
 0x3a1   : > { %v16026_v61 = vadd.f32 %v6264_v9, %v6152_v34  ;;  %v6154_v21 = vadd.f32 %v6153_v25, %v15973_v54  ;;  %v6266_v14 = vpop.f32.mrf.mxu1  ;;  %12347 = vmatprep.subr.bf16.mxu0 %v14017_v59  ;;  %12410 = vmatpush3.bf16.msra.mxu1 %v14026_v47  ;;  %v14031_v23 = vld [vmem:[#allocation6 + $0x728] ss:$36 sps:$4 sm:$0xff]   ;;  %v14029_v59 = vld [vmem:[#allocation6 + $0x260] ss:$36 sps:$4 sm:$0xff]  }
 0x3a2   : > { %v6155_v46 = vpop.f32.mrf.mxu0  ;;  %12411 = vmatprep.subr.bf16.mxu1 %v14027_v19  ;;  %v14032_v47 = vld [vmem:[#allocation6 + $0x4e8] ss:$36 sps:$4 sm:$0xff]   ;;  %v14033_v19 = vld [vmem:[#allocation6 + $0x6e0] ss:$36 sps:$4 sm:$0xff]  }
 0x3a3   : > { %v16029_v1 = vadd.f32 %v6266_v14, %v6154_v21  ;;  %v6156_v7 = vadd.f32 %v6155_v46, %v15980_v30  ;;  %v6268_v10 = vpop.f32.mrf.mxu1  ;;  %v17997_v21 = vld [vmem:[#allocation67_spill] sm:$0xff] }
 0x3a4   : > { %v6159_v17 = vpop.f32.mrf.mxu0  ;;  %12348 = vmatpush3.bf16.msra.mxu0 %v14018_v5  ;;  %v17998_v5 = vld [vmem:[#allocation68_spill] sm:$0xff] }
 0x3a5   : > { %v16032_v34 = vadd.f32 %v6268_v10, %v6156_v7  ;;  %v6160_v9 = vadd.f32 %v6159_v17, %v15973_v54  ;;  %v6272_v25 = vpop.f32.mrf.mxu1  ;;  %12349 = vmatprep.subr.bf16.mxu0 %v14023_v58  ;;  %12412 = vmatpush3.bf16.msra.mxu1 %v14028_v60  ;;  %v14030_v58 = vld [vmem:[#allocation6 + $0x20] ss:$36 sps:$4 sm:$0xff]  }
 0x3a6   : > { %6836 = vmatmul.mubr.bf16.gmra.mxu0 %v17996_v42  ;;  %6949 = vmatmul.mubr.bf16.gmra.mxu1 %v17997_v21  ;;  %v6161_v14 = vpop.f32.mrf.mxu0 }
 0x3a7   : > { %v16037_v46 = vadd.f32 %v6272_v25, %v6160_v9  ;;  %6845 = vmatprep.mubr.bf16.mxu0 %v17998_v5  ;;  %v6162_v10 = vadd.f32 %v6161_v14, %v15980_v30  ;;  %v6274_v7 = vpop.f32.mrf.mxu1  ;;  %6958 = vmatprep.mubr.bf16.mxu1 %v17979_v38  ;;  %v14034_v9 = vld [vmem:[#allocation6 + $0x4a0] ss:$36 sps:$4 sm:$0xff]   ;;  %v14035_v25 = vld [vmem:[#allocation6 + $0xd58] ss:$36 sps:$4 sm:$0xff]  }
 0x3a8   : > { %v6163_v17 = vpop.f32.mrf.mxu0  ;;  %12350 = vmatpush3.bf16.msra.mxu0 %v14024_v4  ;;  %12413 = vmatprep.subr.bf16.mxu1 %v14031_v23  ;;  %v16048_v4 = vld [vmem:[#allocation6 + $0xf98] ss:$36 sps:$4 sm:$0xff]  }
 0x3a9   : > { %v16042_v60 = vadd.f32 %v6274_v7, %v6162_v10  ;;  %v6164_v42 = vadd.f32 %v6163_v17, %v15973_v54  ;;  %v6276_v21 = vpop.f32.mrf.mxu1  ;;  %12351 = vmatprep.subr.bf16.mxu0 %v14029_v59  ;;  %12414 = vmatpush3.bf16.msra.mxu1 %v14032_v47  ;;  %v17999_v59 = vld [vmem:[#allocation69_spill] sm:$0xff]  ;;  %v18000_v47 = vld [vmem:[#allocation70_spill] sm:$0xff] }
 0x3aa   : > { %v6165_v24 = vpop.f32.mrf.mxu0  ;;  %12415 = vmatprep.subr.bf16.mxu1 %v14033_v19 }
 0x3ab   : > { %v16045_v5 = vadd.f32 %v6276_v21, %v6164_v42  ;;  %v6166_v14 = vadd.f32 %v6165_v24, %v15980_v30  ;;  %v6278_v8 = vpop.f32.mrf.mxu1  ;;  %v18001_v24 = vld [vmem:[#allocation71_spill] sm:$0xff] }
 0x3ac   : > { %v6169_v0 = vpop.f32.mrf.mxu0  ;;  %12352 = vmatpush3.bf16.msra.mxu0 %v14030_v58 }
 0x3ad   : > { %v16050_v23 = vadd.f32 %v6278_v8, %v6166_v14  ;;  %v6170_v10 = vadd.f32 %v6169_v0, %v15973_v54  ;;  %v6282_v7 = vpop.f32.mrf.mxu1  ;;  %12416 = vmatpush3.bf16.msra.mxu1 %v14034_v9  ;;  %12465 = vmatprep.subr.bf16.mxu0 %v14035_v25 }
 0x3ae   : > { %6846 = vmatmul.mubr.bf16.gmra.mxu0 %v17999_v59  ;;  %6959 = vmatmul.mubr.bf16.gmra.mxu1 %v18000_v47  ;;  %v6171_v42 = vpop.f32.mrf.mxu0 }
 0x3af   : > { %v16055_v21 = vadd.f32 %v6282_v7, %v6170_v10  ;;  %6855 = vmatprep.mubr.bf16.mxu0 %v18001_v24  ;;  %v6172_v19 = vadd.f32 %v6171_v42, %v15980_v30  ;;  %v6284_v17 = vpop.f32.mrf.mxu1  ;;  %6968 = vmatprep.mubr.bf16.mxu1 %v17979_v38 }
 0x3b0   : > { %v6173_v8 = vpop.f32.mrf.mxu0  ;;  %12865 = vmatprep.subr.bf16.mxu1 %v16048_v4 }
 0x3b1   : > { %v16061_v0 = vadd.f32 %v6284_v17, %v6172_v19  ;;  %v6174_v58 = vadd.f32 %v6173_v8, %v15973_v54  ;;  %v6286_v9 = vpop.f32.mrf.mxu1  ;;  %v18004_v8 = vld [vmem:[#allocation74_spill] sm:$0xff] }
 0x3b2   : > { %v6175_v25 = vpop.f32.mrf.mxu0 }
 0x3b3   : > { %v16064_v14 = vadd.f32 %v6286_v9, %v6174_v58  ;;  %v6176_v10 = vadd.f32 %v6175_v25, %v15980_v30  ;;  %v6288_v7 = vpop.f32.mrf.mxu1 }
 0x3b4   : > { %v6179_v24 = vpop.f32.mrf.mxu0 }
 0x3b5   : > { %v16067_v59 = vadd.f32 %v6288_v7, %v6176_v10  ;;  %v6180_v42 = vadd.f32 %v6179_v24, %v15973_v54  ;;  %v6292_v47 = vpop.f32.mrf.mxu1 }
 0x3b6   : > { %6856 = vmatmul.mubr.bf16.gmra.mxu0 %v18002_v3  ;;  %6969 = vmatmul.mubr.bf16.gmra.mxu1 %v18003_v51  ;;  %v6181_v19 = vpop.f32.mrf.mxu0 }
 0x3b7   : > { %v16072_v17 = vadd.f32 %v6292_v47, %v6180_v42  ;;  %6865 = vmatprep.mubr.bf16.mxu0 %v18004_v8  ;;  %v6182_v58 = vadd.f32 %v6181_v19, %v15980_v30  ;;  %v6294_v9 = vpop.f32.mrf.mxu1  ;;  %6978 = vmatprep.mubr.bf16.mxu1 %v17979_v38 }
 0x3b8   : > { %v6183_v25 = vpop.f32.mrf.mxu0 }
 0x3b9   : > { %v16077_v10 = vadd.f32 %v6294_v9, %v6182_v58  ;;  %v6184_v24 = vadd.f32 %v6183_v25, %v15973_v54  ;;  %v6296_v7 = vpop.f32.mrf.mxu1  ;;  %v18008_v25 = vld [vmem:[#allocation77_spill] sm:$0xff] }
 0x3ba   : > { %v6185_v31 = vpop.f32.mrf.mxu0 }
 0x3bb   : > { %v16080_v3 = vadd.f32 %v6296_v7, %v6184_v24  ;;  %v6186_v51 = vadd.f32 %v6185_v31, %v15980_v30  ;;  %v6298_v47 = vpop.f32.mrf.mxu1 }
 0x3bc   : > { %v6189_v42 = vpop.f32.mrf.mxu0 }
 0x3bd   : > { %v16083_v45 = vadd.f32 %v6298_v47, %v6186_v51  ;;  %v6190_v19 = vadd.f32 %v6189_v42, %v15973_v54  ;;  %v6302_v8 = vpop.f32.mrf.mxu1 }
 0x3be   : > { %6866 = vmatmul.mubr.bf16.gmra.mxu0 %v18005_v48  ;;  %6979 = vmatmul.mubr.bf16.gmra.mxu1 %v18006_v6  ;;  %v6191_v58 = vpop.f32.mrf.mxu0 }
 0x3bf   : > { %v16088_v9 = vadd.f32 %v6302_v8, %v6190_v19  ;;  %6875 = vmatprep.mubr.bf16.mxu0 %v18008_v25  ;;  %v6192_v24 = vadd.f32 %v6191_v58, %v15980_v30  ;;  %v6304_v7 = vpop.f32.mrf.mxu1  ;;  %6988 = vmatprep.mubr.bf16.mxu1 %v17979_v38  ;;  %v18013_v38 = vld [vmem:[#allocation79_spill] sm:$0xff] }
 0x3c0   : > { %v6193_v31 = vpop.f32.mrf.mxu0 }
 0x3c1   : > { %18007 = vst [vmem:[#allocation105_spill] sm:$0xff] %v16088_v9  ;;  %v16093_v51 = vadd.f32 %v6304_v7, %v6192_v24  ;;  %v6194_v47 = vadd.f32 %v6193_v31, %v15973_v54  ;;  %v6306_v42 = vpop.f32.mrf.mxu1  ;;  %v18015_v31 = vld [vmem:[#allocation34_spill] sm:$0xff]  ;;  %v18020_v9 = vld [vmem:[#allocation36_spill] sm:$0xff] }
 0x3c2   : > { %v6195_v43 = vpop.f32.mrf.mxu0 }
 0x3c3   : > { %18009 = vst [vmem:[#allocation106_spill] sm:$0xff] %v16093_v51  ;;  %v16096_v48 = vadd.f32 %v6306_v42, %v6194_v47  ;;  %v6196_v6 = vadd.f32 %v6195_v43, %v15980_v30  ;;  %v6308_v8 = vpop.f32.mrf.mxu1  ;;  %v18016_v42 = vld [vmem:[#allocation35_spill] sm:$0xff] }
 0x3c4   : > { %v6199_v19 = vpop.f32.mrf.mxu0 }
 0x3c5   : > { %18010 = vst [vmem:[#allocation107_spill] sm:$0xff] %v16096_v48  ;;  %v16099_v44 = vadd.f32 %v6308_v8, %v6196_v6  ;;  %v6200_v58 = vadd.f32 %v6199_v19, %v15973_v54  ;;  %v6312_v25 = vpop.f32.mrf.mxu1 }
 0x3c6   : > { %6876 = vmatmul.mubr.bf16.gmra.mxu0 %v18012_v35  ;;  %6989 = vmatmul.mubr.bf16.gmra.mxu1 %v18013_v38  ;;  %v6201_v24 = vpop.f32.mrf.mxu0 }
 0x3c7   : > { %18011 = vst [vmem:[#allocation108_spill] sm:$0xff] %v16099_v44  ;;  %v16104_v7 = vadd.f32 %v6312_v25, %v6200_v58  ;;  %7031 = vmatprep.mubr.bf16.mxu0 %v18015_v31  ;;  %v6202_v47 = vadd.f32 %v6201_v24, %v15980_v30  ;;  %7128 = vmatprep.mubr.bf16.mxu1 %v18016_v42  ;;  %v6314_v43 = vpop.f32.mrf.mxu1  ;;  %v14036_v58 = vld [vmem:[#allocation6 + $0xb18] ss:$36 sps:$4 sm:$0xff]  }
 0x3c8   : > { %v6203_v48 = vpop.f32.mrf.mxu0 }
 0x3c9   : > { %18014 = vst [vmem:[#allocation109_spill] sm:$0xff] %v16104_v7  ;;  %v16109_v6 = vadd.f32 %v6314_v43, %v6202_v47  ;;  %v6204_v8 = vadd.f32 %v6203_v48, %v15973_v54  ;;  %v6316_v19 = vpop.f32.mrf.mxu1  ;;  %v14037_v7 = vld [vmem:[#allocation6 + $0xd10] ss:$36 sps:$4 sm:$0xff]   ;;  %v18021_v47 = vld [vmem:[#allocation33_spill] sm:$0xff] }
 0x3ca   : > { %v6205_v44 = vpop.f32.mrf.mxu0  ;;  %v14046_v48 = vld [vmem:[#allocation6 + $0xf50] ss:$36 sps:$4 sm:$0xff]   ;;  %v18022_v54 = vld [vmem:[#allocation37_spill] sm:$0xff] }
 0x3cb   : > { %18017 = vst [vmem:[#allocation34_spill] sm:$0xff] %v16109_v6  ;;  %v16112_v35 = vadd.f32 %v6316_v19, %v6204_v8  ;;  %v6206_v38 = vadd.f32 %v6205_v44, %v15980_v30  ;;  %v6318_v25 = vpop.f32.mrf.mxu1  ;;  %v14038_v44 = vld [vmem:[#allocation6 + $0xad0] ss:$36 sps:$4 sm:$0xff]  }
 0x3cd   : > { %18018 = vst [vmem:[#allocation35_spill] sm:$0xff] %v16112_v35  ;;  %v16115_v31 = vadd.f32 %v6318_v25, %v6206_v38  ;;  %v6355_v24 = vpop.f32.mrf.mxu0  ;;  %v6468_v51 = vpop.f32.mrf.mxu1  ;;  %v18023_v38 = vld [vmem:[#allocation38_spill] sm:$0xff] }
 0x3ce   : > { %v6356_v42 = vadd.f32 %v6355_v24, %v15987_v2  ;;  %7032 = vmatmul.mubr.bf16.vlgmr.msra.gmra.mxu0 %v18020_v9  ;;  %7129 = vmatmul.mubr.bf16.vlgmr.msra.gmra.mxu1 %v18021_v47  ;;  %v14039_v25 = vld [vmem:[#allocation6 + $0xcc8] ss:$36 sps:$4 sm:$0xff]  }
 0x3cf   : > { %18019 = vst [vmem:[#allocation110_spill] sm:$0xff] %v16115_v31  ;;  %7039 = vmatprep.mubr.bf16.mxu0 %v18022_v54  ;;  %12466 = vmatpush3.bf16.msra.mxu0 %v14036_v58  ;;  %v6357_v43 = vpop.f32.mrf.mxu0  ;;  %v6470_v8 = vpop.f32.mrf.mxu1 }
 0x3d0   : > { %v6469_v30 = vadd.f32 %v6468_v51, %v6356_v42  ;;  %v6358_v19 = vadd.f32 %v6357_v43, %v15992_v41  ;;  %7136 = vmatprep.mubr.bf16.mxu1 %v18023_v38  ;;  %12467 = vmatprep.subr.bf16.mxu0 %v14037_v7  ;;  %v14040_v41 = vld [vmem:[#allocation6 + $0xa88] ss:$36 sps:$4 sm:$0xff]   ;;  %v14041_v38 = vld [vmem:[#allocation6 + $0xc80] ss:$36 sps:$4 sm:$0xff]  }
 0x3d1   : > { %v6359_v31 = vpop.f32.mrf.mxu0  ;;  %v6472_v2 = vpop.f32.mrf.mxu1  ;;  %12866 = vmatpush3.bf16.msra.mxu1 %v16048_v4  ;;  %v14049_v42 = vld [vmem:[#allocation6 + $0xf08] ss:$36 sps:$4 sm:$0xff]  }
 0x3d2   : > { %v6471_v9 = vadd.f32 %v6470_v8, %v6358_v19  ;;  %v6360_v24 = vadd.f32 %v6359_v31, %v15997_v20  ;;  %12867 = vmatprep.subr.bf16.mxu1 %v14046_v48  ;;  %v7391_v35 = vmax.f32 %v6469_v30, 0.0  ;;  %v14050_v20 = vld [vmem:[#allocation6 + $0xec0] ss:$36 sps:$4 sm:$0xff]  }
 0x3d3   : > { %v6361_v47 = vpop.f32.mrf.mxu0  ;;  %v6474_v58 = vpop.f32.mrf.mxu1  ;;  %12468 = vmatpush3.bf16.msra.mxu0 %v14038_v44 }
 0x3d4   : > { %v6473_v54 = vadd.f32 %v6472_v2, %v6360_v24  ;;  %v6362_v51 = vadd.f32 %v6361_v47, %v16000_v32  ;;  %12469 = vmatprep.subr.bf16.mxu0 %v14039_v25  ;;  %v7392_v31 = vmax.f32 %v6471_v9, 0.0 }
 0x3d5   : > { %v6365_v43 = vpop.f32.mrf.mxu0  ;;  %v6478_v7 = vpop.f32.mrf.mxu1  ;;  %12868 = vmatpush3.bf16.msra.mxu1 %v14046_v48 }
 0x3d6   : > { %v7400_v6 = vmax.f32 %v6473_v54, 0.0  ;;  %v6475_v4 = vadd.f32 %v6474_v58, %v6362_v51  ;;  %v6366_v8 = vadd.f32 %v6365_v43, %v16005_v50  ;;  %7040 = vmatmul.mubr.bf16.gmra.mxu0 %v15209_v37  ;;  %7137 = vmatmul.mubr.bf16.gmra.mxu1 %v15201_v22  ;;  %v14042_v50 = vld [vmem:[#allocation6 + $0xa40] ss:$36 sps:$4 sm:$0xff]   ;;  %v14043_v22 = vld [vmem:[#allocation6 + $0xc38] ss:$36 sps:$4 sm:$0xff]  }
 0x3d7   : > { %7047 = vmatprep.mubr.bf16.mxu0 %v15224_v53  ;;  %v6367_v32 = vpop.f32.mrf.mxu0  ;;  %7144 = vmatprep.mubr.bf16.mxu1 %v15226_v11  ;;  %v6480_v44 = vpop.f32.mrf.mxu1  ;;  %v14053_v58 = vld [vmem:[#allocation6 + $0xe78] ss:$36 sps:$4 sm:$0xff]  }
 0x3d8   : > { %v16131_v19 = vpack.c.bf16 %v7400_v6, %v7391_v35  ;;  %v7401_v48 = vmax.f32 %v6475_v4, 0.0  ;;  %v6479_v30 = vadd.f32 %v6478_v7, %v6366_v8  ;;  %v6368_v25 = vadd.f32 %v6367_v32, %v16010_v52  ;;  %12470 = vmatpush3.bf16.msra.mxu0 %v14040_v41  ;;  %12869 = vmatprep.subr.bf16.mxu1 %v14049_v42  ;;  %v14044_v52 = vld [vmem:[#allocation6 + $0x9f8] ss:$36 sps:$4 sm:$0xff]   ;;  %v14047_v41 = vld [vmem:[#allocation6 + $0xbf0] ss:$36 sps:$4 sm:$0xff]  }
 0x3d9   : > { %v6369_v37 = vpop.f32.mrf.mxu0  ;;  %v6482_v2 = vpop.f32.mrf.mxu1  ;;  %12471 = vmatprep.subr.bf16.mxu0 %v14041_v38  ;;  %12870 = vmatpush3.bf16.msra.mxu1 %v14049_v42  ;;  %v14054_v38 = vld [vmem:[#allocation6 + $0xe30] ss:$36 sps:$4 sm:$0xff]  }
 0x3da   : > { %v6481_v9 = vadd.f32 %v6480_v44, %v6368_v25  ;;  %v6370_v53 = vadd.f32 %v6369_v37, %v16013_v62  ;;  %12871 = vmatprep.subr.bf16.mxu1 %v14050_v20  ;;  %v16135_v11 = vpack.c.bf16 %v7401_v48, %v7392_v31  ;;  %v7409_v42 = vmax.f32 %v6479_v30, 0.0 }
 0x3db   : > { %v6371_v35 = vpop.f32.mrf.mxu0  ;;  %v6484_v6 = vpop.f32.mrf.mxu1 }
 0x3dc   : > { %v6483_v24 = vadd.f32 %v6482_v2, %v6370_v53  ;;  %v6372_v47 = vadd.f32 %v6371_v35, %v16016_v39  ;;  %12472 = vmatpush3.bf16.msra.mxu0 %v14042_v50  ;;  %v7410_v4 = vmax.f32 %v6481_v9, 0.0  ;;  %v14055_v35 = vld [vmem:[#allocation6 + $0xb60] ss:$36 sps:$4 sm:$0xff]  }
 0x3dd   : > { %v6375_v54 = vpop.f32.mrf.mxu0  ;;  %v6488_v51 = vpop.f32.mrf.mxu1  ;;  %12473 = vmatprep.subr.bf16.mxu0 %v14043_v22  ;;  %12872 = vmatpush3.bf16.msra.mxu1 %v14050_v20  ;;  %v14057_v22 = vld [vmem:[#allocation6 + $0xde8] ss:$36 sps:$4 sm:$0xff]  }
 0x3de   : > { %v7418_v43 = vmax.f32 %v6483_v24, 0.0  ;;  %v6485_v7 = vadd.f32 %v6484_v6, %v6372_v47  ;;  %v6376_v62 = vadd.f32 %v6375_v54, %v16021_v15  ;;  %7048 = vmatmul.mubr.bf16.gmra.mxu0 %v15229_v56  ;;  %7145 = vmatmul.mubr.bf16.gmra.mxu1 %v15221_v28  ;;  %v14048_v15 = vld [vmem:[#allocation6 + $0x9b0] ss:$36 sps:$4 sm:$0xff]   ;;  %v14051_v28 = vld [vmem:[#allocation6 + $0xba8] ss:$36 sps:$4 sm:$0xff]  }
 0x3df   : > { %7055 = vmatprep.mubr.bf16.mxu0 %v15244_v33  ;;  %v6377_v39 = vpop.f32.mrf.mxu0  ;;  %7152 = vmatprep.mubr.bf16.mxu1 %v15246_v36  ;;  %v6490_v8 = vpop.f32.mrf.mxu1 }
 0x3e0   : > { %v16143_v31 = vpack.c.bf16 %v7418_v43, %v7409_v42  ;;  %v7419_v20 = vmax.f32 %v6485_v7, 0.0  ;;  %v6489_v32 = vadd.f32 %v6488_v51, %v6376_v62  ;;  %v6378_v44 = vadd.f32 %v6377_v39, %v16026_v61  ;;  %12474 = vmatpush3.bf16.msra.mxu0 %v14044_v52  ;;  %12873 = vmatprep.subr.bf16.mxu1 %v14053_v58  ;;  %v14052_v61 = vld [vmem:[#allocation6 + $0x968] ss:$36 sps:$4 sm:$0xff]   ;;  %v14058_v52 = vld [vmem:[#allocation6 + $0xda0] ss:$36 sps:$4 sm:$0xff]  }
 0x3e1   : > { %v6379_v56 = vpop.f32.mrf.mxu0  ;;  %v6492_v48 = vpop.f32.mrf.mxu1  ;;  %12475 = vmatprep.subr.bf16.mxu0 %v14047_v41  ;;  %12874 = vmatpush3.bf16.msra.mxu1 %v14053_v58 }
 0x3e2   : > { %v6491_v30 = vadd.f32 %v6490_v8, %v6378_v44  ;;  %v6380_v33 = vadd.f32 %v6379_v56, %v16029_v1  ;;  %12875 = vmatprep.subr.bf16.mxu1 %v14054_v38  ;;  %v16147_v36 = vpack.c.bf16 %v7419_v20, %v7410_v4  ;;  %v7427_v6 = vmax.f32 %v6489_v32, 0.0 }
 0x3e3   : > { %v6381_v25 = vpop.f32.mrf.mxu0  ;;  %v6494_v50 = vpop.f32.mrf.mxu1 }
 0x3e4   : > { %v6493_v37 = vadd.f32 %v6492_v48, %v6380_v33  ;;  %v6382_v2 = vadd.f32 %v6381_v25, %v16032_v34  ;;  %12476 = vmatpush3.bf16.msra.mxu0 %v14048_v15  ;;  %v7428_v58 = vmax.f32 %v6491_v30, 0.0 }
 0x3e5   : > { %v6385_v9 = vpop.f32.mrf.mxu0  ;;  %v6498_v53 = vpop.f32.mrf.mxu1  ;;  %12477 = vmatprep.subr.bf16.mxu0 %v14051_v28  ;;  %12876 = vmatpush3.bf16.msra.mxu1 %v14054_v38 }
 0x3e6   : > { %v7436_v24 = vmax.f32 %v6493_v37, 0.0  ;;  %v6495_v47 = vadd.f32 %v6494_v50, %v6382_v2  ;;  %v6386_v1 = vadd.f32 %v6385_v9, %v16037_v46  ;;  %7056 = vmatmul.mubr.bf16.gmra.mxu0 %v15249_v26  ;;  %7153 = vmatmul.mubr.bf16.gmra.mxu1 %v15241_v29  ;;  %v14056_v46 = vld [vmem:[#allocation6 + $0x920] ss:$36 sps:$4 sm:$0xff]  }
 0x3e7   : > { %7063 = vmatprep.mubr.bf16.mxu0 %v15264_v27  ;;  %v6387_v34 = vpop.f32.mrf.mxu0  ;;  %7160 = vmatprep.mubr.bf16.mxu1 %v15266_v13  ;;  %v6500_v54 = vpop.f32.mrf.mxu1  ;;  %v14075_v29 = vld [vmem:[#allocation9 + $0xf8] sm:$0xff]  }
 0x3e8   : > { %v16155_v51 = vpack.c.bf16 %v7436_v24, %v7427_v6  ;;  %v7437_v41 = vmax.f32 %v6495_v47, 0.0  ;;  %v6499_v42 = vadd.f32 %v6498_v53, %v6386_v1  ;;  %v6388_v43 = vadd.f32 %v6387_v34, %v16042_v60  ;;  %12478 = vmatpush3.bf16.msra.mxu0 %v14052_v61  ;;  %12877 = vmatprep.subr.bf16.mxu1 %v14057_v22  ;;  %v14059_v60 = vld [vmem:[#allocation9 + $0x78] sm:$0xff]  }
 0x3e9   : > { %v6389_v26 = vpop.f32.mrf.mxu0  ;;  %v6502_v7 = vpop.f32.mrf.mxu1  ;;  %12479 = vmatprep.subr.bf16.mxu0 %v14055_v35  ;;  %12878 = vmatpush3.bf16.msra.mxu1 %v14057_v22 }
 0x3ea   : > { %v6501_v62 = vadd.f32 %v6500_v54, %v6388_v43  ;;  %v6390_v27 = vadd.f32 %v6389_v26, %v16045_v5  ;;  %12879 = vmatprep.subr.bf16.mxu1 %v14058_v52  ;;  %v16159_v13 = vpack.c.bf16 %v7437_v41, %v7428_v58  ;;  %v7445_v44 = vmax.f32 %v6499_v42, 0.0 }
 0x3eb   : > { %v6391_v38 = vpop.f32.mrf.mxu0  ;;  %v6504_v4 = vpop.f32.mrf.mxu1 }
 0x3ec   : > { %v6503_v39 = vadd.f32 %v6502_v7, %v6390_v27  ;;  %v6392_v8 = vadd.f32 %v6391_v38, %v16050_v23  ;;  %12480 = vmatpush3.bf16.msra.mxu0 %v14056_v46  ;;  %v7446_v5 = vmax.f32 %v6501_v62, 0.0  ;;  %v18024_v27 = vld [vmem:[#allocation105_spill] sm:$0xff] }
 0x3ed   : > { %v6395_v20 = vpop.f32.mrf.mxu0  ;;  %v6508_v32 = vpop.f32.mrf.mxu1  ;;  %12880 = vmatpush3.bf16.msra.mxu1 %v14058_v52  ;;  %12609 = vmatprep.subr.bf16.mxu0 %v14075_v29 }
 0x3ee   : > { %v7454_v15 = vmax.f32 %v6503_v39, 0.0  ;;  %v6505_v56 = vadd.f32 %v6504_v4, %v6392_v8  ;;  %v6396_v48 = vadd.f32 %v6395_v20, %v16055_v21  ;;  %7064 = vmatmul.mubr.bf16.gmra.mxu0 %v17888_v40  ;;  %7161 = vmatmul.mubr.bf16.gmra.mxu1 %v17890_v55  ;;  %v18026_v4 = vld [vmem:[#allocation45_spill] sm:$0xff] }
 0x3ef   : > { %7071 = vmatprep.mubr.bf16.mxu0 %v17889_v57  ;;  %v6397_v28 = vpop.f32.mrf.mxu0  ;;  %7168 = vmatprep.mubr.bf16.mxu1 %v17893_v16  ;;  %v6510_v23 = vpop.f32.mrf.mxu1 }
 0x3f0   : > { %v16167_v30 = vpack.c.bf16 %v7454_v15, %v7445_v44  ;;  %v7455_v33 = vmax.f32 %v6505_v56, 0.0  ;;  %v6509_v25 = vadd.f32 %v6508_v32, %v6396_v48  ;;  %v6398_v50 = vadd.f32 %v6397_v28, %v16061_v0  ;;  %12545 = vmatprep.subr.bf16.mxu1 %v14059_v60  ;;  %v18028_v60 = vld [vmem:[#allocation54_spill] sm:$0xff] }
 0x3f1   : > { %v6399_v37 = vpop.f32.mrf.mxu0  ;;  %v6512_v21 = vpop.f32.mrf.mxu1  ;;  %v18030_v15 = vld [vmem:[#allocation106_spill] sm:$0xff] }
 0x3f2   : > { %v6511_v2 = vadd.f32 %v6510_v23, %v6398_v50  ;;  %v6400_v40 = vadd.f32 %v6399_v37, %v16064_v14  ;;  %v16171_v55 = vpack.c.bf16 %v7455_v33, %v7446_v5  ;;  %v7463_v35 = vmax.f32 %v6509_v25, 0.0  ;;  %v18031_v23 = vld [vmem:[#allocation107_spill] sm:$0xff] }
 0x3f3   : > { %v6401_v61 = vpop.f32.mrf.mxu0  ;;  %v6514_v57 = vpop.f32.mrf.mxu1 }
 0x3f4   : > { %v6513_v22 = vadd.f32 %v6512_v21, %v6400_v40  ;;  %v6402_v16 = vadd.f32 %v6401_v61, %v16067_v59  ;;  %v7464_v47 = vmax.f32 %v6511_v2, 0.0  ;;  %v18033_v2 = vld [vmem:[#allocation108_spill] sm:$0xff] }
 0x3f5   : > { %v6405_v9 = vpop.f32.mrf.mxu0  ;;  %v6518_v53 = vpop.f32.mrf.mxu1 }
 0x3f6   : > { %v7472_v6 = vmax.f32 %v6513_v22, 0.0  ;;  %v6515_v24 = vadd.f32 %v6514_v57, %v6402_v16  ;;  %v6406_v0 = vadd.f32 %v6405_v9, %v16072_v17  ;;  %7072 = vmatmul.mubr.bf16.gmra.mxu0 %v17896_v12  ;;  %7169 = vmatmul.mubr.bf16.gmra.mxu1 %v17959_v18 }
 0x3f7   : > { %7079 = vmatprep.mubr.bf16.mxu0 %v17897_v49  ;;  %v6407_v14 = vpop.f32.mrf.mxu0  ;;  %7176 = vmatprep.mubr.bf16.mxu1 %v17962_v63  ;;  %v6520_v1 = vpop.f32.mrf.mxu1 }
 0x3f8   : > { %v16179_v52 = vpack.c.bf16 %v7472_v6, %v7463_v35  ;;  %v7473_v59 = vmax.f32 %v6515_v24, 0.0  ;;  %v6519_v58 = vadd.f32 %v6518_v53, %v6406_v0  ;;  %v6408_v34 = vadd.f32 %v6407_v14, %v16077_v10  ;;  %v18025_v10 = vld [vmem:[#allocation49_spill] sm:$0xff]  ;;  %v18035_v6 = vld [vmem:[#allocation55_spill] sm:$0xff]  ;;  %v18036_v24 = vld [vmem:[#allocation52_spill] sm:$0xff] }
 0x3f9   : > { %v6409_v54 = vpop.f32.mrf.mxu0  ;;  %v6522_v41 = vpop.f32.mrf.mxu1  ;;  %v18034_v53 = vld [vmem:[#allocation109_spill] sm:$0xff] }
 0x3fa   : > { %v6521_v17 = vadd.f32 %v6520_v1, %v6408_v34  ;;  %v6410_v12 = vadd.f32 %v6409_v54, %v16080_v3  ;;  %v16183_v42 = vpack.c.bf16 %v7473_v59, %v7464_v47  ;;  %v7481_v7 = vmax.f32 %v6519_v58, 0.0  ;;  %v18027_v3 = vld [vmem:[#allocation53_spill] sm:$0xff]  ;;  %v18037_v47 = vld [vmem:[#allocation56_spill] sm:$0xff]  ;;  %v18038_v1 = vld [vmem:[#allocation58_spill] sm:$0xff] }
 0x3fb   : > { %v6411_v18 = vpop.f32.mrf.mxu0  ;;  %v6524_v43 = vpop.f32.mrf.mxu1  ;;  %v18039_v58 = vld [vmem:[#allocation28_spill] sm:$0xff] }
 0x3fc   : > { %v6523_v49 = vadd.f32 %v6522_v41, %v6410_v12  ;;  %v6412_v46 = vadd.f32 %v6411_v18, %v16083_v45  ;;  %v7482_v39 = vmax.f32 %v6521_v17, 0.0  ;;  %v2600_v34 = vsub.s32 7, %v18039_v58  ;;  %v18041_v12 = vld [vmem:[#allocation34_spill] sm:$0xff] }
 0x3fd   : > { %v6415_v63 = vpop.f32.mrf.mxu0  ;;  %v6528_v26 = vpop.f32.mrf.mxu1 }
 0x3fe   : > { %v7490_v29 = vmax.f32 %v6523_v49, 0.0  ;;  %v6525_v62 = vadd.f32 %v6524_v43, %v6412_v46  ;;  %v6416_v38 = vadd.f32 %v6415_v63, %v18024_v27  ;;  %7080 = vmatmul.mubr.bf16.gmra.mxu0 %v18025_v10  ;;  %7177 = vmatmul.mubr.bf16.gmra.mxu1 %v18026_v4  ;;  %v18042_v63 = vld [vmem:[#allocation35_spill] sm:$0xff] }
 0x3ff   : > { %7087 = vmatprep.mubr.bf16.mxu0 %v18027_v3  ;;  %v6417_v8 = vpop.f32.mrf.mxu0  ;;  %7184 = vmatprep.mubr.bf16.mxu1 %v18028_v60  ;;  %v6530_v20 = vpop.f32.mrf.mxu1  ;;  %v14060_v60 = vld [vmem:[#allocation9 + $0x38] sm:$0xff]  }
 0x400   : > { %v16191_v32 = vpack.c.bf16 %v7490_v29, %v7481_v7  ;;  %v7491_v45 = vmax.f32 %v6525_v62, 0.0  ;;  %v6529_v44 = vadd.f32 %v6528_v26, %v6416_v38  ;;  %v6418_v56 = vadd.f32 %v6417_v8, %v18030_v15  ;;  %v18043_v7 = vld [vmem:[#allocation50_spill] sm:$0xff]  ;;  %v18044_v29 = vld [vmem:[#allocation93_spill] sm:$0xff] }
 0x401   : > { %v6419_v48 = vpop.f32.mrf.mxu0  ;;  %v6532_v5 = vpop.f32.mrf.mxu1  ;;  %v16210_v62 = vrot.slane %v18044_v29, %v18043_v7  ;;  %v16216_v8 = vrot.slane %v18044_v29, %v2600_v34  ;;  %v14077_v15 = vld [vmem:[#allocation9 + $0xf0] sm:$0xff]  }
 0x402   : > { %18029 = vst [vmem:[#allocation36_spill] sm:$0xff] %v16191_v32  ;;  %v6531_v28 = vadd.f32 %v6530_v20, %v6418_v56  ;;  %v6420_v33 = vadd.f32 %v6419_v48, %v18031_v23  ;;  %v16195_v25 = vpack.c.bf16 %v7491_v45, %v7482_v39  ;;  %v7499_v22 = vmax.f32 %v6529_v44, 0.0  ;;  %v18046_v39 = vld [vmem:[#allocation110_spill] sm:$0xff]  ;;  %v14061_v44 = vld [vmem:[#allocation9 + $0x70] sm:$0xff]   ;;  %v18085_v32 = vld [vmem:[#allocation99_spill] sm:$0xff] }
 0x403   : > { %v6421_v50 = vpop.f32.mrf.mxu0  ;;  %v6534_v37 = vpop.f32.mrf.mxu1  ;;  %v14076_v20 = vld [vmem:[#allocation9 + $0xb8] sm:$0xff]   ;;  %v18053_v29 = vld [vmem:[#allocation60_spill] sm:$0xff] }
 0x404   : > { %18032 = vst [vmem:[#allocation33_spill] sm:$0xff] %v16195_v25  ;;  %v6533_v21 = vadd.f32 %v6532_v5, %v6420_v33  ;;  %v6422_v40 = vadd.f32 %v6421_v50, %v18033_v2  ;;  %v7500_v0 = vmax.f32 %v6531_v28, 0.0  ;;  %v18047_v23 = vld [vmem:[#allocation57_spill] sm:$0xff] }
 0x405   : > { %v6425_v61 = vpop.f32.mrf.mxu0  ;;  %v6538_v57 = vpop.f32.mrf.mxu1  ;;  %v18048_v50 = vld [vmem:[#allocation61_spill] sm:$0xff] }
 0x406   : > { %v7508_v16 = vmax.f32 %v6533_v21, 0.0  ;;  %v6535_v9 = vadd.f32 %v6534_v37, %v6422_v40  ;;  %v6426_v35 = vadd.f32 %v6425_v61, %v18034_v53  ;;  %7088 = vmatmul.mubr.bf16.gmra.mxu0 %v18035_v6  ;;  %7185 = vmatmul.mubr.bf16.gmra.mxu1 %v18036_v24  ;;  %v18049_v21 = vld [vmem:[#allocation59_spill] sm:$0xff]  ;;  %v18050_v40 = vld [vmem:[#allocation64_spill] sm:$0xff]  ;;  %v18081_v7 = vld [vmem:[#allocation97_spill] sm:$0xff] }
 0x407   : > { %7225 = vmatprep.mubr.bf16.mxu0 %v18037_v47  ;;  %v6427_v14 = vpop.f32.mrf.mxu0  ;;  %12881 = vmatprep.mubr.bf16.mxu1 %v18038_v1  ;;  %v6540_v59 = vpop.f32.mrf.mxu1  ;;  %v14062_v53 = vld [vmem:[#allocation9 + $0x30] sm:$0xff]   ;;  %v14063_v24 = vld [vmem:[#allocation9 + $0x68] sm:$0xff]  }
 0x408   : > { %v16204_v54 = vpack.c.bf16 %v7508_v16, %v7499_v22  ;;  %v7509_v41 = vmax.f32 %v6535_v9, 0.0  ;;  %v6539_v17 = vadd.f32 %v6538_v57, %v6426_v35  ;;  %v6428_v18 = vadd.f32 %v6427_v14, %v18041_v12  ;;  %v14078_v35 = vld [vmem:[#allocation9 + $0xb0] sm:$0xff]   ;;  %v14064_v12 = vld [vmem:[#allocation9 + $0x28] sm:$0xff]  }
 0x409   : > { %v6429_v43 = vpop.f32.mrf.mxu0  ;;  %v6542_v49 = vpop.f32.mrf.mxu1 }
 0x40a   : > { %18040 = vst [vmem:[#allocation37_spill] sm:$0xff] %v16204_v54  ;;  %v6541_v46 = vadd.f32 %v6540_v59, %v6428_v18  ;;  %v6430_v26 = vadd.f32 %v6429_v43, %v18042_v63  ;;  %v16212_v27 = vpack.c.bf16 %v7509_v41, %v7500_v0  ;;  %v7517_v56 = vmax.f32 %v6539_v17, 0.0  ;;  %v14079_v0 = vld [vmem:[#allocation9 + $0xe8] sm:$0xff]  }
 0x40b   : > { %v6431_v38 = vpop.f32.mrf.mxu0  ;;  %v6544_v10 = vpop.f32.mrf.mxu1  ;;  %v14080_v18 = vld [vmem:[#allocation9 + $0xa8] sm:$0xff]  }
 0x40c   : > { %18045 = vst [vmem:[#allocation38_spill] sm:$0xff] %v16212_v27  ;;  %v6543_v4 = vadd.f32 %v6542_v49, %v6430_v26  ;;  %v6432_v3 = vadd.f32 %v6431_v38, %v18046_v39  ;;  %v7518_v37 = vmax.f32 %v6541_v46, 0.0  ;;  %v14065_v49 = vld [vmem:[#allocation9 + $0x60] sm:$0xff]  }
 0x40d   : > { %v6581_v45 = vpop.f32.mrf.mxu0  ;;  %v14081_v46 = vld [vmem:[#allocation9 + $0xe0] sm:$0xff]  }
 0x40e   : > { %v7526_v48 = vmax.f32 %v6543_v4, 0.0  ;;  %v6545_v5 = vadd.f32 %v6544_v10, %v6432_v3  ;;  %v6582_v28 = vadd.f32 %v6581_v45, %v16210_v62  ;;  %7226 = vmatmul.mubr.bf16.vlgmr.msra.gmra.mxu0 %v18047_v23  ;;  %v6694_v33 = vpop.f32.mrf.mxu1  ;;  %12882 = vmatmul.mubr.bf16.vlgmr.msra.gmra.mxu1 %v18048_v50  ;;  %v18054_v10 = vld [vmem:[#allocation67_spill] sm:$0xff]  ;;  %v18055_v4 = vld [vmem:[#allocation62_spill] sm:$0xff] }
 0x40f   : > { %7233 = vmatprep.mubr.bf16.mxu0 %v18049_v21  ;;  %v6583_v2 = vpop.f32.mrf.mxu0  ;;  %12885 = vmatprep.mubr.bf16.mxu1 %v18050_v40  ;;  %v18056_v3 = vld [vmem:[#allocation70_spill] sm:$0xff] }
 0x410   : > { %v16223_v61 = vpack.c.bf16 %v7526_v48, %v7517_v56  ;;  %v7527_v57 = vmax.f32 %v6545_v5, 0.0  ;;  %v16225_v22 = vadd.f32 %v6694_v33, %v6582_v28  ;;  %v6584_v16 = vadd.f32 %v6583_v2, %v16216_v8  ;;  %12546 = vmatpush3.bf16.msra.mxu1 %v14060_v60  ;;  %v6696_v9 = vpop.f32.mrf.mxu1  ;;  %12610 = vmatpush3.bf16.msra.mxu0 %v14076_v20  ;;  %v14067_v48 = vld [vmem:[#allocation9 + $0x58] sm:$0xff]  }
 0x411   : > { %v6585_v6 = vpop.f32.mrf.mxu0  ;;  %12547 = vmatprep.subr.bf16.mxu1 %v14061_v44  ;;  %12611 = vmatprep.subr.bf16.mxu0 %v14077_v15  ;;  %v14066_v44 = vld [vmem:[#allocation9 + $0x20] sm:$0xff]   ;;  %v14083_v5 = vld [vmem:[#allocation9 + $0xd8] sm:$0xff]  }
 0x412   : > { %18051 = vst [vmem:[#allocation105_spill] sm:$0xff] %v16223_v61  ;;  %v16228_v47 = vadd.f32 %v6696_v9, %v6584_v16  ;;  %v6586_v14 = vadd.f32 %v6585_v6, %v16210_v62  ;;  %v6698_v1 = vpop.f32.mrf.mxu1  ;;  %v16231_v59 = vpack.c.bf16 %v7527_v57, %v7518_v37  ;;  %v14082_v15 = vld [vmem:[#allocation9 + $0xa0] sm:$0xff]   ;;  %v14068_v40 = vld [vmem:[#allocation9 + $0x18] sm:$0xff]   ;;  %v14069_v9 = vld [vmem:[#allocation9 + $0x50] sm:$0xff]  }
 0x413   : > { %v6587_v58 = vpop.f32.mrf.mxu0  ;;  %v14084_v57 = vld [vmem:[#allocation9 + $0x98] sm:$0xff]  }
 0x414   : > { %18052 = vst [vmem:[#allocation49_spill] sm:$0xff] %v16231_v59  ;;  %v16233_v34 = vadd.f32 %v6698_v1, %v6586_v14  ;;  %v6588_v41 = vadd.f32 %v6587_v58, %v16216_v8  ;;  %12548 = vmatpush3.bf16.msra.mxu1 %v14062_v53  ;;  %v6700_v17 = vpop.f32.mrf.mxu1  ;;  %12612 = vmatpush3.bf16.msra.mxu0 %v14078_v35  ;;  %v14085_v53 = vld [vmem:[#allocation9 + $0xd0] sm:$0xff]  }
 0x415   : > { %v6591_v43 = vpop.f32.mrf.mxu0  ;;  %12549 = vmatprep.subr.bf16.mxu1 %v14063_v24  ;;  %12613 = vmatprep.subr.bf16.mxu0 %v14079_v0  ;;  %v18057_v24 = vld [vmem:[#allocation63_spill] sm:$0xff]  ;;  %v18058_v14 = vld [vmem:[#allocation73_spill] sm:$0xff] }
 0x416   : > { %v16236_v63 = vadd.f32 %v6700_v17, %v6588_v41  ;;  %v6592_v26 = vadd.f32 %v6591_v43, %v16210_v62  ;;  %7234 = vmatmul.mubr.bf16.gmra.mxu0 %v18053_v29  ;;  %v6704_v38 = vpop.f32.mrf.mxu1  ;;  %12886 = vmatmul.mubr.bf16.gmra.mxu1 %v18054_v10  ;;  %v18059_v1 = vld [vmem:[#allocation65_spill] sm:$0xff]  ;;  %v18060_v41 = vld [vmem:[#allocation76_spill] sm:$0xff] }
 0x417   : > { %7241 = vmatprep.mubr.bf16.mxu0 %v18055_v4  ;;  %v6593_v39 = vpop.f32.mrf.mxu0  ;;  %12889 = vmatprep.mubr.bf16.mxu1 %v18056_v3  ;;  %v14070_v43 = vld [vmem:[#allocation9 + $0x10] sm:$0xff]   ;;  %v14087_v29 = vld [vmem:[#allocation9 + $0xc8] sm:$0xff]  }
 0x418   : > { %v16243_v60 = vadd.f32 %v6704_v38, %v6592_v26  ;;  %v6594_v20 = vadd.f32 %v6593_v39, %v16216_v8  ;;  %12550 = vmatpush3.bf16.msra.mxu1 %v14064_v12  ;;  %v6706_v45 = vpop.f32.mrf.mxu1  ;;  %12614 = vmatpush3.bf16.msra.mxu0 %v14080_v18  ;;  %v14071_v26 = vld [vmem:[#allocation9 + $0x48] sm:$0xff]  }
 0x419   : > { %v6595_v56 = vpop.f32.mrf.mxu0  ;;  %12551 = vmatprep.subr.bf16.mxu1 %v14065_v49  ;;  %12615 = vmatprep.subr.bf16.mxu0 %v14081_v46  ;;  %v14086_v49 = vld [vmem:[#allocation9 + $0x90] sm:$0xff]  }
 0x41a   : > { %v16246_v28 = vadd.f32 %v6706_v45, %v6594_v20  ;;  %v6596_v23 = vadd.f32 %v6595_v56, %v16210_v62  ;;  %v6708_v33 = vpop.f32.mrf.mxu1 }
 0x41b   : > { %v6597_v50 = vpop.f32.mrf.mxu0 }
 0x41c   : > { %v16249_v37 = vadd.f32 %v6708_v33, %v6596_v23  ;;  %v6598_v21 = vadd.f32 %v6597_v50, %v16216_v8  ;;  %12552 = vmatpush3.bf16.msra.mxu1 %v14066_v44  ;;  %v6710_v2 = vpop.f32.mrf.mxu1  ;;  %12616 = vmatpush3.bf16.msra.mxu0 %v14082_v15  ;;  %v14072_v44 = vld [vmem:[#allocation9 + $0x8] sm:$0xff]   ;;  %v18061_v50 = vld [vmem:[#allocation66_spill] sm:$0xff] }
 0x41d   : > { %v6601_v16 = vpop.f32.mrf.mxu0  ;;  %12553 = vmatprep.subr.bf16.mxu1 %v14067_v48  ;;  %12617 = vmatprep.subr.bf16.mxu0 %v14083_v5  ;;  %v14088_v15 = vld [vmem:[#allocation9 + $0x88] sm:$0xff]   ;;  %v14073_v48 = vld [vmem:[#allocation9 + $0x40] sm:$0xff]  }
 0x41e   : > { %v16252_v35 = vadd.f32 %v6710_v2, %v6598_v21  ;;  %v6602_v6 = vadd.f32 %v6601_v16, %v16210_v62  ;;  %7242 = vmatmul.mubr.bf16.gmra.mxu0 %v18057_v24  ;;  %v6714_v0 = vpop.f32.mrf.mxu1  ;;  %12890 = vmatmul.mubr.bf16.gmra.mxu1 %v18058_v14  ;;  %v14089_v5 = vld [vmem:[#allocation9 + $0xc0] sm:$0xff]   ;;  %v18064_v16 = vld [vmem:[#allocation85_spill] sm:$0xff] }
 0x41f   : > { %7249 = vmatprep.mubr.bf16.mxu0 %v18059_v1  ;;  %v6603_v58 = vpop.f32.mrf.mxu0  ;;  %12893 = vmatprep.mubr.bf16.mxu1 %v18060_v41  ;;  %v18062_v2 = vld [vmem:[#allocation79_spill] sm:$0xff]  ;;  %v14091_v1 = vld [vmem:[#allocation9 + $0x178] sm:$0xff]  }
 0x420   : > { %v16259_v17 = vadd.f32 %v6714_v0, %v6602_v6  ;;  %v6604_v12 = vadd.f32 %v6603_v58, %v16216_v8  ;;  %12554 = vmatpush3.bf16.msra.mxu1 %v14068_v40  ;;  %v6716_v18 = vpop.f32.mrf.mxu1  ;;  %12618 = vmatpush3.bf16.msra.mxu0 %v14084_v57  ;;  %v18063_v40 = vld [vmem:[#allocation68_spill] sm:$0xff]  ;;  %v14074_v24 = vld [vmem:[#allocation9] sm:$0xff]   ;;  %v14107_v58 = vld [vmem:[#allocation9 + $0x1f8] sm:$0xff]  }
 0x421   : > { %v6605_v46 = vpop.f32.mrf.mxu0  ;;  %12555 = vmatprep.subr.bf16.mxu1 %v14069_v9  ;;  %12619 = vmatprep.subr.bf16.mxu0 %v14085_v53  ;;  %v14090_v0 = vld [vmem:[#allocation9 + $0x80] sm:$0xff]  }
 0x422   : > { %v16262_v38 = vadd.f32 %v6716_v18, %v6604_v12  ;;  %v6606_v10 = vadd.f32 %v6605_v46, %v16210_v62  ;;  %v6718_v4 = vpop.f32.mrf.mxu1 }
 0x423   : > { %v6607_v39 = vpop.f32.mrf.mxu0 }
 0x424   : > { %v16265_v3 = vadd.f32 %v6718_v4, %v6606_v10  ;;  %v6608_v20 = vadd.f32 %v6607_v39, %v16216_v8  ;;  %12556 = vmatpush3.bf16.msra.mxu1 %v14070_v43  ;;  %v6720_v45 = vpop.f32.mrf.mxu1  ;;  %12620 = vmatpush3.bf16.msra.mxu0 %v14086_v49  ;;  %v14093_v4 = vld [vmem:[#allocation9 + $0x170] sm:$0xff]  }
 0x425   : > { %v6611_v56 = vpop.f32.mrf.mxu0  ;;  %12557 = vmatprep.subr.bf16.mxu1 %v14071_v26  ;;  %12621 = vmatprep.subr.bf16.mxu0 %v14087_v29  ;;  %v14092_v29 = vld [vmem:[#allocation9 + $0x138] sm:$0xff]  }
 0x426   : > { %v16268_v23 = vadd.f32 %v6720_v45, %v6608_v20  ;;  %v6612_v33 = vadd.f32 %v6611_v56, %v16210_v62  ;;  %7250 = vmatmul.mubr.bf16.gmra.mxu0 %v18061_v50  ;;  %v6724_v21 = vpop.f32.mrf.mxu1  ;;  %12894 = vmatmul.mubr.bf16.gmra.mxu1 %v18062_v2  ;;  %v18065_v45 = vld [vmem:[#allocation69_spill] sm:$0xff]  ;;  %v18067_v56 = vld [vmem:[#allocation84_spill] sm:$0xff]  ;;  %v18068_v50 = vld [vmem:[#allocation87_spill] sm:$0xff] }
 0x427   : > { %7257 = vmatprep.mubr.bf16.mxu0 %v18063_v40  ;;  %v6613_v57 = vpop.f32.mrf.mxu0  ;;  %8218 = vmatprep.mubr.bf16.mxu1 %v18064_v16  ;;  %v14094_v2 = vld [vmem:[#allocation9 + $0x130] sm:$0xff]  }
 0x428   : > { %v16275_v9 = vadd.f32 %v6724_v21, %v6612_v33  ;;  %v6614_v53 = vadd.f32 %v6613_v57, %v16216_v8  ;;  %12558 = vmatpush3.bf16.msra.mxu1 %v14072_v44  ;;  %v6726_v6 = vpop.f32.mrf.mxu1  ;;  %12622 = vmatpush3.bf16.msra.mxu0 %v14088_v15  ;;  %v18066_v15 = vld [vmem:[#allocation71_spill] sm:$0xff] }
 0x429   : > { %v6615_v14 = vpop.f32.mrf.mxu0  ;;  %12559 = vmatprep.subr.bf16.mxu1 %v14073_v48  ;;  %12623 = vmatprep.subr.bf16.mxu0 %v14089_v5  ;;  %v14095_v57 = vld [vmem:[#allocation9 + $0x168] sm:$0xff]  }
 0x42a   : > { %v16278_v41 = vadd.f32 %v6726_v6, %v6614_v53  ;;  %v6616_v12 = vadd.f32 %v6615_v14, %v16210_v62  ;;  %v6728_v18 = vpop.f32.mrf.mxu1 }
 0x42b   : > { %v6617_v43 = vpop.f32.mrf.mxu0 }
 0x42c   : > { %v16281_v49 = vadd.f32 %v6728_v18, %v6616_v12  ;;  %v6618_v46 = vadd.f32 %v6617_v43, %v16216_v8  ;;  %12560 = vmatpush3.bf16.msra.mxu1 %v14074_v24  ;;  %v6730_v26 = vpop.f32.mrf.mxu1  ;;  %12624 = vmatpush3.bf16.msra.mxu0 %v14090_v0  ;;  %v14097_v18 = vld [vmem:[#allocation9 + $0x160] sm:$0xff]  }
 0x42d   : > { %v6621_v10 = vpop.f32.mrf.mxu0  ;;  %12673 = vmatprep.subr.bf16.mxu1 %v14091_v1  ;;  %12737 = vmatprep.subr.bf16.mxu0 %v14107_v58  ;;  %v14096_v58 = vld [vmem:[#allocation9 + $0x128] sm:$0xff]  }
 0x42e   : > { %v16284_v39 = vadd.f32 %v6730_v26, %v6618_v46  ;;  %v6622_v20 = vadd.f32 %v6621_v10, %v16210_v62  ;;  %7258 = vmatmul.mubr.bf16.gmra.mxu0 %v18065_v45  ;;  %v6734_v44 = vpop.f32.mrf.mxu1  ;;  %v18069_v26 = vld [vmem:[#allocation72_spill] sm:$0xff]  ;;  %v18070_v10 = vld [vmem:[#allocation74_spill] sm:$0xff] }
 0x42f   : > { %7265 = vmatprep.mubr.bf16.mxu0 %v18066_v15  ;;  %8219 = vmatmul.mubr.bf16.vlgmr.msra.gmra.mxu1 %v18067_v56  ;;  %v6623_v48 = vpop.f32.mrf.mxu0  ;;  %v18072_v15 = vld [vmem:[#allocation89_spill] sm:$0xff] }
 0x430   : > { %v16290_v5 = vadd.f32 %v6734_v44, %v6622_v20  ;;  %v6624_v33 = vadd.f32 %v6623_v48, %v16216_v8  ;;  %8226 = vmatprep.mubr.bf16.mxu1 %v18068_v50  ;;  %v6736_v21 = vpop.f32.mrf.mxu1  ;;  %12674 = vmatpush3.bf16.msra.mxu1 %v14092_v29  ;;  %v14098_v48 = vld [vmem:[#allocation9 + $0x120] sm:$0xff]   ;;  %v14099_v50 = vld [vmem:[#allocation9 + $0x158] sm:$0xff]  }
 0x431   : > { %v6625_v40 = vpop.f32.mrf.mxu0  ;;  %12675 = vmatprep.subr.bf16.mxu1 %v14093_v4  ;;  %v18071_v4 = vld [vmem:[#allocation86_spill] sm:$0xff] }
 0x432   : > { %v16294_v16 = vadd.f32 %v6736_v21, %v6624_v33  ;;  %v6626_v53 = vadd.f32 %v6625_v40, %v16210_v62  ;;  %v6738_v6 = vpop.f32.mrf.mxu1 }
 0x433   : > { %v6627_v24 = vpop.f32.mrf.mxu0 }
 0x434   : > { %v16297_v0 = vadd.f32 %v6738_v6, %v6626_v53  ;;  %v6628_v14 = vadd.f32 %v6627_v24, %v16216_v8  ;;  %v6740_v1 = vpop.f32.mrf.mxu1  ;;  %12676 = vmatpush3.bf16.msra.mxu1 %v14094_v2 }
 0x435   : > { %v6631_v12 = vpop.f32.mrf.mxu0  ;;  %12677 = vmatprep.subr.bf16.mxu1 %v14095_v57 }
 0x436   : > { %v16300_v43 = vadd.f32 %v6740_v1, %v6628_v14  ;;  %v6632_v46 = vadd.f32 %v6631_v12, %v16210_v62  ;;  %7266 = vmatmul.mubr.bf16.gmra.mxu0 %v18069_v26  ;;  %v6744_v29 = vpop.f32.mrf.mxu1  ;;  %v14100_v14 = vld [vmem:[#allocation9 + $0x118] sm:$0xff]  }
 0x437   : > { %7273 = vmatprep.mubr.bf16.mxu0 %v18070_v10  ;;  %8227 = vmatmul.mubr.bf16.gmra.mxu1 %v18071_v4  ;;  %v6633_v20 = vpop.f32.mrf.mxu0  ;;  %v18075_v10 = vld [vmem:[#allocation88_spill] sm:$0xff] }
 0x438   : > { %v16306_v45 = vadd.f32 %v6744_v29, %v6632_v46  ;;  %v6634_v44 = vadd.f32 %v6633_v20, %v16216_v8  ;;  %8234 = vmatprep.mubr.bf16.mxu1 %v18072_v15  ;;  %v6746_v56 = vpop.f32.mrf.mxu1  ;;  %12678 = vmatpush3.bf16.msra.mxu1 %v14096_v58  ;;  %v14101_v58 = vld [vmem:[#allocation9 + $0x150] sm:$0xff]   ;;  %v18073_v46 = vld [vmem:[#allocation75_spill] sm:$0xff] }
 0x439   : > { %v6635_v33 = vpop.f32.mrf.mxu0  ;;  %12679 = vmatprep.subr.bf16.mxu1 %v14097_v18  ;;  %v18074_v29 = vld [vmem:[#allocation77_spill] sm:$0xff]  ;;  %v18076_v15 = vld [vmem:[#allocation40_spill] sm:$0xff] }
 0x43a   : > { %v16310_v21 = vadd.f32 %v6746_v56, %v6634_v44  ;;  %v6636_v2 = vadd.f32 %v6635_v33, %v16210_v62  ;;  %v6748_v40 = vpop.f32.mrf.mxu1 }
 0x43b   : > { %v6637_v57 = vpop.f32.mrf.mxu0 }
 0x43c   : > { %v16313_v53 = vadd.f32 %v6748_v40, %v6636_v2  ;;  %v6638_v6 = vadd.f32 %v6637_v57, %v16216_v8  ;;  %v6750_v24 = vpop.f32.mrf.mxu1  ;;  %12680 = vmatpush3.bf16.msra.mxu1 %v14098_v48  ;;  %v14102_v48 = vld [vmem:[#allocation9 + $0x110] sm:$0xff]  }
 0x43d   : > { %v6641_v1 = vpop.f32.mrf.mxu0  ;;  %12681 = vmatprep.subr.bf16.mxu1 %v14099_v50  ;;  %v14103_v50 = vld [vmem:[#allocation9 + $0x148] sm:$0xff]  }
 0x43e   : > { %v16316_v12 = vadd.f32 %v6750_v24, %v6638_v6  ;;  %v6642_v18 = vadd.f32 %v6641_v1, %v16210_v62  ;;  %7274 = vmatmul.mubr.bf16.gmra.mxu0 %v18073_v46  ;;  %v6754_v26 = vpop.f32.mrf.mxu1  ;;  %v14104_v46 = vld [vmem:[#allocation9 + $0x108] sm:$0xff]  }
 0x43f   : > { %7281 = vmatprep.mubr.bf16.mxu0 %v18074_v29  ;;  %8235 = vmatmul.mubr.bf16.gmra.mxu1 %v18075_v10  ;;  %v6643_v4 = vpop.f32.mrf.mxu0  ;;  %v18077_v10 = vld [vmem:[#allocation78_spill] sm:$0xff] }
 0x440   : > { %v16322_v20 = vadd.f32 %v6754_v26, %v6642_v18  ;;  %v6644_v44 = vadd.f32 %v6643_v4, %v16216_v8  ;;  %8242 = vmatprep.mubr.bf16.mxu1 %v18076_v15  ;;  %v6756_v56 = vpop.f32.mrf.mxu1  ;;  %12682 = vmatpush3.bf16.msra.mxu1 %v14100_v14  ;;  %v14105_v14 = vld [vmem:[#allocation9 + $0x140] sm:$0xff]  }
 0x441   : > { %v6645_v33 = vpop.f32.mrf.mxu0  ;;  %12683 = vmatprep.subr.bf16.mxu1 %v14101_v58  ;;  %v18079_v15 = vld [vmem:[#allocation98_spill] sm:$0xff] }
 0x442   : > { %v16326_v2 = vadd.f32 %v6756_v56, %v6644_v44  ;;  %v6646_v40 = vadd.f32 %v6645_v33, %v16210_v62  ;;  %v6758_v57 = vpop.f32.mrf.mxu1  ;;  %v18078_v44 = vld [vmem:[#allocation80_spill] sm:$0xff] }
 0x443   : > { %v6647_v6 = vpop.f32.mrf.mxu0 }
 0x444   : > { %v16329_v24 = vadd.f32 %v6758_v57, %v6646_v40  ;;  %v6648_v1 = vadd.f32 %v6647_v6, %v16216_v8  ;;  %v6760_v18 = vpop.f32.mrf.mxu1  ;;  %12684 = vmatpush3.bf16.msra.mxu1 %v14102_v48  ;;  %v18080_v40 = vld [vmem:[#allocation39_spill] sm:$0xff] }
 0x445   : > { %v6651_v26 = vpop.f32.mrf.mxu0  ;;  %12685 = vmatprep.subr.bf16.mxu1 %v14103_v50  ;;  %v14106_v57 = vld [vmem:[#allocation9 + $0x100] sm:$0xff]  }
 0x446   : > { %v16332_v29 = vadd.f32 %v6760_v18, %v6648_v1  ;;  %v6652_v58 = vadd.f32 %v6651_v26, %v16210_v62  ;;  %7282 = vmatmul.mubr.bf16.gmra.mxu0 %v18077_v10  ;;  %v6764_v4 = vpop.f32.mrf.mxu1  ;;  %v16342_v1 = vld [vmem:[#allocation9 + $0x238] sm:$0xff]  }
 0x447   : > { %8243 = vmatmul.mubr.bf16.gmra.mxu1 %v18078_v44  ;;  %8315 = vmatprep.mubr.bf16.mxu0 %v18079_v15  ;;  %v6653_v56 = vpop.f32.mrf.mxu0 }
 0x448   : > { %v16338_v33 = vadd.f32 %v6764_v4, %v6652_v58  ;;  %v6654_v48 = vadd.f32 %v6653_v56, %v16216_v8  ;;  %8250 = vmatprep.mubr.bf16.mxu1 %v18080_v40  ;;  %v6766_v50 = vpop.f32.mrf.mxu1  ;;  %12686 = vmatpush3.bf16.msra.mxu1 %v14104_v46  ;;  %v14108_v56 = vld [vmem:[#allocation9 + $0x1b8] sm:$0xff]   ;;  %v14109_v40 = vld [vmem:[#allocation9 + $0x1f0] sm:$0xff]  }
 0x449   : > { %v6655_v6 = vpop.f32.mrf.mxu0  ;;  %12687 = vmatprep.subr.bf16.mxu1 %v14105_v14 }
 0x44a   : > { %v16344_v18 = vadd.f32 %v6766_v50, %v6654_v48  ;;  %v6656_v26 = vadd.f32 %v6655_v6, %v16210_v62  ;;  %v6768_v10 = vpop.f32.mrf.mxu1  ;;  %v18082_v50 = vld [vmem:[#allocation42_spill] sm:$0xff]  ;;  %v18083_v6 = vld [vmem:[#allocation100_spill] sm:$0xff] }
 0x44b   : > { %v6657_v44 = vpop.f32.mrf.mxu0 }
 0x44c   : > { %v16347_v15 = vadd.f32 %v6768_v10, %v6656_v26  ;;  %v6658_v58 = vadd.f32 %v6657_v44, %v16216_v8  ;;  %v6770_v4 = vpop.f32.mrf.mxu1  ;;  %12688 = vmatpush3.bf16.msra.mxu1 %v14106_v57  ;;  %v18084_v8 = vld [vmem:[#allocation43_spill] sm:$0xff]  ;;  %v14110_v10 = vld [vmem:[#allocation9 + $0x1b0] sm:$0xff]  }
 0x44d   : > { %12897 = vmatprep.subr.bf16.mxu1 %v16342_v1 }
 0x44e   : > { %v16351_v46 = vadd.f32 %v6770_v4, %v6658_v58  ;;  %v6807_v14 = vpop.f32.mrf.mxu0  ;;  %8316 = vmatmul.mubr.bf16.vlgmr.msra.gmra.mxu0 %v18081_v7  ;;  %v6920_v48 = vpop.f32.mrf.mxu1  ;;  %v14111_v58 = vld [vmem:[#allocation9 + $0x1e8] sm:$0xff]  }
 0x44f   : > { %v6808_v62 = vadd.f32 %v6807_v14, %v16225_v22  ;;  %8251 = vmatmul.mubr.bf16.gmra.mxu1 %v18082_v50  ;;  %8323 = vmatprep.mubr.bf16.mxu0 %v18083_v6  ;;  %v14112_v50 = vld [vmem:[#allocation9 + $0x1a8] sm:$0xff]  }
 0x450   : > { %v6809_v26 = vpop.f32.mrf.mxu0  ;;  %8258 = vmatprep.mubr.bf16.mxu1 %v18084_v8  ;;  %v6922_v57 = vpop.f32.mrf.mxu1  ;;  %12738 = vmatpush3.bf16.msra.mxu0 %v14108_v56  ;;  %v14113_v56 = vld [vmem:[#allocation9 + $0x1e0] sm:$0xff]  }
 0x451   : > { %v6810_v44 = vadd.f32 %v6809_v26, %v16228_v47  ;;  %12739 = vmatprep.subr.bf16.mxu0 %v14109_v40  ;;  %v6921_v7 = vadd.f32 %v6920_v48, %v6808_v62  ;;  %v18087_v62 = vld [vmem:[#allocation102_spill] sm:$0xff] }
 0x452   : > { %v6811_v4 = vpop.f32.mrf.mxu0  ;;  %v6924_v61 = vpop.f32.mrf.mxu1 }
 0x453   : > { %v6812_v59 = vadd.f32 %v6811_v4, %v16233_v34  ;;  %v6923_v6 = vadd.f32 %v6922_v57, %v6810_v44  ;;  %v7393_v40 = vmax.f32 %v6921_v7, 0.0  ;;  %v18086_v34 = vld [vmem:[#allocation81_spill] sm:$0xff]  ;;  %v18088_v57 = vld [vmem:[#allocation44_spill] sm:$0xff] }
 0x454   : > { %v6813_v22 = vpop.f32.mrf.mxu0  ;;  %v6926_v14 = vpop.f32.mrf.mxu1  ;;  %12740 = vmatpush3.bf16.msra.mxu0 %v14110_v10 }
 0x455   : > { %v6925_v54 = vadd.f32 %v6924_v61, %v6812_v59  ;;  %v6814_v8 = vadd.f32 %v6813_v22, %v16236_v63  ;;  %12741 = vmatprep.subr.bf16.mxu0 %v14111_v58  ;;  %v14114_v59 = vld [vmem:[#allocation9 + $0x1a0] sm:$0xff]   ;;  %v7394_v63 = vmax.f32 %v6923_v6, 0.0 }
 0x456   : > { %v6817_v27 = vpop.f32.mrf.mxu0  ;;  %8324 = vmatmul.mubr.bf16.gmra.mxu0 %v18085_v32  ;;  %v6930_v47 = vpop.f32.mrf.mxu1 }
 0x457   : > { %v7402_v26 = vmax.f32 %v6925_v54, 0.0  ;;  %v6927_v25 = vadd.f32 %v6926_v14, %v6814_v8  ;;  %v6818_v48 = vadd.f32 %v6817_v27, %v16243_v60  ;;  %8259 = vmatmul.mubr.bf16.gmra.mxu1 %v18086_v34  ;;  %8331 = vmatprep.mubr.bf16.mxu0 %v18087_v62  ;;  %v14115_v54 = vld [vmem:[#allocation9 + $0x1d8] sm:$0xff]  }
 0x458   : > { %v6819_v10 = vpop.f32.mrf.mxu0  ;;  %8266 = vmatprep.mubr.bf16.mxu1 %v18088_v57  ;;  %v6932_v61 = vpop.f32.mrf.mxu1  ;;  %12742 = vmatpush3.bf16.msra.mxu0 %v14112_v50  ;;  %v14116_v50 = vld [vmem:[#allocation9 + $0x198] sm:$0xff]   ;;  %v18091_v57 = vld [vmem:[#allocation104_spill] sm:$0xff] }
 0x459   : > { %v16366_v44 = vpack.c.bf16 %v7402_v26, %v7393_v40  ;;  %v7403_v32 = vmax.f32 %v6927_v25, 0.0  ;;  %v6820_v58 = vadd.f32 %v6819_v10, %v16246_v28  ;;  %12743 = vmatprep.subr.bf16.mxu0 %v14113_v56  ;;  %v6931_v60 = vadd.f32 %v6930_v47, %v6818_v48  ;;  %v14117_v25 = vld [vmem:[#allocation9 + $0x1d0] sm:$0xff]   ;;  %v18090_v10 = vld [vmem:[#allocation82_spill] sm:$0xff] }
 0x45a   : > { %v6821_v4 = vpop.f32.mrf.mxu0  ;;  %v6934_v27 = vpop.f32.mrf.mxu1  ;;  %v18089_v56 = vld [vmem:[#allocation101_spill] sm:$0xff] }
 0x45b   : > { %v6822_v7 = vadd.f32 %v6821_v4, %v16249_v37  ;;  %v16370_v22 = vpack.c.bf16 %v7403_v32, %v7394_v63  ;;  %v6933_v34 = vadd.f32 %v6932_v61, %v6820_v58  ;;  %v7411_v62 = vmax.f32 %v6931_v60, 0.0  ;;  %v18092_v61 = vld [vmem:[#allocation83_spill] sm:$0xff] }
 0x45c   : > { %v6823_v14 = vpop.f32.mrf.mxu0  ;;  %v6936_v8 = vpop.f32.mrf.mxu1  ;;  %12744 = vmatpush3.bf16.msra.mxu0 %v14114_v59 }
 0x45d   : > { %v6935_v6 = vadd.f32 %v6934_v27, %v6822_v7  ;;  %v6824_v40 = vadd.f32 %v6823_v14, %v16252_v35  ;;  %12745 = vmatprep.subr.bf16.mxu0 %v14115_v54  ;;  %v14118_v35 = vld [vmem:[#allocation9 + $0x190] sm:$0xff]   ;;  %v7412_v32 = vmax.f32 %v6933_v34, 0.0  ;;  %v14119_v27 = vld [vmem:[#allocation9 + $0x1c8] sm:$0xff]  }
 0x45e   : > { %v6827_v28 = vpop.f32.mrf.mxu0  ;;  %8332 = vmatmul.mubr.bf16.gmra.mxu0 %v18089_v56  ;;  %v6940_v26 = vpop.f32.mrf.mxu1 }
 0x45f   : > { %v7420_v47 = vmax.f32 %v6935_v6, 0.0  ;;  %v6937_v48 = vadd.f32 %v6936_v8, %v6824_v40  ;;  %v6828_v37 = vadd.f32 %v6827_v28, %v16259_v17  ;;  %8267 = vmatmul.mubr.bf16.gmra.mxu1 %v18090_v10  ;;  %8339 = vmatprep.mubr.bf16.mxu0 %v18091_v57  ;;  %v18094_v10 = vld [vmem:[#allocation46_spill] sm:$0xff] }
 0x460   : > { %v6829_v59 = vpop.f32.mrf.mxu0  ;;  %8274 = vmatprep.mubr.bf16.mxu1 %v18092_v61  ;;  %v6942_v63 = vpop.f32.mrf.mxu1  ;;  %12746 = vmatpush3.bf16.msra.mxu0 %v14116_v50  ;;  %v14120_v50 = vld [vmem:[#allocation9 + $0x188] sm:$0xff]   ;;  %v18095_v57 = vld [vmem:[#allocation90_spill] sm:$0xff] }
 0x461   : > { %v16378_v58 = vpack.c.bf16 %v7420_v47, %v7411_v62  ;;  %v7421_v54 = vmax.f32 %v6937_v48, 0.0  ;;  %v6830_v4 = vadd.f32 %v6829_v59, %v16262_v38  ;;  %12747 = vmatprep.subr.bf16.mxu0 %v14117_v25  ;;  %v6941_v7 = vadd.f32 %v6940_v26, %v6828_v37  ;;  %v14121_v62 = vld [vmem:[#allocation9 + $0x1c0] sm:$0xff]  }
 0x462   : > { %v6831_v60 = vpop.f32.mrf.mxu0  ;;  %v6944_v17 = vpop.f32.mrf.mxu1  ;;  %v18093_v25 = vld [vmem:[#allocation103_spill] sm:$0xff] }
 0x463   : > { %v6832_v14 = vadd.f32 %v6831_v60, %v16265_v3  ;;  %v16382_v8 = vpack.c.bf16 %v7421_v54, %v7412_v32  ;;  %v6943_v28 = vadd.f32 %v6942_v63, %v6830_v4  ;;  %v7429_v48 = vmax.f32 %v6941_v7, 0.0 }
 0x464   : > { %v6833_v6 = vpop.f32.mrf.mxu0  ;;  %v6946_v40 = vpop.f32.mrf.mxu1  ;;  %12748 = vmatpush3.bf16.msra.mxu0 %v14118_v35 }
 0x465   : > { %v6945_v34 = vadd.f32 %v6944_v17, %v6832_v14  ;;  %v6834_v56 = vadd.f32 %v6833_v6, %v16268_v23  ;;  %12749 = vmatprep.subr.bf16.mxu0 %v14119_v27  ;;  %v14122_v23 = vld [vmem:[#allocation9 + $0x180] sm:$0xff]   ;;  %v7430_v63 = vmax.f32 %v6943_v28, 0.0 }
 0x466   : > { %v6837_v38 = vpop.f32.mrf.mxu0  ;;  %8340 = vmatmul.mubr.bf16.gmra.mxu0 %v18093_v25  ;;  %v6950_v47 = vpop.f32.mrf.mxu1 }
 0x467   : > { %v7438_v26 = vmax.f32 %v6945_v34, 0.0  ;;  %v6947_v37 = vadd.f32 %v6946_v40, %v6834_v56  ;;  %v6838_v3 = vadd.f32 %v6837_v38, %v16275_v9  ;;  %8275 = vmatmul.mubr.bf16.gmra.mxu1 %v18094_v10  ;;  %8347 = vmatprep.mubr.bf16.mxu0 %v18095_v57  ;;  %v18096_v34 = vld [vmem:[#allocation41_spill] sm:$0xff]  ;;  %v14125_v10 = vld [vmem:[#allocation9 + $0x228] sm:$0xff]  }
 0x468   : > { %v6839_v59 = vpop.f32.mrf.mxu0  ;;  %8412 = vmatprep.mubr.bf16.mxu1 %v16135_v11  ;;  %v6952_v61 = vpop.f32.mrf.mxu1  ;;  %12750 = vmatpush3.bf16.msra.mxu0 %v14120_v50  ;;  %v14124_v50 = vld [vmem:[#allocation9 + $0x230] sm:$0xff]  }
 0x469   : > { %v16390_v35 = vpack.c.bf16 %v7438_v26, %v7429_v48  ;;  %v7439_v32 = vmax.f32 %v6947_v37, 0.0  ;;  %v6840_v54 = vadd.f32 %v6839_v59, %v16278_v41  ;;  %12751 = vmatprep.subr.bf16.mxu0 %v14121_v62  ;;  %v6951_v9 = vadd.f32 %v6950_v47, %v6838_v3 }
 0x46a   : > { %v6841_v4 = vpop.f32.mrf.mxu0  ;;  %v6954_v27 = vpop.f32.mrf.mxu1 }
 0x46b   : > { %v6842_v60 = vadd.f32 %v6841_v4, %v16281_v49  ;;  %v16394_v17 = vpack.c.bf16 %v7439_v32, %v7430_v63  ;;  %v6953_v11 = vadd.f32 %v6952_v61, %v6840_v54  ;;  %v7447_v56 = vmax.f32 %v6951_v9, 0.0  ;;  %v18097_v49 = vld [vmem:[#allocation91_spill] sm:$0xff] }
 0x46c   : > { %v6843_v7 = vpop.f32.mrf.mxu0  ;;  %v6956_v14 = vpop.f32.mrf.mxu1  ;;  %12752 = vmatpush3.bf16.msra.mxu0 %v14122_v23  ;;  %v14126_v54 = vld [vmem:[#allocation9 + $0x220] sm:$0xff]  }
 0x46d   : > { %v6955_v6 = vadd.f32 %v6954_v27, %v6842_v60  ;;  %v6844_v40 = vadd.f32 %v6843_v7, %v16284_v39  ;;  %v7448_v39 = vmax.f32 %v6953_v11, 0.0 }
 0x46e   : > { %v6847_v28 = vpop.f32.mrf.mxu0  ;;  %8348 = vmatmul.mubr.bf16.gmra.mxu0 %v18096_v34  ;;  %v6960_v41 = vpop.f32.mrf.mxu1  ;;  %v14127_v34 = vld [vmem:[#allocation9 + $0x218] sm:$0xff]  }
 0x46f   : > { %v7456_v62 = vmax.f32 %v6955_v6, 0.0  ;;  %v6957_v38 = vadd.f32 %v6956_v14, %v6844_v40  ;;  %v6848_v25 = vadd.f32 %v6847_v28, %v16290_v5  ;;  %8355 = vmatprep.mubr.bf16.mxu0 %v18097_v49  ;;  %8413 = vmatmul.mubr.bf16.vlgmr.msra.gmra.mxu1 %v16131_v19  ;;  %v18099_v14 = vld [vmem:[#allocation94_spill] sm:$0xff] }
 0x470   : > { %v6849_v47 = vpop.f32.mrf.mxu0  ;;  %8420 = vmatprep.mubr.bf16.mxu1 %v16147_v36  ;;  %v6962_v48 = vpop.f32.mrf.mxu1  ;;  %12898 = vmatpush3.bf16.msra.mxu1 %v16342_v1 }
 0x471   : > { %v16403_v26 = vpack.c.bf16 %v7456_v62, %v7447_v56  ;;  %v7457_v37 = vmax.f32 %v6957_v38, 0.0  ;;  %v6850_v3 = vadd.f32 %v6849_v47, %v16294_v16  ;;  %12899 = vmatprep.subr.bf16.mxu1 %v14124_v50  ;;  %v6961_v59 = vadd.f32 %v6960_v41, %v6848_v25  ;;  %v18098_v16 = vld [vmem:[#allocation47_spill] sm:$0xff] }
 0x472   : > { %v6851_v57 = vpop.f32.mrf.mxu0  ;;  %v6964_v5 = vpop.f32.mrf.mxu1 }
 0x473   : > { %v6852_v61 = vadd.f32 %v6851_v57, %v16297_v0  ;;  %v16407_v19 = vpack.c.bf16 %v7457_v37, %v7448_v39  ;;  %v6963_v63 = vadd.f32 %v6962_v48, %v6850_v3  ;;  %v7465_v9 = vmax.f32 %v6961_v59, 0.0  ;;  %v14128_v48 = vld [vmem:[#allocation9 + $0x210] sm:$0xff]  }
 0x474   : > { %v6853_v23 = vpop.f32.mrf.mxu0  ;;  %v6966_v36 = vpop.f32.mrf.mxu1  ;;  %12900 = vmatpush3.bf16.msra.mxu1 %v14124_v50 }
 0x475   : > { %v6965_v1 = vadd.f32 %v6964_v5, %v6852_v61  ;;  %v6854_v32 = vadd.f32 %v6853_v23, %v16300_v43  ;;  %12901 = vmatprep.subr.bf16.mxu1 %v14125_v10  ;;  %v7466_v43 = vmax.f32 %v6963_v63, 0.0  ;;  %v18101_v5 = vld [vmem:[#allocation96_spill] sm:$0xff] }
 0x476   : > { %v6857_v4 = vpop.f32.mrf.mxu0  ;;  %8356 = vmatmul.mubr.bf16.gmra.mxu0 %v18098_v16  ;;  %v6970_v27 = vpop.f32.mrf.mxu1 }
 0x477   : > { %v7474_v60 = vmax.f32 %v6965_v1, 0.0  ;;  %v6967_v7 = vadd.f32 %v6966_v36, %v6854_v32  ;;  %v6858_v0 = vadd.f32 %v6857_v4, %v16306_v45  ;;  %8363 = vmatprep.mubr.bf16.mxu0 %v18099_v14  ;;  %8421 = vmatmul.mubr.bf16.gmra.mxu1 %v16143_v31  ;;  %v14129_v1 = vld [vmem:[#allocation9 + $0x208] sm:$0xff]  }
 0x478   : > { %v6859_v11 = vpop.f32.mrf.mxu0  ;;  %8428 = vmatprep.mubr.bf16.mxu1 %v16159_v13  ;;  %v6972_v6 = vpop.f32.mrf.mxu1  ;;  %12902 = vmatpush3.bf16.msra.mxu1 %v14125_v10 }
 0x479   : > { %v16415_v40 = vpack.c.bf16 %v7474_v60, %v7465_v9  ;;  %v7475_v50 = vmax.f32 %v6967_v7, 0.0  ;;  %v6860_v28 = vadd.f32 %v6859_v11, %v16310_v21  ;;  %12903 = vmatprep.subr.bf16.mxu1 %v14126_v54  ;;  %v6971_v45 = vadd.f32 %v6970_v27, %v6858_v0  ;;  %v18100_v21 = vld [vmem:[#allocation92_spill] sm:$0xff]  ;;  %v14130_v7 = vld [vmem:[#allocation9 + $0x200] sm:$0xff]  }
 0x47a   : > { %v6861_v41 = vpop.f32.mrf.mxu0  ;;  %v6974_v56 = vpop.f32.mrf.mxu1 }
 0x47b   : > { %v6862_v62 = vadd.f32 %v6861_v41, %v16313_v53  ;;  %v16419_v38 = vpack.c.bf16 %v7475_v50, %v7466_v43  ;;  %v6973_v13 = vadd.f32 %v6972_v6, %v6860_v28  ;;  %v7483_v3 = vmax.f32 %v6971_v45, 0.0 }
 0x47c   : > { %v6863_v31 = vpop.f32.mrf.mxu0  ;;  %v6976_v25 = vpop.f32.mrf.mxu1  ;;  %12904 = vmatpush3.bf16.msra.mxu1 %v14126_v54 }
 0x47d   : > { %v6975_v49 = vadd.f32 %v6974_v56, %v6862_v62  ;;  %v6864_v47 = vadd.f32 %v6863_v31, %v16316_v12  ;;  %12905 = vmatprep.subr.bf16.mxu1 %v14127_v34  ;;  %v7484_v12 = vmax.f32 %v6973_v13, 0.0 }
 0x47e   : > { %v6867_v39 = vpop.f32.mrf.mxu0  ;;  %8364 = vmatmul.mubr.bf16.gmra.mxu0 %v18100_v21  ;;  %v6980_v37 = vpop.f32.mrf.mxu1 }
 0x47f   : > { %v7492_v10 = vmax.f32 %v6975_v49, 0.0  ;;  %v6977_v57 = vadd.f32 %v6976_v25, %v6864_v47  ;;  %v6868_v53 = vadd.f32 %v6867_v39, %v16322_v20  ;;  %8371 = vmatprep.mubr.bf16.mxu0 %v18101_v5  ;;  %8429 = vmatmul.mubr.bf16.gmra.mxu1 %v16155_v51 }
 0x480   : > { %v6869_v59 = vpop.f32.mrf.mxu0  ;;  %8436 = vmatprep.mubr.bf16.mxu1 %v16171_v55  ;;  %v6982_v61 = vpop.f32.mrf.mxu1  ;;  %12906 = vmatpush3.bf16.msra.mxu1 %v14127_v34 }
 0x481   : > { %v16427_v23 = vpack.c.bf16 %v7492_v10, %v7483_v3  ;;  %v7493_v36 = vmax.f32 %v6977_v57, 0.0  ;;  %v6870_v63 = vadd.f32 %v6869_v59, %v16326_v2  ;;  %12907 = vmatprep.subr.bf16.mxu1 %v14128_v48  ;;  %v6981_v20 = vadd.f32 %v6980_v37, %v6868_v53  ;;  %v18102_v2 = vld [vmem:[#allocation95_spill] sm:$0xff]  ;;  %v16449_v37 = vld [vmem:[#allocation7 + $0x8] ss:$0 sm:$0xff]  ;;  %v18103_v10 = vld [vmem:[#allocation33_spill] sm:$0xff] }
 0x482   : > { %v6871_v32 = vpop.f32.mrf.mxu0  ;;  %v6984_v54 = vpop.f32.mrf.mxu1 }
 0x483   : > { %v6872_v4 = vadd.f32 %v6871_v32, %v16329_v24  ;;  %v16431_v16 = vpack.c.bf16 %v7493_v36, %v7484_v12  ;;  %v6983_v55 = vadd.f32 %v6982_v61, %v6870_v63  ;;  %v7501_v11 = vmax.f32 %v6981_v20, 0.0 }
 0x484   : > { %v6873_v51 = vpop.f32.mrf.mxu0  ;;  %v6986_v27 = vpop.f32.mrf.mxu1  ;;  %12908 = vmatpush3.bf16.msra.mxu1 %v14128_v48 }
 0x485   : > { %v6985_v9 = vadd.f32 %v6984_v54, %v6872_v4  ;;  %v6874_v60 = vadd.f32 %v6873_v51, %v16332_v29  ;;  %12909 = vmatprep.subr.bf16.mxu1 %v14129_v1  ;;  %v7502_v29 = vmax.f32 %v6983_v55, 0.0  ;;  %v18104_v54 = vld [vmem:[#allocation36_spill] sm:$0xff]  ;;  %v18105_v4 = vld [vmem:[#allocation38_spill] sm:$0xff] }
 0x486   : > { %v6877_v0 = vpop.f32.mrf.mxu0  ;;  %8372 = vmatmul.mubr.bf16.gmra.mxu0 %v18102_v2  ;;  %v6990_v14 = vpop.f32.mrf.mxu1 }
 0x487   : > { %v7510_v6 = vmax.f32 %v6985_v9, 0.0  ;;  %v6987_v43 = vadd.f32 %v6986_v27, %v6874_v60  ;;  %v6878_v24 = vadd.f32 %v6877_v0, %v16338_v33  ;;  %8437 = vmatmul.mubr.bf16.gmra.mxu1 %v16167_v30  ;;  %8509 = vmatprep.mubr.bf16.mxu0 %v16370_v22 }
 0x488   : > { %v6879_v50 = vpop.f32.mrf.mxu0  ;;  %8444 = vmatprep.mubr.bf16.mxu1 %v16183_v42  ;;  %v6992_v28 = vpop.f32.mrf.mxu1  ;;  %12910 = vmatpush3.bf16.msra.mxu1 %v14129_v1 }
 0x489   : > { %v16439_v34 = vpack.c.bf16 %v7510_v6, %v7501_v11  ;;  %v7511_v41 = vmax.f32 %v6987_v43, 0.0  ;;  %v6880_v56 = vadd.f32 %v6879_v50, %v16344_v18  ;;  %12911 = vmatprep.subr.bf16.mxu1 %v14130_v7  ;;  %v6991_v31 = vadd.f32 %v6990_v14, %v6878_v24  ;;  %v18106_v11 = vld [vmem:[#allocation37_spill] sm:$0xff] }
 0x48a   : > { %v6881_v45 = vpop.f32.mrf.mxu0  ;;  %v6994_v62 = vpop.f32.mrf.mxu1  ;;  %v18107_v43 = vld [vmem:[#allocation49_spill] sm:$0xff] }
 0x48b   : > { %v6882_v33 = vadd.f32 %v6881_v45, %v16347_v15  ;;  %v16443_v30 = vpack.c.bf16 %v7511_v41, %v7502_v29  ;;  %v6993_v22 = vadd.f32 %v6992_v28, %v6880_v56  ;;  %v7519_v18 = vmax.f32 %v6991_v31, 0.0 }
 0x48c   : > { %v6883_v25 = vpop.f32.mrf.mxu0  ;;  %v6996_v13 = vpop.f32.mrf.mxu1  ;;  %12912 = vmatpush3.bf16.msra.mxu1 %v14130_v7 }
 0x48d   : > { %v6995_v42 = vadd.f32 %v6994_v62, %v6882_v33  ;;  %v6884_v49 = vadd.f32 %v6883_v25, %v16351_v46  ;;  %v7520_v15 = vmax.f32 %v6993_v22, 0.0  ;;  %v18108_v33 = vld [vmem:[#allocation105_spill] sm:$0xff] }
 0x48e   : > { %v12353_v47 = vpop.f32.mrf.mxu0  ;;  %8510 = vmatmul.mubr.bf16.vlgmr.msra.gmra.mxu0 %v16366_v44  ;;  %v12417_v48 = vpop.f32.mrf.mxu1 }
 0x48f   : > { %v7528_v39 = vmax.f32 %v6995_v42, 0.0  ;;  %v6997_v21 = vadd.f32 %v6996_v13, %v6884_v49  ;;  %8445 = vmatmul.mubr.bf16.gmra.mxu1 %v16179_v52  ;;  %8517 = vmatprep.mubr.bf16.mxu0 %v16382_v8 }
 0x490   : > { %v12354_v3 = vpop.f32.mrf.mxu0  ;;  %8452 = vmatprep.mubr.bf16.mxu1 %v18103_v10  ;;  %v12418_v57 = vpop.f32.mrf.mxu1 }
 0x491   : > { %v16452_v53 = vpack.c.bf16 %v7528_v39, %v7519_v18  ;;  %v7529_v46 = vmax.f32 %v6997_v21, 0.0  ;;  %v12355_v5 = vadd.f32 %v12354_v3, %v12353_v47  ;;  %v12419_v44 = vadd.f32 %v12418_v57, %v12417_v48 }
 0x492   : > { %v16454_v59 = vpop.f32.mrf.mxu0  ;;  %v16456_v61 = vpop.f32.mrf.mxu1 }
 0x493   : > { %v7034_v52 = vadd.f32 %v12355_v5, %v16449_v37  ;;  %v16459_v12 = vpack.c.bf16 %v7529_v46, %v7520_v15 }
 0x494   : > { %v16461_v8 = vpop.f32.mrf.mxu0  ;;  %v16463_v36 = vpop.f32.mrf.mxu1 }
 0x495   : > { %v16465_v63 = vadd.f32 %v12419_v44, %v7034_v52 }
 0x496   : > { %v12359_v1 = vpop.f32.mrf.mxu0  ;;  %8518 = vmatmul.mubr.bf16.gmra.mxu0 %v16378_v58  ;;  %v12423_v32 = vpop.f32.mrf.mxu1 }
 0x497   : > { %8453 = vmatmul.mubr.bf16.gmra.mxu1 %v18104_v54  ;;  %8525 = vmatprep.mubr.bf16.mxu0 %v16394_v17 }
 0x498   : > { %v12360_v20 = vpop.f32.mrf.mxu0  ;;  %8460 = vmatprep.mubr.bf16.mxu1 %v18105_v4  ;;  %v12424_v51 = vpop.f32.mrf.mxu1 }
 0x499   : > { %v12361_v27 = vadd.f32 %v12360_v20, %v12359_v1  ;;  %v12425_v55 = vadd.f32 %v12424_v51, %v12423_v32 }
 0x49a   : > { %v16471_v9 = vpop.f32.mrf.mxu0  ;;  %v16473_v60 = vpop.f32.mrf.mxu1 }
 0x49b   : > { %v7042_v7 = vadd.f32 %v12361_v27, %v16449_v37 }
 0x49c   : > { %v16476_v0 = vpop.f32.mrf.mxu0  ;;  %v16478_v58 = vpop.f32.mrf.mxu1 }
 0x49d   : > { %v16480_v2 = vadd.f32 %v12425_v55, %v7042_v7 }
 0x49e   : > { %v12365_v14 = vpop.f32.mrf.mxu0  ;;  %8526 = vmatmul.mubr.bf16.gmra.mxu0 %v16390_v35  ;;  %v12429_v17 = vpop.f32.mrf.mxu1 }
 0x49f   : > { %8461 = vmatmul.mubr.bf16.gmra.mxu1 %v18106_v11  ;;  %8533 = vmatprep.mubr.bf16.mxu0 %v16407_v19 }
 0x4a0   : > { %v12366_v6 = vpop.f32.mrf.mxu0  ;;  %8468 = vmatprep.mubr.bf16.mxu1 %v18107_v43  ;;  %v12430_v24 = vpop.f32.mrf.mxu1 }
 0x4a1   : > { %v12367_v50 = vadd.f32 %v12366_v6, %v12365_v14  ;;  %v12431_v28 = vadd.f32 %v12430_v24, %v12429_v17 }
 0x4a2   : > { %v16486_v29 = vpop.f32.mrf.mxu0  ;;  %v16488_v41 = vpop.f32.mrf.mxu1 }
 0x4a3   : > { %v7050_v56 = vadd.f32 %v12367_v50, %v16449_v37 }
 0x4a4   : > { %v16491_v45 = vpop.f32.mrf.mxu0  ;;  %v16493_v35 = vpop.f32.mrf.mxu1 }
 0x4a5   : > { %v16495_v62 = vadd.f32 %v12431_v28, %v7050_v56 }
 0x4a6   : > { %v12371_v31 = vpop.f32.mrf.mxu0  ;;  %8534 = vmatmul.mubr.bf16.gmra.mxu0 %v16403_v26  ;;  %v12435_v19 = vpop.f32.mrf.mxu1 }
 0x4a7   : > { %8469 = vmatmul.mubr.bf16.gmra.mxu1 %v18108_v33  ;;  %8541 = vmatprep.mubr.bf16.mxu0 %v16419_v38 }
 0x4a8   : > { %v12372_v22 = vpop.f32.mrf.mxu0  ;;  %v12436_v25 = vpop.f32.mrf.mxu1 }
 0x4a9   : > { %v12373_v13 = vadd.f32 %v12372_v22, %v12371_v31  ;;  %v12437_v42 = vadd.f32 %v12436_v25, %v12435_v19 }
 0x4aa   : > { %v16500_v49 = vpop.f32.mrf.mxu0  ;;  %v16502_v47 = vpop.f32.mrf.mxu1 }
 0x4ab   : > { %v7058_v48 = vadd.f32 %v12373_v13, %v16449_v37 }
 0x4ac   : > { %v16505_v18 = vpop.f32.mrf.mxu0  ;;  %v16507_v39 = vpop.f32.mrf.mxu1 }
 0x4ad   : > { %v16509_v26 = vadd.f32 %v12437_v42, %v7058_v48 }
 0x4ae   : > { %v12377_v21 = vpop.f32.mrf.mxu0  ;;  %8542 = vmatmul.mubr.bf16.gmra.mxu0 %v16415_v40  ;;  %v12441_v38 = vpop.f32.mrf.mxu1 }
 0x4af   : > { %8549 = vmatprep.mubr.bf16.mxu0 %v16431_v16 }
 0x4b0   : > { %v12378_v15 = vpop.f32.mrf.mxu0  ;;  %v12442_v3 = vpop.f32.mrf.mxu1 }
 0x4b1   : > { %v12379_v10 = vadd.f32 %v12378_v15, %v12377_v21  ;;  %v12443_v57 = vadd.f32 %v12442_v3, %v12441_v38 }
 0x4b2   : > { %v16513_v46 = vpop.f32.mrf.mxu0  ;;  %v16515_v5 = vpop.f32.mrf.mxu1 }
 0x4b3   : > { %v7066_v44 = vadd.f32 %v12379_v10, %v16449_v37 }
 0x4b4   : > { %v16518_v52 = vpop.f32.mrf.mxu0  ;;  %v16520_v1 = vpop.f32.mrf.mxu1 }
 0x4b5   : > { %v16522_v32 = vadd.f32 %v12443_v57, %v7066_v44  ;;  %v12358_v57 = vadd.f32 %v16461_v8, %v16454_v59  ;;  %v12364_v59 = vadd.f32 %v16476_v0, %v16471_v9 }
 0x4b6   : > { %v12383_v40 = vpop.f32.mrf.mxu0  ;;  %8550 = vmatmul.mubr.bf16.gmra.mxu0 %v16427_v23  ;;  %v12447_v16 = vpop.f32.mrf.mxu1 }
 0x4b7   : > { %8557 = vmatprep.mubr.bf16.mxu0 %v16443_v30 }
 0x4b8   : > { %v12384_v54 = vpop.f32.mrf.mxu0  ;;  %v12448_v20 = vpop.f32.mrf.mxu1 }
 0x4b9   : > { %v12385_v4 = vadd.f32 %v12384_v54, %v12383_v40  ;;  %v12449_v51 = vadd.f32 %v12448_v20, %v12447_v16  ;;  %v7037_v20 = vadd.f32 %v12358_v57, %v16449_v37 }
 0x4ba   : > { %v16526_v27 = vpop.f32.mrf.mxu0  ;;  %v16528_v55 = vpop.f32.mrf.mxu1 }
 0x4bb   : > { %v7074_v7 = vadd.f32 %v12385_v4, %v16449_v37  ;;  %v12422_v4 = vadd.f32 %v16463_v36, %v16456_v61  ;;  %v7045_v61 = vadd.f32 %v12364_v59, %v16449_v37  ;;  %v12428_v36 = vadd.f32 %v16478_v58, %v16473_v60 }
 0x4bc   : > { %v16531_v14 = vpop.f32.mrf.mxu0  ;;  %v16533_v17 = vpop.f32.mrf.mxu1 }
 0x4bd   : > { %v16535_v11 = vadd.f32 %v12449_v51, %v7074_v7 }
 0x4be   : > { %v12389_v23 = vpop.f32.mrf.mxu0  ;;  %8558 = vmatmul.mubr.bf16.gmra.mxu0 %v16439_v34  ;;  %v12453_v30 = vpop.f32.mrf.mxu1 }
 0x4bf   : > { %8565 = vmatprep.mubr.bf16.mxu0 %v16459_v12 }
 0x4c0   : > { %v12390_v6 = vpop.f32.mrf.mxu0  ;;  %v12454_v43 = vpop.f32.mrf.mxu1 }
 0x4c1   : > { %v12391_v24 = vadd.f32 %v12390_v6, %v12389_v23  ;;  %v12455_v50 = vadd.f32 %v12454_v43, %v12453_v30 }
 0x4c2   : > { %v16539_v28 = vpop.f32.mrf.mxu0  ;;  %v16541_v56 = vpop.f32.mrf.mxu1 }
 0x4c3   : > { %v7082_v31 = vadd.f32 %v12391_v24, %v16449_v37  ;;  %v7134_v24 = vadd.f32 %v12422_v4, %v7037_v20  ;;  %v7142_v20 = vadd.f32 %v12428_v36, %v7045_v61  ;;  %v12376_v36 = vadd.f32 %v16505_v18, %v16500_v49 }
 0x4c4   : > { %v16544_v19 = vpop.f32.mrf.mxu0  ;;  %v16546_v33 = vpop.f32.mrf.mxu1 }
 0x4c5   : > { %v16548_v22 = vadd.f32 %v12455_v50, %v7082_v31 }
 0x4c6   : > { %v12395_v34 = vpop.f32.mrf.mxu0  ;;  %8566 = vmatmul.mubr.bf16.gmra.mxu0 %v16452_v53  ;;  %v12459_v12 = vpop.f32.mrf.mxu1 }
 0x4c8   : > { %v12396_v25 = vpop.f32.mrf.mxu0  ;;  %v12460_v13 = vpop.f32.mrf.mxu1 }
 0x4c9   : > { %v12397_v42 = vadd.f32 %v12396_v25, %v12395_v34  ;;  %v12461_v48 = vadd.f32 %v12460_v13, %v12459_v12 }
 0x4ca   : > { %v16551_v21 = vpop.f32.mrf.mxu0  ;;  %v16553_v38 = vpop.f32.mrf.mxu1 }
 0x4cb   : > { %v7090_v15 = vadd.f32 %v12397_v42, %v16449_v37 }
 0x4cc   : > { %v16556_v3 = vpop.f32.mrf.mxu0  ;;  %v16558_v10 = vpop.f32.mrf.mxu1 }
 0x4cd   : > { %v16562_v44 = vadd.f32 %v12461_v48, %v7090_v15 }
 0x4ce   : > { %v12481_v53 = vpop.f32.mrf.mxu0  ;;  %v12883_v40 = vpop.f32.mrf.mxu1 }
 0x4d0   : > { %v12482_v16 = vpop.f32.mrf.mxu0  ;;  %v7324_v54 = vpop.f32.mrf.mxu1 }
 0x4d1   : > { %v12483_v51 = vadd.f32 %v12482_v16, %v12481_v53 }
 0x4d2   : > { %v12484_v7 = vpop.f32.mrf.mxu0  ;;  %v12884_v23 = vpop.f32.mrf.mxu1 }
 0x4d3   : > { %v7228_v30 = vadd.f32 %v12483_v51, %v16465_v63 }
 0x4d4   : > { %v12485_v6 = vpop.f32.mrf.mxu0  ;;  %v7327_v43 = vpop.f32.mrf.mxu1 }
 0x4d5   : > { %v12486_v8 = vadd.f32 %v12485_v6, %v12484_v7  ;;  %v7325_v34 = vadd.f32 %v7324_v54, %v7228_v30  ;;  %v12370_v54 = vadd.f32 %v16491_v45, %v16486_v29 }
 0x4d6   : > { %v12487_v50 = vpop.f32.mrf.mxu0  ;;  %v16570_v31 = vpop.f32.mrf.mxu1 }
 0x4d7   : > { %v7231_v12 = vadd.f32 %v12486_v8, %v7134_v24  ;;  %v7395_v57 = vmax.f32 %v7325_v34, 0.0  ;;  %v7053_v24 = vadd.f32 %v12370_v54, %v16449_v37 }
 0x4d8   : > { %v12488_v25 = vpop.f32.mrf.mxu0  ;;  %v7340_v13 = vpop.f32.mrf.mxu1 }
 0x4d9   : > { %v7328_v63 = vadd.f32 %v7327_v43, %v7231_v12  ;;  %v12489_v42 = vadd.f32 %v12488_v25, %v12487_v50 }
 0x4da   : > { %v12490_v48 = vpop.f32.mrf.mxu0  ;;  %v12888_v15 = vpop.f32.mrf.mxu1 }
 0x4db   : > { %v7404_v53 = vmax.f32 %v7328_v63, 0.0  ;;  %v7236_v9 = vadd.f32 %v12489_v42, %v16480_v2  ;;  %v12434_v2 = vadd.f32 %v16493_v35, %v16488_v41 }
 0x4dc   : > { %v12491_v0 = vpop.f32.mrf.mxu0  ;;  %v7343_v16 = vpop.f32.mrf.mxu1 }
 0x4dd   : > { %v12492_v4 = vadd.f32 %v12491_v0, %v12490_v48  ;;  %v7539_v51 = vpack.c.bf16 %v7404_v53, %v7395_v57  ;;  %v7333_v60 = vadd.f32 %v12883_v40, %v7236_v9  ;;  %v7150_v61 = vadd.f32 %v12434_v2, %v7053_v24 }
 0x4de   : > { %v12493_v7 = vpop.f32.mrf.mxu0  ;;  %v16578_v30 = vpop.f32.mrf.mxu1  ;;  %v7061_v9 = vadd.f32 %v12376_v36, %v16449_v37 }
 0x4df   : > { %v7239_v58 = vadd.f32 %v12492_v4, %v7142_v20  ;;  %12913 = vmatprep.mubr.bf16.mxu1 %v7539_v51  ;;  %v7413_v29 = vmax.f32 %v7333_v60, 0.0 }
 0x4e0   : > { %v12494_v6 = vpop.f32.mrf.mxu0  ;;  %v7356_v43 = vpop.f32.mrf.mxu1 }
 0x4e1   : > { %v7336_v59 = vadd.f32 %v12884_v23, %v7239_v58  ;;  %v12495_v8 = vadd.f32 %v12494_v6, %v12493_v7  ;;  %v12382_v58 = vadd.f32 %v16518_v52, %v16513_v46 }
 0x4e2   : > { %v12496_v50 = vpop.f32.mrf.mxu0  ;;  %v16583_v34 = vpop.f32.mrf.mxu1 }
 0x4e3   : > { %v7422_v45 = vmax.f32 %v7336_v59, 0.0  ;;  %v7244_v12 = vadd.f32 %v12495_v8, %v16495_v62  ;;  %v12440_v62 = vadd.f32 %v16507_v39, %v16502_v47  ;;  %v7069_v8 = vadd.f32 %v12382_v58, %v16449_v37 }
 0x4e4   : > { %v12497_v25 = vpop.f32.mrf.mxu0  ;;  %v7359_v40 = vpop.f32.mrf.mxu1  ;;  %v12394_v58 = vadd.f32 %v16544_v19, %v16539_v28 }
 0x4e5   : > { %v7548_v63 = vpack.c.bf16 %v7422_v45, %v7413_v29  ;;  %v12498_v42 = vadd.f32 %v12497_v25, %v12496_v50  ;;  %v7341_v41 = vadd.f32 %v7340_v13, %v7244_v12  ;;  %v7158_v60 = vadd.f32 %v12440_v62, %v7061_v9 }
 0x4e6   : > { %v12499_v48 = vpop.f32.mrf.mxu0  ;;  %v16588_v57 = vpop.f32.mrf.mxu1 }
 0x4e7   : > { %v7247_v35 = vadd.f32 %v12498_v42, %v7150_v61  ;;  %12914 = vmatmul.mubr.bf16.vlgmr.msra.gmra.mxu1 %v7548_v63  ;;  %v7431_v18 = vmax.f32 %v7341_v41, 0.0  ;;  %v12388_v42 = vadd.f32 %v16531_v14, %v16526_v27 }
 0x4e8   : > { %v12500_v23 = vpop.f32.mrf.mxu0  ;;  %v16590_v53 = vpop.f32.mrf.mxu1 }
 0x4e9   : > { %v7344_v0 = vadd.f32 %v7343_v16, %v7247_v35  ;;  %v12501_v20 = vadd.f32 %v12500_v23, %v12499_v48  ;;  %v7077_v62 = vadd.f32 %v12388_v42, %v16449_v37 }
 0x4ea   : > { %v12502_v54 = vpop.f32.mrf.mxu0  ;;  %v16595_v49 = vpop.f32.mrf.mxu1 }
 0x4eb   : > { %v7252_v4 = vadd.f32 %v12501_v20, %v16509_v26  ;;  %v7440_v51 = vmax.f32 %v7344_v0, 0.0  ;;  %v12446_v26 = vadd.f32 %v16520_v1, %v16515_v5 }
 0x4ec   : > { %v12503_v13 = vpop.f32.mrf.mxu0  ;;  %v16598_v7 = vpop.f32.mrf.mxu1 }
 0x4ed   : > { %v12504_v6 = vadd.f32 %v12503_v13, %v12502_v54  ;;  %v7557_v24 = vpack.c.bf16 %v7440_v51, %v7431_v18  ;;  %v7349_v47 = vadd.f32 %v16570_v31, %v7252_v4  ;;  %v7166_v63 = vadd.f32 %v12446_v26, %v7069_v8 }
 0x4ee   : > { %v12505_v2 = vpop.f32.mrf.mxu0 }
 0x4ef   : > { %v7255_v39 = vadd.f32 %v12504_v6, %v7158_v60  ;;  %v12561_v16 = vpop.f32.mrf.mxu1  ;;  %12917 = vmatprep.mubr.bf16.mxu1 %v7557_v24  ;;  %v7449_v52 = vmax.f32 %v7349_v47, 0.0 }
 0x4f0   : > { %v12506_v59 = vpop.f32.mrf.mxu0 }
 0x4f1   : > { %v7352_v50 = vadd.f32 %v12888_v15, %v7255_v39  ;;  %v12507_v29 = vadd.f32 %v12506_v59, %v12505_v2  ;;  %v12562_v45 = vpop.f32.mrf.mxu1 }
 0x4f2   : > { %v16606_v12 = vadd.f32 %v12562_v45, %v12561_v16  ;;  %v12508_v46 = vpop.f32.mrf.mxu0  ;;  %v12458_v16 = vadd.f32 %v16546_v33, %v16541_v56 }
 0x4f3   : > { %v7458_v25 = vmax.f32 %v7352_v50, 0.0  ;;  %v7260_v61 = vadd.f32 %v12507_v29, %v16522_v32  ;;  %v16609_v31 = vpop.f32.mrf.mxu1  ;;  %v12452_v32 = vadd.f32 %v16533_v17, %v16528_v55 }
 0x4f4   : > { %v12509_v36 = vpop.f32.mrf.mxu0 }
 0x4f5   : > { %v12510_v48 = vadd.f32 %v12509_v36, %v12508_v46  ;;  %v16613_v41 = vpop.f32.mrf.mxu1  ;;  %v7566_v5 = vpack.c.bf16 %v7458_v25, %v7449_v52  ;;  %v7357_v15 = vadd.f32 %v7356_v43, %v7260_v61  ;;  %v7174_v60 = vadd.f32 %v12452_v32, %v7077_v62 }
 0x4f6   : > { %v12511_v1 = vpop.f32.mrf.mxu0  ;;  %v12400_v25 = vadd.f32 %v16556_v3, %v16551_v21 }
 0x4f7   : > { %v7263_v35 = vadd.f32 %v12510_v48, %v7166_v63  ;;  %v12567_v23 = vpop.f32.mrf.mxu1  ;;  %12918 = vmatmul.mubr.bf16.gmra.mxu1 %v7566_v5  ;;  %v7467_v14 = vmax.f32 %v7357_v15, 0.0  ;;  %v12464_v5 = vadd.f32 %v16558_v10, %v16553_v38 }
 0x4f8   : > { %v12512_v9 = vpop.f32.mrf.mxu0 }
 0x4f9   : > { %v7360_v0 = vadd.f32 %v7359_v40, %v7263_v35  ;;  %v12513_v20 = vadd.f32 %v12512_v9, %v12511_v1  ;;  %v12568_v54 = vpop.f32.mrf.mxu1 }
 0x4fa   : > { %v16618_v18 = vadd.f32 %v12568_v54, %v12567_v23  ;;  %v12514_v27 = vpop.f32.mrf.mxu0  ;;  %v8750_v23 = vld [vmem:[#allocation12 + $0x78] sm:$0xff]  ;;  %v8749_v54 = vld [vmem:[#allocation12 + $0x70] sm:$0xff] }
 0x4fb   : > { %v7268_v4 = vadd.f32 %v12513_v20, %v16535_v11  ;;  %v16621_v51 = vpop.f32.mrf.mxu1  ;;  %v7476_v43 = vmax.f32 %v7360_v0, 0.0  ;;  %v7085_v11 = vadd.f32 %v12394_v58, %v16449_v37  ;;  %12929 = vmatprep.subr.mxu0 %v8750_v23  ;;  %v16651_v0 = vld [vmem:[#allocation10] ss:$0 sm:$0xff]  ;;  %v8747_v58 = vld [vmem:[#allocation12 + $0x60] sm:$0xff] }
 0x4fc   : > { %v12515_v13 = vpop.f32.mrf.mxu0  ;;  %12930 = vmatpush3.msra.mxu0 %v8750_v23 }
 0x4fd   : > { %v12516_v6 = vadd.f32 %v12515_v13, %v12514_v27  ;;  %v16625_v24 = vpop.f32.mrf.mxu1  ;;  %v7575_v55 = vpack.c.bf16 %v7476_v43, %v7467_v14  ;;  %v7365_v40 = vadd.f32 %v16578_v30, %v7268_v4  ;;  %v7182_v52 = vadd.f32 %v12458_v16, %v7085_v11  ;;  %v8748_v27 = vld [vmem:[#allocation12 + $0x68] sm:$0xff]  ;;  %12931 = vmatprep.subr.mxu0 %v8749_v54  ;;  %v8746_v11 = vld [vmem:[#allocation12 + $0x58] sm:$0xff] }
 0x4fe   : > { %v12517_v17 = vpop.f32.mrf.mxu0  ;;  %v14131_v14 = vld [vmem:[#allocation15 + $0x188] ss:$28 sps:$4 sm:$0xff]   ;;  %12932 = vmatpush3.msra.mxu0 %v8749_v54 }
 0x4ff   : > { %v7271_v2 = vadd.f32 %v12516_v6, %v7174_v60  ;;  %v12573_v47 = vpop.f32.mrf.mxu1  ;;  %12921 = vmatprep.mubr.bf16.mxu1 %v7575_v55  ;;  %v7485_v50 = vmax.f32 %v7365_v40, 0.0  ;;  %v14133_v43 = vld [vmem:[#allocation15 + $0x18c] ss:$28 sps:$4 sm:$0xff]   ;;  %v14136_v6 = vld [vmem:[#allocation15 + $0x154] ss:$28 sps:$4 sm:$0xff]   ;;  %v8221_v55 = vadd.f32 %v16606_v12, %v16651_v0  ;;  %12933 = vmatprep.subr.mxu0 %v8748_v27  ;;  %v12566_v40 = vadd.f32 %v16613_v41, %v16609_v31 }
 0x500   : > { %v12518_v39 = vpop.f32.mrf.mxu0  ;;  %9364 = vmatprep.subr.bf16.mxu1 %v14133_v43  ;;  %12934 = vmatpush3.msra.mxu0 %v8748_v27  ;;  %v14139_v12 = vld [vmem:[#allocation15 + $0x11c] ss:$28 sps:$4 sm:$0xff]  }
 0x501   : > { %v7368_v59 = vadd.f32 %v16583_v34, %v7271_v2  ;;  %v12519_v8 = vadd.f32 %v12518_v39, %v12517_v17  ;;  %v12574_v28 = vpop.f32.mrf.mxu1  ;;  %9365 = vmatpush1.bf16.msra.mxu1 %v14131_v14  ;;  %12935 = vmatprep.subr.mxu0 %v8747_v58  ;;  %v8224_v41 = vadd.f32 %v12566_v40, %v16651_v0 }
 0x502   : > { %v16632_v19 = vadd.f32 %v12574_v28, %v12573_v47  ;;  %v12520_v26 = vpop.f32.mrf.mxu0  ;;  %9366 = vmatprep.subr.bf16.mxu1 %v14136_v6  ;;  %12936 = vmatpush3.msra.mxu0 %v8747_v58 }
 0x503   : > { %v7494_v29 = vmax.f32 %v7368_v59, 0.0  ;;  %v7276_v30 = vadd.f32 %v12519_v8, %v16548_v22  ;;  %v16635_v45 = vpop.f32.mrf.mxu1  ;;  %v7093_v22 = vadd.f32 %v12400_v25, %v16449_v37  ;;  %12937 = vmatprep.subr.mxu0 %v8746_v11  ;;  %v8744_v25 = vld [vmem:[#allocation12 + $0x48] sm:$0xff] }
 0x504   : > { %v12521_v46 = vpop.f32.mrf.mxu0  ;;  %12938 = vmatpush3.msra.mxu0 %v8746_v11  ;;  %v8237_v27 = vadd.f32 %v16632_v19, %v16651_v0 }
 0x505   : > { %v12522_v61 = vadd.f32 %v12521_v46, %v12520_v26  ;;  %v16639_v56 = vpop.f32.mrf.mxu1  ;;  %v7584_v33 = vpack.c.bf16 %v7494_v29, %v7485_v50  ;;  %v7373_v36 = vadd.f32 %v16590_v53, %v7276_v30  ;;  %v7190_v38 = vadd.f32 %v12464_v5, %v7093_v22  ;;  %v14140_v5 = vld [vmem:[#allocation15 + $0xe0] ss:$28 sps:$4 sm:$0xff]  }
 0x506   : > { %v12523_v34 = vpop.f32.mrf.mxu0  ;;  %v12578_v14 = vadd.f32 %v16639_v56, %v16635_v45 }
 0x507   : > { %v7279_v63 = vadd.f32 %v12522_v61, %v7182_v52  ;;  %v12579_v42 = vpop.f32.mrf.mxu1  ;;  %12922 = vmatmul.mubr.bf16.gmra.mxu1 %v7584_v33  ;;  %v7503_v9 = vmax.f32 %v7373_v36, 0.0  ;;  %v14137_v52 = vld [vmem:[#allocation15 + $0x118] ss:$28 sps:$4 sm:$0xff]   ;;  %v14142_v33 = vld [vmem:[#allocation15 + $0xe4] ss:$28 sps:$4 sm:$0xff]  }
 0x508   : > { %v12524_v48 = vpop.f32.mrf.mxu0 }
 0x509   : > { %v7376_v1 = vadd.f32 %v16598_v7, %v7279_v63  ;;  %v12525_v15 = vadd.f32 %v12524_v48, %v12523_v34  ;;  %v12580_v21 = vpop.f32.mrf.mxu1  ;;  %v8743_v63 = vld [vmem:[#allocation12 + $0x40] sm:$0xff]  ;;  %v18109_v48 = vmov 0  }
 0x50a   : > { %v16646_v3 = vadd.f32 %v12580_v21, %v12579_v42  ;;  %v12526_v35 = vpop.f32.mrf.mxu0 }
 0x50b   : > { %v7284_v53 = vadd.f32 %v12525_v15, %v16562_v44  ;;  %v16649_v62 = vpop.f32.mrf.mxu1  ;;  %v7512_v32 = vmax.f32 %v7376_v1, 0.0  ;;  %v8742_v1 = vld [vmem:[#allocation12 + $0x38] sm:$0xff] }
 0x50c   : > { %v12527_v37 = vpop.f32.mrf.mxu0 }
 0x50d   : > { %v12528_v10 = vadd.f32 %v12527_v37, %v12526_v35  ;;  %v16653_v7 = vpop.f32.mrf.mxu1  ;;  %v7593_v20 = vpack.c.bf16 %v7512_v32, %v7503_v9  ;;  %v7381_v44 = vadd.f32 %v16588_v57, %v7284_v53  ;;  %v14134_v57 = vld [vmem:[#allocation15 + $0x150] ss:$28 sps:$4 sm:$0xff]   ;;  %v14143_v37 = vld [vmem:[#allocation15 + $0xa8] ss:$28 sps:$4 sm:$0xff]  }
 0x50e   : > { %v12625_v4 = vpop.f32.mrf.mxu0  ;;  %9367 = vmatpush1.bf16.msra.mxu1 %v14134_v57  ;;  %v14145_v35 = vld [vmem:[#allocation15 + $0xac] ss:$28 sps:$4 sm:$0xff]  }
 0x50f   : > { %v7287_v13 = vadd.f32 %v12528_v10, %v7190_v38  ;;  %v12585_v60 = vpop.f32.mrf.mxu1  ;;  %12925 = vmatprep.mubr.bf16.mxu1 %v7593_v20  ;;  %v7521_v8 = vmax.f32 %v7381_v44, 0.0  ;;  %9368 = vmatprep.subr.bf16.mxu1 %v14139_v12  ;;  %v8741_v9 = vld [vmem:[#allocation12 + $0x30] sm:$0xff]  ;;  %v8740_v38 = vld [vmem:[#allocation12 + $0x28] sm:$0xff] }
 0x510   : > { %v12626_v17 = vpop.f32.mrf.mxu0 }
 0x511   : > { %v7384_v2 = vadd.f32 %v16595_v49, %v7287_v13  ;;  %v12627_v47 = vadd.f32 %v12626_v17, %v12625_v4  ;;  %v12586_v39 = vpop.f32.mrf.mxu1  ;;  %v8745_v49 = vld [vmem:[#allocation12 + $0x50] sm:$0xff] }
 0x512   : > { %v16661_v16 = vadd.f32 %v12586_v39, %v12585_v60  ;;  %v12628_v59 = vpop.f32.mrf.mxu0  ;;  %12939 = vmatprep.subr.mxu0 %v8745_v49  ;;  %9369 = vmatpush1.bf16.msra.mxu1 %v14137_v52  ;;  %v14146_v39 = vld [vmem:[#allocation15 + $0x70] ss:$28 sps:$4 sm:$0xff]  }
 0x513   : > { %v7530_v28 = vmax.f32 %v7384_v2, 0.0  ;;  %v16663_v26 = vadd.f32 %v12627_v47, %v8221_v55  ;;  %v16665_v50 = vpop.f32.mrf.mxu1  ;;  %12940 = vmatpush3.msra.mxu0 %v8745_v49  ;;  %9370 = vmatprep.subr.bf16.mxu1 %v14142_v33  ;;  %v8240_v55 = vadd.f32 %v12578_v14, %v16651_v0  ;;  %v14148_v2 = vld [vmem:[#allocation15 + $0x74] ss:$28 sps:$4 sm:$0xff]   ;;  %v8739_v47 = vld [vmem:[#allocation12 + $0x20] sm:$0xff]  ;;  %v8736_v52 = vld [vmem:[#allocation12 + $0x8] sm:$0xff] }
 0x514   : > { %v12629_v31 = vpop.f32.mrf.mxu0  ;;  %12941 = vmatprep.subr.mxu0 %v8744_v25  ;;  %v14154_v33 = vld [vmem:[#allocation15 + $0x4] ss:$28 sps:$4 sm:$0xff]  }
 0x515   : > { %v12630_v29 = vadd.f32 %v12629_v31, %v12628_v59  ;;  %v16668_v30 = vpop.f32.mrf.mxu1  ;;  %v7602_v46 = vpack.c.bf16 %v7530_v28, %v7521_v8  ;;  %12942 = vmatpush3.msra.mxu0 %v8744_v25  ;;  %v8738_v59 = vld [vmem:[#allocation12 + $0x18] sm:$0xff]  ;;  %v8737_v31 = vld [vmem:[#allocation12 + $0x10] sm:$0xff] }
 0x516   : > { %v16670_v61 = vpop.f32.mrf.mxu0  ;;  %12943 = vmatprep.subr.mxu0 %v8743_v63  ;;  %9371 = vmatpush1.bf16.msra.mxu1 %v14140_v5  ;;  %v14151_v28 = vld [vmem:[#allocation15 + $0x3c] ss:$28 sps:$4 sm:$0xff]  }
 0x517   : > { %v16672_v34 = vadd.f32 %v12630_v29, %v8224_v41  ;;  %v12591_v36 = vpop.f32.mrf.mxu1  ;;  %12926 = vmatmul.mubr.bf16.gmra.mxu1 %v7602_v46  ;;  %12944 = vmatpush3.msra.mxu0 %v8743_v63  ;;  %v14149_v41 = vld [vmem:[#allocation15 + $0x38] ss:$28 sps:$4 sm:$0xff]   ;;  %v8735_v63 = vld [vmem:[#allocation12] sm:$0xff] }
 0x518   : > { %v16674_v42 = vpop.f32.mrf.mxu0  ;;  %9396 = vmatprep.mubr.bf16.mxu1 %v18109_v48  ;;  %12945 = vmatprep.subr.mxu0 %v8742_v1 }
 0x519   : > { %v12592_v22 = vpop.f32.mrf.mxu1  ;;  %12946 = vmatpush3.msra.mxu0 %v8742_v1  ;;  %9372 = vmatprep.subr.bf16.mxu1 %v14145_v35  ;;  %v8253_v1 = vadd.f32 %v16661_v16, %v16651_v0  ;;  %v12590_v35 = vadd.f32 %v16668_v30, %v16665_v50 }
 0x51a   : > { %v16677_v15 = vadd.f32 %v12592_v22, %v12591_v36  ;;  %v16679_v21 = vpop.f32.mrf.mxu0  ;;  %12947 = vmatprep.subr.mxu0 %v8741_v9  ;;  %9373 = vmatpush1.bf16.msra.mxu1 %v14143_v37  ;;  %v14152_v22 = vld [vmem:[#allocation15] ss:$28 sps:$4 sm:$0xff]  }
 0x51b   : > { %v16681_v23 = vpop.f32.mrf.mxu1  ;;  %12948 = vmatpush3.msra.mxu0 %v8741_v9  ;;  %9374 = vmatprep.subr.bf16.mxu1 %v14148_v2 }
 0x51c   : > { %18110 = vst [vmem:[#allocation45_spill] sm:$0xff] %v16681_v23  ;;  %v16683_v53 = vpop.f32.mrf.mxu0  ;;  %12949 = vmatprep.subr.mxu0 %v8740_v38 }
 0x51d   : > { %v16685_v32 = vpop.f32.mrf.mxu1  ;;  %12950 = vmatpush3.msra.mxu0 %v8740_v38 }
 0x51e   : > { %18111 = vst [vmem:[#allocation53_spill] sm:$0xff] %v16685_v32  ;;  %v12637_v10 = vpop.f32.mrf.mxu0  ;;  %12951 = vmatprep.subr.mxu0 %v8739_v47  ;;  %9375 = vmatpush1.bf16.msra.mxu1 %v14146_v39 }
 0x51f   : > { %v12597_v20 = vpop.f32.mrf.mxu1  ;;  %12952 = vmatpush3.msra.mxu0 %v8739_v47  ;;  %9376 = vmatprep.subr.bf16.mxu1 %v14151_v28 }
 0x520   : > { %v12638_v54 = vpop.f32.mrf.mxu0  ;;  %12953 = vmatprep.subr.mxu0 %v8738_v59 }
 0x521   : > { %v12639_v4 = vadd.f32 %v12638_v54, %v12637_v10  ;;  %v12598_v43 = vpop.f32.mrf.mxu1  ;;  %12954 = vmatpush3.msra.mxu0 %v8738_v59 }
 0x522   : > { %v16691_v44 = vadd.f32 %v12598_v43, %v12597_v20  ;;  %v12640_v13 = vpop.f32.mrf.mxu0  ;;  %12955 = vmatprep.subr.mxu0 %v8737_v31  ;;  %9377 = vmatpush1.bf16.msra.mxu1 %v14149_v41 }
 0x523   : > { %v16693_v60 = vadd.f32 %v12639_v4, %v8237_v27  ;;  %v16695_v58 = vpop.f32.mrf.mxu1  ;;  %12956 = vmatpush3.msra.mxu0 %v8737_v31  ;;  %9378 = vmatprep.subr.bf16.mxu1 %v14154_v33  ;;  %v8256_v27 = vadd.f32 %v12590_v35, %v16651_v0 }
 0x524   : > { %v12641_v6 = vpop.f32.mrf.mxu0  ;;  %12957 = vmatprep.subr.mxu0 %v8736_v52 }
 0x525   : > { %v12642_v17 = vadd.f32 %v12641_v6, %v12640_v13  ;;  %v12601_v40 = vpop.f32.mrf.mxu1  ;;  %12958 = vmatpush3.msra.mxu0 %v8736_v52 }
 0x526   : > { %v16698_v19 = vpop.f32.mrf.mxu0  ;;  %12959 = vmatprep.subr.mxu0 %v8735_v63  ;;  %9379 = vmatpush1.bf16.msra.mxu1 %v14152_v22  ;;  %v12602_v47 = vadd.f32 %v12601_v40, %v16695_v58 }
 0x527   : > { %v16700_v45 = vadd.f32 %v12642_v17, %v8240_v55  ;;  %v12603_v56 = vpop.f32.mrf.mxu1  ;;  %12960 = vmatpush3.msra.mxu0 %v8735_v63 }
 0x528   : > { %v16702_v57 = vpop.f32.mrf.mxu0  ;;  %v8272_v41 = vadd.f32 %v12602_v47, %v16651_v0 }
 0x529   : > { %v12604_v11 = vpop.f32.mrf.mxu1 }
 0x52a   : > { %v16704_v12 = vadd.f32 %v12604_v11, %v12603_v56  ;;  %v16706_v8 = vpop.f32.mrf.mxu0  ;;  %v8269_v56 = vadd.f32 %v16691_v44, %v16651_v0  ;;  %v14157_v44 = vld [vmem:[#allocation15 + $0x194] ss:$28 sps:$4 sm:$0xff]  }
 0x52b   : > { %v16708_v49 = vpop.f32.mrf.mxu1  ;;  %9477 = vmatprep.subr.bf16.mxu0 %v14157_v44 }
 0x52c   : > { %18112 = vst [vmem:[#allocation54_spill] sm:$0xff] %v16704_v12  ;;  %18113 = vst [vmem:[#allocation106_spill] sm:$0xff] %v16708_v49  ;;  %v16710_v29 = vpop.f32.mrf.mxu0 }
 0x52d   : > { %v16712_v46 = vpop.f32.mrf.mxu1 }
 0x52e   : > { %18114 = vst [vmem:[#allocation107_spill] sm:$0xff] %v16712_v46  ;;  %v12649_v25 = vpop.f32.mrf.mxu0 }
 0x52f   : > { %v16714_v36 = vpop.f32.mrf.mxu1 }
 0x530   : > { %v12650_v5 = vpop.f32.mrf.mxu0 }
 0x531   : > { %v12651_v9 = vadd.f32 %v12650_v5, %v12649_v25  ;;  %v16720_v37 = vpop.f32.mrf.mxu1  ;;  %v14160_v5 = vld [vmem:[#allocation15 + $0x19c] ss:$28 sps:$4 sm:$0xff]  }
 0x532   : > { %v12652_v38 = vpop.f32.mrf.mxu0  ;;  %9590 = vmatprep.subr.bf16.mxu1 %v14160_v5 }
 0x533   : > { %v16722_v10 = vadd.f32 %v12651_v9, %v8253_v1  ;;  %v16724_v20 = vpop.f32.mrf.mxu1 }
 0x534   : > { %v12653_v54 = vpop.f32.mrf.mxu0 }
 0x535   : > { %18115 = vst [vmem:[#allocation108_spill] sm:$0xff] %v16722_v10  ;;  %v12654_v14 = vadd.f32 %v12653_v54, %v12652_v38  ;;  %v16727_v4 = vpop.f32.mrf.mxu1 }
 0x536   : > { %v16729_v16 = vpop.f32.mrf.mxu0 }
 0x537   : > { %v16731_v43 = vadd.f32 %v12654_v14, %v8256_v27  ;;  %v16735_v30 = vpop.f32.mrf.mxu1 }
 0x538   : > { %v16733_v50 = vpop.f32.mrf.mxu0 }
 0x539   : > { %18116 = vst [vmem:[#allocation109_spill] sm:$0xff] %v16731_v43  ;;  %v16741_v55 = vpop.f32.mrf.mxu1 }
 0x53a   : > { %v16737_v13 = vpop.f32.mrf.mxu0 }
 0x53b   : > { %18117 = vst [vmem:[#allocation55_spill] sm:$0xff] %v16737_v13  ;;  %v16746_v39 = vpop.f32.mrf.mxu1 }
 0x53c   : > { %v16739_v6 = vpop.f32.mrf.mxu0 }
 0x53d   : > { %18118 = vst [vmem:[#allocation52_spill] sm:$0xff] %v16739_v6  ;;  %v16751_v52 = vpop.f32.mrf.mxu1 }
 0x53e   : > { %v12661_v17 = vpop.f32.mrf.mxu0 }
 0x53f   : > { %v16757_v22 = vpop.f32.mrf.mxu1 }
 0x540   : > { %v12662_v2 = vpop.f32.mrf.mxu0 }
 0x541   : > { %v12663_v11 = vadd.f32 %v12662_v2, %v12661_v17  ;;  %v16761_v40 = vpop.f32.mrf.mxu1 }
 0x542   : > { %v12664_v59 = vpop.f32.mrf.mxu0 }
 0x543   : > { %v16748_v28 = vadd.f32 %v12663_v11, %v8269_v56  ;;  %v16765_v35 = vpop.f32.mrf.mxu1 }
 0x544   : > { %v12665_v31 = vpop.f32.mrf.mxu0 }
 0x545   : > { %18119 = vst [vmem:[#allocation56_spill] sm:$0xff] %v16748_v28  ;;  %v12666_v25 = vadd.f32 %v12665_v31, %v12664_v59  ;;  %v16769_v38 = vpop.f32.mrf.mxu1 }
 0x546   : > { %v16755_v63 = vpop.f32.mrf.mxu0 }
 0x547   : > { %v16753_v33 = vadd.f32 %v12666_v25, %v8272_v41  ;;  %18121 = vst [vmem:[#allocation28_spill] sm:$0xff] %v16755_v63  ;;  %v16771_v27 = vpop.f32.mrf.mxu1 }
 0x548   : > { %v16759_v58 = vpop.f32.mrf.mxu0 }
 0x549   : > { %18120 = vst [vmem:[#allocation58_spill] sm:$0xff] %v16753_v33  ;;  %18122 = vst [vmem:[#allocation34_spill] sm:$0xff] %v16759_v58  ;;  %v16773_v17 = vpop.f32.mrf.mxu1 }
 0x54a   : > { %v16763_v1 = vpop.f32.mrf.mxu0 }
 0x54b   : > { %18123 = vst [vmem:[#allocation35_spill] sm:$0xff] %v16763_v1  ;;  %v16775_v56 = vpop.f32.mrf.mxu1 }
 0x54c   : > { %v16767_v9 = vpop.f32.mrf.mxu0 }
 0x54d   : > { %18124 = vst [vmem:[#allocation93_spill] sm:$0xff] %v16767_v9  ;;  %v16777_v11 = vpop.f32.mrf.mxu1 }
 0x54e   : > { %v12753_v54 = vpop.f32.mrf.mxu0 }
 0x54f   : > { %v16779_v31 = vpop.f32.mrf.mxu1 }
 0x550   : > { %v12754_v14 = vpop.f32.mrf.mxu0  ;;  %18125 = vst [vmem:[#allocation110_spill] sm:$0xff] %v16779_v31 }
 0x551   : > { %v16781_v25 = vpop.f32.mrf.mxu1  ;;  %v12755_v23 = vadd.f32 %v12754_v14, %v12753_v54 }
 0x552   : > { %v12756_v2 = vpop.f32.mrf.mxu0  ;;  %18126 = vst [vmem:[#allocation57_spill] sm:$0xff] %v16781_v25 }
 0x553   : > { %v16783_v5 = vpop.f32.mrf.mxu1 }
 0x554   : > { %v12757_v47 = vpop.f32.mrf.mxu0  ;;  %18127 = vst [vmem:[#allocation61_spill] sm:$0xff] %v16783_v5 }
 0x555   : > { %v16785_v28 = vpop.f32.mrf.mxu1 }
 0x556   : > { %v12759_v59 = vpop.f32.mrf.mxu0  ;;  %18128 = vst [vmem:[#allocation59_spill] sm:$0xff] %v16785_v28 }
 0x557   : > { %v16789_v1 = vpop.f32.mrf.mxu1 }
 0x558   : > { %v12760_v41 = vpop.f32.mrf.mxu0  ;;  %18129 = vst [vmem:[#allocation64_spill] sm:$0xff] %v16789_v1 }
 0x559   : > { %v16793_v49 = vpop.f32.mrf.mxu1 }
 0x55a   : > { %v12762_v44 = vpop.f32.mrf.mxu0  ;;  %18130 = vst [vmem:[#allocation60_spill] sm:$0xff] %v16793_v49 }
 0x55b   : > { %v16797_v58 = vpop.f32.mrf.mxu1 }
 0x55c   : > { %v12763_v33 = vpop.f32.mrf.mxu0  ;;  %18131 = vst [vmem:[#allocation67_spill] sm:$0xff] %v16797_v58 }
 0x55d   : > { %v16801_v43 = vpop.f32.mrf.mxu1 }
 0x55e   : > { %v16787_v9 = vpop.f32.mrf.mxu0  ;;  %18132 = vst [vmem:[#allocation62_spill] sm:$0xff] %v16801_v43 }
 0x55f   : > { %v16805_v10 = vpop.f32.mrf.mxu1 }
 0x560   : > { %v16791_v46 = vpop.f32.mrf.mxu0  ;;  %18133 = vst [vmem:[#allocation70_spill] sm:$0xff] %v16805_v10  ;;  %v12633_v10 = vadd.f32 %v16674_v42, %v16670_v61  ;;  %v12691_v61 = vadd.f32 %v16720_v37, %v16714_v36  ;;  %v12761_v42 = vadd.f32 %v12760_v41, %v12759_v59 }
 0x561   : > { %v16809_v25 = vpop.f32.mrf.mxu1 }
 0x562   : > { %v16795_v12 = vpop.f32.mrf.mxu0  ;;  %18134 = vst [vmem:[#allocation63_spill] sm:$0xff] %v16809_v25  ;;  %v12572_v25 = vadd.f32 %v16625_v24, %v16621_v51 }
 0x563   : > { %v16813_v6 = vpop.f32.mrf.mxu1 }
 0x564   : > { %v16799_v63 = vpop.f32.mrf.mxu0  ;;  %18135 = vst [vmem:[#allocation73_spill] sm:$0xff] %v16813_v6  ;;  %v8232_v51 = vadd.f32 %v12572_v25, %v16651_v0 }
 0x565   : > { %v16817_v49 = vpop.f32.mrf.mxu1 }
 0x566   : > { %v16803_v5 = vpop.f32.mrf.mxu0  ;;  %18136 = vst [vmem:[#allocation65_spill] sm:$0xff] %v16817_v49  ;;  %v8229_v49 = vadd.f32 %v16618_v18, %v16651_v0  ;;  %v12700_v18 = vadd.f32 %v16751_v52, %v16746_v39 }
 0x567   : > { %v16821_v1 = vpop.f32.mrf.mxu1 }
 0x568   : > { %v16807_v28 = vpop.f32.mrf.mxu0  ;;  %18138 = vst [vmem:[#allocation66_spill] sm:$0xff] %v16821_v1  ;;  %v12636_v1 = vadd.f32 %v16683_v53, %v16679_v21  ;;  %v8415_v21 = vadd.f32 %v12691_v61, %v16663_v26  ;;  %v12694_v53 = vadd.f32 %v16727_v4, %v16724_v20  ;;  %v8245_v61 = vadd.f32 %v16646_v3, %v16651_v0 }
 0x569   : > { %v16825_v32 = vpop.f32.mrf.mxu1  ;;  %v12648_v3 = vadd.f32 %v16710_v29, %v16706_v8  ;;  %v14161_v8 = vld [vmem:[#allocation15 + $0x158] ss:$28 sps:$4 sm:$0xff]   ;;  %v14169_v29 = vld [vmem:[#allocation15 + $0x164] ss:$28 sps:$4 sm:$0xff]  }
 0x56a   : > { %v16811_v31 = vpop.f32.mrf.mxu0  ;;  %18140 = vst [vmem:[#allocation68_spill] sm:$0xff] %v16825_v32  ;;  %v8326_v32 = vadd.f32 %v12633_v10, %v8229_v49  ;;  %v12764_v49 = vadd.f32 %v12763_v33, %v12762_v44  ;;  %v8512_v41 = vadd.f32 %v12755_v23, %v8415_v21  ;;  %v8418_v39 = vadd.f32 %v12694_v53, %v16672_v34 }
 0x56c   : > { %v16815_v13 = vpop.f32.mrf.mxu0 }
 0x56e   : > { %v16819_v58 = vpop.f32.mrf.mxu0 }
 0x56f   : > { %18137 = vst [vmem:[#allocation76_spill] sm:$0xff] %v16819_v58  ;;  %v12697_v58 = vadd.f32 %v16741_v55, %v16735_v30  ;;  %v8329_v30 = vadd.f32 %v12636_v1, %v8232_v51 }
 0x570   : > { %v16823_v43 = vpop.f32.mrf.mxu0 }
 0x571   : > { %18139 = vst [vmem:[#allocation79_spill] sm:$0xff] %v16823_v43  ;;  %v16839_v43 = vpop.f32.mrf.mxu1  ;;  %v8426_v59 = vadd.f32 %v12700_v18, %v8329_v30  ;;  %v14155_v18 = vld [vmem:[#allocation15 + $0x190] ss:$28 sps:$4 sm:$0xff]  }
 0x572   : > { %v16831_v6 = vpop.f32.mrf.mxu0 }
 0x573   : > { %18141 = vst [vmem:[#allocation85_spill] sm:$0xff] %v16831_v6  ;;  %v8423_v6 = vadd.f32 %v12697_v58, %v8326_v32  ;;  %v16848_v55 = vpop.f32.mrf.mxu1  ;;  %v12758_v32 = vadd.f32 %v12757_v47, %v12756_v2  ;;  %v12645_v2 = vadd.f32 %v16702_v57, %v16698_v19  ;;  %v12709_v19 = vadd.f32 %v16773_v17, %v16771_v27  ;;  %v14163_v17 = vld [vmem:[#allocation15 + $0x15c] ss:$28 sps:$4 sm:$0xff]  }
 0x574   : > { %v16844_v24 = vpop.f32.mrf.mxu0 }
 0x575   : > { %v8520_v36 = vadd.f32 %v12761_v42, %v8423_v6  ;;  %v8523_v6 = vadd.f32 %v12764_v49, %v8426_v59  ;;  %v8515_v23 = vadd.f32 %v12758_v32, %v8418_v39  ;;  %v12584_v42 = vadd.f32 %v16653_v7, %v16649_v62  ;;  %v14158_v62 = vld [vmem:[#allocation15 + $0x198] ss:$28 sps:$4 sm:$0xff]  }
 0x576   : > { %v16854_v37 = vpop.f32.mrf.mxu0  ;;  %v8342_v53 = vadd.f32 %v12645_v2, %v8245_v61  ;;  %v12703_v49 = vadd.f32 %v16761_v40, %v16757_v22  ;;  %v12773_v7 = vadd.f32 %v16807_v28, %v16803_v5  ;;  %v12712_v40 = vadd.f32 %v16777_v11, %v16775_v56  ;;  %v14166_v5 = vld [vmem:[#allocation15 + $0x124] ss:$28 sps:$4 sm:$0xff]  }
 0x577   : > { %v12767_v28 = vadd.f32 %v16791_v46, %v16787_v9  ;;  %v12776_v56 = vadd.f32 %v16815_v13, %v16811_v31  ;;  %v14178_v46 = vld [vmem:[#allocation15 + $0x12c] ss:$28 sps:$4 sm:$0xff]  }
 0x578   : > { %v16862_v52 = vpop.f32.mrf.mxu0  ;;  %v8439_v22 = vadd.f32 %v12709_v19, %v8342_v53  ;;  %v18142_v53 = vld [vmem:[#allocation45_spill] sm:$0xff] }
 0x57a   : > { %v16872_v51 = vpop.f32.mrf.mxu0  ;;  %v8536_v11 = vadd.f32 %v12773_v7, %v8439_v22  ;;  %v18144_v7 = vld [vmem:[#allocation64_spill] sm:$0xff] }
 0x57c   : > { %v16889_v59 = vpop.f32.mrf.mxu0 }
 0x57e   : > { %v16902_v9 = vpop.f32.mrf.mxu0 }
 0x5a7   : > { %v12915_v10 = vpop.f32.mrf.mxu1 }
 0x5a8   : > { %v8617_v58 = vadd.f32 %v12915_v10, %v8520_v36  ;;  %v8248_v10 = vadd.f32 %v12584_v42, %v16651_v0  ;;  %v14182_v42 = vld [vmem:[#allocation15 + $0xf0] ss:$28 sps:$4 sm:$0xff]  }
 0x5a9   : > { %v8608_v26 = vpop.f32.mrf.mxu1 }
 0x5aa   : > { %v8673_v20 = vmax.f32 %v8617_v58, 0.0  ;;  %v8609_v4 = vadd.f32 %v8608_v26, %v8512_v41  ;;  %v8345_v32 = vadd.f32 %v12648_v3, %v8248_v10  ;;  %v8431_v58 = vadd.f32 %v12703_v49, %v16693_v60  ;;  %v14167_v41 = vld [vmem:[#allocation15 + $0x160] ss:$28 sps:$4 sm:$0xff]   ;;  %v18143_v3 = vld [vmem:[#allocation53_spill] sm:$0xff] }
 0x5ab   : > { %v12916_v33 = vpop.f32.mrf.mxu1  ;;  %v12706_v26 = vadd.f32 %v16769_v38, %v16765_v35  ;;  %v14172_v35 = vld [vmem:[#allocation15 + $0xec] ss:$28 sps:$4 sm:$0xff]   ;;  %v12596_v49 = vadd.f32 %v18143_v3, %v18142_v53  ;;  %v14185_v53 = vld [vmem:[#allocation15 + $0x40] ss:$28 sps:$4 sm:$0xff]  }
 0x5ac   : > { %11138 = vst [vmem:[%s16859_s26 + $0x40] sm:$0xff] %v8673_v20  ;;  %v8671_v1 = vmax.f32 %v8609_v4, 0.0  ;;  %v8620_v54 = vadd.f32 %v12916_v33, %v8523_v6  ;;  %v8689_v14 = vmul.f32 %v8673_v20, %v8673_v20  ;;  %v8442_v60 = vadd.f32 %v12712_v40, %v8345_v32  ;;  %v14176_v38 = vld [vmem:[#allocation15 + $0x128] ss:$28 sps:$4 sm:$0xff]   ;;  %v18148_v40 = vld [vmem:[#allocation110_spill] sm:$0xff] }
 0x5ad   : > { %v8611_v47 = vpop.f32.mrf.mxu1  ;;  %v12770_v4 = vadd.f32 %v16799_v63, %v16795_v12  ;;  %v8528_v33 = vadd.f32 %v12767_v28, %v8431_v58  ;;  %v8434_v31 = vadd.f32 %v12706_v26, %v16700_v45  ;;  %v14170_v12 = vld [vmem:[#allocation15 + $0xe8] ss:$28 sps:$4 sm:$0xff]   ;;  %v14184_v63 = vld [vmem:[#allocation15 + $0xf4] ss:$28 sps:$4 sm:$0xff]   ;;  %v14181_v58 = vld [vmem:[#allocation15 + $0x7c] ss:$28 sps:$4 sm:$0xff]   ;;  %v12785_v26 = vadd.f32 %v16862_v52, %v16854_v37 }
 0x5ae   : > { %11136 = vst [vmem:[%s16859_s26] sm:$0xff] %v8671_v1  ;;  %v8674_v25 = vmax.f32 %v8620_v54, 0.0  ;;  %v8612_v44 = vadd.f32 %v8611_v47, %v8515_v23  ;;  %8707 = vadd.xlane.f32.xlu1 %v8689_v14  ;;  %12961 = vmatprep.mubr.f32.mxu0 %v8671_v1  ;;  %v8687_v34 = vmul.f32 %v8671_v1, %v8671_v1  ;;  %v16907_v14 = vpop.f32.mrf.mxu0  ;;  %v14175_v45 = vld [vmem:[#allocation15 + $0xb4] ss:$28 sps:$4 sm:$0xff]  }
 0x5af   : > { %v8539_v23 = vadd.f32 %v12776_v56, %v8442_v60  ;;  %v18149_v28 = vld [vmem:[#allocation57_spill] sm:$0xff] }
 0x5b0   : > { %11139 = vst [vmem:[%s16859_s26 + $0x60] sm:$0xff] %v8674_v25  ;;  %v8672_v57 = vmax.f32 %v8612_v44, 0.0  ;;  %8703 = vadd.xlane.f32.xlu0 %v8687_v34  ;;  %v8690_v30 = vmul.f32 %v8674_v25, %v8674_v25  ;;  %v16877_v21 = vpack.c.bf16 %v8674_v25, %v8673_v20  ;;  %v8531_v44 = vadd.f32 %v12770_v4, %v8434_v31  ;;  %v14190_v4 = vld [vmem:[#allocation15 + $0xbc] ss:$28 sps:$4 sm:$0xff]  }
 0x5b1   : > { %v14179_v52 = vld [vmem:[#allocation15 + $0x78] ss:$28 sps:$4 sm:$0xff]  }
 0x5b2   : > { %v16885_v36 = vpack.c.bf16 %v8672_v57, %v8671_v1  ;;  %11137 = vst [vmem:[%s16859_s26 + $0x20] sm:$0xff] %v8672_v57  ;;  %8709 = vadd.xlane.f32.xlu1 %v8690_v30  ;;  %12962 = vmatmul.mubr.f32.vlgmr.msra.gmra.mxu0 %v8672_v57  ;;  %v8688_v27 = vmul.f32 %v8672_v57, %v8672_v57 }
 0x5b3   : > { %12964 = vmatprep.mubr.f32.mxu0 %v8673_v20  ;;  %9478 = vmatpush1.bf16.msra.mxu0 %v14155_v18  ;;  %v14164_v20 = vld [vmem:[#allocation15 + $0x120] ss:$28 sps:$4 sm:$0xff]   ;;  %v12657_v18 = vadd.f32 %v16733_v50, %v16729_v16  ;;  %v8261_v30 = vadd.f32 %v16677_v15, %v16651_v0  ;;  %v18147_v15 = vld [vmem:[#allocation52_spill] sm:$0xff] }
 0x5b4   : > { %9397 = vmatmul.mubr.bf16.vlgmr.msra.gmra.mxu1 %v16885_v36  ;;  %8705 = vadd.xlane.f32.xlu0 %v8688_v27  ;;  %v18145_v27 = vld [vmem:[#allocation60_spill] sm:$0xff] }
 0x5b5   : > { %9406 = vmatprep.mubr.bf16.mxu1 %v18109_v48  ;;  %9591 = vmatpush1.bf16.msra.mxu1 %v14158_v62  ;;  %v16919_v62 = vpop.f32.mrf.mxu0 }
 0x5b6   : > { %12965 = vmatmul.mubr.f32.gmra.mxu0 %v8674_v25  ;;  %9479 = vmatprep.subr.bf16.mxu0 %v14163_v17  ;;  %v12721_v17 = vadd.f32 %v18145_v27, %v18144_v7 }
 0x5b7   : > { %v12919_v39 = vpop.f32.mrf.mxu1  ;;  %9480 = vmatpush1.bf16.msra.mxu0 %v14161_v8  ;;  %9592 = vmatprep.subr.bf16.mxu1 %v14169_v29  ;;  %v14173_v8 = vld [vmem:[#allocation15 + $0xb0] ss:$28 sps:$4 sm:$0xff]   ;;  %v18146_v29 = vld [vmem:[#allocation55_spill] sm:$0xff]  ;;  %v16938_v60 = vpop.f32.mrf.mxu0 }
 0x5b8   : > { %v8633_v6 = vadd.f32 %v12919_v39, %v8536_v11  ;;  %9481 = vmatprep.subr.bf16.mxu0 %v14166_v5  ;;  %v12660_v22 = vadd.f32 %v18147_v15, %v18146_v29  ;;  %v12715_v5 = vadd.f32 %v18149_v28, %v18148_v40  ;;  %v8264_v11 = vadd.f32 %v12596_v49, %v16651_v0  ;;  %v18151_v39 = vld [vmem:[#allocation62_spill] sm:$0xff]  ;;  %v14193_v49 = vld [vmem:[#allocation15 + $0xc] ss:$28 sps:$4 sm:$0xff]  }
 0x5b9   : > { %v8624_v13 = vpop.f32.mrf.mxu1  ;;  %9593 = vmatpush1.bf16.msra.mxu1 %v14167_v41  ;;  %v8358_v41 = vadd.f32 %v12657_v18, %v8261_v30  ;;  %v14200_v40 = vld [vmem:[#allocation15 + $0x4c] ss:$28 sps:$4 sm:$0xff]  }
 0x5ba   : > { %v8677_v1 = vmax.f32 %v8633_v6, 0.0  ;;  %v8625_v54 = vadd.f32 %v8624_v13, %v8528_v33  ;;  %9594 = vmatprep.subr.bf16.mxu1 %v14178_v46  ;;  %v18150_v46 = vld [vmem:[#allocation67_spill] sm:$0xff]  ;;  %v18152_v33 = vld [vmem:[#allocation76_spill] sm:$0xff]  ;;  %v8361_v31 = vadd.f32 %v12660_v22, %v8264_v11 }
 0x5bb   : > { %v12920_v2 = vpop.f32.mrf.mxu1  ;;  %9482 = vmatpush1.bf16.msra.mxu0 %v14164_v20  ;;  %v12724_v20 = vadd.f32 %v18151_v39, %v18150_v46  ;;  %v8455_v6 = vadd.f32 %v12721_v17, %v8358_v41  ;;  %v14191_v22 = vld [vmem:[#allocation15 + $0x8] ss:$28 sps:$4 sm:$0xff]   ;;  %v18161_v46 = vld [vmem:[#allocation54_spill] sm:$0xff] }
 0x5bc   : > { %11142 = vst [vmem:[%s16859_s26 + $0xc0] sm:$0xff] %v8677_v1  ;;  %v8675_v47 = vmax.f32 %v8625_v54, 0.0  ;;  %v8636_v25 = vadd.f32 %v12920_v2, %v8539_v23  ;;  %9407 = vmatmul.mubr.bf16.gmra.mxu1 %v16877_v21  ;;  %v8693_v34 = vmul.f32 %v8677_v1, %v8677_v1  ;;  %9483 = vmatprep.subr.bf16.mxu0 %v14172_v35  ;;  %v18153_v35 = vld [vmem:[#allocation79_spill] sm:$0xff]  ;;  %v18154_v54 = vld [vmem:[#allocation108_spill] sm:$0xff] }
 0x5bd   : > { %v8627_v61 = vpop.f32.mrf.mxu1  ;;  %9416 = vmatprep.mubr.bf16.mxu1 %v18109_v48  ;;  %9595 = vmatpush1.bf16.msra.mxu1 %v14176_v38  ;;  %v12779_v13 = vadd.f32 %v18153_v35, %v18152_v33  ;;  %v14188_v38 = vld [vmem:[#allocation15 + $0xb8] ss:$28 sps:$4 sm:$0xff]   ;;  %v8447_v23 = vadd.f32 %v12715_v5, %v18154_v54  ;;  %v14187_v2 = vld [vmem:[#allocation15 + $0x44] ss:$28 sps:$4 sm:$0xff]   ;;  %v8277_v39 = vadd.f32 %v18161_v46, %v16651_v0 }
 0x5be   : > { %11140 = vst [vmem:[%s16859_s26 + $0x80] sm:$0xff] %v8675_v47  ;;  %v8678_v19 = vmax.f32 %v8636_v25, 0.0  ;;  %v8628_v57 = vadd.f32 %v8627_v61, %v8531_v44  ;;  %12967 = vmatprep.mubr.f32.mxu0 %v8675_v47  ;;  %8715 = vadd.xlane.f32.xlu0 %v8693_v34  ;;  %v8691_v32 = vmul.f32 %v8675_v47, %v8675_v47  ;;  %v16955_v5 = vld [vmem:[#allocation15 + $0x1a0] ss:$28 sps:$4 sm:$0xff]  }
 0x5bf   : > { %9484 = vmatpush1.bf16.msra.mxu0 %v14170_v12  ;;  %9596 = vmatprep.subr.bf16.mxu1 %v14184_v63  ;;  %v14196_v12 = vld [vmem:[#allocation15 + $0x84] ss:$28 sps:$4 sm:$0xff]   ;;  %v12788_v25 = vadd.f32 %v16889_v59, %v16872_v51  ;;  %v8552_v44 = vadd.f32 %v12785_v26, %v8455_v6  ;;  %v8458_v34 = vadd.f32 %v12724_v20, %v8361_v31  ;;  %v18158_v51 = vld [vmem:[#allocation109_spill] sm:$0xff] }
 0x5c0   : > { %11143 = vst [vmem:[%s16859_s26 + $0xe0] sm:$0xff] %v8678_v19  ;;  %v8676_v16 = vmax.f32 %v8628_v57, 0.0  ;;  %v8694_v50 = vmul.f32 %v8678_v19, %v8678_v19  ;;  %v16924_v10 = vpack.c.bf16 %v8678_v19, %v8677_v1  ;;  %9485 = vmatprep.subr.bf16.mxu0 %v14175_v45  ;;  %v18156_v63 = vld [vmem:[#allocation59_spill] sm:$0xff]  ;;  %v12795_v45 = vpop.f32.mrf.mxu0  ;;  %v8544_v30 = vadd.f32 %v12779_v13, %v8447_v23  ;;  %v18162_v20 = vld [vmem:[#allocation106_spill] sm:$0xff]  ;;  %v18165_v13 = vld [vmem:[#allocation68_spill] sm:$0xff] }
 0x5c1   : > { %9597 = vmatpush1.bf16.msra.mxu1 %v14182_v42  ;;  %v18157_v42 = vld [vmem:[#allocation85_spill] sm:$0xff]  ;;  %v8555_v27 = vadd.f32 %v12788_v25, %v8458_v34  ;;  %v18164_v35 = vld [vmem:[#allocation66_spill] sm:$0xff]  ;;  %v18166_v54 = vld [vmem:[#allocation35_spill] sm:$0xff] }
 0x5c2   : > { %11141 = vst [vmem:[%s16859_s26 + $0xa0] sm:$0xff] %v8676_v16  ;;  %8717 = vadd.xlane.f32.xlu1 %v8694_v50  ;;  %12968 = vmatmul.mubr.f32.gmra.mxu0 %v8676_v16  ;;  %v16933_v56 = vpack.c.bf16 %v8676_v16, %v8675_v47  ;;  %v8692_v37 = vmul.f32 %v8676_v16, %v8676_v16  ;;  %v12796_v17 = vpop.f32.mrf.mxu0  ;;  %v14194_v50 = vld [vmem:[#allocation15 + $0x80] ss:$28 sps:$4 sm:$0xff]   ;;  %v18167_v23 = vld [vmem:[#allocation93_spill] sm:$0xff]  ;;  %v14198_v25 = vld [vmem:[#allocation15 + $0x48] ss:$28 sps:$4 sm:$0xff]  }
 0x5c3   : > { %8711 = vadd.xlane.f32.xlu0 %v8691_v32  ;;  %12970 = vmatprep.mubr.f32.mxu0 %v8677_v1  ;;  %v18155_v1 = vld [vmem:[#allocation61_spill] sm:$0xff]  ;;  %v12782_v18 = vadd.f32 %v16844_v24, %v18157_v42  ;;  %v18159_v32 = vld [vmem:[#allocation28_spill] sm:$0xff]  ;;  %v12797_v34 = vadd.f32 %v12796_v17, %v12795_v45 }
 0x5c4   : > { %9417 = vmatmul.mubr.bf16.gmra.mxu1 %v16933_v56  ;;  %9486 = vmatpush1.bf16.msra.mxu0 %v14173_v8  ;;  %v12718_v47 = vadd.f32 %v18156_v63, %v18155_v1  ;;  %v12798_v33 = vpop.f32.mrf.mxu0  ;;  %v18169_v1 = vld [vmem:[#allocation63_spill] sm:$0xff] }
 0x5c5   : > { %9426 = vmatprep.mubr.bf16.mxu1 %v18109_v48  ;;  %9487 = vmatprep.subr.bf16.mxu0 %v14181_v58  ;;  %v18160_v58 = vld [vmem:[#allocation34_spill] sm:$0xff] }
 0x5c6   : > { %8713 = vadd.xlane.f32.xlu1 %v8692_v37  ;;  %12971 = vmatmul.mubr.f32.gmra.mxu0 %v8678_v19  ;;  %v8450_v59 = vadd.f32 %v12718_v47, %v18158_v51  ;;  %v12669_v41 = vadd.f32 %v18160_v58, %v18159_v32  ;;  %v12733_v37 = vadd.f32 %v18165_v13, %v18164_v35  ;;  %v18170_v51 = vld [vmem:[#allocation56_spill] sm:$0xff] }
 0x5c7   : > { %v12923_v61 = vpop.f32.mrf.mxu1  ;;  %9598 = vmatprep.subr.bf16.mxu1 %v14190_v4  ;;  %v18163_v4 = vld [vmem:[#allocation107_spill] sm:$0xff] }
 0x5c8   : > { %v8649_v57 = vadd.f32 %v12923_v61, %v8552_v44  ;;  %9488 = vmatpush1.bf16.msra.mxu0 %v14179_v52  ;;  %9599 = vmatpush1.bf16.msra.mxu1 %v14188_v38  ;;  %v8547_v29 = vadd.f32 %v12782_v18, %v8450_v59  ;;  %v12608_v6 = vadd.f32 %v18163_v4, %v18162_v20  ;;  %v12799_v18 = vpop.f32.mrf.mxu0  ;;  %v14204_v13 = vld [vmem:[#allocation15 + $0x168] ss:$28 sps:$4 sm:$0xff]  }
 0x5c9   : > { %v8640_v3 = vpop.f32.mrf.mxu1  ;;  %9489 = vmatprep.subr.bf16.mxu0 %v14187_v2  ;;  %9600 = vmatprep.subr.bf16.mxu1 %v14196_v12  ;;  %v12672_v2 = vadd.f32 %v18167_v23, %v18166_v54  ;;  %v18168_v12 = vld [vmem:[#allocation70_spill] sm:$0xff]  ;;  %v8374_v44 = vadd.f32 %v12669_v41, %v8277_v39  ;;  %v12800_v17 = vadd.f32 %v12799_v18, %v12798_v33  ;;  %v14216_v54 = vld [vmem:[#allocation18 + $0x64] ss:$8 sps:$4 sm:$0xff]   ;;  %v14214_v23 = vld [vmem:[#allocation18 + $0x60] ss:$8 sps:$4 sm:$0xff]  }
 0x5ca   : > { %v8681_v19 = vmax.f32 %v8649_v57, 0.0  ;;  %v8641_v7 = vadd.f32 %v8640_v3, %v8544_v30  ;;  %v12727_v63 = vadd.f32 %v18169_v1, %v18168_v12  ;;  %v8280_v42 = vadd.f32 %v12608_v6, %v16651_v0  ;;  %v14203_v57 = vld [vmem:[#allocation15 + $0x14] ss:$28 sps:$4 sm:$0xff]   ;;  %v14208_v12 = vld [vmem:[#allocation15 + $0x88] ss:$28 sps:$4 sm:$0xff]  }
 0x5cb   : > { %v12924_v16 = vpop.f32.mrf.mxu1  ;;  %v8471_v30 = vadd.f32 %v12733_v37, %v8374_v44  ;;  %v12791_v3 = vadd.f32 %v16907_v14, %v16902_v9  ;;  %v14201_v0 = vld [vmem:[#allocation15 + $0x10] ss:$28 sps:$4 sm:$0xff]   ;;  %v14217_v1 = vld [vmem:[#allocation18 + $0x50] ss:$8 sps:$4 sm:$0xff]   ;;  %v14225_v44 = vld [vmem:[#allocation18 + $0x34] ss:$8 sps:$4 sm:$0xff]  }
 0x5cc   : > { %11146 = vst [vmem:[%s16859_s26 + $0x140] sm:$0xff] %v8681_v19  ;;  %v8679_v24 = vmax.f32 %v8641_v7, 0.0  ;;  %v8652_v8 = vadd.f32 %v12924_v16, %v8555_v27  ;;  %9427 = vmatmul.mubr.bf16.gmra.mxu1 %v16924_v10  ;;  %v8697_v15 = vmul.f32 %v8681_v19, %v8681_v19  ;;  %9490 = vmatpush1.bf16.msra.mxu0 %v14185_v53  ;;  %v18171_v7 = vld [vmem:[#allocation73_spill] sm:$0xff] }
 0x5cd   : > { %v8643_v28 = vpop.f32.mrf.mxu1  ;;  %9436 = vmatprep.mubr.bf16.mxu1 %v18109_v48  ;;  %9491 = vmatprep.subr.bf16.mxu0 %v14193_v49  ;;  %v12736_v53 = vadd.f32 %v16848_v55, %v16839_v43  ;;  %v8377_v49 = vadd.f32 %v12672_v2, %v8280_v42  ;;  %v8463_v59 = vadd.f32 %v12727_v63, %v18170_v51  ;;  %v14213_v55 = vld [vmem:[#allocation18 + $0x74] ss:$8 sps:$4 sm:$0xff]   ;;  %v14205_v37 = vld [vmem:[#allocation15 + $0x130] ss:$28 sps:$4 sm:$0xff]   ;;  %v14223_v42 = vld [vmem:[#allocation18 + $0x30] ss:$8 sps:$4 sm:$0xff]  }
 0x5ce   : > { %11144 = vst [vmem:[%s16859_s26 + $0x100] sm:$0xff] %v8679_v24  ;;  %v8682_v26 = vmax.f32 %v8652_v8, 0.0  ;;  %v8644_v11 = vadd.f32 %v8643_v28, %v8547_v29  ;;  %12973 = vmatprep.mubr.f32.mxu0 %v8679_v24  ;;  %8723 = vadd.xlane.f32.xlu0 %v8697_v15  ;;  %v8695_v47 = vmul.f32 %v8679_v24, %v8679_v24  ;;  %v18173_v29 = vld [vmem:[#allocation58_spill] sm:$0xff]  ;;  %v14222_v63 = vld [vmem:[#allocation18 + $0x44] ss:$8 sps:$4 sm:$0xff]  }
 0x5cf   : > { %9601 = vmatpush1.bf16.msra.mxu1 %v14194_v50  ;;  %v8568_v43 = vadd.f32 %v12797_v34, %v8471_v30  ;;  %v8474_v14 = vadd.f32 %v12736_v53, %v8377_v49  ;;  %v12794_v16 = vadd.f32 %v16938_v60, %v16919_v62  ;;  %v14219_v2 = vld [vmem:[#allocation18 + $0x54] ss:$8 sps:$4 sm:$0xff]   ;;  %v14210_v34 = vld [vmem:[#allocation15 + $0x18] ss:$28 sps:$4 sm:$0xff]   ;;  %v14226_v30 = vld [vmem:[#allocation18 + $0x20] ss:$8 sps:$4 sm:$0xff]  }
 0x5d0   : > { %11147 = vst [vmem:[%s16859_s26 + $0x160] sm:$0xff] %v8682_v26  ;;  %v8680_v52 = vmax.f32 %v8644_v11, 0.0  ;;  %v8698_v38 = vmul.f32 %v8682_v26, %v8682_v26  ;;  %v16967_v31 = vpack.c.bf16 %v8682_v26, %v8681_v19  ;;  %9492 = vmatpush1.bf16.msra.mxu0 %v14191_v22  ;;  %9602 = vmatprep.subr.bf16.mxu1 %v14200_v40  ;;  %v14228_v18 = vld [vmem:[#allocation18 + $0x24] ss:$8 sps:$4 sm:$0xff]   ;;  %v14231_v53 = vld [vmem:[#allocation18 + $0x14] ss:$8 sps:$4 sm:$0xff]  }
 0x5d1   : > { %12985 = vmatprep.subr.bf16.mxu0 %v16955_v5  ;;  %v8571_v28 = vadd.f32 %v12800_v17, %v8474_v14  ;;  %v14232_v49 = vld [vmem:[#allocation18] ss:$8 sps:$4 sm:$0xff]   ;;  %v14237_v51 = vld [vmem:[#allocation18 + $0xf4] ss:$8 sps:$4 sm:$0xff]   ;;  %v14246_v17 = vld [vmem:[#allocation18 + $0xc4] ss:$8 sps:$4 sm:$0xff]  }
 0x5d2   : > { %11145 = vst [vmem:[%s16859_s26 + $0x120] sm:$0xff] %v8680_v52  ;;  %8725 = vadd.xlane.f32.xlu1 %v8698_v38  ;;  %12974 = vmatmul.mubr.f32.gmra.mxu0 %v8680_v52  ;;  %v16975_v61 = vpack.c.bf16 %v8680_v52, %v8679_v24  ;;  %v8696_v45 = vmul.f32 %v8680_v52, %v8680_v52  ;;  %v14206_v52 = vld [vmem:[#allocation15 + $0xf8] ss:$28 sps:$4 sm:$0xff]  }
 0x5d3   : > { %8719 = vadd.xlane.f32.xlu0 %v8695_v47  ;;  %12976 = vmatprep.mubr.f32.mxu0 %v8681_v19  ;;  %v18172_v19 = vld [vmem:[#allocation65_spill] sm:$0xff]  ;;  %v8560_v24 = vadd.f32 %v12791_v3, %v8463_v59 }
 0x5d4   : > { %9437 = vmatmul.mubr.bf16.gmra.mxu1 %v16975_v61  ;;  %v12730_v27 = vadd.f32 %v18172_v19, %v18171_v7  ;;  %v14211_v38 = vld [vmem:[#allocation18 + $0x70] ss:$8 sps:$4 sm:$0xff]   ;;  %v14209_v47 = vld [vmem:[#allocation15 + $0x50] ss:$28 sps:$4 sm:$0xff]   ;;  %v14243_v19 = vld [vmem:[#allocation18 + $0xd4] ss:$8 sps:$4 sm:$0xff]  }
 0x5d5   : > { %9446 = vmatprep.mubr.bf16.mxu1 %v18109_v48  ;;  %9603 = vmatpush1.bf16.msra.mxu1 %v14198_v25  ;;  %v14220_v25 = vld [vmem:[#allocation18 + $0x40] ss:$8 sps:$4 sm:$0xff]   ;;  %v14229_v3 = vld [vmem:[#allocation18 + $0x10] ss:$8 sps:$4 sm:$0xff]   ;;  %v14252_v14 = vld [vmem:[#allocation18 + $0xa4] ss:$8 sps:$4 sm:$0xff]  }
 0x5d6   : > { %8721 = vadd.xlane.f32.xlu1 %v8696_v45  ;;  %12977 = vmatmul.mubr.f32.gmra.mxu0 %v8682_v26  ;;  %v8466_v15 = vadd.f32 %v12730_v27, %v18173_v29  ;;  %v14234_v45 = vld [vmem:[#allocation18 + $0x4] ss:$8 sps:$4 sm:$0xff]   ;;  %v14235_v59 = vld [vmem:[#allocation18 + $0xf0] ss:$8 sps:$4 sm:$0xff]   ;;  %v14238_v7 = vld [vmem:[#allocation18 + $0xe0] ss:$8 sps:$4 sm:$0xff]  }
 0x5d7   : > { %v12927_v9 = vpop.f32.mrf.mxu1  ;;  %9604 = vmatprep.subr.bf16.mxu1 %v14203_v57  ;;  %v14255_v57 = vld [vmem:[#allocation18 + $0x174] ss:$8 sps:$4 sm:$0xff]   ;;  %v14241_v27 = vld [vmem:[#allocation18 + $0xd0] ss:$8 sps:$4 sm:$0xff]  }
 0x5d8   : > { %v8665_v50 = vadd.f32 %v12927_v9, %v8568_v43  ;;  %v8563_v62 = vadd.f32 %v12794_v16, %v8466_v15  ;;  %v14244_v43 = vld [vmem:[#allocation18 + $0xc0] ss:$8 sps:$4 sm:$0xff]   ;;  %v14247_v9 = vld [vmem:[#allocation18 + $0xb0] ss:$8 sps:$4 sm:$0xff]   ;;  %v14264_v15 = vld [vmem:[#allocation18 + $0x84] ss:$8 sps:$4 sm:$0xff]  }
 0x5d9   : > { %v8656_v8 = vpop.f32.mrf.mxu1  ;;  %9605 = vmatpush1.bf16.msra.mxu1 %v14201_v0  ;;  %v14240_v0 = vld [vmem:[#allocation18 + $0xe4] ss:$8 sps:$4 sm:$0xff]   ;;  %v14250_v16 = vld [vmem:[#allocation18 + $0xa0] ss:$8 sps:$4 sm:$0xff]   ;;  %v14256_v29 = vld [vmem:[#allocation18 + $0x90] ss:$8 sps:$4 sm:$0xff]  }
 0x5da   : > { %v8685_v22 = vmax.f32 %v8665_v50, 0.0  ;;  %v8657_v40 = vadd.f32 %v8656_v8, %v8560_v24  ;;  %10652 = vmatprep.subr.bf16.mxu1 %v14213_v55  ;;  %v14249_v55 = vld [vmem:[#allocation18 + $0xb4] ss:$8 sps:$4 sm:$0xff]   ;;  %v14253_v24 = vld [vmem:[#allocation18 + $0x170] ss:$8 sps:$4 sm:$0xff]  }
 0x5db   : > { %v12928_v32 = vpop.f32.mrf.mxu1  ;;  %v14258_v50 = vld [vmem:[#allocation18 + $0x94] ss:$8 sps:$4 sm:$0xff]   ;;  %v14261_v8 = vld [vmem:[#allocation18 + $0x164] ss:$8 sps:$4 sm:$0xff]  }
 0x5dc   : > { %11150 = vst [vmem:[%s16859_s26 + $0x1c0] sm:$0xff] %v8685_v22  ;;  %v8683_v58 = vmax.f32 %v8657_v40, 0.0  ;;  %v8668_v41 = vadd.f32 %v12928_v32, %v8571_v28  ;;  %9447 = vmatmul.mubr.bf16.gmra.mxu1 %v16967_v31  ;;  %v8701_v33 = vmul.f32 %v8685_v22, %v8685_v22  ;;  %v14262_v40 = vld [vmem:[#allocation18 + $0x80] ss:$8 sps:$4 sm:$0xff]   ;;  %v14270_v28 = vld [vmem:[#allocation18 + $0x274] ss:$8 sps:$4 sm:$0xff]  }
 0x5dd   : > { %v8659_v60 = vpop.f32.mrf.mxu1  ;;  %9456 = vmatprep.mubr.bf16.mxu1 %v18109_v48  ;;  %v14265_v32 = vld [vmem:[#allocation18 + $0x150] ss:$8 sps:$4 sm:$0xff]  }
 0x5de   : > { %11148 = vst [vmem:[%s16859_s26 + $0x180] sm:$0xff] %v8683_v58  ;;  %v8686_v26 = vmax.f32 %v8668_v41, 0.0  ;;  %v8660_v11 = vadd.f32 %v8659_v60, %v8563_v62  ;;  %12979 = vmatprep.mubr.f32.mxu0 %v8683_v58  ;;  %v8699_v46 = vmul.f32 %v8683_v58, %v8683_v58  ;;  %v14277_v41 = vld [vmem:[#allocation18 + $0x130] ss:$8 sps:$4 sm:$0xff]   ;;  %v14285_v62 = vld [vmem:[#allocation18 + $0x124] ss:$8 sps:$4 sm:$0xff]  }
 0x5df   : > { %v14283_v60 = vld [vmem:[#allocation18 + $0x120] ss:$8 sps:$4 sm:$0xff]  }
 0x5e0   : > { %11151 = vst [vmem:[%s16859_s26 + $0x1e0] sm:$0xff] %v8686_v26  ;;  %v8684_v39 = vmax.f32 %v8660_v11, 0.0  ;;  %8727 = vadd.xlane.f32.xlu0 %v8699_v46  ;;  %v16995_v20 = vpack.c.bf16 %v8686_v26, %v8685_v22  ;;  %v8702_v35 = vmul.f32 %v8686_v26, %v8686_v26  ;;  %v14295_v11 = vld [vmem:[#allocation18 + $0x100] ss:$8 sps:$4 sm:$0xff]   ;;  %v14303_v46 = vld [vmem:[#allocation18 + $0x1f4] ss:$8 sps:$4 sm:$0xff]  }
 0x5e2   : > { %11149 = vst [vmem:[%s16859_s26 + $0x1a0] sm:$0xff] %v8684_v39  ;;  %12980 = vmatmul.mubr.f32.gmra.mxu0 %v8684_v39  ;;  %v8700_v4 = vmul.f32 %v8684_v39, %v8684_v39  ;;  %v16998_v6 = vpack.c.bf16 %v8684_v39, %v8683_v58  ;;  %v14273_v58 = vld [vmem:[#allocation18 + $0x144] ss:$8 sps:$4 sm:$0xff]   ;;  %v14301_v39 = vld [vmem:[#allocation18 + $0x1f0] ss:$8 sps:$4 sm:$0xff]  }
 0x5e3   : > { %12982 = vmatprep.mubr.f32.mxu0 %v8685_v22  ;;  %v14267_v22 = vld [vmem:[#allocation18 + $0x154] ss:$8 sps:$4 sm:$0xff]  }
 0x5e4   : > { %8729 = vadd.xlane.f32.xlu1 %v8700_v4  ;;  %9457 = vmatmul.mubr.bf16.gmra.mxu1 %v16998_v6  ;;  %v14307_v4 = vld [vmem:[#allocation18 + $0x1e0] ss:$8 sps:$4 sm:$0xff]  }
 0x5e5   : > { %8731 = vadd.xlane.f32.xlu0 %v8701_v33  ;;  %9466 = vmatprep.mubr.bf16.mxu1 %v18109_v48  ;;  %v14313_v33 = vld [vmem:[#allocation18 + $0x1d0] ss:$8 sps:$4 sm:$0xff]  }
 0x5e6   : > { %12983 = vmatmul.mubr.f32.gmra.mxu0 %v8686_v26  ;;  %v14291_v26 = vld [vmem:[#allocation18 + $0x114] ss:$8 sps:$4 sm:$0xff]  }
 0x5e7   : > { %9509 = vmatprep.mubr.bf16.mxu0 %v18109_v48 }
 0x5e8   : > { %8733 = vadd.xlane.f32.xlu1 %v8702_v35  ;;  %v14321_v35 = vld [vmem:[#allocation18 + $0x1c4] ss:$8 sps:$4 sm:$0xff]  }
 0x5ea   : > { %9510 = vmatmul.mubr.bf16.vlgmr.msra.gmra.mxu0 %v16885_v36 }
 0x5eb   : > { %12986 = vmatpush3.bf16.msra.mxu0 %v16955_v5  ;;  %9519 = vmatprep.mubr.bf16.mxu0 %v18109_v48  ;;  %v14207_v5 = vld [vmem:[#allocation15 + $0xc0] ss:$28 sps:$4 sm:$0xff]  }
 0x5ec   : > { %9467 = vmatmul.mubr.bf16.gmra.mxu1 %v16995_v20  ;;  %12987 = vmatprep.subr.bf16.mxu0 %v14204_v13 }
 0x5ed   : > { %9622 = vmatprep.mubr.bf16.mxu1 %v18109_v48 }
 0x5ef   : > { %12988 = vmatpush3.bf16.msra.mxu0 %v14204_v13  ;;  %v14319_v13 = vld [vmem:[#allocation18 + $0x1c0] ss:$8 sps:$4 sm:$0xff]  }
 0x5f0   : > { %12989 = vmatprep.subr.bf16.mxu0 %v14205_v37 }
 0x5f2   : > { %9520 = vmatmul.mubr.bf16.gmra.mxu0 %v16877_v21 }
 0x5f3   : > { %9529 = vmatprep.mubr.bf16.mxu0 %v18109_v48  ;;  %12990 = vmatpush3.bf16.msra.mxu0 %v14205_v37  ;;  %v14325_v37 = vld [vmem:[#allocation18 + $0x1b0] ss:$8 sps:$4 sm:$0xff]  }
 0x5f4   : > { %9623 = vmatmul.mubr.bf16.vlgmr.msra.gmra.mxu1 %v16885_v36  ;;  %12991 = vmatprep.subr.bf16.mxu0 %v14206_v52 }
 0x5f5   : > { %9632 = vmatprep.mubr.bf16.mxu1 %v18109_v48  ;;  %10653 = vmatpush1.bf16.msra.mxu1 %v14211_v38  ;;  %v14331_v38 = vld [vmem:[#allocation18 + $0x1a0] ss:$8 sps:$4 sm:$0xff]  }
 0x5f6   : > { %10654 = vmatprep.subr.bf16.mxu1 %v14216_v54  ;;  %v14339_v54 = vld [vmem:[#allocation18 + $0x194] ss:$8 sps:$4 sm:$0xff]  }
 0x5f7   : > { %12992 = vmatpush3.bf16.msra.mxu0 %v14206_v52  ;;  %v14333_v52 = vld [vmem:[#allocation18 + $0x1a4] ss:$8 sps:$4 sm:$0xff]  }
 0x5f8   : > { %12993 = vmatprep.subr.bf16.mxu0 %v14207_v5 }
 0x5f9   : > { %10655 = vmatpush1.bf16.msra.mxu1 %v14214_v23  ;;  %v14345_v23 = vld [vmem:[#allocation18 + $0x184] ss:$8 sps:$4 sm:$0xff]  }
 0x5fa   : > { %9530 = vmatmul.mubr.bf16.gmra.mxu0 %v16933_v56  ;;  %10656 = vmatprep.subr.bf16.mxu1 %v14219_v2  ;;  %v14343_v2 = vld [vmem:[#allocation18 + $0x180] ss:$8 sps:$4 sm:$0xff]  }
 0x5fb   : > { %9539 = vmatprep.mubr.bf16.mxu0 %v18109_v48  ;;  %12994 = vmatpush3.bf16.msra.mxu0 %v14207_v5  ;;  %v14337_v5 = vld [vmem:[#allocation18 + $0x190] ss:$8 sps:$4 sm:$0xff]  }
 0x5fc   : > { %9633 = vmatmul.mubr.bf16.gmra.mxu1 %v16877_v21  ;;  %12995 = vmatprep.subr.bf16.mxu0 %v14208_v12 }
 0x5fd   : > { %9642 = vmatprep.mubr.bf16.mxu1 %v18109_v48  ;;  %10657 = vmatpush1.bf16.msra.mxu1 %v14217_v1 }
 0x5fe   : > { %10658 = vmatprep.subr.bf16.mxu1 %v14222_v63 }
 0x5ff   : > { %12996 = vmatpush3.bf16.msra.mxu0 %v14208_v12  ;;  %v17044_v12 = vld [vmem:[#allocation18 + $0x374] ss:$8 sps:$4 sm:$0xff]  }
 0x600   : > { %12997 = vmatprep.subr.bf16.mxu0 %v14209_v47 }
 0x601   : > { %10659 = vmatpush1.bf16.msra.mxu1 %v14220_v25 }
 0x602   : > { %9540 = vmatmul.mubr.bf16.gmra.mxu0 %v16924_v10  ;;  %10660 = vmatprep.subr.bf16.mxu1 %v14225_v44 }
 0x603   : > { %9549 = vmatprep.mubr.bf16.mxu0 %v18109_v48  ;;  %12998 = vmatpush3.bf16.msra.mxu0 %v14209_v47 }
 0x604   : > { %9643 = vmatmul.mubr.bf16.gmra.mxu1 %v16933_v56  ;;  %12999 = vmatprep.subr.bf16.mxu0 %v14210_v34 }
 0x605   : > { %9652 = vmatprep.mubr.bf16.mxu1 %v18109_v48  ;;  %10661 = vmatpush1.bf16.msra.mxu1 %v14223_v42  ;;  %v17049_v42 = vld [vmem:[#allocation13] ss:$0 sm:$0xff] }
 0x606   : > { %10662 = vmatprep.subr.bf16.mxu1 %v14228_v18 }
 0x607   : > { %13000 = vmatpush3.bf16.msra.mxu0 %v14210_v34  ;;  %v17047_v34 = vld [vmem:[#allocation16] sm:$0xff] }
 0x608   : > { %10765 = vmatprep.subr.bf16.mxu0 %v14255_v57 }
 0x609   : > { %10663 = vmatpush1.bf16.msra.mxu1 %v14226_v30  ;;  %v18174_v30 = vld [vmem:[#allocation31_spill] sm:$0xff] }
 0x60a   : > { %9550 = vmatmul.mubr.bf16.gmra.mxu0 %v16975_v61  ;;  %10664 = vmatprep.subr.bf16.mxu1 %v14231_v53  ;;  %v17053_v53 = vrot.slane %v17047_v34, %v18174_v30 }
 0x60b   : > { %9559 = vmatprep.mubr.bf16.mxu0 %v18109_v48 }
 0x60c   : > { %9653 = vmatmul.mubr.bf16.gmra.mxu1 %v16924_v10 }
 0x60d   : > { %9662 = vmatprep.mubr.bf16.mxu1 %v18109_v48  ;;  %10665 = vmatpush1.bf16.msra.mxu1 %v14229_v3 }
 0x60e   : > { %10666 = vmatprep.subr.bf16.mxu1 %v14234_v45 }
 0x611   : > { %10667 = vmatpush1.bf16.msra.mxu1 %v14232_v49  ;;  %v18175_v49 = vld [vmem:[#allocation32_spill] sm:$0xff] }
 0x612   : > { %9560 = vmatmul.mubr.bf16.gmra.mxu0 %v16967_v31  ;;  %10668 = vmatprep.subr.bf16.mxu1 %v14237_v51  ;;  %v17057_v51 = vrot.slane %v17047_v34, %v18175_v49 }
 0x613   : > { %9569 = vmatprep.mubr.bf16.mxu0 %v18109_v48 }
 0x614   : > { %9663 = vmatmul.mubr.bf16.gmra.mxu1 %v16975_v61 }
 0x615   : > { %9672 = vmatprep.mubr.bf16.mxu1 %v18109_v48  ;;  %10669 = vmatpush2.bf16.msra.mxu1 %v14235_v59 }
 0x616   : > { %10670 = vmatprep.subr.bf16.mxu1 %v14240_v0 }
 0x619   : > { %10671 = vmatpush2.bf16.msra.mxu1 %v14238_v7 }
 0x61a   : > { %9570 = vmatmul.mubr.bf16.gmra.mxu0 %v16998_v6  ;;  %10672 = vmatprep.subr.bf16.mxu1 %v14243_v19 }
 0x61b   : > { %9579 = vmatprep.mubr.bf16.mxu0 %v18109_v48 }
 0x61c   : > { %9673 = vmatmul.mubr.bf16.gmra.mxu1 %v16967_v31 }
 0x61d   : > { %9682 = vmatprep.mubr.bf16.mxu1 %v18109_v48  ;;  %10673 = vmatpush2.bf16.msra.mxu1 %v14241_v27 }
 0x61e   : > { %10674 = vmatprep.subr.bf16.mxu1 %v14246_v17 }
 0x621   : > { %10675 = vmatpush2.bf16.msra.mxu1 %v14244_v43 }
 0x622   : > { %9580 = vmatmul.mubr.bf16.gmra.mxu0 %v16995_v20  ;;  %10676 = vmatprep.subr.bf16.mxu1 %v14249_v55 }
 0x623   : > { %13001 = vmatprep.mubr.bf16.mxu0 %v16885_v36  ;;  %v14259_v36 = vld [vmem:[#allocation18 + $0x160] ss:$8 sps:$4 sm:$0xff]  }
 0x624   : > { %9683 = vmatmul.mubr.bf16.gmra.mxu1 %v16998_v6 }
 0x625   : > { %9692 = vmatprep.mubr.bf16.mxu1 %v18109_v48  ;;  %10677 = vmatpush2.bf16.msra.mxu1 %v14247_v9 }
 0x626   : > { %10678 = vmatprep.subr.bf16.mxu1 %v14252_v14 }
 0x629   : > { %10679 = vmatpush2.bf16.msra.mxu1 %v14250_v16 }
 0x62a   : > { %13002 = vmatmul.mubr.bf16.vlgmr.msra.gmra.mxu0 %v16877_v21  ;;  %10680 = vmatprep.subr.bf16.mxu1 %v14258_v50  ;;  %v14271_v21 = vld [vmem:[#allocation18 + $0x140] ss:$8 sps:$4 sm:$0xff]  }
 0x62b   : > { %13005 = vmatprep.mubr.bf16.mxu0 %v16933_v56  ;;  %10766 = vmatpush1.bf16.msra.mxu0 %v14253_v24  ;;  %v14279_v56 = vld [vmem:[#allocation18 + $0x134] ss:$8 sps:$4 sm:$0xff]  }
 0x62c   : > { %9693 = vmatmul.mubr.bf16.gmra.mxu1 %v16995_v20  ;;  %10767 = vmatprep.subr.bf16.mxu0 %v14261_v8 }
 0x62d   : > { %10681 = vmatpush2.bf16.msra.mxu1 %v14256_v29 }
 0x62e   : > { %10682 = vmatprep.subr.bf16.mxu1 %v14264_v15 }
 0x62f   : > { %10768 = vmatpush1.bf16.msra.mxu0 %v14259_v36 }
 0x630   : > { %10769 = vmatprep.subr.bf16.mxu0 %v14267_v22 }
 0x631   : > { %10683 = vmatpush2.bf16.msra.mxu1 %v14262_v40 }
 0x632   : > { %13006 = vmatmul.mubr.bf16.gmra.mxu0 %v16924_v10  ;;  %10878 = vmatprep.subr.bf16.mxu1 %v14270_v28  ;;  %v14289_v10 = vld [vmem:[#allocation18 + $0x110] ss:$8 sps:$4 sm:$0xff]  }
 0x633   : > { %13009 = vmatprep.mubr.bf16.mxu0 %v16975_v61  ;;  %10770 = vmatpush1.bf16.msra.mxu0 %v14265_v32  ;;  %v14297_v61 = vld [vmem:[#allocation18 + $0x104] ss:$8 sps:$4 sm:$0xff]  }
 0x634   : > { %10771 = vmatprep.subr.bf16.mxu0 %v14273_v58 }
 0x637   : > { %10772 = vmatpush1.bf16.msra.mxu0 %v14271_v21  ;;  %v8708_v63 = vpop.xlane.xlu1 %8707 }
 0x638   : > { %10773 = vmatprep.subr.bf16.mxu0 %v14279_v56 }
 0x639   : > { %v8704_v1 = vpop.xlane.xlu0 %8703 }
 0x63a   : > { %13010 = vmatmul.mubr.bf16.gmra.mxu0 %v16967_v31  ;;  %v14309_v31 = vld [vmem:[#allocation18 + $0x1e4] ss:$8 sps:$4 sm:$0xff]  }
 0x63b   : > { %13013 = vmatprep.mubr.bf16.mxu0 %v16998_v6  ;;  %10774 = vmatpush1.bf16.msra.mxu0 %v14277_v41  ;;  %v14315_v6 = vld [vmem:[#allocation18 + $0x1d4] ss:$8 sps:$4 sm:$0xff]   ;;  %v8710_v7 = vpop.xlane.xlu1 %8709 }
 0x63c   : > { %10775 = vmatprep.subr.bf16.mxu0 %v14285_v62 }
 0x63d   : > { %v8706_v25 = vpop.xlane.xlu0 %8705 }
 0x63f   : > { %10776 = vmatpush1.bf16.msra.mxu0 %v14283_v60 }
 0x640   : > { %10777 = vmatprep.subr.bf16.mxu0 %v14291_v26 }
 0x642   : > { %13014 = vmatmul.mubr.bf16.gmra.mxu0 %v16995_v20  ;;  %v14327_v20 = vld [vmem:[#allocation18 + $0x1b4] ss:$8 sps:$4 sm:$0xff]  }
 0x643   : > { %10778 = vmatpush1.bf16.msra.mxu0 %v14289_v10 }
 0x644   : > { %10779 = vmatprep.subr.bf16.mxu0 %v14297_v61 }
 0x647   : > { %10780 = vmatpush1.bf16.msra.mxu0 %v14295_v11  ;;  %v17071_v61 = vpop.xlane.xlu0 %8715 }
 0x648   : > { %10781 = vmatprep.subr.bf16.mxu0 %v14303_v46 }
 0x64b   : > { %10782 = vmatpush2.bf16.msra.mxu0 %v14301_v39  ;;  %v17067_v21 = vpop.xlane.xlu1 %8717  ;;  %v14268_v39 = vld [vmem:[#allocation18 + $0x270] ss:$8 sps:$4 sm:$0xff]  }
 0x64c   : > { %10783 = vmatprep.subr.bf16.mxu0 %v14309_v31 }
 0x64f   : > { %10784 = vmatpush2.bf16.msra.mxu0 %v14307_v4 }
 0x650   : > { %10785 = vmatprep.subr.bf16.mxu0 %v14315_v6  ;;  %v14276_v6 = vld [vmem:[#allocation18 + $0x264] ss:$8 sps:$4 sm:$0xff]  }
 0x653   : > { %10786 = vmatpush2.bf16.msra.mxu0 %v14313_v33 }
 0x654   : > { %10787 = vmatprep.subr.bf16.mxu0 %v14321_v35 }
 0x657   : > { %10788 = vmatpush2.bf16.msra.mxu0 %v14319_v13 }
 0x658   : > { %10789 = vmatprep.subr.bf16.mxu0 %v14327_v20 }
 0x65b   : > { %10790 = vmatpush2.bf16.msra.mxu0 %v14325_v37 }
 0x65c   : > { %10791 = vmatprep.subr.bf16.mxu0 %v14333_v52  ;;  %v8714_v52 = vpop.xlane.xlu1 %8713 }
 0x65f   : > { %10792 = vmatpush2.bf16.msra.mxu0 %v14331_v38 }
 0x660   : > { %10793 = vmatprep.subr.bf16.mxu0 %v14339_v54 }
 0x663   : > { %10794 = vmatpush2.bf16.msra.mxu0 %v14337_v5  ;;  %v14274_v5 = vld [vmem:[#allocation18 + $0x260] ss:$8 sps:$4 sm:$0xff]  }
 0x664   : > { %10795 = vmatprep.subr.bf16.mxu0 %v14345_v23 }
 0x667   : > { %10796 = vmatpush2.bf16.msra.mxu0 %v14343_v2 }
 0x668   : > { %10991 = vmatprep.subr.bf16.mxu0 %v17044_v12 }
 0x672   : > { %v12963_v47 = vpop.f32.mrf.mxu0 }
 0x673   : > { %v8897_v44 = vmul.f32 2.0, %v12963_v47  ;;  %v8712_v47 = vpop.xlane.xlu0 %8711 }
 0x674   : > { %v8817_v18 = vpop.f32.mrf.mxu0  ;;  %v9398_v57 = vpop.f32.mrf.mxu1 }
 0x675   : > { %v8913_v3 = vsub.f32 %v8706_v25, %v8897_v44  ;;  %v8896_v45 = vmul.f32 2.0, %v8817_v18  ;;  %v9399_v8 = vadd.f32 %v9398_v57, %v17057_v51 }
 0x676   : > { %v12966_v59 = vpop.f32.mrf.mxu0  ;;  %v9400_v0 = vpop.f32.mrf.mxu1 }
 0x677   : > { %v8936_v19 = vadd.f32 %v17049_v42, %v8913_v3  ;;  %v8912_v27 = vsub.f32 %v8704_v1, %v8896_v45  ;;  %v8899_v17 = vmul.f32 2.0, %v12966_v59  ;;  %v9401_v43 = vadd.f32 %v9400_v0, %v17053_v53 }
 0x678   : > { %v8827_v55 = vpop.f32.mrf.mxu0  ;;  %v9402_v9 = vpop.f32.mrf.mxu1  ;;  %v9800_v26 = vmax.f32 %v9399_v8, 0.0  ;;  %v14288_v8 = vld [vmem:[#allocation18 + $0x244] ss:$8 sps:$4 sm:$0xff]  }
 0x679   : > { %v8952_v14 = vmax.f32 %v8936_v19, 0.0  ;;  %v8935_v16 = vadd.f32 %v17049_v42, %v8912_v27  ;;  %v8915_v50 = vsub.f32 %v8710_v7, %v8899_v17  ;;  %v8898_v24 = vmul.f32 2.0, %v8827_v55 }
 0x67a   : > { %v9403_v29 = vadd.f32 %v9402_v9, %v17057_v51  ;;  %v9404_v15 = vpop.f32.mrf.mxu1  ;;  %v9801_v41 = vmax.f32 %v9401_v43, 0.0  ;;  %v14280_v9 = vld [vmem:[#allocation18 + $0x250] ss:$8 sps:$4 sm:$0xff]  }
 0x67b   : > { %11153 = vst [vmem:[%s16859_s26 + $0x28] sm:$0xff] %v8952_v14  ;;  %v8951_v36 = vmax.f32 %v8935_v16, 0.0  ;;  %v8938_v22 = vadd.f32 %v17049_v42, %v8915_v50  ;;  %v8914_v40 = vsub.f32 %v8708_v63, %v8898_v24  ;;  %v9405_v28 = vadd.f32 %v9404_v15, %v17053_v53  ;;  %v14282_v63 = vld [vmem:[#allocation18 + $0x254] ss:$8 sps:$4 sm:$0xff]  }
 0x67c   : > { %v9807_v32 = vmax.f32 %v9403_v29, 0.0  ;;  %v9408_v58 = vpop.f32.mrf.mxu1 }
 0x67d   : > { %11152 = vst [vmem:[%s16859_s26 + $0x8] sm:$0xff] %v8951_v36  ;;  %v8954_v56 = vmax.f32 %v8938_v22, 0.0  ;;  %v8937_v62 = vadd.f32 %v17049_v42, %v8914_v40  ;;  %v9808_v60 = vmax.f32 %v9405_v28, 0.0  ;;  %v9409_v35 = vadd.f32 %v9408_v58, %v17057_v51 }
 0x67e   : > { %v9410_v10 = vpop.f32.mrf.mxu1  ;;  %v9912_v31 = vpack.c.bf16 %v9807_v32, %v9800_v26 }
 0x67f   : > { %11155 = vst [vmem:[%s16859_s26 + $0x68] sm:$0xff] %v8954_v56  ;;  %v8953_v11 = vmax.f32 %v8937_v62, 0.0  ;;  %v9913_v46 = vpack.c.bf16 %v9808_v60, %v9801_v41  ;;  %v9411_v13 = vadd.f32 %v9410_v10, %v17053_v53  ;;  %v9814_v57 = vmax.f32 %v9409_v35, 0.0  ;;  %v14286_v56 = vld [vmem:[#allocation18 + $0x240] ss:$8 sps:$4 sm:$0xff]   ;;  %v17089_v41 = vpop.xlane.xlu1 %8725 }
 0x680   : > { %v9412_v4 = vpop.f32.mrf.mxu1  ;;  %v14292_v35 = vld [vmem:[#allocation18 + $0x230] ss:$8 sps:$4 sm:$0xff]  }
 0x681   : > { %11154 = vst [vmem:[%s16859_s26 + $0x48] sm:$0xff] %v8953_v11  ;;  %v9413_v33 = vadd.f32 %v9412_v4, %v17057_v51  ;;  %10684 = vmatprep.mubr.bf16.mxu1 %v9913_v46  ;;  %v9815_v3 = vmax.f32 %v9411_v13, 0.0  ;;  %v14294_v11 = vld [vmem:[#allocation18 + $0x234] ss:$8 sps:$4 sm:$0xff]  }
 0x682   : > { %v12969_v20 = vpop.f32.mrf.mxu0  ;;  %v9414_v37 = vpop.f32.mrf.mxu1  ;;  %10685 = vmatmul.mubr.bf16.vlgmr.msra.gmra.mxu1 %v9912_v31 }
 0x683   : > { %v8901_v38 = vmul.f32 2.0, %v12969_v20  ;;  %v9415_v54 = vadd.f32 %v9414_v37, %v17053_v53  ;;  %10879 = vmatpush1.bf16.msra.mxu1 %v14268_v39  ;;  %v9821_v23 = vmax.f32 %v9413_v33, 0.0  ;;  %v17093_v31 = vpop.xlane.xlu0 %8723  ;;  %v14300_v37 = vld [vmem:[#allocation18 + $0x224] ss:$8 sps:$4 sm:$0xff]  }
 0x684   : > { %v8837_v2 = vpop.f32.mrf.mxu0  ;;  %v9418_v1 = vpop.f32.mrf.mxu1  ;;  %10880 = vmatprep.subr.bf16.mxu1 %v14276_v6 }
 0x685   : > { %v8917_v25 = vsub.f32 %v8714_v52, %v8901_v38  ;;  %v9822_v44 = vmax.f32 %v9415_v54, 0.0  ;;  %v8900_v18 = vmul.f32 2.0, %v8837_v2  ;;  %v9919_v27 = vpack.c.bf16 %v9821_v23, %v9814_v57  ;;  %v8722_v23 = vpop.xlane.xlu1 %8721 }
 0x686   : > { %v12972_v45 = vpop.f32.mrf.mxu0  ;;  %v9420_v59 = vpop.f32.mrf.mxu1  ;;  %v9419_v40 = vadd.f32 %v9418_v1, %v17057_v51 }
 0x687   : > { %v8940_v0 = vadd.f32 %v17049_v42, %v8917_v25  ;;  %v8916_v7 = vsub.f32 %v8712_v47, %v8900_v18  ;;  %v8903_v19 = vmul.f32 2.0, %v12972_v45  ;;  %10881 = vmatpush1.bf16.msra.mxu1 %v14274_v5  ;;  %v9920_v55 = vpack.c.bf16 %v9822_v44, %v9815_v3  ;;  %v14298_v44 = vld [vmem:[#allocation18 + $0x220] ss:$8 sps:$4 sm:$0xff]   ;;  %v8720_v18 = vpop.xlane.xlu0 %8719 }
 0x688   : > { %v8847_v17 = vpop.f32.mrf.mxu0  ;;  %v9422_v43 = vpop.f32.mrf.mxu1  ;;  %10882 = vmatprep.subr.bf16.mxu1 %v14282_v63  ;;  %v9421_v24 = vadd.f32 %v9420_v59, %v17053_v53  ;;  %v14306_v59 = vld [vmem:[#allocation18 + $0x214] ss:$8 sps:$4 sm:$0xff]  }
 0x689   : > { %v8956_v14 = vmax.f32 %v8940_v0, 0.0  ;;  %v8939_v16 = vadd.f32 %v17049_v42, %v8916_v7  ;;  %v8919_v50 = vsub.f32 %v17067_v21, %v8903_v19  ;;  %v8902_v29 = vmul.f32 2.0, %v8847_v17  ;;  %10694 = vmatprep.mubr.bf16.mxu1 %v9920_v55 }
 0x68a   : > { %v9423_v15 = vadd.f32 %v9422_v43, %v17057_v51  ;;  %v9424_v36 = vpop.f32.mrf.mxu1  ;;  %10695 = vmatmul.mubr.bf16.gmra.mxu1 %v9919_v27  ;;  %v9829_v60 = vmax.f32 %v9421_v24, 0.0  ;;  %v14304_v24 = vld [vmem:[#allocation18 + $0x210] ss:$8 sps:$4 sm:$0xff]  }
 0x68b   : > { %11157 = vst [vmem:[%s16859_s26 + $0xa8] sm:$0xff] %v8956_v14  ;;  %v8955_v22 = vmax.f32 %v8939_v16, 0.0  ;;  %v8942_v28 = vadd.f32 %v17049_v42, %v8919_v50  ;;  %v9425_v32 = vadd.f32 %v9424_v36, %v17053_v53  ;;  %v8918_v58 = vsub.f32 %v17071_v61, %v8902_v29  ;;  %10883 = vmatpush1.bf16.msra.mxu1 %v14280_v9 }
 0x68c   : > { %v9428_v21 = vpop.f32.mrf.mxu1  ;;  %v9835_v26 = vmax.f32 %v9423_v15, 0.0  ;;  %10884 = vmatprep.subr.bf16.mxu1 %v14288_v8  ;;  %v9828_v61 = vmax.f32 %v9419_v40, 0.0 }
 0x68d   : > { %11156 = vst [vmem:[%s16859_s26 + $0x88] sm:$0xff] %v8955_v22  ;;  %v8958_v62 = vmax.f32 %v8942_v28, 0.0  ;;  %v9836_v10 = vmax.f32 %v9425_v32, 0.0  ;;  %v8941_v46 = vadd.f32 %v17049_v42, %v8918_v58  ;;  %v9429_v52 = vadd.f32 %v9428_v21, %v17057_v51  ;;  %v14312_v22 = vld [vmem:[#allocation18 + $0x204] ss:$8 sps:$4 sm:$0xff]  }
 0x68e   : > { %v9430_v39 = vpop.f32.mrf.mxu1  ;;  %v9926_v13 = vpack.c.bf16 %v9835_v26, %v9828_v61  ;;  %v14310_v26 = vld [vmem:[#allocation18 + $0x200] ss:$8 sps:$4 sm:$0xff]   ;;  %v14318_v61 = vld [vmem:[#allocation18 + $0x2f4] ss:$8 sps:$4 sm:$0xff]  }
 0x68f   : > { %11159 = vst [vmem:[%s16859_s26 + $0xe8] sm:$0xff] %v8958_v62  ;;  %v9927_v4 = vpack.c.bf16 %v9836_v10, %v9829_v60  ;;  %v8957_v6 = vmax.f32 %v8941_v46, 0.0  ;;  %10885 = vmatpush1.bf16.msra.mxu1 %v14286_v56  ;;  %v9431_v38 = vadd.f32 %v9430_v39, %v17053_v53  ;;  %v9842_v0 = vmax.f32 %v9429_v52, 0.0 }
 0x690   : > { %v9432_v33 = vpop.f32.mrf.mxu1  ;;  %10886 = vmatprep.subr.bf16.mxu1 %v14294_v11 }
 0x691   : > { %v9433_v20 = vadd.f32 %v9432_v33, %v17057_v51  ;;  %10704 = vmatprep.mubr.bf16.mxu1 %v9927_v4  ;;  %11158 = vst [vmem:[%s16859_s26 + $0xc8] sm:$0xff] %v8957_v6  ;;  %v9843_v7 = vmax.f32 %v9431_v38, 0.0 }
 0x692   : > { %v12975_v54 = vpop.f32.mrf.mxu0  ;;  %v9434_v5 = vpop.f32.mrf.mxu1  ;;  %10705 = vmatmul.mubr.bf16.gmra.mxu1 %v9926_v13 }
 0x693   : > { %v8905_v2 = vmul.f32 2.0, %v12975_v54  ;;  %v9435_v1 = vadd.f32 %v9434_v5, %v17053_v53  ;;  %v9849_v63 = vmax.f32 %v9433_v20, 0.0  ;;  %10887 = vmatpush1.bf16.msra.mxu1 %v14292_v35  ;;  %v14316_v20 = vld [vmem:[#allocation18 + $0x2f0] ss:$8 sps:$4 sm:$0xff]   ;;  %v14324_v54 = vld [vmem:[#allocation18 + $0x2e4] ss:$8 sps:$4 sm:$0xff]  }
 0x694   : > { %v8857_v47 = vpop.f32.mrf.mxu0  ;;  %v9438_v25 = vpop.f32.mrf.mxu1  ;;  %10888 = vmatprep.subr.bf16.mxu1 %v14300_v37 }
 0x695   : > { %v8921_v57 = vsub.f32 %v8722_v23, %v8905_v2  ;;  %v9850_v3 = vmax.f32 %v9435_v1, 0.0  ;;  %v8904_v45 = vmul.f32 2.0, %v8857_v47  ;;  %v9933_v9 = vpack.c.bf16 %v9849_v63, %v9842_v0  ;;  %v8730_v37 = vpop.xlane.xlu1 %8729 }
 0x696   : > { %v12978_v19 = vpop.f32.mrf.mxu0  ;;  %v9440_v27 = vpop.f32.mrf.mxu1  ;;  %v9439_v21 = vadd.f32 %v9438_v25, %v17057_v51 }
 0x697   : > { %v8944_v17 = vadd.f32 %v17049_v42, %v8921_v57  ;;  %v8920_v43 = vsub.f32 %v8720_v18, %v8904_v45  ;;  %v8907_v55 = vmul.f32 2.0, %v12978_v19  ;;  %10889 = vmatpush1.bf16.msra.mxu1 %v14298_v44  ;;  %v9934_v50 = vpack.c.bf16 %v9850_v3, %v9843_v7  ;;  %v14322_v57 = vld [vmem:[#allocation18 + $0x2e0] ss:$8 sps:$4 sm:$0xff]   ;;  %v8728_v3 = vpop.xlane.xlu0 %8727  ;;  %v14330_v7 = vld [vmem:[#allocation18 + $0x2d4] ss:$8 sps:$4 sm:$0xff]  }
 0x698   : > { %v8867_v14 = vpop.f32.mrf.mxu0  ;;  %v9442_v16 = vpop.f32.mrf.mxu1  ;;  %v9441_v36 = vadd.f32 %v9440_v27, %v17053_v53  ;;  %10890 = vmatprep.subr.bf16.mxu1 %v14306_v59  ;;  %v9856_v33 = vmax.f32 %v9439_v21, 0.0 }
 0x699   : > { %v8960_v8 = vmax.f32 %v8944_v17, 0.0  ;;  %v8943_v29 = vadd.f32 %v17049_v42, %v8920_v43  ;;  %v8923_v15 = vsub.f32 %v17089_v41, %v8907_v55  ;;  %v8906_v40 = vmul.f32 2.0, %v8867_v14  ;;  %10714 = vmatprep.mubr.bf16.mxu1 %v9934_v50  ;;  %v8734_v55 = vpop.xlane.xlu1 %8733 }
 0x69a   : > { %v9443_v28 = vadd.f32 %v9442_v16, %v17057_v51  ;;  %v9444_v32 = vpop.f32.mrf.mxu1  ;;  %10715 = vmatmul.mubr.bf16.gmra.mxu1 %v9933_v9  ;;  %v9857_v11 = vmax.f32 %v9441_v36, 0.0 }
 0x69b   : > { %11161 = vst [vmem:[%s16859_s26 + $0x128] sm:$0xff] %v8960_v8  ;;  %v8959_v58 = vmax.f32 %v8943_v29, 0.0  ;;  %v8946_v56 = vadd.f32 %v17049_v42, %v8923_v15  ;;  %v9445_v62 = vadd.f32 %v9444_v32, %v17053_v53  ;;  %v8922_v41 = vsub.f32 %v17093_v31, %v8906_v40  ;;  %10891 = vmatpush1.bf16.msra.mxu1 %v14304_v24  ;;  %v14328_v15 = vld [vmem:[#allocation18 + $0x2d0] ss:$8 sps:$4 sm:$0xff]   ;;  %v14336_v32 = vld [vmem:[#allocation18 + $0x2c4] ss:$8 sps:$4 sm:$0xff]  }
 0x69c   : > { %v9448_v60 = vpop.f32.mrf.mxu1  ;;  %v9863_v46 = vmax.f32 %v9443_v28, 0.0  ;;  %10892 = vmatprep.subr.bf16.mxu1 %v14312_v22 }
 0x69d   : > { %11160 = vst [vmem:[%s16859_s26 + $0x108] sm:$0xff] %v8959_v58  ;;  %v8962_v10 = vmax.f32 %v8946_v56, 0.0  ;;  %v9864_v39 = vmax.f32 %v9445_v62, 0.0  ;;  %v8945_v4 = vadd.f32 %v17049_v42, %v8922_v41  ;;  %v9449_v5 = vadd.f32 %v9448_v60, %v17057_v51  ;;  %v8732_v60 = vpop.xlane.xlu0 %8731 }
 0x69e   : > { %v9450_v6 = vpop.f32.mrf.mxu1  ;;  %v9940_v52 = vpack.c.bf16 %v9863_v46, %v9856_v33  ;;  %v18176_v46 = vld [vmem:[#allocation30_spill] sm:$0xff] }
 0x69f   : > { %11163 = vst [vmem:[%s16859_s26 + $0x168] sm:$0xff] %v8962_v10  ;;  %v9941_v35 = vpack.c.bf16 %v9864_v39, %v9857_v11  ;;  %v8961_v13 = vmax.f32 %v8945_v4, 0.0  ;;  %10893 = vmatpush1.bf16.msra.mxu1 %v14310_v26  ;;  %v9451_v23 = vadd.f32 %v9450_v6, %v17053_v53  ;;  %v9870_v19 = vmax.f32 %v9449_v5, 0.0  ;;  %v18177_v6 = vld [vmem:[#allocation29_spill] sm:$0xff] }
 0x6a0   : > { %v9452_v31 = vpop.f32.mrf.mxu1  ;;  %10894 = vmatprep.subr.bf16.mxu1 %v14318_v61  ;;  %v17129_v39 = vrot.slane %v17047_v34, %v18176_v46  ;;  %v17133_v33 = vrot.slane %v17047_v34, %v18177_v6  ;;  %v14352_v6 = vld [vmem:[#allocation18 + $0x290] ss:$8 sps:$4 sm:$0xff]  }
 0x6a1   : > { %v9453_v38 = vadd.f32 %v9452_v31, %v17057_v51  ;;  %10724 = vmatprep.mubr.bf16.mxu1 %v9941_v35  ;;  %11162 = vst [vmem:[%s16859_s26 + $0x148] sm:$0xff] %v8961_v13  ;;  %v9871_v27 = vmax.f32 %v9451_v23, 0.0  ;;  %v14334_v31 = vld [vmem:[#allocation18 + $0x2c0] ss:$8 sps:$4 sm:$0xff]  }
 0x6a2   : > { %v12981_v2 = vpop.f32.mrf.mxu0  ;;  %v9454_v1 = vpop.f32.mrf.mxu1  ;;  %10725 = vmatmul.mubr.bf16.gmra.mxu1 %v9940_v52 }
 0x6a3   : > { %v8909_v63 = vmul.f32 2.0, %v12981_v2  ;;  %v9455_v47 = vadd.f32 %v9454_v1, %v17053_v53  ;;  %v9877_v25 = vmax.f32 %v9453_v38, 0.0  ;;  %10895 = vmatpush2.bf16.msra.mxu1 %v14316_v20  ;;  %v14342_v38 = vld [vmem:[#allocation18 + $0x2b4] ss:$8 sps:$4 sm:$0xff]  }
 0x6a4   : > { %v8877_v44 = vpop.f32.mrf.mxu0  ;;  %v9458_v18 = vpop.f32.mrf.mxu1  ;;  %10896 = vmatprep.subr.bf16.mxu1 %v14324_v54 }
 0x6a5   : > { %v8925_v45 = vsub.f32 %v8730_v37, %v8909_v63  ;;  %v9878_v59 = vmax.f32 %v9455_v47, 0.0  ;;  %v8908_v0 = vmul.f32 2.0, %v8877_v44  ;;  %v9947_v50 = vpack.c.bf16 %v9877_v25, %v9870_v19 }
 0x6a6   : > { %v12984_v17 = vpop.f32.mrf.mxu0  ;;  %v9460_v43 = vpop.f32.mrf.mxu1  ;;  %v9459_v58 = vadd.f32 %v9458_v18, %v17057_v51 }
 0x6a7   : > { %v8948_v9 = vadd.f32 %v17049_v42, %v8925_v45  ;;  %v8924_v14 = vsub.f32 %v8728_v3, %v8908_v0  ;;  %v8911_v16 = vmul.f32 2.0, %v12984_v17  ;;  %10897 = vmatpush2.bf16.msra.mxu1 %v14322_v57  ;;  %v9948_v29 = vpack.c.bf16 %v9878_v59, %v9871_v27  ;;  %v14340_v45 = vld [vmem:[#allocation18 + $0x2b0] ss:$8 sps:$4 sm:$0xff]  }
 0x6a8   : > { %v8887_v24 = vpop.f32.mrf.mxu0  ;;  %v9462_v8 = vpop.f32.mrf.mxu1  ;;  %v9461_v28 = vadd.f32 %v9460_v43, %v17053_v53  ;;  %10898 = vmatprep.subr.bf16.mxu1 %v14330_v7  ;;  %v9884_v54 = vmax.f32 %v9459_v58, 0.0  ;;  %v14348_v7 = vld [vmem:[#allocation18 + $0x2a4] ss:$8 sps:$4 sm:$0xff]  }
 0x6a9   : > { %v8964_v36 = vmax.f32 %v8948_v9, 0.0  ;;  %v8947_v22 = vadd.f32 %v17049_v42, %v8924_v14  ;;  %v8927_v40 = vsub.f32 %v8734_v55, %v8911_v16  ;;  %v8910_v21 = vmul.f32 2.0, %v8887_v24  ;;  %10734 = vmatprep.mubr.bf16.mxu1 %v9948_v29 }
 0x6aa   : > { %v9463_v56 = vadd.f32 %v9462_v8, %v17057_v51  ;;  %v9464_v62 = vpop.f32.mrf.mxu1  ;;  %v9511_v41 = vpop.f32.mrf.mxu0  ;;  %10735 = vmatmul.mubr.bf16.gmra.mxu1 %v9947_v50  ;;  %v9885_v37 = vmax.f32 %v9461_v28, 0.0  ;;  %v14346_v8 = vld [vmem:[#allocation18 + $0x2a0] ss:$8 sps:$4 sm:$0xff]  }
 0x6ab   : > { %11165 = vst [vmem:[%s16859_s26 + $0x1a8] sm:$0xff] %v8964_v36  ;;  %v8963_v26 = vmax.f32 %v8947_v22, 0.0  ;;  %v8950_v10 = vadd.f32 %v17049_v42, %v8927_v40  ;;  %v9465_v11 = vadd.f32 %v9464_v62, %v17053_v53  ;;  %v8926_v61 = vsub.f32 %v8732_v60, %v8910_v21  ;;  %10899 = vmatpush2.bf16.msra.mxu1 %v14328_v15  ;;  %v17147_v40 = vld [vmem:[#allocation18 + $0x370] ss:$8 sps:$4 sm:$0xff]   ;;  %v14354_v62 = vld [vmem:[#allocation18 + $0x294] ss:$8 sps:$4 sm:$0xff]  }
 0x6ac   : > { %v9891_v4 = vmax.f32 %v9463_v56, 0.0  ;;  %v9468_v35 = vpop.f32.mrf.mxu1  ;;  %v9513_v13 = vpop.f32.mrf.mxu0  ;;  %10900 = vmatprep.subr.bf16.mxu1 %v14336_v32  ;;  %v9512_v18 = vadd.f32 %v9511_v41, %v17133_v33  ;;  %v18178_v32 = vld [vmem:[#allocation51_spill] sm:$0xff]  ;;  %v17157_v41 = vld [vmem:[#allocation18 + $0x364] ss:$8 sps:$4 sm:$0xff]  }
 0x6ad   : > { %11164 = vst [vmem:[%s16859_s26 + $0x188] sm:$0xff] %v8963_v26  ;;  %v8966_v20 = vmax.f32 %v8950_v10, 0.0  ;;  %v9892_v52 = vmax.f32 %v9465_v11, 0.0  ;;  %v8949_v5 = vadd.f32 %v17049_v42, %v8926_v61  ;;  %v9514_v63 = vadd.f32 %v9513_v13, %v17129_v39 }
 0x6ae   : > { %v9470_v23 = vpop.f32.mrf.mxu1  ;;  %v9515_v2 = vpop.f32.mrf.mxu0  ;;  %v9954_v44 = vpack.c.bf16 %v9891_v4, %v9884_v54  ;;  %v9469_v43 = vadd.f32 %v9468_v35, %v17057_v51  ;;  %v9802_v16 = vmax.f32 %v9512_v18, 0.0  ;;  %v14355_v18 = vld [vmem:[#allocation18 + $0x280] ss:$8 sps:$4 sm:$0xff]  }
 0x6af   : > { %11167 = vst [vmem:[%s16859_s26 + $0x1e8] sm:$0xff] %v8966_v20  ;;  %v9955_v1 = vpack.c.bf16 %v9892_v52, %v9885_v37  ;;  %v9516_v47 = vadd.f32 %v9515_v2, %v17133_v33  ;;  %v8965_v25 = vmax.f32 %v8949_v5, 0.0  ;;  %10901 = vmatpush2.bf16.msra.mxu1 %v14334_v31  ;;  %v9471_v59 = vadd.f32 %v9470_v23, %v17053_v53  ;;  %v14357_v31 = vld [vmem:[#allocation18 + $0x284] ss:$8 sps:$4 sm:$0xff]   ;;  %v17165_v20 = vld [vmem:[#allocation18 + $0x360] ss:$8 sps:$4 sm:$0xff]  }
 0x6b0   : > { %v9472_v57 = vpop.f32.mrf.mxu1  ;;  %v9517_v3 = vpop.f32.mrf.mxu0  ;;  %10902 = vmatprep.subr.bf16.mxu1 %v14342_v38  ;;  %v9803_v55 = vmax.f32 %v9514_v63, 0.0  ;;  %v9898_v60 = vmax.f32 %v9469_v43, 0.0  ;;  %v17169_v5 = vld [vmem:[#allocation18 + $0x354] ss:$8 sps:$4 sm:$0xff]  }
 0x6b1   : > { %v9473_v42 = vadd.f32 %v9472_v57, %v17057_v51  ;;  %v9518_v0 = vadd.f32 %v9517_v3, %v17129_v39  ;;  %10744 = vmatprep.mubr.bf16.mxu1 %v9955_v1  ;;  %11166 = vst [vmem:[%s16859_s26 + $0x1c8] sm:$0xff] %v8965_v25  ;;  %v9809_v19 = vmax.f32 %v9516_v47, 0.0  ;;  %v9899_v29 = vmax.f32 %v9471_v59, 0.0 }
 0x6b2   : > { %v9474_v27 = vpop.f32.mrf.mxu1  ;;  %v9521_v17 = vpop.f32.mrf.mxu0  ;;  %10745 = vmatmul.mubr.bf16.gmra.mxu1 %v9954_v44  ;;  %v17151_v51 = vrot.slane %v17047_v34, %v18178_v32 }
 0x6b3   : > { %v9810_v9 = vmax.f32 %v9518_v0, 0.0  ;;  %v9475_v14 = vadd.f32 %v9474_v27, %v17053_v53  ;;  %10903 = vmatpush2.bf16.msra.mxu1 %v14340_v45  ;;  %v9905_v15 = vmax.f32 %v9473_v42, 0.0  ;;  %v9914_v28 = vpack.c.bf16 %v9809_v19, %v9802_v16  ;;  %v18179_v53 = vld [vmem:[#allocation48_spill] sm:$0xff]  ;;  %v17174_v45 = vld [vmem:[#allocation18 + $0x350] ss:$8 sps:$4 sm:$0xff]  }
 0x6b4   : > { %v9523_v50 = vpop.f32.mrf.mxu0  ;;  %v9624_v24 = vpop.f32.mrf.mxu1  ;;  %10904 = vmatprep.subr.bf16.mxu1 %v14348_v7  ;;  %v17155_v21 = vrot.slane %v17047_v34, %v18179_v53  ;;  %v9522_v46 = vadd.f32 %v9521_v17, %v17133_v33  ;;  %v17177_v27 = vld [vmem:[#allocation18 + $0x344] ss:$8 sps:$4 sm:$0xff]  }
 0x6b5   : > { %v9915_v36 = vpack.c.bf16 %v9810_v9, %v9803_v55  ;;  %v9906_v22 = vmax.f32 %v9475_v14, 0.0  ;;  %v9524_v10 = vadd.f32 %v9523_v50, %v17129_v39  ;;  %v9961_v34 = vpack.c.bf16 %v9905_v15, %v9898_v60  ;;  %v17185_v15 = vld [vmem:[#allocation18 + $0x340] ss:$8 sps:$4 sm:$0xff]  }
 0x6b6   : > { %v9525_v58 = vpop.f32.mrf.mxu0  ;;  %v9626_v56 = vpop.f32.mrf.mxu1  ;;  %v9625_v2 = vadd.f32 %v9624_v24, %v17151_v51  ;;  %v9816_v63 = vmax.f32 %v9522_v46, 0.0 }
 0x6b7   : > { %v9962_v26 = vpack.c.bf16 %v9906_v22, %v9899_v29  ;;  %v9526_v11 = vadd.f32 %v9525_v58, %v17133_v33  ;;  %10797 = vmatprep.mubr.bf16.mxu0 %v9915_v36  ;;  %10905 = vmatpush2.bf16.msra.mxu1 %v14346_v8  ;;  %v9627_v52 = vadd.f32 %v9626_v56, %v17155_v21  ;;  %v9817_v23 = vmax.f32 %v9524_v10, 0.0  ;;  %v17190_v58 = vld [vmem:[#allocation18 + $0x334] ss:$8 sps:$4 sm:$0xff]  }
 0x6b8   : > { %v9527_v61 = vpop.f32.mrf.mxu0  ;;  %v9628_v4 = vpop.f32.mrf.mxu1  ;;  %10798 = vmatmul.mubr.bf16.vlgmr.msra.gmra.mxu0 %v9914_v28  ;;  %10906 = vmatprep.subr.bf16.mxu1 %v14354_v62  ;;  %v9804_v17 = vmax.f32 %v9625_v2, 0.0 }
 0x6b9   : > { %v9528_v35 = vadd.f32 %v9527_v61, %v17129_v39  ;;  %v9629_v13 = vadd.f32 %v9628_v4, %v17151_v51  ;;  %10754 = vmatprep.mubr.bf16.mxu1 %v9962_v26  ;;  %10992 = vmatpush1.bf16.msra.mxu0 %v17147_v40  ;;  %v9823_v37 = vmax.f32 %v9526_v11, 0.0  ;;  %v9805_v42 = vmax.f32 %v9627_v52, 0.0  ;;  %v17196_v61 = vld [vmem:[#allocation18 + $0x330] ss:$8 sps:$4 sm:$0xff]  }
 0x6ba   : > { %v9531_v38 = vpop.f32.mrf.mxu0  ;;  %v9630_v54 = vpop.f32.mrf.mxu1  ;;  %10993 = vmatprep.subr.bf16.mxu0 %v17157_v41  ;;  %10755 = vmatmul.mubr.bf16.gmra.mxu1 %v9961_v34 }
 0x6bb   : > { %v9824_v1 = vmax.f32 %v9528_v35, 0.0  ;;  %v9631_v47 = vadd.f32 %v9630_v54, %v17155_v21  ;;  %10907 = vmatpush2.bf16.msra.mxu1 %v14352_v6  ;;  %v9811_v3 = vmax.f32 %v9629_v13, 0.0  ;;  %v9921_v59 = vpack.c.bf16 %v9823_v37, %v9816_v63 }
 0x6bc   : > { %v9533_v25 = vpop.f32.mrf.mxu0  ;;  %v9634_v44 = vpop.f32.mrf.mxu1  ;;  %10908 = vmatprep.subr.bf16.mxu1 %v14357_v31  ;;  %v9532_v9 = vadd.f32 %v9531_v38, %v17133_v33  ;;  %v17200_v31 = vld [vmem:[#allocation18 + $0x324] ss:$8 sps:$4 sm:$0xff]  }
 0x6bd   : > { %v9922_v57 = vpack.c.bf16 %v9824_v1, %v9817_v23  ;;  %10994 = vmatpush1.bf16.msra.mxu0 %v17165_v20  ;;  %v9812_v0 = vmax.f32 %v9631_v47, 0.0  ;;  %v9534_v43 = vadd.f32 %v9533_v25, %v17129_v39  ;;  %v9916_v24 = vpack.c.bf16 %v9811_v3, %v9804_v17  ;;  %v17209_v47 = vld [vmem:[#allocation18 + $0x320] ss:$8 sps:$4 sm:$0xff]  }
 0x6be   : > { %v9535_v7 = vpop.f32.mrf.mxu0  ;;  %v9636_v19 = vpop.f32.mrf.mxu1  ;;  %10995 = vmatprep.subr.bf16.mxu0 %v17169_v5  ;;  %v9635_v56 = vadd.f32 %v9634_v44, %v17151_v51  ;;  %v9830_v60 = vmax.f32 %v9532_v9, 0.0 }
 0x6bf   : > { %v9536_v55 = vadd.f32 %v9535_v7, %v17133_v33  ;;  %10807 = vmatprep.mubr.bf16.mxu0 %v9922_v57  ;;  %v9917_v14 = vpack.c.bf16 %v9812_v0, %v9805_v42  ;;  %10909 = vmatpush2.bf16.msra.mxu1 %v14355_v18  ;;  %v9637_v22 = vadd.f32 %v9636_v19, %v17155_v21  ;;  %v9831_v53 = vmax.f32 %v9534_v43, 0.0 }
 0x6c0   : > { %v9537_v16 = vpop.f32.mrf.mxu0  ;;  %v9638_v50 = vpop.f32.mrf.mxu1  ;;  %10808 = vmatmul.mubr.bf16.gmra.mxu0 %v9921_v59  ;;  %13017 = vmatprep.subr.bf16.mxu1 %v17044_v12  ;;  %v9818_v37 = vmax.f32 %v9635_v56, 0.0 }
 0x6c1   : > { %v9538_v8 = vadd.f32 %v9537_v16, %v17129_v39  ;;  %v9639_v29 = vadd.f32 %v9638_v50, %v17151_v51  ;;  %10996 = vmatpush1.bf16.msra.mxu0 %v17174_v45  ;;  %v9837_v36 = vmax.f32 %v9536_v55, 0.0  ;;  %10910 = vmatprep.mubr.bf16.mxu1 %v9917_v14  ;;  %v9819_v6 = vmax.f32 %v9637_v22, 0.0  ;;  %v17220_v55 = vld [vmem:[#allocation18 + $0x310] ss:$8 sps:$4 sm:$0xff]  }
 0x6c2   : > { %v9541_v28 = vpop.f32.mrf.mxu0  ;;  %v9640_v32 = vpop.f32.mrf.mxu1  ;;  %10997 = vmatprep.subr.bf16.mxu0 %v17177_v27  ;;  %10911 = vmatmul.mubr.bf16.vlgmr.msra.gmra.mxu1 %v9916_v24 }
 0x6c3   : > { %v9838_v62 = vmax.f32 %v9538_v8, 0.0  ;;  %v9641_v26 = vadd.f32 %v9640_v32, %v17155_v21  ;;  %13025 = vmatpush1.bf16.msra.mxu1 %v17147_v40  ;;  %v9825_v46 = vmax.f32 %v9639_v29, 0.0  ;;  %v9928_v4 = vpack.c.bf16 %v9837_v36, %v9830_v60  ;;  %v17224_v8 = vld [vmem:[#allocation18 + $0x304] ss:$8 sps:$4 sm:$0xff]   ;;  %v17233_v60 = vld [vmem:[#allocation18 + $0x300] ss:$8 sps:$4 sm:$0xff]  }
 0x6c4   : > { %v9543_v10 = vpop.f32.mrf.mxu0  ;;  %v9644_v12 = vpop.f32.mrf.mxu1  ;;  %13018 = vmatprep.subr.bf16.mxu1 %v17157_v41  ;;  %v9542_v38 = vadd.f32 %v9541_v28, %v17133_v33 }
 0x6c5   : > { %v9929_v11 = vpack.c.bf16 %v9838_v62, %v9831_v53  ;;  %10998 = vmatpush1.bf16.msra.mxu0 %v17185_v15  ;;  %v9826_v34 = vmax.f32 %v9641_v26, 0.0  ;;  %v9544_v40 = vadd.f32 %v9543_v10, %v17129_v39  ;;  %v9923_v2 = vpack.c.bf16 %v9825_v46, %v9818_v37 }
 0x6c6   : > { %v9545_v35 = vpop.f32.mrf.mxu0  ;;  %v9646_v13 = vpop.f32.mrf.mxu1  ;;  %10999 = vmatprep.subr.bf16.mxu0 %v17190_v58  ;;  %v9645_v59 = vadd.f32 %v9644_v12, %v17151_v51  ;;  %v9844_v0 = vmax.f32 %v9542_v38, 0.0 }
 0x6c7   : > { %v9546_v52 = vadd.f32 %v9545_v35, %v17133_v33  ;;  %10817 = vmatprep.mubr.bf16.mxu0 %v9929_v11  ;;  %v9924_v54 = vpack.c.bf16 %v9826_v34, %v9819_v6  ;;  %13026 = vmatpush1.bf16.msra.mxu1 %v17165_v20  ;;  %v9647_v44 = vadd.f32 %v9646_v13, %v17155_v21  ;;  %v17214_v20 = vld [vmem:[#allocation18 + $0x314] ss:$8 sps:$4 sm:$0xff]   ;;  %v9845_v3 = vmax.f32 %v9544_v40, 0.0 }
 0x6c8   : > { %v9547_v23 = vpop.f32.mrf.mxu0  ;;  %v9648_v41 = vpop.f32.mrf.mxu1  ;;  %10818 = vmatmul.mubr.bf16.gmra.mxu0 %v9928_v4  ;;  %13019 = vmatprep.subr.bf16.mxu1 %v17169_v5  ;;  %v9832_v29 = vmax.f32 %v9645_v59, 0.0 }
 0x6c9   : > { %v9548_v1 = vadd.f32 %v9547_v23, %v17129_v39  ;;  %v9649_v63 = vadd.f32 %v9648_v41, %v17151_v51  ;;  %11000 = vmatpush1.bf16.msra.mxu0 %v17196_v61  ;;  %v9851_v25 = vmax.f32 %v9546_v52, 0.0  ;;  %10920 = vmatprep.mubr.bf16.mxu1 %v9924_v54  ;;  %v9833_v14 = vmax.f32 %v9647_v44, 0.0 }
 0x6ca   : > { %v9551_v18 = vpop.f32.mrf.mxu0  ;;  %v9650_v57 = vpop.f32.mrf.mxu1  ;;  %11001 = vmatprep.subr.bf16.mxu0 %v17200_v31  ;;  %10921 = vmatmul.mubr.bf16.gmra.mxu1 %v9923_v2 }
 0x6cb   : > { %v9852_v42 = vmax.f32 %v9548_v1, 0.0  ;;  %v9651_v7 = vadd.f32 %v9650_v57, %v17155_v21  ;;  %13027 = vmatpush1.bf16.msra.mxu1 %v17174_v45  ;;  %v9839_v43 = vmax.f32 %v9649_v63, 0.0  ;;  %v9935_v9 = vpack.c.bf16 %v9851_v25, %v9844_v0 }
 0x6cc   : > { %v9553_v19 = vpop.f32.mrf.mxu0  ;;  %v9654_v5 = vpop.f32.mrf.mxu1  ;;  %13020 = vmatprep.subr.bf16.mxu1 %v17177_v27  ;;  %v9552_v22 = vadd.f32 %v9551_v18, %v17133_v33 }
 0x6cd   : > { %v9936_v17 = vpack.c.bf16 %v9852_v42, %v9845_v3  ;;  %11002 = vmatpush1.bf16.msra.mxu0 %v17209_v47  ;;  %v9840_v16 = vmax.f32 %v9651_v7, 0.0  ;;  %v9554_v45 = vadd.f32 %v9553_v19, %v17129_v39  ;;  %v9930_v53 = vpack.c.bf16 %v9839_v43, %v9832_v29 }
 0x6ce   : > { %v9555_v50 = vpop.f32.mrf.mxu0  ;;  %v9656_v24 = vpop.f32.mrf.mxu1  ;;  %11003 = vmatprep.subr.bf16.mxu0 %v17214_v20  ;;  %v9655_v46 = vadd.f32 %v9654_v5, %v17151_v51  ;;  %v9858_v6 = vmax.f32 %v9552_v22, 0.0 }
 0x6cf   : > { %v9556_v36 = vadd.f32 %v9555_v50, %v17133_v33  ;;  %10827 = vmatprep.mubr.bf16.mxu0 %v9936_v17  ;;  %v9931_v28 = vpack.c.bf16 %v9840_v16, %v9833_v14  ;;  %13028 = vmatpush1.bf16.msra.mxu1 %v17185_v15  ;;  %v9657_v10 = vadd.f32 %v9656_v24, %v17155_v21  ;;  %v9859_v15 = vmax.f32 %v9554_v45, 0.0 }
 0x6d0   : > { %v9557_v32 = vpop.f32.mrf.mxu0  ;;  %v9658_v27 = vpop.f32.mrf.mxu1  ;;  %10828 = vmatmul.mubr.bf16.gmra.mxu0 %v9935_v9  ;;  %13021 = vmatprep.subr.bf16.mxu1 %v17190_v58  ;;  %v9846_v41 = vmax.f32 %v9655_v46, 0.0 }
 0x6d1   : > { %v9558_v56 = vadd.f32 %v9557_v32, %v17129_v39  ;;  %v9659_v62 = vadd.f32 %v9658_v27, %v17151_v51  ;;  %11004 = vmatpush1.bf16.msra.mxu0 %v17220_v55  ;;  %v9865_v26 = vmax.f32 %v9556_v36, 0.0  ;;  %10930 = vmatprep.mubr.bf16.mxu1 %v9931_v28  ;;  %v9847_v52 = vmax.f32 %v9657_v10, 0.0 }
 0x6d2   : > { %v9561_v12 = vpop.f32.mrf.mxu0  ;;  %v9660_v11 = vpop.f32.mrf.mxu1  ;;  %11005 = vmatprep.subr.bf16.mxu0 %v17224_v8  ;;  %10931 = vmatmul.mubr.bf16.gmra.mxu1 %v9930_v53 }
 0x6d3   : > { %v9866_v4 = vmax.f32 %v9558_v56, 0.0  ;;  %v9661_v34 = vadd.f32 %v9660_v11, %v17155_v21  ;;  %13029 = vmatpush1.bf16.msra.mxu1 %v17196_v61  ;;  %v9853_v37 = vmax.f32 %v9659_v62, 0.0  ;;  %v9942_v40 = vpack.c.bf16 %v9865_v26, %v9858_v6 }
 0x6d4   : > { %v9563_v35 = vpop.f32.mrf.mxu0  ;;  %v9664_v13 = vpop.f32.mrf.mxu1  ;;  %13022 = vmatprep.subr.bf16.mxu1 %v17200_v31  ;;  %v9562_v63 = vadd.f32 %v9561_v12, %v17133_v33 }
 0x6d5   : > { %v9943_v58 = vpack.c.bf16 %v9866_v4, %v9859_v15  ;;  %11006 = vmatpush1.bf16.msra.mxu0 %v17233_v60  ;;  %v9854_v38 = vmax.f32 %v9661_v34, 0.0  ;;  %v9564_v2 = vadd.f32 %v9563_v35, %v17129_v39  ;;  %v9937_v31 = vpack.c.bf16 %v9853_v37, %v9846_v41 }
 0x6d6   : > { %v9565_v54 = vpop.f32.mrf.mxu0  ;;  %v9666_v23 = vpop.f32.mrf.mxu1  ;;  %v9665_v19 = vadd.f32 %v9664_v13, %v17151_v51  ;;  %v9872_v17 = vmax.f32 %v9562_v63, 0.0 }
 0x6d7   : > { %v9566_v1 = vadd.f32 %v9565_v54, %v17133_v33  ;;  %10837 = vmatprep.mubr.bf16.mxu0 %v9943_v58  ;;  %v9938_v61 = vpack.c.bf16 %v9854_v38, %v9847_v52  ;;  %13030 = vmatpush1.bf16.msra.mxu1 %v17209_v47  ;;  %v9667_v59 = vadd.f32 %v9666_v23, %v17155_v21  ;;  %v9873_v7 = vmax.f32 %v9564_v2, 0.0 }
 0x6d8   : > { %v9567_v25 = vpop.f32.mrf.mxu0  ;;  %v9668_v44 = vpop.f32.mrf.mxu1  ;;  %10838 = vmatmul.mubr.bf16.gmra.mxu0 %v9942_v40  ;;  %13023 = vmatprep.subr.bf16.mxu1 %v17214_v20  ;;  %v9860_v36 = vmax.f32 %v9665_v19, 0.0 }
 0x6d9   : > { %v9568_v18 = vadd.f32 %v9567_v25, %v17129_v39  ;;  %v9669_v57 = vadd.f32 %v9668_v44, %v17151_v51  ;;  %v9879_v3 = vmax.f32 %v9566_v1, 0.0  ;;  %10940 = vmatprep.mubr.bf16.mxu1 %v9938_v61  ;;  %v9861_v50 = vmax.f32 %v9667_v59, 0.0 }
 0x6da   : > { %v9571_v42 = vpop.f32.mrf.mxu0  ;;  %v9670_v0 = vpop.f32.mrf.mxu1  ;;  %10941 = vmatmul.mubr.bf16.gmra.mxu1 %v9937_v31 }
 0x6db   : > { %v9880_v5 = vmax.f32 %v9568_v18, 0.0  ;;  %v9671_v47 = vadd.f32 %v9670_v0, %v17155_v21  ;;  %13031 = vmatpush1.bf16.msra.mxu1 %v17220_v55  ;;  %v9867_v20 = vmax.f32 %v9669_v57, 0.0  ;;  %v9949_v16 = vpack.c.bf16 %v9879_v3, %v9872_v17 }
 0x6dc   : > { %v9573_v43 = vpop.f32.mrf.mxu0  ;;  %v9674_v9 = vpop.f32.mrf.mxu1  ;;  %13024 = vmatprep.subr.bf16.mxu1 %v17224_v8  ;;  %v9572_v32 = vadd.f32 %v9571_v42, %v17133_v33 }
 0x6dd   : > { %v9950_v14 = vpack.c.bf16 %v9880_v5, %v9873_v7  ;;  %v9868_v24 = vmax.f32 %v9671_v47, 0.0  ;;  %v9574_v22 = vadd.f32 %v9573_v43, %v17129_v39  ;;  %v9944_v8 = vpack.c.bf16 %v9867_v20, %v9860_v36  ;;  %v14381_v20 = vld [vmem:[#allocation16] sm:$0xff] }
 0x6de   : > { %v9575_v29 = vpop.f32.mrf.mxu0  ;;  %v9676_v45 = vpop.f32.mrf.mxu1  ;;  %v9675_v46 = vadd.f32 %v9674_v9, %v17151_v51  ;;  %v9886_v6 = vmax.f32 %v9572_v32, 0.0 }
 0x6df   : > { %v9576_v28 = vadd.f32 %v9575_v29, %v17133_v33  ;;  %10847 = vmatprep.mubr.bf16.mxu0 %v9950_v14  ;;  %v9945_v27 = vpack.c.bf16 %v9868_v24, %v9861_v50  ;;  %13032 = vmatpush1.bf16.msra.mxu1 %v17233_v60  ;;  %v9677_v10 = vadd.f32 %v9676_v45, %v17155_v21  ;;  %v9887_v15 = vmax.f32 %v9574_v22, 0.0 }
 0x6e0   : > { %v9577_v53 = vpop.f32.mrf.mxu0  ;;  %v9678_v55 = vpop.f32.mrf.mxu1  ;;  %10848 = vmatmul.mubr.bf16.gmra.mxu0 %v9949_v16  ;;  %v9874_v23 = vmax.f32 %v9675_v46, 0.0  ;;  %v18180_v16 = vld [vmem:[#allocation50_spill] sm:$0xff] }
 0x6e1   : > { %v9578_v56 = vadd.f32 %v9577_v53, %v17129_v39  ;;  %v9679_v62 = vadd.f32 %v9678_v55, %v17151_v51  ;;  %v9893_v26 = vmax.f32 %v9576_v28, 0.0  ;;  %10950 = vmatprep.mubr.bf16.mxu1 %v9945_v27  ;;  %v9875_v40 = vmax.f32 %v9677_v10, 0.0 }
 0x6e2   : > { %v9581_v12 = vpop.f32.mrf.mxu0  ;;  %v9680_v11 = vpop.f32.mrf.mxu1  ;;  %10951 = vmatmul.mubr.bf16.gmra.mxu1 %v9944_v8  ;;  %v17273_v50 = vrot.slane %v14381_v20, %v18180_v16 }
 0x6e3   : > { %v9894_v4 = vmax.f32 %v9578_v56, 0.0  ;;  %v9681_v34 = vadd.f32 %v9680_v11, %v17155_v21  ;;  %v9881_v58 = vmax.f32 %v9679_v62, 0.0  ;;  %v9956_v37 = vpack.c.bf16 %v9893_v26, %v9886_v6 }
 0x6e4   : > { %v9583_v60 = vpop.f32.mrf.mxu0  ;;  %v9684_v35 = vpop.f32.mrf.mxu1  ;;  %v9582_v1 = vadd.f32 %v9581_v12, %v17133_v33 }
 0x6e5   : > { %v9957_v13 = vpack.c.bf16 %v9894_v4, %v9887_v15  ;;  %v9882_v52 = vmax.f32 %v9681_v34, 0.0  ;;  %v9584_v41 = vadd.f32 %v9583_v60, %v17129_v39  ;;  %v9951_v44 = vpack.c.bf16 %v9881_v58, %v9874_v23 }
 0x6e6   : > { %v9585_v38 = vpop.f32.mrf.mxu0  ;;  %v9686_v54 = vpop.f32.mrf.mxu1  ;;  %v9685_v3 = vadd.f32 %v9684_v35, %v17151_v51  ;;  %v9900_v5 = vmax.f32 %v9582_v1, 0.0 }
 0x6e7   : > { %v9586_v2 = vadd.f32 %v9585_v38, %v17133_v33  ;;  %10857 = vmatprep.mubr.bf16.mxu0 %v9957_v13  ;;  %v9952_v63 = vpack.c.bf16 %v9882_v52, %v9875_v40  ;;  %v9687_v31 = vadd.f32 %v9686_v54, %v17155_v21  ;;  %v9901_v7 = vmax.f32 %v9584_v41, 0.0 }
 0x6e8   : > { %v9587_v61 = vpop.f32.mrf.mxu0  ;;  %v9688_v25 = vpop.f32.mrf.mxu1  ;;  %10858 = vmatmul.mubr.bf16.gmra.mxu0 %v9956_v37  ;;  %v9888_v24 = vmax.f32 %v9685_v3, 0.0 }
 0x6e9   : > { %v9588_v18 = vadd.f32 %v9587_v61, %v17129_v39  ;;  %v9689_v57 = vadd.f32 %v9688_v25, %v17151_v51  ;;  %v9907_v59 = vmax.f32 %v9586_v2, 0.0  ;;  %10960 = vmatprep.mubr.bf16.mxu1 %v9952_v63  ;;  %v9889_v9 = vmax.f32 %v9687_v31, 0.0 }
 0x6ea   : > { %v9690_v42 = vpop.f32.mrf.mxu1  ;;  %v13003_v0 = vpop.f32.mrf.mxu0  ;;  %10961 = vmatmul.mubr.bf16.gmra.mxu1 %v9951_v44 }
 0x6eb   : > { %v9908_v19 = vmax.f32 %v9588_v18, 0.0  ;;  %v9691_v33 = vadd.f32 %v9690_v42, %v17155_v21  ;;  %v9895_v17 = vmax.f32 %v9689_v57, 0.0  ;;  %v9963_v29 = vpack.c.bf16 %v9907_v59, %v9900_v5 }
 0x6ec   : > { %v9694_v47 = vpop.f32.mrf.mxu1  ;;  %v9737_v43 = vpop.f32.mrf.mxu0  ;;  %v9746_v40 = vadd.f32 %v13003_v0, %v17273_v50 }
 0x6ed   : > { %v9964_v14 = vpack.c.bf16 %v9908_v19, %v9901_v7  ;;  %v9896_v39 = vmax.f32 %v9691_v33, 0.0  ;;  %v9738_v28 = vadd.f32 %v9737_v43, %v17273_v50  ;;  %v9958_v32 = vpack.c.bf16 %v9895_v17, %v9888_v24 }
 0x6ee   : > { %v9696_v45 = vpop.f32.mrf.mxu1  ;;  %v13004_v36 = vpop.f32.mrf.mxu0  ;;  %v9695_v10 = vadd.f32 %v9694_v47, %v17151_v51  ;;  %v9820_v54 = vmax.f32 %v9746_v40, 0.0 }
 0x6ef   : > { %v9959_v22 = vpack.c.bf16 %v9896_v39, %v9889_v9  ;;  %10867 = vmatprep.mubr.bf16.mxu0 %v9964_v14  ;;  %v9697_v55 = vadd.f32 %v9696_v45, %v17155_v21  ;;  %v9806_v12 = vmax.f32 %v9738_v28, 0.0  ;;  %v9749_v35 = vadd.f32 %v13004_v36, %v17273_v50 }
 0x6f0   : > { %v9698_v27 = vpop.f32.mrf.mxu1  ;;  %v9740_v53 = vpop.f32.mrf.mxu0  ;;  %10868 = vmatmul.mubr.bf16.gmra.mxu0 %v9963_v29  ;;  %v9902_v58 = vmax.f32 %v9695_v10, 0.0 }
 0x6f1   : > { %v9699_v8 = vadd.f32 %v9698_v27, %v17151_v51  ;;  %v9741_v56 = vadd.f32 %v9740_v53, %v17273_v50  ;;  %10970 = vmatprep.mubr.bf16.mxu1 %v9959_v22  ;;  %11023 = vmatprep.mubr.bf16.mxu0 %v18109_v48  ;;  %v9903_v4 = vmax.f32 %v9697_v55, 0.0 }
 0x6f2   : > { %v9700_v62 = vpop.f32.mrf.mxu1  ;;  %v13007_v26 = vpop.f32.mrf.mxu0  ;;  %10971 = vmatmul.mubr.bf16.gmra.mxu1 %v9958_v32 }
 0x6f3   : > { %v9813_v11 = vmax.f32 %v9741_v56, 0.0  ;;  %v9701_v15 = vadd.f32 %v9700_v62, %v17155_v21  ;;  %v9909_v6 = vmax.f32 %v9699_v8, 0.0  ;;  %v9827_v21 = vmax.f32 %v9749_v35, 0.0 }
 0x6f4   : > { %v9753_v46 = vpop.f32.mrf.mxu0  ;;  %v9762_v0 = vadd.f32 %v13007_v26, %v17273_v50 }
 0x6f5   : > { %v9918_v34 = vpack.c.bf16 %v9813_v11, %v9806_v12  ;;  %v9910_v60 = vmax.f32 %v9701_v15, 0.0  ;;  %v9965_v51 = vpack.c.bf16 %v9909_v6, %v9902_v58  ;;  %v9925_v41 = vpack.c.bf16 %v9827_v21, %v9820_v54 }
 0x6f6   : > { %v13008_v13 = vpop.f32.mrf.mxu0  ;;  %v9754_v63 = vadd.f32 %v9753_v46, %v17273_v50  ;;  %v9848_v47 = vmax.f32 %v9762_v0, 0.0 }
 0x6f7   : > { %v9966_v37 = vpack.c.bf16 %v9910_v60, %v9903_v4  ;;  %v9765_v57 = vadd.f32 %v13008_v13, %v17273_v50 }
 0x6f8   : > { %v9756_v52 = vpop.f32.mrf.mxu0  ;;  %11024 = vmatmul.mubr.bf16.vlgmr.msra.gmra.mxu0 %v9918_v34  ;;  %v9834_v31 = vmax.f32 %v9754_v63, 0.0 }
 0x6f9   : > { %10980 = vmatprep.mubr.bf16.mxu1 %v9966_v37  ;;  %11033 = vmatprep.mubr.bf16.mxu0 %v18109_v48  ;;  %v9757_v2 = vadd.f32 %v9756_v52, %v17273_v50  ;;  %v9855_v33 = vmax.f32 %v9765_v57, 0.0 }
 0x6fa   : > { %v13011_v38 = vpop.f32.mrf.mxu0  ;;  %10981 = vmatmul.mubr.bf16.gmra.mxu1 %v9965_v51 }
 0x6fb   : > { %11083 = vmatprep.mubr.bf16.mxu1 %v18109_v48  ;;  %v9841_v25 = vmax.f32 %v9757_v2, 0.0  ;;  %v9939_v14 = vpack.c.bf16 %v9855_v33, %v9848_v47  ;;  %v9778_v27 = vadd.f32 %v13011_v38, %v17273_v50 }
 0x6fc   : > { %v9769_v23 = vpop.f32.mrf.mxu0 }
 0x6fd   : > { %v9932_v3 = vpack.c.bf16 %v9841_v25, %v9834_v31  ;;  %v9770_v16 = vadd.f32 %v9769_v23, %v17273_v50  ;;  %v9876_v55 = vmax.f32 %v9778_v27, 0.0 }
 0x6fe   : > { %v13012_v1 = vpop.f32.mrf.mxu0 }
 0x6ff   : > { %v9862_v36 = vmax.f32 %v9770_v16, 0.0  ;;  %v9781_v28 = vadd.f32 %v13012_v1, %v17273_v50 }
 0x700   : > { %v9772_v61 = vpop.f32.mrf.mxu0  ;;  %11034 = vmatmul.mubr.bf16.gmra.mxu0 %v9925_v41 }
 0x701   : > { %11043 = vmatprep.mubr.bf16.mxu0 %v18109_v48  ;;  %v9773_v39 = vadd.f32 %v9772_v61, %v17273_v50  ;;  %v9883_v53 = vmax.f32 %v9781_v28, 0.0 }
 0x702   : > { %v13015_v44 = vpop.f32.mrf.mxu0 }
 0x703   : > { %v9794_v20 = vadd.f32 %v13015_v44, %v17273_v50  ;;  %v9869_v29 = vmax.f32 %v9773_v39, 0.0  ;;  %v9953_v8 = vpack.c.bf16 %v9883_v53, %v9876_v55 }
 0x704   : > { %v9785_v18 = vpop.f32.mrf.mxu0 }
 0x705   : > { %v9786_v42 = vadd.f32 %v9785_v18, %v17273_v50  ;;  %v9904_v45 = vmax.f32 %v9794_v20, 0.0  ;;  %v9946_v32 = vpack.c.bf16 %v9869_v29, %v9862_v36 }
 0x706   : > { %v13016_v59 = vpop.f32.mrf.mxu0 }
 0x707   : > { %v9890_v5 = vmax.f32 %v9786_v42, 0.0  ;;  %v9797_v43 = vadd.f32 %v13016_v59, %v17273_v50 }
 0x708   : > { %v9788_v7 = vpop.f32.mrf.mxu0  ;;  %11044 = vmatmul.mubr.bf16.gmra.mxu0 %v9932_v3 }
 0x709   : > { %v9789_v19 = vadd.f32 %v9788_v7, %v17273_v50  ;;  %11053 = vmatprep.mubr.bf16.mxu0 %v18109_v48  ;;  %v9911_v24 = vmax.f32 %v9797_v43, 0.0 }
 0x70b   : > { %v9897_v17 = vmax.f32 %v9789_v19, 0.0  ;;  %v9967_v22 = vpack.c.bf16 %v9911_v24, %v9904_v45 }
 0x70d   : > { %v9960_v9 = vpack.c.bf16 %v9897_v17, %v9890_v5 }
 0x70f   : > { %11084 = vmatmul.mubr.bf16.vlgmr.msra.gmra.mxu1 %v9960_v9 }
 0x710   : > { %11054 = vmatmul.mubr.bf16.gmra.mxu0 %v9939_v14  ;;  %11093 = vmatprep.mubr.bf16.mxu1 %v18109_v48 }
 0x711   : > { %11063 = vmatprep.mubr.bf16.mxu0 %v18109_v48 }
 0x717   : > { %11094 = vmatmul.mubr.bf16.gmra.mxu1 %v9967_v22 }
 0x718   : > { %11064 = vmatmul.mubr.bf16.gmra.mxu0 %v9946_v32 }
 0x719   : > { %11073 = vmatprep.mubr.bf16.mxu0 %v18109_v48 }
 0x720   : > { %11074 = vmatmul.mubr.bf16.gmra.mxu0 %v9953_v8 }
 0x742   : > { %v17303_v56 = vpop.f32.mrf.mxu1 }
 0x744   : > { %v17305_v62 = vpop.f32.mrf.mxu1 }
 0x746   : > { %v17307_v26 = vpop.f32.mrf.mxu1 }
 0x748   : > { %v17309_v10 = vpop.f32.mrf.mxu1 }
 0x74a   : > { %v17311_v12 = vpop.f32.mrf.mxu1 }
 0x74c   : > { %v17313_v11 = vpop.f32.mrf.mxu1 }
 0x74e   : > { %v17315_v50 = vpop.f32.mrf.mxu1 }
 0x750   : > { %v17317_v15 = vpop.f32.mrf.mxu1 }
 0x752   : > { %v17319_v48 = vpop.f32.mrf.mxu1 }
 0x754   : > { %v17321_v46 = vpop.f32.mrf.mxu1 }
 0x756   : > { %v17323_v4 = vpop.f32.mrf.mxu1 }
 0x758   : > { %v17325_v6 = vpop.f32.mrf.mxu1 }
 0x75a   : > { %v17327_v34 = vpop.f32.mrf.mxu1 }
 0x75c   : > { %v17329_v60 = vpop.f32.mrf.mxu1 }
 0x75e   : > { %v17331_v35 = vpop.f32.mrf.mxu1 }
 0x760   : > { %v17333_v13 = vpop.f32.mrf.mxu1 }
 0x762   : > { %v17335_v58 = vpop.f32.mrf.mxu1 }
 0x764   : > { %v17337_v37 = vpop.f32.mrf.mxu1 }
 0x766   : > { %v17339_v40 = vpop.f32.mrf.mxu1 }
 0x768   : > { %v17341_v52 = vpop.f32.mrf.mxu1 }
 0x76a   : > { %v17343_v51 = vpop.f32.mrf.mxu1 }
 0x76c   : > { %v17345_v21 = vpop.f32.mrf.mxu1 }
 0x76d   : > { %18181 = vst [vmem:[#allocation69_spill] sm:$0xff] %v17345_v21 }
 0x76e   : > { %v17347_v38 = vpop.f32.mrf.mxu1 }
 0x76f   : > { %18182 = vst [vmem:[#allocation71_spill] sm:$0xff] %v17347_v38 }
 0x770   : > { %v17349_v54 = vpop.f32.mrf.mxu1 }
 0x771   : > { %18183 = vst [vmem:[#allocation84_spill] sm:$0xff] %v17349_v54 }
 0x772   : > { %v17351_v23 = vpop.f32.mrf.mxu1 }
 0x774   : > { %v17353_v41 = vpop.f32.mrf.mxu1 }
 0x776   : > { %v17355_v2 = vpop.f32.mrf.mxu1 }
 0x778   : > { %v17357_v1 = vpop.f32.mrf.mxu0  ;;  %v17359_v63 = vpop.f32.mrf.mxu1 }
 0x77a   : > { %v17361_v61 = vpop.f32.mrf.mxu0  ;;  %v17363_v25 = vpop.f32.mrf.mxu1 }
 0x77c   : > { %v17365_v44 = vpop.f32.mrf.mxu0  ;;  %v17367_v31 = vpop.f32.mrf.mxu1 }
 0x77d   : > { %18184 = vst [vmem:[#allocation87_spill] sm:$0xff] %v17367_v31 }
 0x77e   : > { %v17369_v18 = vpop.f32.mrf.mxu0  ;;  %v17371_v57 = vpop.f32.mrf.mxu1 }
 0x77f   : > { %18185 = vst [vmem:[#allocation72_spill] sm:$0xff] %v17371_v57 }
 0x780   : > { %v17373_v3 = vpop.f32.mrf.mxu0  ;;  %v17375_v59 = vpop.f32.mrf.mxu1 }
 0x781   : > { %18186 = vst [vmem:[#allocation74_spill] sm:$0xff] %v17375_v59 }
 0x782   : > { %v17377_v42 = vpop.f32.mrf.mxu0  ;;  %v10912_v0 = vpop.f32.mrf.mxu1 }
 0x784   : > { %v17379_v7 = vpop.f32.mrf.mxu0  ;;  %v10914_v19 = vpop.f32.mrf.mxu1 }
 0x786   : > { %v17381_v33 = vpop.f32.mrf.mxu0  ;;  %v17383_v5 = vpop.f32.mrf.mxu1 }
 0x788   : > { %v17385_v17 = vpop.f32.mrf.mxu0  ;;  %v17387_v47 = vpop.f32.mrf.mxu1 }
 0x78a   : > { %v17389_v43 = vpop.f32.mrf.mxu0  ;;  %v17391_v9 = vpop.f32.mrf.mxu1 }
 0x78c   : > { %v17393_v14 = vpop.f32.mrf.mxu0  ;;  %v17395_v39 = vpop.f32.mrf.mxu1 }
 0x78e   : > { %v17397_v20 = vpop.f32.mrf.mxu0  ;;  %v17399_v16 = vpop.f32.mrf.mxu1 }
 0x790   : > { %v17401_v24 = vpop.f32.mrf.mxu0  ;;  %v17403_v29 = vpop.f32.mrf.mxu1 }
 0x792   : > { %v17405_v45 = vpop.f32.mrf.mxu0  ;;  %v17407_v36 = vpop.f32.mrf.mxu1 }
 0x793   : > { %18187 = vst [vmem:[#allocation86_spill] sm:$0xff] %v17405_v45 }
 0x794   : > { %v17409_v22 = vpop.f32.mrf.mxu0  ;;  %v17411_v28 = vpop.f32.mrf.mxu1 }
 0x795   : > { %18188 = vst [vmem:[#allocation89_spill] sm:$0xff] %v17409_v22 }
 0x796   : > { %v17413_v32 = vpop.f32.mrf.mxu0  ;;  %v17415_v27 = vpop.f32.mrf.mxu1 }
 0x797   : > { %18189 = vst [vmem:[#allocation75_spill] sm:$0xff] %v17413_v32 }
 0x798   : > { %v17417_v53 = vpop.f32.mrf.mxu0  ;;  %v17419_v55 = vpop.f32.mrf.mxu1 }
 0x799   : > { %18190 = vst [vmem:[#allocation77_spill] sm:$0xff] %v17417_v53  ;;  %18191 = vst [vmem:[#allocation88_spill] sm:$0xff] %v17419_v55 }
 0x79a   : > { %v17421_v8 = vpop.f32.mrf.mxu0  ;;  %v17423_v54 = vpop.f32.mrf.mxu1 }
 0x79b   : > { %18192 = vst [vmem:[#allocation40_spill] sm:$0xff] %v17421_v8  ;;  %18193 = vst [vmem:[#allocation78_spill] sm:$0xff] %v17423_v54 }
 0x79c   : > { %v17425_v38 = vpop.f32.mrf.mxu0  ;;  %v17427_v21 = vpop.f32.mrf.mxu1 }
 0x79d   : > { %18194 = vst [vmem:[#allocation80_spill] sm:$0xff] %v17425_v38  ;;  %18195 = vst [vmem:[#allocation98_spill] sm:$0xff] %v17427_v21 }
 0x79e   : > { %v17429_v59 = vpop.f32.mrf.mxu0  ;;  %v17431_v22 = vpop.f32.mrf.mxu1 }
 0x79f   : > { %18196 = vst [vmem:[#allocation39_spill] sm:$0xff] %v17429_v59  ;;  %18197 = vst [vmem:[#allocation97_spill] sm:$0xff] %v17431_v22 }
 0x7a0   : > { %v17433_v45 = vpop.f32.mrf.mxu0  ;;  %v17435_v32 = vpop.f32.mrf.mxu1 }
 0x7a1   : > { %18198 = vst [vmem:[#allocation42_spill] sm:$0xff] %v17433_v45  ;;  %18199 = vst [vmem:[#allocation100_spill] sm:$0xff] %v17435_v32  ;;  %v10080_v32 = vld [vmem:[#allocation19] sm:$0x3] }
 0x7a2   : > { %v17437_v57 = vpop.f32.mrf.mxu0  ;;  %v17439_v53 = vpop.f32.mrf.mxu1 }
 0x7a3   : > { %18200 = vst [vmem:[#allocation43_spill] sm:$0xff] %v17437_v57  ;;  %18201 = vst [vmem:[#allocation99_spill] sm:$0xff] %v17439_v53 }
 0x7a4   : > { %v17441_v31 = vpop.f32.mrf.mxu0  ;;  %v17443_v8 = vpop.f32.mrf.mxu1 }
 0x7a5   : > { %18202 = vst [vmem:[#allocation81_spill] sm:$0xff] %v17441_v31  ;;  %18203 = vst [vmem:[#allocation102_spill] sm:$0xff] %v17443_v8  ;;  %v17464_v8 = vrot.slane %v10080_v32, %v18175_v49 }
 0x7a6   : > { %v17445_v54 = vpop.f32.mrf.mxu0  ;;  %v17447_v38 = vpop.f32.mrf.mxu1 }
 0x7a7   : > { %18204 = vst [vmem:[#allocation44_spill] sm:$0xff] %v17445_v54  ;;  %18205 = vst [vmem:[#allocation101_spill] sm:$0xff] %v17447_v38 }
 0x7a8   : > { %v17449_v21 = vpop.f32.mrf.mxu0  ;;  %v17451_v59 = vpop.f32.mrf.mxu1 }
 0x7a9   : > { %18206 = vst [vmem:[#allocation82_spill] sm:$0xff] %v17451_v59  ;;  %v17471_v59 = vrot.slane %v10080_v32, %v18174_v30  ;;  %v10691_v32 = vadd.f32 %v17307_v26, %v17464_v8 }
 0x7aa   : > { %v17453_v22 = vpop.f32.mrf.mxu0  ;;  %v17455_v45 = vpop.f32.mrf.mxu1 }
 0x7ab   : > { %18207 = vst [vmem:[#allocation104_spill] sm:$0xff] %v17453_v22  ;;  %18208 = vst [vmem:[#allocation83_spill] sm:$0xff] %v17455_v45  ;;  %v10689_v49 = vadd.f32 %v17305_v62, %v17471_v59 }
 0x7ac   : > { %v17457_v57 = vpop.f32.mrf.mxu0  ;;  %v17459_v53 = vpop.f32.mrf.mxu1 }
 0x7ad   : > { %18209 = vst [vmem:[#allocation103_spill] sm:$0xff] %v17457_v57  ;;  %18210 = vst [vmem:[#allocation46_spill] sm:$0xff] %v17459_v53  ;;  %v10687_v57 = vadd.f32 %v17303_v56, %v17464_v8 }
 0x7ae   : > { %v17461_v31 = vpop.f32.mrf.mxu0  ;;  %v17466_v54 = vpop.f32.mrf.mxu1 }
 0x7af   : > { %18211 = vst [vmem:[#allocation90_spill] sm:$0xff] %v17461_v31  ;;  %18212 = vst [vmem:[#allocation41_spill] sm:$0xff] %v17466_v54  ;;  %v10800_v54 = vadd.f32 %v17357_v1, %v10687_v57  ;;  %v10697_v57 = vadd.f32 %v17311_v12, %v17464_v8 }
 0x7b0   : > { %v17468_v38 = vpop.f32.mrf.mxu0  ;;  %v17473_v22 = vpop.f32.mrf.mxu1 }
 0x7b1   : > { %18213 = vst [vmem:[#allocation91_spill] sm:$0xff] %v17468_v38  ;;  %18214 = vst [vmem:[#allocation47_spill] sm:$0xff] %v17473_v22  ;;  %v10802_v22 = vadd.f32 %v17361_v61, %v10689_v49 }
 0x7b2   : > { %v17475_v45 = vpop.f32.mrf.mxu0  ;;  %v17479_v53 = vpop.f32.mrf.mxu1 }
 0x7b3   : > { %18215 = vst [vmem:[#allocation94_spill] sm:$0xff] %v17475_v45  ;;  %18216 = vst [vmem:[#allocation92_spill] sm:$0xff] %v17479_v53  ;;  %v10913_v45 = vadd.f32 %v10912_v0, %v10800_v54  ;;  %v10693_v53 = vadd.f32 %v17309_v10, %v17471_v59  ;;  %v10915_v62 = vadd.f32 %v10914_v19, %v10802_v22 }
 0x7b4   : > { %v17481_v31 = vpop.f32.mrf.mxu0  ;;  %v17486_v38 = vpop.f32.mrf.mxu1  ;;  %v10699_v10 = vadd.f32 %v17313_v11, %v17471_v59 }
 0x7b5   : > { %18217 = vst [vmem:[#allocation96_spill] sm:$0xff] %v17481_v31  ;;  %v10804_v31 = vadd.f32 %v17365_v44, %v10691_v32  ;;  %v10806_v26 = vadd.f32 %v17369_v18, %v10693_v53  ;;  %v10810_v44 = vadd.f32 %v17373_v3, %v10697_v57  ;;  %v10701_v18 = vadd.f32 %v17315_v50, %v17464_v8 }
 0x7b6   : > { %v17488_v30 = vpop.f32.mrf.mxu0  ;;  %v17496_v55 = vpop.f32.mrf.mxu1 }
 0x7b7   : > { %18218 = vst [vmem:[#allocation95_spill] sm:$0xff] %v17488_v30  ;;  %v10917_v54 = vadd.f32 %v17383_v5, %v10804_v31  ;;  %v10919_v19 = vadd.f32 %v17387_v47, %v10806_v26  ;;  %v10812_v5 = vadd.f32 %v17377_v42, %v10699_v10  ;;  %v10923_v53 = vadd.f32 %v17391_v9, %v10810_v44 }
 0x7b8   : > { %v11025_v56 = vpop.f32.mrf.mxu0  ;;  %v10703_v47 = vadd.f32 %v17317_v15, %v17471_v59  ;;  %v10814_v32 = vadd.f32 %v17379_v7, %v10701_v18  ;;  %v10707_v9 = vadd.f32 %v17319_v48, %v17464_v8  ;;  %v10709_v7 = vadd.f32 %v17321_v46, %v17471_v59 }
 0x7b9   : > { %v11026_v1 = vadd.f32 %v11025_v56, %v10913_v45  ;;  %v17506_v45 = vpop.f32.mrf.mxu1  ;;  %v10925_v56 = vadd.f32 %v17395_v39, %v10812_v5  ;;  %v10711_v39 = vadd.f32 %v17323_v4, %v17464_v8  ;;  %v10717_v46 = vadd.f32 %v17327_v34, %v17464_v8 }
 0x7ba   : > { %v11027_v30 = vpop.f32.mrf.mxu0  ;;  %v10816_v57 = vadd.f32 %v17381_v33, %v10703_v47  ;;  %v10927_v26 = vadd.f32 %v17399_v16, %v10814_v32  ;;  %v10719_v44 = vadd.f32 %v17329_v60, %v17471_v59  ;;  %v10721_v4 = vadd.f32 %v17331_v35, %v17464_v8  ;;  %v18219_v32 = vld [vmem:[#allocation88_spill] sm:$0xff] }
 0x7bb   : > { %v11104_v61 = vmax.f32 %v11026_v1, 0.0  ;;  %v11028_v0 = vadd.f32 %v11027_v30, %v10915_v62  ;;  %v17518_v62 = vpop.f32.mrf.mxu1  ;;  %v17550_v34 = vadd.f32 %v17335_v58, %v17464_v8  ;;  %v17554_v60 = vadd.f32 %v17337_v37, %v17471_v59 }
 0x7bc   : > { %v11029_v49 = vpop.f32.mrf.mxu0  ;;  %v10929_v48 = vadd.f32 %v17403_v29, %v10816_v57  ;;  %v10822_v29 = vadd.f32 %v17389_v43, %v10709_v7  ;;  %v17558_v35 = vadd.f32 %v17339_v40, %v17464_v8  ;;  %v17567_v5 = vadd.f32 %v17341_v52, %v17471_v59  ;;  %v18225_v7 = vld [vmem:[#allocation78_spill] sm:$0xff] }
 0x7bd   : > { %11168 = vst [vmem:[%s16859_s26 + $0x10] sm:$0xff] %v11104_v61  ;;  %v11105_v12 = vmax.f32 %v11028_v0, 0.0  ;;  %v11030_v22 = vadd.f32 %v11029_v49, %v10917_v54  ;;  %v10820_v0 = vadd.f32 %v17385_v17, %v10707_v9  ;;  %v17532_v10 = vpop.f32.mrf.mxu1  ;;  %v10713_v49 = vadd.f32 %v17325_v6, %v17471_v59 }
 0x7be   : > { %v11031_v31 = vpop.f32.mrf.mxu0  ;;  %v10723_v6 = vadd.f32 %v17333_v13, %v17471_v59  ;;  %v10935_v18 = vadd.f32 %v17411_v28, %v10822_v29  ;;  %v17571_v37 = vadd.f32 %v17343_v51, %v17464_v8  ;;  %v10747_v40 = vadd.f32 %v17351_v23, %v17464_v8 }
 0x7bf   : > { %11169 = vst [vmem:[%s16859_s26 + $0x18] sm:$0xff] %v11105_v12  ;;  %v11106_v11 = vmax.f32 %v11030_v22, 0.0  ;;  %v11032_v3 = vadd.f32 %v11031_v31, %v10919_v19  ;;  %v10933_v19 = vadd.f32 %v17407_v36, %v10820_v0  ;;  %v10824_v36 = vadd.f32 %v17393_v14, %v10711_v39  ;;  %v17562_v31 = vpop.f32.mrf.mxu1 }
 0x7c0   : > { %v11035_v30 = vpop.f32.mrf.mxu0  ;;  %v10749_v14 = vadd.f32 %v17353_v41, %v17471_v59  ;;  %v10751_v47 = vadd.f32 %v17355_v2, %v17464_v8  ;;  %v10753_v51 = vadd.f32 %v17359_v63, %v17471_v59  ;;  %v10757_v23 = vadd.f32 %v17363_v25, %v17464_v8  ;;  %v18220_v2 = vld [vmem:[#allocation87_spill] sm:$0xff]  ;;  %v18221_v63 = vld [vmem:[#allocation72_spill] sm:$0xff] }
 0x7c1   : > { %11170 = vst [vmem:[%s16859_s26 + $0x30] sm:$0xff] %v11106_v11  ;;  %v11107_v50 = vmax.f32 %v11032_v3, 0.0  ;;  %v11036_v42 = vadd.f32 %v11035_v30, %v10923_v53  ;;  %v10826_v53 = vadd.f32 %v17397_v20, %v10713_v49  ;;  %v10937_v11 = vadd.f32 %v17415_v27, %v10824_v36  ;;  %v18222_v25 = vld [vmem:[#allocation104_spill] sm:$0xff]  ;;  %v18227_v49 = vld [vmem:[#allocation103_spill] sm:$0xff] }
 0x7c2   : > { %v11037_v1 = vpop.f32.mrf.mxu0  ;;  %v10860_v41 = vadd.f32 %v17449_v21, %v10747_v40  ;;  %v10830_v20 = vadd.f32 %v17401_v24, %v10717_v46  ;;  %v10759_v9 = vadd.f32 %v18220_v2, %v17471_v59  ;;  %v10862_v57 = vadd.f32 %v18222_v25, %v10749_v14  ;;  %v18224_v24 = vld [vmem:[#allocation86_spill] sm:$0xff] }
 0x7c3   : > { %11171 = vst [vmem:[%s16859_s26 + $0x38] sm:$0xff] %v11107_v50  ;;  %v11108_v15 = vmax.f32 %v11036_v42, 0.0  ;;  %v11038_v54 = vadd.f32 %v11037_v1, %v10925_v56  ;;  %v10939_v27 = vadd.f32 %v18219_v32, %v10826_v53  ;;  %v17589_v56 = vpop.f32.mrf.mxu1  ;;  %v10761_v1 = vadd.f32 %v18221_v63, %v17464_v8 }
 0x7c4   : > { %v11039_v61 = vpop.f32.mrf.mxu0  ;;  %v10943_v39 = vadd.f32 %v18225_v7, %v10830_v20  ;;  %v10864_v46 = vadd.f32 %v18227_v49, %v10751_v47  ;;  %v18233_v20 = vld [vmem:[#allocation91_spill] sm:$0xff]  ;;  %v18237_v7 = vld [vmem:[#allocation40_spill] sm:$0xff] }
 0x7c5   : > { %11172 = vst [vmem:[%s16859_s26 + $0x50] sm:$0xff] %v11108_v15  ;;  %v11109_v33 = vmax.f32 %v11038_v54, 0.0  ;;  %v11040_v16 = vadd.f32 %v11039_v61, %v10927_v26  ;;  %v18223_v26 = vld [vmem:[#allocation92_spill] sm:$0xff]  ;;  %v10832_v54 = vadd.f32 %v18224_v24, %v10719_v44  ;;  %v10870_v32 = vadd.f32 %v18233_v20, %v10757_v23  ;;  %v18247_v20 = vld [vmem:[#allocation82_spill] sm:$0xff] }
 0x7c6   : > { %v11041_v17 = vpop.f32.mrf.mxu0  ;;  %v10973_v21 = vadd.f32 %v18223_v26, %v10860_v41  ;;  %v10977_v14 = vadd.f32 %v17496_v55, %v10864_v46  ;;  %v18239_v49 = vld [vmem:[#allocation96_spill] sm:$0xff] }
 0x7c7   : > { %11173 = vst [vmem:[%s16859_s26 + $0x58] sm:$0xff] %v11109_v33  ;;  %v11110_v12 = vmax.f32 %v11040_v16, 0.0  ;;  %v11042_v22 = vadd.f32 %v11041_v17, %v10929_v48  ;;  %v18226_v33 = vld [vmem:[#allocation74_spill] sm:$0xff]  ;;  %v10975_v17 = vadd.f32 %v17486_v38, %v10862_v57  ;;  %v10983_v23 = vadd.f32 %v17518_v62, %v10870_v32 }
 0x7c8   : > { %v11045_v43 = vpop.f32.mrf.mxu0  ;;  %v10763_v16 = vadd.f32 %v18226_v33, %v17471_v59  ;;  %v10874_v46 = vadd.f32 %v18239_v49, %v10761_v1  ;;  %v18255_v49 = vld [vmem:[#allocation41_spill] sm:$0xff] }
 0x7c9   : > { %11174 = vst [vmem:[%s16859_s26 + $0x70] sm:$0xff] %v11110_v12  ;;  %v11111_v13 = vmax.f32 %v11042_v22, 0.0  ;;  %v11046_v58 = vadd.f32 %v11045_v43, %v10933_v19  ;;  %v18228_v12 = vld [vmem:[#allocation89_spill] sm:$0xff]  ;;  %v18229_v43 = vld [vmem:[#allocation98_spill] sm:$0xff] }
 0x7ca   : > { %v11047_v28 = vpop.f32.mrf.mxu0  ;;  %v10834_v22 = vadd.f32 %v18228_v12, %v10721_v4  ;;  %v10945_v44 = vadd.f32 %v18229_v43, %v10832_v54  ;;  %v10987_v1 = vadd.f32 %v17562_v31, %v10874_v46 }
 0x7cb   : > { %11175 = vst [vmem:[%s16859_s26 + $0x78] sm:$0xff] %v11111_v13  ;;  %v11112_v3 = vmax.f32 %v11046_v58, 0.0  ;;  %v11048_v52 = vadd.f32 %v11047_v28, %v10935_v18  ;;  %v18230_v58 = vld [vmem:[#allocation90_spill] sm:$0xff] }
 0x7cc   : > { %v11049_v30 = vpop.f32.mrf.mxu0  ;;  %v10866_v40 = vadd.f32 %v18230_v58, %v10753_v51 }
 0x7cd   : > { %11176 = vst [vmem:[%s16859_s26 + $0x90] sm:$0xff] %v11112_v3  ;;  %v11113_v50 = vmax.f32 %v11048_v52, 0.0  ;;  %v11050_v42 = vadd.f32 %v11049_v30, %v10937_v11  ;;  %v18231_v11 = vld [vmem:[#allocation75_spill] sm:$0xff]  ;;  %v18232_v52 = vld [vmem:[#allocation97_spill] sm:$0xff] }
 0x7ce   : > { %v11051_v15 = vpop.f32.mrf.mxu0  ;;  %v10836_v3 = vadd.f32 %v18231_v11, %v10723_v6  ;;  %v10947_v47 = vadd.f32 %v18232_v52, %v10834_v22  ;;  %v18235_v6 = vld [vmem:[#allocation100_spill] sm:$0xff]  ;;  %v18245_v52 = vld [vmem:[#allocation69_spill] sm:$0xff] }
 0x7cf   : > { %11177 = vst [vmem:[%s16859_s26 + $0x98] sm:$0xff] %v11113_v50  ;;  %v11114_v61 = vmax.f32 %v11050_v42, 0.0  ;;  %v11052_v0 = vadd.f32 %v11051_v15, %v10939_v27  ;;  %v11085_v48 = vpop.f32.mrf.mxu1  ;;  %v10979_v27 = vadd.f32 %v17506_v45, %v10866_v40  ;;  %v18234_v42 = vld [vmem:[#allocation77_spill] sm:$0xff] }
 0x7d0   : > { %v11086_v29 = vadd.f32 %v11085_v48, %v10973_v21  ;;  %v11055_v19 = vpop.f32.mrf.mxu0  ;;  %v10840_v2 = vadd.f32 %v18234_v42, %v17550_v34  ;;  %v10949_v63 = vadd.f32 %v18235_v6, %v10836_v3  ;;  %v18236_v21 = vld [vmem:[#allocation94_spill] sm:$0xff]  ;;  %v18238_v34 = vld [vmem:[#allocation99_spill] sm:$0xff] }
 0x7d1   : > { %11178 = vst [vmem:[%s16859_s26 + $0xb0] sm:$0xff] %v11114_v61  ;;  %v11115_v36 = vmax.f32 %v11052_v0, 0.0  ;;  %v11056_v18 = vadd.f32 %v11055_v19, %v10943_v39  ;;  %v11087_v13 = vpop.f32.mrf.mxu1  ;;  %v10872_v15 = vadd.f32 %v18236_v21, %v10759_v9  ;;  %v10842_v39 = vadd.f32 %v18237_v7, %v17554_v60  ;;  %v18240_v19 = vld [vmem:[#allocation80_spill] sm:$0xff]  ;;  %v18241_v60 = vld [vmem:[#allocation102_spill] sm:$0xff] }
 0x7d2   : > { %v11128_v28 = vmax.f32 %v11086_v29, 0.0  ;;  %v11088_v53 = vadd.f32 %v11087_v13, %v10975_v17  ;;  %v11057_v38 = vpop.f32.mrf.mxu0  ;;  %v10953_v61 = vadd.f32 %v18238_v34, %v10840_v2  ;;  %v10844_v12 = vadd.f32 %v18240_v19, %v17558_v35  ;;  %v18244_v35 = vld [vmem:[#allocation101_spill] sm:$0xff]  ;;  %v18253_v7 = vld [vmem:[#allocation46_spill] sm:$0xff] }
 0x7d3   : > { %11179 = vst [vmem:[%s16859_s26 + $0xb8] sm:$0xff] %v11115_v36  ;;  %v11116_v4 = vmax.f32 %v11056_v18, 0.0  ;;  %v11058_v41 = vadd.f32 %v11057_v38, %v10945_v44  ;;  %v11089_v30 = vpop.f32.mrf.mxu1  ;;  %v10985_v9 = vadd.f32 %v17532_v10, %v10872_v15  ;;  %v10955_v22 = vadd.f32 %v18241_v60, %v10842_v39  ;;  %v18242_v18 = vld [vmem:[#allocation95_spill] sm:$0xff]  ;;  %v18251_v15 = vld [vmem:[#allocation84_spill] sm:$0xff] }
 0x7d4   : > { %11192 = vst [vmem:[%s16859_s26 + $0x190] sm:$0xff] %v11128_v28  ;;  %v11129_v51 = vmax.f32 %v11088_v53, 0.0  ;;  %v11090_v55 = vadd.f32 %v11089_v30, %v10977_v14  ;;  %v11059_v50 = vpop.f32.mrf.mxu0  ;;  %v10876_v13 = vadd.f32 %v18242_v18, %v10763_v16  ;;  %v18243_v14 = vld [vmem:[#allocation39_spill] sm:$0xff]  ;;  %v10957_v53 = vadd.f32 %v18244_v35, %v10844_v12  ;;  %v18246_v30 = vld [vmem:[#allocation42_spill] sm:$0xff] }
 0x7d5   : > { %11180 = vst [vmem:[%s16859_s26 + $0xd0] sm:$0xff] %v11116_v4  ;;  %v11117_v25 = vmax.f32 %v11058_v41, 0.0  ;;  %v11060_v57 = vadd.f32 %v11059_v50, %v10947_v47  ;;  %v11091_v26 = vpop.f32.mrf.mxu1  ;;  %v10846_v28 = vadd.f32 %v18243_v14, %v17567_v5  ;;  %v10739_v16 = vadd.f32 %v18245_v52, %v17471_v59  ;;  %v18248_v50 = vld [vmem:[#allocation71_spill] sm:$0xff] }
 0x7d6   : > { %11193 = vst [vmem:[%s16859_s26 + $0x198] sm:$0xff] %v11129_v51  ;;  %v11130_v45 = vmax.f32 %v11090_v55, 0.0  ;;  %v11092_v24 = vadd.f32 %v11091_v26, %v10979_v27  ;;  %v11061_v54 = vpop.f32.mrf.mxu0  ;;  %v10989_v31 = vadd.f32 %v17589_v56, %v10876_v13  ;;  %v10850_v5 = vadd.f32 %v18246_v30, %v17571_v37 }
 0x7d7   : > { %11181 = vst [vmem:[%s16859_s26 + $0xd8] sm:$0xff] %v11117_v25  ;;  %v11118_v0 = vmax.f32 %v11060_v57, 0.0  ;;  %v11062_v48 = vadd.f32 %v11061_v54, %v10949_v63  ;;  %v11095_v33 = vpop.f32.mrf.mxu1  ;;  %v10959_v32 = vadd.f32 %v18247_v20, %v10846_v28  ;;  %v10741_v42 = vadd.f32 %v18248_v50, %v17464_v8  ;;  %v18249_v63 = vld [vmem:[#allocation43_spill] sm:$0xff] }
 0x7d8   : > { %11194 = vst [vmem:[%s16859_s26 + $0x1b0] sm:$0xff] %v11130_v45  ;;  %v11131_v62 = vmax.f32 %v11092_v24, 0.0  ;;  %v11096_v17 = vadd.f32 %v11095_v33, %v10983_v23  ;;  %v11065_v29 = vpop.f32.mrf.mxu0  ;;  %v10852_v25 = vadd.f32 %v18249_v63, %v10739_v16  ;;  %v18250_v57 = vld [vmem:[#allocation83_spill] sm:$0xff]  ;;  %v10743_v23 = vadd.f32 %v18251_v15, %v17471_v59  ;;  %v18252_v24 = vld [vmem:[#allocation81_spill] sm:$0xff] }
 0x7d9   : > { %11182 = vst [vmem:[%s16859_s26 + $0xf0] sm:$0xff] %v11118_v0  ;;  %v11119_v43 = vmax.f32 %v11062_v48, 0.0  ;;  %v11066_v44 = vadd.f32 %v11065_v29, %v10953_v61  ;;  %v11097_v36 = vpop.f32.mrf.mxu1  ;;  %v10963_v37 = vadd.f32 %v18250_v57, %v10850_v5  ;;  %v10854_v54 = vadd.f32 %v18252_v24, %v10741_v42  ;;  %v18254_v48 = vld [vmem:[#allocation44_spill] sm:$0xff] }
 0x7da   : > { %11195 = vst [vmem:[%s16859_s26 + $0x1b8] sm:$0xff] %v11131_v62  ;;  %v11132_v10 = vmax.f32 %v11096_v17, 0.0  ;;  %v11098_v58 = vadd.f32 %v11097_v36, %v10985_v9  ;;  %v11067_v40 = vpop.f32.mrf.mxu0  ;;  %v10965_v39 = vadd.f32 %v18253_v7, %v10852_v25  ;;  %v10856_v33 = vadd.f32 %v18254_v48, %v10743_v23  ;;  %v18256_v17 = vld [vmem:[#allocation47_spill] sm:$0xff] }
 0x7db   : > { %11183 = vst [vmem:[%s16859_s26 + $0xf8] sm:$0xff] %v11119_v43  ;;  %v11120_v38 = vmax.f32 %v11066_v44, 0.0  ;;  %v11068_v11 = vadd.f32 %v11067_v40, %v10955_v22  ;;  %v11099_v3 = vpop.f32.mrf.mxu1  ;;  %v10967_v59 = vadd.f32 %v18255_v49, %v10854_v54 }
 0x7dc   : > { %11196 = vst [vmem:[%s16859_s26 + $0x1d0] sm:$0xff] %v11132_v10  ;;  %v11133_v47 = vmax.f32 %v11098_v58, 0.0  ;;  %v11100_v4 = vadd.f32 %v11099_v3, %v10987_v1  ;;  %v11069_v41 = vpop.f32.mrf.mxu0  ;;  %v10969_v29 = vadd.f32 %v18256_v17, %v10856_v33 }
 0x7dd   : > { %11184 = vst [vmem:[%s16859_s26 + $0x110] sm:$0xff] %v11120_v38  ;;  %v11121_v27 = vmax.f32 %v11068_v11, 0.0  ;;  %v11070_v51 = vadd.f32 %v11069_v41, %v10957_v53  ;;  %v11101_v55 = vpop.f32.mrf.mxu1 }
 0x7de   : > { %11197 = vst [vmem:[%s16859_s26 + $0x1d8] sm:$0xff] %v11133_v47  ;;  %v11134_v56 = vmax.f32 %v11100_v4, 0.0  ;;  %v11102_v2 = vadd.f32 %v11101_v55, %v10989_v31  ;;  %v11071_v6 = vpop.f32.mrf.mxu0 }
 0x7df   : > { %11185 = vst [vmem:[%s16859_s26 + $0x118] sm:$0xff] %v11121_v27  ;;  %v11122_v26 = vmax.f32 %v11070_v51, 0.0  ;;  %v11072_v21 = vadd.f32 %v11071_v6, %v10959_v32 }
 0x7e0   : > { %11198 = vst [vmem:[%s16859_s26 + $0x1f0] sm:$0xff] %v11134_v56  ;;  %v11135_v45 = vmax.f32 %v11102_v2, 0.0  ;;  %v11075_v8 = vpop.f32.mrf.mxu0 }
 0x7e1   : > { %11186 = vst [vmem:[%s16859_s26 + $0x130] sm:$0xff] %v11122_v26  ;;  %v11123_v34 = vmax.f32 %v11072_v21, 0.0  ;;  %v11076_v61 = vadd.f32 %v11075_v8, %v10963_v37 }
 0x7e2   : > { %11199 = vst [vmem:[%s16859_s26 + $0x1f8] sm:$0xff] %v11135_v45  ;;  %v11077_v0 = vpop.f32.mrf.mxu0 }
 0x7e3   : > { %11187 = vst [vmem:[%s16859_s26 + $0x138] sm:$0xff] %v11123_v34  ;;  %v11124_v46 = vmax.f32 %v11076_v61, 0.0  ;;  %v11078_v9 = vadd.f32 %v11077_v0, %v10965_v39 }
 0x7e4   : > { %v11079_v62 = vpop.f32.mrf.mxu0 }
 0x7e5   : > { %11188 = vst [vmem:[%s16859_s26 + $0x150] sm:$0xff] %v11124_v46  ;;  %v11125_v19 = vmax.f32 %v11078_v9, 0.0  ;;  %v11080_v12 = vadd.f32 %v11079_v62, %v10967_v59 }
 0x7e6   : > { %v11081_v60 = vpop.f32.mrf.mxu0 }
 0x7e7   : > { %11189 = vst [vmem:[%s16859_s26 + $0x158] sm:$0xff] %v11125_v19  ;;  %v11126_v22 = vmax.f32 %v11080_v12, 0.0  ;;  %v11082_v43 = vadd.f32 %v11081_v60, %v10969_v29 }
 0x7e9   : > { %11190 = vst [vmem:[%s16859_s26 + $0x170] sm:$0xff] %v11126_v22  ;;  %v11127_v44 = vmax.f32 %v11082_v43, 0.0 }
 0x7eb   : > { %11191 = vst [vmem:[%s16859_s26 + $0x178] sm:$0xff] %v11127_v44 }
 0x7ec PF: > { %s30_s25 = sadd.s32 1, %s14728_s25  }
 0x7ed   : > { %p27_p6 = scmp.ge.s32.totalorder %s30_s25, 4  }
 0x7ef   :  { %29 = sbr.rel (!%p27_p6) target bundleno = 7 (0x7), region = 151 }
 0x7f4   :  { %11224 = vsyncpa [#allocation3], 1 }
 0x7f5   :  { %11226 = vsyncpa [#allocation3 + $0x1], 1 }
 0x7f6   :  { %11227 = vsyncpa [#allocation5], 1 }
 0x7f7   :  { %11228 = vsyncpa [#allocation8], 1 }
 0x7f8   :  { %11229 = vsyncpa [#allocation11], 1 }
 0x7f9   :  { %11230 = vsyncpa [#allocation14], 1 }
 0x7fa   :  { %11231 = vsyncpa [#allocation17], 1 }
 0x7fb   :  { %11232 = vsyncpa [#allocation20], 1 }

</bundles_post_ra>
